<compile_context>
chip_gen: v7x
topology: tpu7x:2x2x1
jax: 0.10.0
libtpu: 0.0.40
codegen_flags: <defaults>
</compile_context>

<pallas_src>
import jax
import jax.numpy as jnp
from jax import lax
from jax.experimental import pallas as pl
from jax.experimental.pallas import tpu as pltpu

LATENT_DIM = 2
HIDDEN = 400
IN_DIM = 784
HEAD_PAD = 128            # lane-dense width of the fused [mu | log_sigma] output
LORA_R = 4
LORA_ALPHA = 1.0
LORA_SCALE = LORA_ALPHA / LORA_R
BN_EPS = 1e-5

# VMEM budgeting (bytes): weights are resident once per call, activations scale
# with B.  Used to derive vmem_limit_bytes in the wrapper (review item 6).
_WEIGHT_VMEM_BYTES = (
    IN_DIM * HIDDEN * 4          # w1t  (784, 400) f32
    + HIDDEN * HEAD_PAD * 4      # wht  (400, 128) f32 (lane-padded heads)
    + 8 * 512 * 4                # wd1t (2, 400) f32, (8,128)-padded tile
    + HIDDEN * IN_DIM * 2        # wd2t (400, 784) bf16
    + 8 * 896 * 4                # slab (8, 784) f32, lane-padded tile
)
_PER_SAMPLE_VMEM_BYTES = 64 * 1024   # x, xrec, pre-sigmoid, h, h2, heads, eps + slack
_VMEM_BASE_BYTES = 4 << 20           # compiler scratch / alignment headroom


def _bn_relu(h, gamma, beta):
    """Training-mode BatchNorm1d (full-batch stats, biased variance) + ReLU."""
    m = jnp.mean(h, axis=0, keepdims=True)
    c = h - m
    v = jnp.mean(c * c, axis=0, keepdims=True)
    return jnp.maximum(c * lax.rsqrt(v + BN_EPS) * gamma + beta, 0.0)


def lora_vae_kernel(
    # inputs
    x_ref,      # (B, 784)   f32
    eps_ref,    # (B, 2)     f32  reparameterization noise
    w1t_ref,    # (784, 400) f32  encoder weight, LoRA-merged, pre-transposed
    wht_ref,    # (400, 128) f32  fused [mu | log_sigma | 0...] heads, merged, pre-T
    wd1t_ref,   # (2, 400)   f32  decoder linear1, merged, pre-transposed
    wd2t_ref,   # (400, 784) bf16 decoder linear2, merged, pre-transposed
    slab_ref,   # (8, 784)   f32  rows: b1,g1,be1,b_d1,g2,be2,b_d2,[b_mu|b_ls|0]
    # outputs
    xrec_ref,   # (B, 784)   f32
    heads_ref,  # (B, 128)   f32  cols 0:2 = mu, 2:4 = log_sigma, rest exactly 0
):
    x = x_ref[...]

    # ---- encoder: Linear(784->400) + BN + ReLU (f32, MXU) ----
    h = (jnp.dot(x, w1t_ref[...], preferred_element_type=jnp.float32)
         + slab_ref[0:1, :HIDDEN])
    h = _bn_relu(h, slab_ref[1:2, :HIDDEN], slab_ref[2:3, :HIDDEN])

    # ---- fused lane-dense heads: Linear(400->128)  (cols 4..127 are zero) ----
    heads = (jnp.dot(h, wht_ref[...], preferred_element_type=jnp.float32)
             + slab_ref[7:8, :HEAD_PAD])
    heads_ref[...] = heads            # full-width unmasked store (review item 1)

    # ---- reparameterize + decoder Linear(2->400) as two VPU broadcast-FMAs ---
    # z = mu + eps * exp(0.5 * log_sigma); only columns 0/1 feed the decoder,
    # so compute them as per-column scalars and lane-broadcast (review item 2).
    z0 = heads[:, 0:1] + eps_ref[:, 0:1] * jnp.exp(0.5 * heads[:, 2:3])
    z1 = heads[:, 1:2] + eps_ref[:, 1:2] * jnp.exp(0.5 * heads[:, 3:4])
    h2 = (z0 * wd1t_ref[0:1, :]
          + z1 * wd1t_ref[1:2, :]
          + slab_ref[3:4, :HIDDEN])
    h2 = _bn_relu(h2, slab_ref[4:5, :HIDDEN], slab_ref[5:6, :HIDDEN])

    # ---- decoder Linear(400->784): bf16 MXU matmul, f32 accumulate, Sigmoid --
    out = (jnp.dot(h2.astype(wd2t_ref.dtype), wd2t_ref[...],
                   preferred_element_type=jnp.float32)
           + slab_ref[6:7, :])
    xrec_ref[...] = jax.nn.sigmoid(out)


def prepare_params(raw_params):
    """One-time (outside the kernel) LoRA merge + transpose + pack + cast.

    Amortized over all forward calls; the kernel consumes only this tuple.
    """
    (w1, b1, a1, bb1, g1, be1,
     wmu, bmu, amu, bbmu,
     wls, bls, als, bbls,
     wd1, bd1, ad1, bbd1, g2, be2,
     wd2, bd2, ad2, bbd2) = raw_params

    def merge(w, a, bmat):
        # W_eff = W + (alpha/r) * (B @ A) -- algebraically identical to the
        # separate low-rank path within f32 rounding.
        return w + LORA_SCALE * (bmat @ a)

    w1t = merge(w1, a1, bb1).T                                        # (784, 400)
    wht = jnp.concatenate(
        [merge(wmu, amu, bbmu), merge(wls, als, bbls)], axis=0).T     # (400, 4)
    wht_pad = jnp.pad(wht, ((0, 0), (0, HEAD_PAD - 2 * LATENT_DIM)))  # (400, 128)
    wd1t = merge(wd1, ad1, bbd1).T                                    # (2, 400)
    # bf16 weight (review item 4, safe variant: decoder linear2 only).
    wd2t = merge(wd2, ad2, bbd2).T.astype(jnp.bfloat16)               # (400, 784)

    def pad_lanes(v):
        return jnp.pad(v, ((0, 0), (0, IN_DIM - v.shape[1])))

    slab = jnp.concatenate(
        [pad_lanes(b1), pad_lanes(g1), pad_lanes(be1),
         pad_lanes(bd1), pad_lanes(g2), pad_lanes(be2),
         bd2, pad_lanes(jnp.concatenate([bmu, bls], axis=1))],
        axis=0).astype(jnp.float32)                                   # (8, 784)

    return (w1t, wht_pad, wd1t, wd2t, slab)


@jax.jit
def lora_vae_forward(x_img, eps, prepared):
    """x_img: (B, 1, 28, 28) f32, eps: (B, 2) f32.

    Returns (x_recon (B, 784), mu (B, 2), log_sigma (B, 2)).
    """
    B = x_img.shape[0]
    x = x_img.reshape(B, -1).astype(jnp.float32)   # glue: x.view(B, -1)

    inputs = (x, eps) + tuple(prepared)
    vmem = pl.BlockSpec(memory_space=pltpu.MemorySpace.VMEM)

    out_shapes = (
        jax.ShapeDtypeStruct((B, IN_DIM), jnp.float32),
        jax.ShapeDtypeStruct((B, HEAD_PAD), jnp.float32),
    )

    # Derive the VMEM limit from B and clamp below v7x's 64 MiB physical VMEM.
    # This caps the monolithic batch at O(1k); see the batch-grid TODO above.
    vmem_bytes = _WEIGHT_VMEM_BYTES + B * _PER_SAMPLE_VMEM_BYTES + _VMEM_BASE_BYTES
    vmem_bytes = int(min(max(vmem_bytes, 8 << 20), 56 << 20))

    xrec, heads = pl.pallas_call(
        lora_vae_kernel,
        out_shape=out_shapes,
        in_specs=[vmem] * len(inputs),
        out_specs=(vmem, vmem),
        compiler_params=pltpu.CompilerParams(vmem_limit_bytes=vmem_bytes),
    )(*inputs)

    return xrec, heads[:, :LATENT_DIM], heads[:, LATENT_DIM:2 * LATENT_DIM]


def make_params(key):
    """Deterministic parameter construction (PyTorch nn.Linear conventions)."""
    keys = jax.random.split(key, 32)
    k = iter(keys)

    def lin(kw, kb, out_d, in_d):
        bound = 1.0 / jnp.sqrt(in_d)
        w = jax.random.uniform(kw, (out_d, in_d), jnp.float32, -bound, bound)
        b = jax.random.uniform(kb, (1, out_d), jnp.float32, -bound, bound)
        return w, b

    def lora_ab(ka, kb_, out_d, in_d):
        # LoRA A small random, B nonzero so the low-rank path is exercised.
        a = jax.random.normal(ka, (LORA_R, in_d), jnp.float32) * 0.02
        bmat = jax.random.normal(kb_, (out_d, LORA_R), jnp.float32) * 0.02
        return a, bmat

    # encoder linear 784 -> 400
    w1, b1 = lin(next(k), next(k), HIDDEN, IN_DIM)
    a1, bb1 = lora_ab(next(k), next(k), HIDDEN, IN_DIM)
    g1 = jnp.ones((1, HIDDEN), jnp.float32)
    be1 = jnp.zeros((1, HIDDEN), jnp.float32)

    # enc_mu / enc_log_sigma 400 -> 2
    wmu, bmu = lin(next(k), next(k), LATENT_DIM, HIDDEN)
    amu, bbmu = lora_ab(next(k), next(k), LATENT_DIM, HIDDEN)
    wls, bls = lin(next(k), next(k), LATENT_DIM, HIDDEN)
    als, bbls = lora_ab(next(k), next(k), LATENT_DIM, HIDDEN)

    # decoder linear1 2 -> 400
    wd1, bd1 = lin(next(k), next(k), HIDDEN, LATENT_DIM)
    ad1, bbd1 = lora_ab(next(k), next(k), HIDDEN, LATENT_DIM)
    g2 = jnp.ones((1, HIDDEN), jnp.float32)
    be2 = jnp.zeros((1, HIDDEN), jnp.float32)

    # decoder linear2 400 -> 784
    wd2, bd2 = lin(next(k), next(k), IN_DIM, HIDDEN)
    ad2, bbd2 = lora_ab(next(k), next(k), IN_DIM, HIDDEN)

    return (
        w1, b1, a1, bb1, g1, be1,
        wmu, bmu, amu, bbmu,
        wls, bls, als, bbls,
        wd1, bd1, ad1, bbd1, g2, be2,
        wd2, bd2, ad2, bbd2,
    )


def reference_forward(x_img, eps, params):
    """Pure-JAX f32 reference (explicit LoRA path, un-merged) for verification."""
    (w1, b1, a1, bb1, g1, be1,
     wmu, bmu, amu, bbmu,
     wls, bls, als, bbls,
     wd1, bd1, ad1, bbd1, g2, be2,
     wd2, bd2, ad2, bbd2) = params

    def lora(x, w, b, a, bmat):
        return x @ w.T + b + LORA_SCALE * ((x @ a.T) @ bmat.T)

    def bn_relu(h, g, be):
        m = h.mean(0, keepdims=True)
        v = ((h - m) ** 2).mean(0, keepdims=True)
        return jnp.maximum((h - m) / jnp.sqrt(v + BN_EPS) * g + be, 0.0)

    x = x_img.reshape(x_img.shape[0], -1)
    h = bn_relu(lora(x, w1, b1, a1, bb1), g1, be1)
    mu = lora(h, wmu, bmu, amu, bbmu)
    ls = lora(h, wls, bls, als, bbls)
    z = mu + eps * jnp.exp(0.5 * ls)
    h2 = bn_relu(lora(z, wd1, bd1, ad1, bbd1), g2, be2)
    xr = jax.nn.sigmoid(lora(h2, wd2, bd2, ad2, bbd2))
    return xr, mu, ls


if __name__ == "__main__":
    key = jax.random.PRNGKey(0)
    k_x, k_eps, k_p = jax.random.split(key, 3)

    # Review item 5: amortize fixed weight-DMA/launch cost -- B at the MXU row
    # width (>=128; use >=256 on v6e/v7x for best utilization).  Whole batch in
    # one call so BatchNorm sees full-batch statistics.
    B = 128
    x_img = jax.random.uniform(k_x, (B, 1, 28, 28), jnp.float32)   # MNIST-like
    eps = jax.random.normal(k_eps, (B, LATENT_DIM), jnp.float32)   # reparam noise
    raw_params = make_params(k_p)

    # One-time LoRA merge / transpose / pack / bf16 cast (amortized).
    prepared = prepare_params(raw_params)

    x_recon, mu, log_sigma = jax.block_until_ready(
        lora_vae_forward(x_img, eps, prepared)
    )

    # sanity check against the pure-JAX, un-merged f32 reference
    xr_ref, mu_ref, ls_ref = reference_forward(x_img, eps, raw_params)
    assert x_recon.shape == (B, IN_DIM)
    assert mu.shape == (B, LATENT_DIM) and log_sigma.shape == (B, LATENT_DIM)
    # latent path is fully f32 -> tight parity
    assert jnp.allclose(mu, mu_ref, atol=1e-4, rtol=1e-4)
    assert jnp.allclose(log_sigma, ls_ref, atol=1e-4, rtol=1e-4)
    # decoder linear2 runs with bf16 weights -> relaxed (still tight post-sigmoid)
    assert jnp.allclose(x_recon, xr_ref, atol=2e-2, rtol=2e-2)

    print("KERNEL_OK")
</pallas_src>

<mosaic_0001>
module attributes {stable_mosaic.version = 11 : i64} {
  func.func @lora_vae_kernel(%arg0: memref<128x784xf32, #tpu.memory_space<vmem>>, %arg1: memref<128x2xf32, #tpu.memory_space<vmem>>, %arg2: memref<784x400xf32, #tpu.memory_space<vmem>>, %arg3: memref<400x128xf32, #tpu.memory_space<vmem>>, %arg4: memref<2x400xf32, #tpu.memory_space<vmem>>, %arg5: memref<400x784xbf16, #tpu.memory_space<vmem>>, %arg6: memref<8x784xf32, #tpu.memory_space<vmem>>, %arg7: memref<128x784xf32, #tpu.memory_space<vmem>>, %arg8: memref<128x128xf32, #tpu.memory_space<vmem>>) attributes {dimension_semantics = [], scalar_prefetch = 0 : i64, scratch_operands = 0 : i64, tpu.core_type = #tpu.core_type<tc>} {
    %c0 = arith.constant 0 : index
    %c0_0 = arith.constant 0 : index
    %0 = vector.load %arg0[%c0, %c0_0] : memref<128x784xf32, #tpu.memory_space<vmem>>, vector<128x784xf32>
    %c0_1 = arith.constant 0 : index
    %c0_2 = arith.constant 0 : index
    %1 = vector.load %arg2[%c0_1, %c0_2] : memref<784x400xf32, #tpu.memory_space<vmem>>, vector<784x400xf32>
    %cst = arith.constant dense<0.000000e+00> : vector<128x400xf32>
    %2 = tpu.matmul %0, %1, %cst {dimension_numbers = #tpu.dot_dimension_numbers<[1], [0], [0], [1], [0, 0, 1, 1], [], []>} : vector<128x784xf32>, vector<784x400xf32>, vector<128x400xf32> -> vector<128x400xf32>
    %c0_3 = arith.constant 0 : index
    %c0_4 = arith.constant 0 : index
    %3 = vector.load %arg6[%c0_3, %c0_4] : memref<8x784xf32, #tpu.memory_space<vmem>>, vector<1x400xf32>
    %4 = vector.broadcast %3 : vector<1x400xf32> to vector<128x400xf32>
    %5 = arith.addf %2, %4 : vector<128x400xf32>
    %c1 = arith.constant 1 : index
    %c0_5 = arith.constant 0 : index
    %6 = vector.load %arg6[%c1, %c0_5] : memref<8x784xf32, #tpu.memory_space<vmem>>, vector<1x400xf32>
    %c2 = arith.constant 2 : index
    %c0_6 = arith.constant 0 : index
    %7 = vector.load %arg6[%c2, %c0_6] : memref<8x784xf32, #tpu.memory_space<vmem>>, vector<1x400xf32>
    %cst_7 = arith.constant dense<0.000000e+00> : vector<400xf32>
    %8 = vector.multi_reduction <add>, %5, %cst_7 [0] : vector<128x400xf32> to vector<400xf32>
    %9 = vector.shape_cast %8 : vector<400xf32> to vector<1x400xf32>
    %cst_8 = arith.constant 1.280000e+02 : f32
    %10 = vector.broadcast %cst_8 : f32 to vector<1x400xf32>
    %11 = arith.divf %9, %10 : vector<1x400xf32>
    %12 = vector.broadcast %11 : vector<1x400xf32> to vector<128x400xf32>
    %13 = arith.subf %5, %12 : vector<128x400xf32>
    %14 = arith.mulf %13, %13 : vector<128x400xf32>
    %cst_9 = arith.constant dense<0.000000e+00> : vector<400xf32>
    %15 = vector.multi_reduction <add>, %14, %cst_9 [0] : vector<128x400xf32> to vector<400xf32>
    %16 = vector.shape_cast %15 : vector<400xf32> to vector<1x400xf32>
    %cst_10 = arith.constant 1.280000e+02 : f32
    %17 = vector.broadcast %cst_10 : f32 to vector<1x400xf32>
    %18 = arith.divf %16, %17 : vector<1x400xf32>
    %cst_11 = arith.constant 9.99999974E-6 : f32
    %19 = vector.broadcast %cst_11 : f32 to vector<1x400xf32>
    %20 = arith.addf %18, %19 : vector<1x400xf32>
    %21 = math.rsqrt %20 : vector<1x400xf32>
    %22 = vector.broadcast %21 : vector<1x400xf32> to vector<128x400xf32>
    %23 = arith.mulf %13, %22 : vector<128x400xf32>
    %24 = vector.broadcast %6 : vector<1x400xf32> to vector<128x400xf32>
    %25 = arith.mulf %23, %24 : vector<128x400xf32>
    %26 = vector.broadcast %7 : vector<1x400xf32> to vector<128x400xf32>
    %27 = arith.addf %25, %26 : vector<128x400xf32>
    %cst_12 = arith.constant 0.000000e+00 : f32
    %28 = vector.broadcast %cst_12 : f32 to vector<128x400xf32>
    %29 = arith.maximumf %27, %28 : vector<128x400xf32>
    %c0_13 = arith.constant 0 : index
    %c0_14 = arith.constant 0 : index
    %30 = vector.load %arg3[%c0_13, %c0_14] : memref<400x128xf32, #tpu.memory_space<vmem>>, vector<400x128xf32>
    %cst_15 = arith.constant dense<0.000000e+00> : vector<128x128xf32>
    %31 = tpu.matmul %29, %30, %cst_15 {dimension_numbers = #tpu.dot_dimension_numbers<[1], [0], [0], [1], [0, 0, 1, 1], [], []>} : vector<128x400xf32>, vector<400x128xf32>, vector<128x128xf32> -> vector<128x128xf32>
    %c7 = arith.constant 7 : index
    %c0_16 = arith.constant 0 : index
    %32 = vector.load %arg6[%c7, %c0_16] : memref<8x784xf32, #tpu.memory_space<vmem>>, vector<1x128xf32>
    %33 = vector.broadcast %32 : vector<1x128xf32> to vector<128x128xf32>
    %34 = arith.addf %31, %33 : vector<128x128xf32>
    %c0_17 = arith.constant 0 : index
    %c0_18 = arith.constant 0 : index
    %35 = vector.load %arg8[%c0_17, %c0_18] : memref<128x128xf32, #tpu.memory_space<vmem>>, vector<128x128xf32>
    tpu.vector_store %arg8[%c0_17, %c0_18], %34 {strides = array<i32>} : memref<128x128xf32, #tpu.memory_space<vmem>>, vector<128x128xf32>,
    %36 = vector.extract_strided_slice %34 {offsets = [0, 0], sizes = [128, 1], strides = [1, 1]} : vector<128x128xf32> to vector<128x1xf32>
    %c0_19 = arith.constant 0 : index
    %c0_20 = arith.constant 0 : index
    %37 = vector.load %arg1[%c0_19, %c0_20] : memref<128x2xf32, #tpu.memory_space<vmem>>, vector<128x1xf32>
    %38 = vector.extract_strided_slice %34 {offsets = [0, 2], sizes = [128, 1], strides = [1, 1]} : vector<128x128xf32> to vector<128x1xf32>
    %cst_21 = arith.constant 5.000000e-01 : f32
    %39 = vector.broadcast %cst_21 : f32 to vector<128x1xf32>
    %40 = arith.mulf %39, %38 : vector<128x1xf32>
    %41 = math.exp %40 : vector<128x1xf32>
    %42 = arith.mulf %37, %41 : vector<128x1xf32>
    %43 = arith.addf %36, %42 : vector<128x1xf32>
    %44 = vector.extract_strided_slice %34 {offsets = [0, 1], sizes = [128, 1], strides = [1, 1]} : vector<128x128xf32> to vector<128x1xf32>
    %c0_22 = arith.constant 0 : index
    %c1_23 = arith.constant 1 : index
    %45 = vector.load %arg1[%c0_22, %c1_23] : memref<128x2xf32, #tpu.memory_space<vmem>>, vector<128x1xf32>
    %46 = vector.extract_strided_slice %34 {offsets = [0, 3], sizes = [128, 1], strides = [1, 1]} : vector<128x128xf32> to vector<128x1xf32>
    %cst_24 = arith.constant 5.000000e-01 : f32
    %47 = vector.broadcast %cst_24 : f32 to vector<128x1xf32>
    %48 = arith.mulf %47, %46 : vector<128x1xf32>
    %49 = math.exp %48 : vector<128x1xf32>
    %50 = arith.mulf %45, %49 : vector<128x1xf32>
    %51 = arith.addf %44, %50 : vector<128x1xf32>
    %c0_25 = arith.constant 0 : index
    %c0_26 = arith.constant 0 : index
    %52 = vector.load %arg4[%c0_25, %c0_26] : memref<2x400xf32, #tpu.memory_space<vmem>>, vector<1x400xf32>
    %53 = vector.broadcast %43 : vector<128x1xf32> to vector<128x400xf32>
    %54 = vector.broadcast %52 : vector<1x400xf32> to vector<128x400xf32>
    %55 = arith.mulf %53, %54 : vector<128x400xf32>
    %c1_27 = arith.constant 1 : index
    %c0_28 = arith.constant 0 : index
    %56 = vector.load %arg4[%c1_27, %c0_28] : memref<2x400xf32, #tpu.memory_space<vmem>>, vector<1x400xf32>
    %57 = vector.broadcast %51 : vector<128x1xf32> to vector<128x400xf32>
    %58 = vector.broadcast %56 : vector<1x400xf32> to vector<128x400xf32>
    %59 = arith.mulf %57, %58 : vector<128x400xf32>
    %60 = arith.addf %55, %59 : vector<128x400xf32>
    %c3 = arith.constant 3 : index
    %c0_29 = arith.constant 0 : index
    %61 = vector.load %arg6[%c3, %c0_29] : memref<8x784xf32, #tpu.memory_space<vmem>>, vector<1x400xf32>
    %62 = vector.broadcast %61 : vector<1x400xf32> to vector<128x400xf32>
    %63 = arith.addf %60, %62 : vector<128x400xf32>
    %c4 = arith.constant 4 : index
    %c0_30 = arith.constant 0 : index
    %64 = vector.load %arg6[%c4, %c0_30] : memref<8x784xf32, #tpu.memory_space<vmem>>, vector<1x400xf32>
    %c5 = arith.constant 5 : index
    %c0_31 = arith.constant 0 : index
    %65 = vector.load %arg6[%c5, %c0_31] : memref<8x784xf32, #tpu.memory_space<vmem>>, vector<1x400xf32>
    %cst_32 = arith.constant dense<0.000000e+00> : vector<400xf32>
    %66 = vector.multi_reduction <add>, %63, %cst_32 [0] : vector<128x400xf32> to vector<400xf32>
    %67 = vector.shape_cast %66 : vector<400xf32> to vector<1x400xf32>
    %cst_33 = arith.constant 1.280000e+02 : f32
    %68 = vector.broadcast %cst_33 : f32 to vector<1x400xf32>
    %69 = arith.divf %67, %68 : vector<1x400xf32>
    %70 = vector.broadcast %69 : vector<1x400xf32> to vector<128x400xf32>
    %71 = arith.subf %63, %70 : vector<128x400xf32>
    %72 = arith.mulf %71, %71 : vector<128x400xf32>
    %cst_34 = arith.constant dense<0.000000e+00> : vector<400xf32>
    %73 = vector.multi_reduction <add>, %72, %cst_34 [0] : vector<128x400xf32> to vector<400xf32>
    %74 = vector.shape_cast %73 : vector<400xf32> to vector<1x400xf32>
    %cst_35 = arith.constant 1.280000e+02 : f32
    %75 = vector.broadcast %cst_35 : f32 to vector<1x400xf32>
    %76 = arith.divf %74, %75 : vector<1x400xf32>
    %cst_36 = arith.constant 9.99999974E-6 : f32
    %77 = vector.broadcast %cst_36 : f32 to vector<1x400xf32>
    %78 = arith.addf %76, %77 : vector<1x400xf32>
    %79 = math.rsqrt %78 : vector<1x400xf32>
    %80 = vector.broadcast %79 : vector<1x400xf32> to vector<128x400xf32>
    %81 = arith.mulf %71, %80 : vector<128x400xf32>
    %82 = vector.broadcast %64 : vector<1x400xf32> to vector<128x400xf32>
    %83 = arith.mulf %81, %82 : vector<128x400xf32>
    %84 = vector.broadcast %65 : vector<1x400xf32> to vector<128x400xf32>
    %85 = arith.addf %83, %84 : vector<128x400xf32>
    %cst_37 = arith.constant 0.000000e+00 : f32
    %86 = vector.broadcast %cst_37 : f32 to vector<128x400xf32>
    %87 = arith.maximumf %85, %86 : vector<128x400xf32>
    %88 = arith.truncf %87 : vector<128x400xf32> to vector<128x400xbf16>
    %c0_38 = arith.constant 0 : index
    %c0_39 = arith.constant 0 : index
    %89 = vector.load %arg5[%c0_38, %c0_39] : memref<400x784xbf16, #tpu.memory_space<vmem>>, vector<400x784xbf16>
    %cst_40 = arith.constant dense<0.000000e+00> : vector<128x784xf32>
    %90 = tpu.matmul %88, %89, %cst_40 {dimension_numbers = #tpu.dot_dimension_numbers<[1], [0], [0], [1], [0, 0, 1, 1], [], []>} : vector<128x400xbf16>, vector<400x784xbf16>, vector<128x784xf32> -> vector<128x784xf32>
    %c6 = arith.constant 6 : index
    %c0_41 = arith.constant 0 : index
    %91 = vector.load %arg6[%c6, %c0_41] : memref<8x784xf32, #tpu.memory_space<vmem>>, vector<1x784xf32>
    %92 = vector.broadcast %91 : vector<1x784xf32> to vector<128x784xf32>
    %93 = arith.addf %90, %92 : vector<128x784xf32>
    %94 = arith.negf %93 : vector<128x784xf32>
    %95 = math.exp %94 : vector<128x784xf32>
    %cst_42 = arith.constant 1.000000e+00 : f32
    %96 = vector.broadcast %cst_42 : f32 to vector<128x784xf32>
    %97 = arith.addf %96, %95 : vector<128x784xf32>
    %98 = arith.divf %96, %97 : vector<128x784xf32>
    %c0_43 = arith.constant 0 : index
    %c0_44 = arith.constant 0 : index
    %99 = vector.load %arg7[%c0_43, %c0_44] : memref<128x784xf32, #tpu.memory_space<vmem>>, vector<128x784xf32>
    tpu.vector_store %arg7[%c0_43, %c0_44], %98 {strides = array<i32>} : memref<128x784xf32, #tpu.memory_space<vmem>>, vector<128x784xf32>,
    return
  }
}

</mosaic_0001>

<bundles_post_ra>
// kernel: lora_vae_forward.1
= control target key start
LH: loop header
LB: loop body
LE: loop exit
PB: predicated region body
PF: predicated region fallthrough
CT: control target
= control target key end

     0   :  { %vm555_vm0 = vcmask 130048   ;;  %s9274_s14 = smov 126   ;;  %s15073_s2 = inlined_call_operand.vmem [shape: f32[784,400], index: 2, kind: input, shape index: {}]   ;;  %s15074_s0 = inlined_call_operand.vmem [shape: f32[128,784], index: 0, kind: input, shape index: {}]   ;;  %s15075_s6 = inlined_call_operand.vmem [shape: f32[8,784], index: 6, kind: input, shape index: {}]   ;;  %s15076_s3 = inlined_call_operand.vmem [shape: f32[400,128], index: 3, kind: input, shape index: {}]   ;;  %s15077_s8 = inlined_call_operand.vmem [shape: f32[128,128], index: 8, kind: output, shape index: {1}]   ;;  %s15078_s1 = inlined_call_operand.vmem [shape: f32[128,2], index: 1, kind: input, shape index: {}]   ;;  %s15079_s4 = inlined_call_operand.vmem [shape: f32[2,400], index: 4, kind: input, shape index: {}]   ;;  %s15080_s5 = inlined_call_operand.vmem [shape: bf16[400,784], index: 5, kind: input, shape index: {}]   ;;  %s15081_s7 = inlined_call_operand.vmem [shape: f32[128,784], index: 7, kind: output, shape index: {0}]  }
   0x1   :  { %v142_v0 = vld [vmem:[%s15073_s2 + $0x8] sm:$0xff]  ;;  %v144_v2 = vld [vmem:[%s15073_s2 + $0x18] sm:$0xff]  ;;  %v141_v5 = vld [vmem:[%s15073_s2] sm:$0xff] }
   0x2   :  { %v146_v1 = vld [vmem:[%s15073_s2 + $0x28] sm:$0xff]  ;;  %v148_v4 = vld [vmem:[%s15073_s2 + $0x38] sm:$0xff]  ;;  %v145_v6 = vld [vmem:[%s15073_s2 + $0x20] sm:$0xff] }
   0x3   :  { %v7597_v3 = vpack.c.bf16 %v146_v1, %v142_v0  ;;  %v7793_v7 = vpack.c.bf16 %v148_v4, %v144_v2  ;;  %v7599_v8 = vpack.c.bf16 %v145_v6, %v141_v5  ;;  %v143_v9 = vld [vmem:[%s15073_s2 + $0x10] sm:$0xff]  ;;  %v150_v11 = vld [vmem:[%s15073_s2 + $0x48] sm:$0xff]  ;;  %v152_v14 = vld [vmem:[%s15073_s2 + $0x58] sm:$0xff] }
   0x4   :  { %v147_v10 = vld [vmem:[%s15073_s2 + $0x30] sm:$0xff]  ;;  %v154_v13 = vld [vmem:[%s15073_s2 + $0x68] sm:$0xff]  ;;  %v156_v15 = vld [vmem:[%s15073_s2 + $0x78] sm:$0xff] }
   0x5   :  { %7598 = vmatprep.subr.bf16.mxu0 %v7597_v3  ;;  %v7795_v12 = vpack.c.bf16 %v147_v10, %v143_v9  ;;  %7794 = vmatprep.subr.bf16.mxu1 %v7793_v7  ;;  %v7601_v16 = vpack.c.bf16 %v154_v13, %v150_v11  ;;  %v7797_v17 = vpack.c.bf16 %v156_v15, %v152_v14  ;;  %v149_v18 = vld [vmem:[%s15073_s2 + $0x40] sm:$0xff]  ;;  %v151_v20 = vld [vmem:[%s15073_s2 + $0x50] sm:$0xff]  ;;  %v158_v23 = vld [vmem:[%s15073_s2 + $0x88] sm:$0xff] }
   0x6   :  { %7600 = vmatpush1.bf16.msra.mxu0 %v7599_v8  ;;  %v153_v19 = vld [vmem:[%s15073_s2 + $0x60] sm:$0xff]  ;;  %v155_v22 = vld [vmem:[%s15073_s2 + $0x70] sm:$0xff]  ;;  %v162_v24 = vld [vmem:[%s15073_s2 + $0xa8] sm:$0xff] }
   0x7   :  { %7796 = vmatpush1.bf16.msra.mxu1 %v7795_v12  ;;  %v7603_v21 = vpack.c.bf16 %v153_v19, %v149_v18  ;;  %7602 = vmatprep.subr.bf16.mxu0 %v7601_v16  ;;  %v7799_v25 = vpack.c.bf16 %v155_v22, %v151_v20  ;;  %v7605_v26 = vpack.c.bf16 %v162_v24, %v158_v23  ;;  %v160_v27 = vld [vmem:[%s15073_s2 + $0x98] sm:$0xff]  ;;  %v157_v29 = vld [vmem:[%s15073_s2 + $0x80] sm:$0xff]  ;;  %v159_v32 = vld [vmem:[%s15073_s2 + $0x90] sm:$0xff] }
   0x8   :  { %7798 = vmatprep.subr.bf16.mxu1 %v7797_v17  ;;  %v164_v28 = vld [vmem:[%s15073_s2 + $0xb8] sm:$0xff]  ;;  %v161_v31 = vld [vmem:[%s15073_s2 + $0xa0] sm:$0xff]  ;;  %v163_v33 = vld [vmem:[%s15073_s2 + $0xb0] sm:$0xff] }
   0x9   :  { %v7801_v30 = vpack.c.bf16 %v164_v28, %v160_v27  ;;  %v7607_v34 = vpack.c.bf16 %v161_v31, %v157_v29  ;;  %v166_v35 = vld [vmem:[%s15073_s2 + $0xc8] sm:$0xff]  ;;  %v168_v37 = vld [vmem:[%s15073_s2 + $0xd8] sm:$0xff]  ;;  %v7803_v38 = vpack.c.bf16 %v163_v33, %v159_v32  ;;  %v165_v41 = vld [vmem:[%s15073_s2 + $0xc0] sm:$0xff] }
   0xa   :  { %7604 = vmatpush1.bf16.msra.mxu0 %v7603_v21  ;;  %v170_v36 = vld [vmem:[%s15073_s2 + $0xe8] sm:$0xff]  ;;  %v172_v40 = vld [vmem:[%s15073_s2 + $0xf8] sm:$0xff]  ;;  %v169_v42 = vld [vmem:[%s15073_s2 + $0xe0] sm:$0xff] }
   0xb   :  { %7800 = vmatpush1.bf16.msra.mxu1 %v7799_v25  ;;  %7606 = vmatprep.subr.bf16.mxu0 %v7605_v26  ;;  %v7609_v39 = vpack.c.bf16 %v170_v36, %v166_v35  ;;  %v7805_v43 = vpack.c.bf16 %v172_v40, %v168_v37  ;;  %v167_v44 = vld [vmem:[%s15073_s2 + $0xd0] sm:$0xff]  ;;  %v174_v46 = vld [vmem:[%s15073_s2 + $0x108] sm:$0xff]  ;;  %v176_v48 = vld [vmem:[%s15073_s2 + $0x118] sm:$0xff]  ;;  %v7611_v50 = vpack.c.bf16 %v169_v42, %v165_v41 }
   0xc   :  { %7802 = vmatprep.subr.bf16.mxu1 %v7801_v30  ;;  %v171_v45 = vld [vmem:[%s15073_s2 + $0xf0] sm:$0xff]  ;;  %v178_v47 = vld [vmem:[%s15073_s2 + $0x128] sm:$0xff]  ;;  %v180_v49 = vld [vmem:[%s15073_s2 + $0x138] sm:$0xff] }
   0xd   :  { %v7807_v51 = vpack.c.bf16 %v171_v45, %v167_v44  ;;  %v7613_v52 = vpack.c.bf16 %v178_v47, %v174_v46  ;;  %v173_v53 = vld [vmem:[%s15073_s2 + $0x100] sm:$0xff]  ;;  %v175_v55 = vld [vmem:[%s15073_s2 + $0x110] sm:$0xff]  ;;  %v7809_v56 = vpack.c.bf16 %v180_v49, %v176_v48  ;;  %v182_v58 = vld [vmem:[%s15073_s2 + $0x148] sm:$0xff] }
   0xe   :  { %7608 = vmatpush1.bf16.msra.mxu0 %v7607_v34  ;;  %v177_v54 = vld [vmem:[%s15073_s2 + $0x120] sm:$0xff]  ;;  %v179_v57 = vld [vmem:[%s15073_s2 + $0x130] sm:$0xff]  ;;  %v186_v59 = vld [vmem:[%s15073_s2 + $0x168] sm:$0xff] }
   0xf   :  { %7804 = vmatpush1.bf16.msra.mxu1 %v7803_v38  ;;  %7610 = vmatprep.subr.bf16.mxu0 %v7609_v39  ;;  %v184_v60 = vld [vmem:[%s15073_s2 + $0x158] sm:$0xff]  ;;  %v7615_v62 = vpack.c.bf16 %v177_v54, %v173_v53  ;;  %v7811_v63 = vpack.c.bf16 %v179_v57, %v175_v55  ;;  %v7617_v0 = vpack.c.bf16 %v186_v59, %v182_v58  ;;  %v181_v1 = vld [vmem:[%s15073_s2 + $0x140] sm:$0xff]  ;;  %v183_v3 = vld [vmem:[%s15073_s2 + $0x150] sm:$0xff] }
  0x10   :  { %7806 = vmatprep.subr.bf16.mxu1 %v7805_v43  ;;  %v188_v61 = vld [vmem:[%s15073_s2 + $0x178] sm:$0xff]  ;;  %v185_v2 = vld [vmem:[%s15073_s2 + $0x160] sm:$0xff]  ;;  %v187_v5 = vld [vmem:[%s15073_s2 + $0x170] sm:$0xff] }
  0x11   :  { %v7813_v4 = vpack.c.bf16 %v188_v61, %v184_v60  ;;  %v190_v6 = vld [vmem:[%s15073_s2 + $0x188] sm:$0xff]  ;;  %v192_v8 = vld [vmem:[%s15073_s2 + $0x198] sm:$0xff]  ;;  %v7619_v10 = vpack.c.bf16 %v185_v2, %v181_v1  ;;  %v7815_v11 = vpack.c.bf16 %v187_v5, %v183_v3  ;;  %v189_v13 = vld [vmem:[%s15073_s2 + $0x180] sm:$0xff] }
  0x12   :  { %7612 = vmatpush1.bf16.msra.mxu0 %v7611_v50  ;;  %v194_v7 = vld [vmem:[%s15073_s2 + $0x1a8] sm:$0xff]  ;;  %v196_v9 = vld [vmem:[%s15073_s2 + $0x1b8] sm:$0xff]  ;;  %v193_v14 = vld [vmem:[%s15073_s2 + $0x1a0] sm:$0xff] }
  0x13   :  { %7808 = vmatpush1.bf16.msra.mxu1 %v7807_v51  ;;  %7614 = vmatprep.subr.bf16.mxu0 %v7613_v52  ;;  %v7621_v12 = vpack.c.bf16 %v194_v7, %v190_v6  ;;  %v191_v15 = vld [vmem:[%s15073_s2 + $0x190] sm:$0xff]  ;;  %v7817_v16 = vpack.c.bf16 %v196_v9, %v192_v8  ;;  %v198_v18 = vld [vmem:[%s15073_s2 + $0x1c8] sm:$0xff]  ;;  %v200_v20 = vld [vmem:[%s15073_s2 + $0x1d8] sm:$0xff]  ;;  %v7623_v22 = vpack.c.bf16 %v193_v14, %v189_v13 }
  0x14   :  { %7810 = vmatprep.subr.bf16.mxu1 %v7809_v56  ;;  %v195_v17 = vld [vmem:[%s15073_s2 + $0x1b0] sm:$0xff]  ;;  %v202_v19 = vld [vmem:[%s15073_s2 + $0x1e8] sm:$0xff]  ;;  %v204_v21 = vld [vmem:[%s15073_s2 + $0x1f8] sm:$0xff] }
  0x15   :  { %v7819_v23 = vpack.c.bf16 %v195_v17, %v191_v15  ;;  %v7625_v24 = vpack.c.bf16 %v202_v19, %v198_v18  ;;  %v197_v25 = vld [vmem:[%s15073_s2 + $0x1c0] sm:$0xff]  ;;  %v199_v27 = vld [vmem:[%s15073_s2 + $0x1d0] sm:$0xff]  ;;  %v7821_v28 = vpack.c.bf16 %v204_v21, %v200_v20  ;;  %v206_v30 = vld [vmem:[%s15073_s2 + $0x208] sm:$0xff] }
  0x16   :  { %7616 = vmatpush1.bf16.msra.mxu0 %v7615_v62  ;;  %v201_v26 = vld [vmem:[%s15073_s2 + $0x1e0] sm:$0xff]  ;;  %v203_v29 = vld [vmem:[%s15073_s2 + $0x1f0] sm:$0xff]  ;;  %v210_v31 = vld [vmem:[%s15073_s2 + $0x228] sm:$0xff] }
  0x17   :  { %7812 = vmatpush1.bf16.msra.mxu1 %v7811_v63  ;;  %7618 = vmatprep.subr.bf16.mxu0 %v7617_v0  ;;  %v208_v32 = vld [vmem:[%s15073_s2 + $0x218] sm:$0xff]  ;;  %v7627_v34 = vpack.c.bf16 %v201_v26, %v197_v25  ;;  %v7823_v35 = vpack.c.bf16 %v203_v29, %v199_v27  ;;  %v7629_v36 = vpack.c.bf16 %v210_v31, %v206_v30  ;;  %v205_v37 = vld [vmem:[%s15073_s2 + $0x200] sm:$0xff]  ;;  %v207_v39 = vld [vmem:[%s15073_s2 + $0x210] sm:$0xff] }
  0x18   :  { %7814 = vmatprep.subr.bf16.mxu1 %v7813_v4  ;;  %v212_v33 = vld [vmem:[%s15073_s2 + $0x238] sm:$0xff]  ;;  %v209_v38 = vld [vmem:[%s15073_s2 + $0x220] sm:$0xff]  ;;  %v211_v41 = vld [vmem:[%s15073_s2 + $0x230] sm:$0xff] }
  0x19   :  { %v7825_v40 = vpack.c.bf16 %v212_v33, %v208_v32  ;;  %v214_v42 = vld [vmem:[%s15073_s2 + $0x248] sm:$0xff]  ;;  %v216_v44 = vld [vmem:[%s15073_s2 + $0x258] sm:$0xff]  ;;  %v7631_v46 = vpack.c.bf16 %v209_v38, %v205_v37  ;;  %v7827_v47 = vpack.c.bf16 %v211_v41, %v207_v39  ;;  %v213_v49 = vld [vmem:[%s15073_s2 + $0x240] sm:$0xff] }
  0x1a   :  { %7620 = vmatpush1.bf16.msra.mxu0 %v7619_v10  ;;  %v218_v43 = vld [vmem:[%s15073_s2 + $0x268] sm:$0xff]  ;;  %v220_v45 = vld [vmem:[%s15073_s2 + $0x278] sm:$0xff]  ;;  %v217_v50 = vld [vmem:[%s15073_s2 + $0x260] sm:$0xff] }
  0x1b   :  { %7816 = vmatpush1.bf16.msra.mxu1 %v7815_v11  ;;  %7622 = vmatprep.subr.bf16.mxu0 %v7621_v12  ;;  %v7633_v48 = vpack.c.bf16 %v218_v43, %v214_v42  ;;  %v215_v51 = vld [vmem:[%s15073_s2 + $0x250] sm:$0xff]  ;;  %v7829_v52 = vpack.c.bf16 %v220_v45, %v216_v44  ;;  %v222_v54 = vld [vmem:[%s15073_s2 + $0x288] sm:$0xff]  ;;  %v224_v56 = vld [vmem:[%s15073_s2 + $0x298] sm:$0xff]  ;;  %v7635_v58 = vpack.c.bf16 %v217_v50, %v213_v49 }
  0x1c   :  { %7818 = vmatprep.subr.bf16.mxu1 %v7817_v16  ;;  %v219_v53 = vld [vmem:[%s15073_s2 + $0x270] sm:$0xff]  ;;  %v226_v55 = vld [vmem:[%s15073_s2 + $0x2a8] sm:$0xff]  ;;  %v228_v57 = vld [vmem:[%s15073_s2 + $0x2b8] sm:$0xff] }
  0x1d   :  { %v7831_v59 = vpack.c.bf16 %v219_v53, %v215_v51  ;;  %v7637_v60 = vpack.c.bf16 %v226_v55, %v222_v54  ;;  %v221_v61 = vld [vmem:[%s15073_s2 + $0x280] sm:$0xff]  ;;  %v223_v63 = vld [vmem:[%s15073_s2 + $0x290] sm:$0xff]  ;;  %v7833_v0 = vpack.c.bf16 %v228_v57, %v224_v56  ;;  %v230_v2 = vld [vmem:[%s15073_s2 + $0x2c8] sm:$0xff] }
  0x1e   :  { %7624 = vmatpush1.bf16.msra.mxu0 %v7623_v22  ;;  %v225_v62 = vld [vmem:[%s15073_s2 + $0x2a0] sm:$0xff]  ;;  %v227_v1 = vld [vmem:[%s15073_s2 + $0x2b0] sm:$0xff]  ;;  %v234_v3 = vld [vmem:[%s15073_s2 + $0x2e8] sm:$0xff] }
  0x1f   :  { %7820 = vmatpush1.bf16.msra.mxu1 %v7819_v23  ;;  %7626 = vmatprep.subr.bf16.mxu0 %v7625_v24  ;;  %v232_v4 = vld [vmem:[%s15073_s2 + $0x2d8] sm:$0xff]  ;;  %v7639_v6 = vpack.c.bf16 %v225_v62, %v221_v61  ;;  %v229_v7 = vld [vmem:[%s15073_s2 + $0x2c0] sm:$0xff]  ;;  %v7835_v8 = vpack.c.bf16 %v227_v1, %v223_v63  ;;  %v7641_v9 = vpack.c.bf16 %v234_v3, %v230_v2  ;;  %v231_v11 = vld [vmem:[%s15073_s2 + $0x2d0] sm:$0xff] }
  0x20   :  { %7822 = vmatprep.subr.bf16.mxu1 %v7821_v28  ;;  %v236_v5 = vld [vmem:[%s15073_s2 + $0x2f8] sm:$0xff]  ;;  %v233_v10 = vld [vmem:[%s15073_s2 + $0x2e0] sm:$0xff]  ;;  %v235_v12 = vld [vmem:[%s15073_s2 + $0x2f0] sm:$0xff] }
  0x21   :  { %v7837_v13 = vpack.c.bf16 %v236_v5, %v232_v4  ;;  %v238_v14 = vld [vmem:[%s15073_s2 + $0x308] sm:$0xff]  ;;  %v240_v17 = vld [vmem:[%s15073_s2 + $0x318] sm:$0xff]  ;;  %v7643_v19 = vpack.c.bf16 %v233_v10, %v229_v7  ;;  %v7839_v20 = vpack.c.bf16 %v235_v12, %v231_v11  ;;  %v237_v22 = vld [vmem:[%s15073_s2 + $0x300] sm:$0xff] }
  0x22   :  { %7628 = vmatpush1.bf16.msra.mxu0 %v7627_v34  ;;  %v242_v15 = vld [vmem:[%s15073_s2 + $0x328] sm:$0xff]  ;;  %v244_v18 = vld [vmem:[%s15073_s2 + $0x338] sm:$0xff]  ;;  %v241_v23 = vld [vmem:[%s15073_s2 + $0x320] sm:$0xff] }
  0x23   :  { %7824 = vmatpush1.bf16.msra.mxu1 %v7823_v35  ;;  %7630 = vmatprep.subr.bf16.mxu0 %v7629_v36  ;;  %v30_v16 = vld [vmem:[%s15074_s0 + $0x8] sm:$0xff]  ;;  %v7645_v21 = vpack.c.bf16 %v242_v15, %v238_v14  ;;  %v239_v24 = vld [vmem:[%s15073_s2 + $0x310] sm:$0xff]  ;;  %v7841_v25 = vpack.c.bf16 %v244_v18, %v240_v17  ;;  %v248_v29 = vld [vmem:[%s15073_s2 + $0x358] sm:$0xff]  ;;  %v7647_v31 = vpack.c.bf16 %v241_v23, %v237_v22 }
  0x24   :  { %7826 = vmatprep.subr.bf16.mxu1 %v7825_v40  ;;  %668 = vmatprep.mubr.f32.mxu0 %v30_v16  ;;  %v243_v26 = vld [vmem:[%s15073_s2 + $0x330] sm:$0xff]  ;;  %v246_v27 = vld [vmem:[%s15073_s2 + $0x348] sm:$0xff]  ;;  %v252_v30 = vld [vmem:[%s15073_s2 + $0x378] sm:$0xff] }
  0x25   :  { %1312 = vmatprep.mubr.f32.mxu1 %v30_v16  ;;  %v250_v28 = vld [vmem:[%s15073_s2 + $0x368] sm:$0xff]  ;;  %v7843_v32 = vpack.c.bf16 %v243_v26, %v239_v24  ;;  %v245_v34 = vld [vmem:[%s15073_s2 + $0x340] sm:$0xff]  ;;  %v247_v36 = vld [vmem:[%s15073_s2 + $0x350] sm:$0xff]  ;;  %v7845_v37 = vpack.c.bf16 %v252_v30, %v248_v29 }
  0x26   :  { %7632 = vmatpush1.bf16.msra.mxu0 %v7631_v46  ;;  %v7649_v33 = vpack.c.bf16 %v250_v28, %v246_v27  ;;  %v249_v35 = vld [vmem:[%s15073_s2 + $0x360] sm:$0xff]  ;;  %v251_v38 = vld [vmem:[%s15073_s2 + $0x370] sm:$0xff]  ;;  %v254_v39 = vld [vmem:[%s15073_s2 + $0x388] sm:$0xff] }
  0x27   :  { %7828 = vmatpush1.bf16.msra.mxu1 %v7827_v47  ;;  %7634 = vmatprep.subr.bf16.mxu0 %v7633_v48  ;;  %v258_v40 = vld [vmem:[%s15073_s2 + $0x3a8] sm:$0xff]  ;;  %v256_v41 = vld [vmem:[%s15073_s2 + $0x398] sm:$0xff]  ;;  %v7651_v43 = vpack.c.bf16 %v249_v35, %v245_v34  ;;  %v7847_v44 = vpack.c.bf16 %v251_v38, %v247_v36  ;;  %v253_v46 = vld [vmem:[%s15073_s2 + $0x380] sm:$0xff] }
  0x28   :  { %7830 = vmatprep.subr.bf16.mxu1 %v7829_v52  ;;  %v260_v42 = vld [vmem:[%s15073_s2 + $0x3b8] sm:$0xff]  ;;  %v7653_v45 = vpack.c.bf16 %v258_v40, %v254_v39  ;;  %v257_v47 = vld [vmem:[%s15073_s2 + $0x3a0] sm:$0xff]  ;;  %v255_v48 = vld [vmem:[%s15073_s2 + $0x390] sm:$0xff] }
  0x29   :  { %v7849_v49 = vpack.c.bf16 %v260_v42, %v256_v41  ;;  %v259_v50 = vld [vmem:[%s15073_s2 + $0x3b0] sm:$0xff]  ;;  %v262_v51 = vld [vmem:[%s15073_s2 + $0x3c8] sm:$0xff]  ;;  %v264_v53 = vld [vmem:[%s15073_s2 + $0x3d8] sm:$0xff]  ;;  %v7655_v55 = vpack.c.bf16 %v257_v47, %v253_v46 }
  0x2a   :  { %7636 = vmatpush1.bf16.msra.mxu0 %v7635_v58  ;;  %v266_v52 = vld [vmem:[%s15073_s2 + $0x3e8] sm:$0xff]  ;;  %v268_v54 = vld [vmem:[%s15073_s2 + $0x3f8] sm:$0xff]  ;;  %v7851_v56 = vpack.c.bf16 %v259_v50, %v255_v48  ;;  %v261_v58 = vld [vmem:[%s15073_s2 + $0x3c0] sm:$0xff] }
  0x2b   :  { %7832 = vmatpush1.bf16.msra.mxu1 %v7831_v59  ;;  %7638 = vmatprep.subr.bf16.mxu0 %v7637_v60  ;;  %v7657_v57 = vpack.c.bf16 %v266_v52, %v262_v51  ;;  %v265_v59 = vld [vmem:[%s15073_s2 + $0x3e0] sm:$0xff]  ;;  %v263_v60 = vld [vmem:[%s15073_s2 + $0x3d0] sm:$0xff]  ;;  %v7853_v61 = vpack.c.bf16 %v268_v54, %v264_v53  ;;  %v270_v63 = vld [vmem:[%s15073_s2 + $0x408] sm:$0xff] }
  0x2c   :  { %7834 = vmatprep.subr.bf16.mxu1 %v7833_v0  ;;  %v267_v62 = vld [vmem:[%s15073_s2 + $0x3f0] sm:$0xff]  ;;  %v274_v0 = vld [vmem:[%s15073_s2 + $0x428] sm:$0xff]  ;;  %v272_v1 = vld [vmem:[%s15073_s2 + $0x418] sm:$0xff]  ;;  %v7659_v3 = vpack.c.bf16 %v265_v59, %v261_v58 }
  0x2d   :  { %v276_v2 = vld [vmem:[%s15073_s2 + $0x438] sm:$0xff]  ;;  %v7855_v4 = vpack.c.bf16 %v267_v62, %v263_v60  ;;  %v7661_v5 = vpack.c.bf16 %v274_v0, %v270_v63  ;;  %v273_v7 = vld [vmem:[%s15073_s2 + $0x420] sm:$0xff]  ;;  %v275_v10 = vld [vmem:[%s15073_s2 + $0x430] sm:$0xff] }
  0x2e   :  { %7640 = vmatpush1.bf16.msra.mxu0 %v7639_v6  ;;  %v269_v6 = vld [vmem:[%s15073_s2 + $0x400] sm:$0xff]  ;;  %v278_v11 = vld [vmem:[%s15073_s2 + $0x448] sm:$0xff]  ;;  %v280_v15 = vld [vmem:[%s15073_s2 + $0x458] sm:$0xff] }
  0x2f   :  { %7836 = vmatpush1.bf16.msra.mxu1 %v7835_v8  ;;  %7642 = vmatprep.subr.bf16.mxu0 %v7641_v9  ;;  %v7857_v8 = vpack.c.bf16 %v276_v2, %v272_v1  ;;  %v271_v9 = vld [vmem:[%s15073_s2 + $0x410] sm:$0xff]  ;;  %v282_v12 = vld [vmem:[%s15073_s2 + $0x468] sm:$0xff]  ;;  %v7663_v14 = vpack.c.bf16 %v273_v7, %v269_v6  ;;  %v284_v16 = vld [vmem:[%s15073_s2 + $0x478] sm:$0xff] }
  0x30   :  { %7838 = vmatprep.subr.bf16.mxu1 %v7837_v13  ;;  %v29_v13 = vld [vmem:[%s15074_s0] sm:$0xff]  ;;  %v7859_v17 = vpack.c.bf16 %v275_v10, %v271_v9  ;;  %v279_v22 = vld [vmem:[%s15073_s2 + $0x450] sm:$0xff]  ;;  %v7861_v24 = vpack.c.bf16 %v284_v16, %v280_v15  ;;  %v290_v26 = vld [vmem:[%s15073_s2 + $0x4a8] sm:$0xff] }
  0x31   :  { %v277_v18 = vld [vmem:[%s15073_s2 + $0x440] sm:$0xff]  ;;  %v283_v23 = vld [vmem:[%s15073_s2 + $0x470] sm:$0xff]  ;;  %v36_v27 = vld [vmem:[%s15074_s0 + $0x38] sm:$0xff] }
  0x32   :  { %7644 = vmatpush1.bf16.msra.mxu0 %v7643_v19  ;;  %v281_v19 = vld [vmem:[%s15073_s2 + $0x460] sm:$0xff]  ;;  %v288_v29 = vld [vmem:[%s15073_s2 + $0x498] sm:$0xff]  ;;  %v287_v36 = vld [vmem:[%s15073_s2 + $0x490] sm:$0xff] }
  0x33   :  { %7840 = vmatpush1.bf16.msra.mxu1 %v7839_v20  ;;  %7646 = vmatprep.subr.bf16.mxu0 %v7645_v21  ;;  %v37_v20 = vld [vmem:[%s15074_s0 + $0x40] sm:$0xff]  ;;  %v7665_v21 = vpack.c.bf16 %v282_v12, %v278_v11  ;;  %v7667_v28 = vpack.c.bf16 %v281_v19, %v277_v18  ;;  %v292_v30 = vld [vmem:[%s15073_s2 + $0x4b8] sm:$0xff]  ;;  %v294_v39 = vld [vmem:[%s15073_s2 + $0x4c8] sm:$0xff] }
  0x34   :  { %7842 = vmatprep.subr.bf16.mxu1 %v7841_v25  ;;  %v286_v25 = vld [vmem:[%s15073_s2 + $0x488] sm:$0xff]  ;;  %v44_v34 = vld [vmem:[%s15074_s0 + $0x78] sm:$0xff]  ;;  %v7865_v38 = vpack.c.bf16 %v292_v30, %v288_v29  ;;  %v43_v41 = vld [vmem:[%s15074_s0 + $0x70] sm:$0xff] }
  0x35   :  { %v7669_v35 = vpack.c.bf16 %v290_v26, %v286_v25  ;;  %v298_v40 = vld [vmem:[%s15073_s2 + $0x4e8] sm:$0xff]  ;;  %v293_v46 = vld [vmem:[%s15073_s2 + $0x4c0] sm:$0xff]  ;;  %v51_v48 = vld [vmem:[%s15074_s0 + $0xb0] sm:$0xff] }
  0x36   :  { %7648 = vmatpush1.bf16.msra.mxu0 %v7647_v31  ;;  %v7863_v31 = vpack.c.bf16 %v283_v23, %v279_v22  ;;  %v297_v47 = vld [vmem:[%s15073_s2 + $0x4e0] sm:$0xff]  ;;  %v295_v50 = vld [vmem:[%s15073_s2 + $0x4d0] sm:$0xff]  ;;  %v302_v53 = vld [vmem:[%s15073_s2 + $0x508] sm:$0xff] }
  0x37   :  { %7844 = vmatpush1.bf16.msra.mxu1 %v7843_v32  ;;  %7650 = vmatprep.subr.bf16.mxu0 %v7649_v33  ;;  %v285_v32 = vld [vmem:[%s15073_s2 + $0x480] sm:$0xff]  ;;  %v299_v51 = vld [vmem:[%s15073_s2 + $0x4f0] sm:$0xff]  ;;  %v306_v54 = vld [vmem:[%s15073_s2 + $0x528] sm:$0xff] }
  0x38   :  { %7846 = vmatprep.subr.bf16.mxu1 %v7845_v37  ;;  %v289_v33 = vld [vmem:[%s15073_s2 + $0x4a0] sm:$0xff]  ;;  %v291_v37 = vld [vmem:[%s15073_s2 + $0x4b0] sm:$0xff]  ;;  %v308_v58 = vld [vmem:[%s15073_s2 + $0x538] sm:$0xff]  ;;  %v7871_v59 = vpack.c.bf16 %v299_v51, %v295_v50  ;;  %v7677_v63 = vpack.c.bf16 %v306_v54, %v302_v53 }
  0x39   :  { %v7671_v42 = vpack.c.bf16 %v289_v33, %v285_v32  ;;  %v301_v60 = vld [vmem:[%s15073_s2 + $0x500] sm:$0xff]  ;;  %v58_v62 = vld [vmem:[%s15074_s0 + $0xe8] sm:$0xff]  ;;  %v303_v0 = vld [vmem:[%s15073_s2 + $0x510] sm:$0xff] }
  0x3a   :  { %7652 = vmatpush1.bf16.msra.mxu0 %v7651_v43  ;;  %v296_v43 = vld [vmem:[%s15073_s2 + $0x4d8] sm:$0xff]  ;;  %v307_v1 = vld [vmem:[%s15073_s2 + $0x530] sm:$0xff]  ;;  %v309_v10 = vld [vmem:[%s15073_s2 + $0x540] sm:$0xff] }
  0x3b   :  { %7848 = vmatpush1.bf16.msra.mxu1 %v7847_v44  ;;  %7654 = vmatprep.subr.bf16.mxu0 %v7653_v45  ;;  %v300_v44 = vld [vmem:[%s15073_s2 + $0x4f8] sm:$0xff]  ;;  %v7867_v45 = vpack.c.bf16 %v291_v37, %v287_v36  ;;  %v7875_v9 = vpack.c.bf16 %v307_v1, %v303_v0  ;;  %v313_v11 = vld [vmem:[%s15073_s2 + $0x560] sm:$0xff]  ;;  %v315_v15 = vld [vmem:[%s15073_s2 + $0x570] sm:$0xff] }
  0x3c   :  { %7850 = vmatprep.subr.bf16.mxu1 %v7849_v49  ;;  %v7673_v49 = vpack.c.bf16 %v298_v40, %v294_v39  ;;  %v7869_v52 = vpack.c.bf16 %v300_v44, %v296_v43  ;;  %v312_v7 = vld [vmem:[%s15073_s2 + $0x558] sm:$0xff]  ;;  %v65_v12 = vld [vmem:[%s15074_s0 + $0x120] sm:$0xff]  ;;  %v322_v18 = vld [vmem:[%s15073_s2 + $0x5a8] sm:$0xff] }
  0x3d   :  { %v64_v19 = vld [vmem:[%s15074_s0 + $0x118] sm:$0xff]  ;;  %v321_v25 = vld [vmem:[%s15073_s2 + $0x5a0] sm:$0xff]  ;;  %v323_v29 = vld [vmem:[%s15073_s2 + $0x5b0] sm:$0xff] }
  0x3e   :  { %7656 = vmatpush1.bf16.msra.mxu0 %v7655_v55  ;;  %v50_v55 = vld [vmem:[%s15074_s0 + $0xa8] sm:$0xff]  ;;  %v324_v22 = vld [vmem:[%s15073_s2 + $0x5b8] sm:$0xff]  ;;  %v71_v33 = vld [vmem:[%s15074_s0 + $0x150] sm:$0xff] }
  0x3f   :  { %7852 = vmatpush1.bf16.msra.mxu1 %v7851_v56  ;;  %7658 = vmatprep.subr.bf16.mxu0 %v7657_v57  ;;  %v7675_v56 = vpack.c.bf16 %v297_v47, %v293_v46  ;;  %v304_v57 = vld [vmem:[%s15073_s2 + $0x518] sm:$0xff]  ;;  %v330_v32 = vld [vmem:[%s15073_s2 + $0x5e8] sm:$0xff]  ;;  %v329_v39 = vld [vmem:[%s15073_s2 + $0x5e0] sm:$0xff] }
  0x40   :  { %7854 = vmatprep.subr.bf16.mxu1 %v7853_v61  ;;  %v305_v61 = vld [vmem:[%s15073_s2 + $0x520] sm:$0xff]  ;;  %v7873_v2 = vpack.c.bf16 %v308_v58, %v304_v57  ;;  %v72_v26 = vld [vmem:[%s15074_s0 + $0x158] sm:$0xff]  ;;  %v79_v40 = vld [vmem:[%s15074_s0 + $0x190] sm:$0xff] }
  0x41   :  { %v7679_v6 = vpack.c.bf16 %v305_v61, %v301_v60  ;;  %v332_v36 = vld [vmem:[%s15073_s2 + $0x5f8] sm:$0xff]  ;;  %v331_v43 = vld [vmem:[%s15073_s2 + $0x5f0] sm:$0xff]  ;;  %v338_v46 = vld [vmem:[%s15073_s2 + $0x628] sm:$0xff] }
  0x42   :  { %7660 = vmatpush1.bf16.msra.mxu0 %v7659_v3  ;;  %v310_v3 = vld [vmem:[%s15073_s2 + $0x548] sm:$0xff]  ;;  %v340_v50 = vld [vmem:[%s15073_s2 + $0x638] sm:$0xff]  ;;  %v337_v53 = vld [vmem:[%s15073_s2 + $0x620] sm:$0xff] }
  0x43   :  { %7856 = vmatpush1.bf16.msra.mxu1 %v7855_v4  ;;  %7662 = vmatprep.subr.bf16.mxu0 %v7661_v5  ;;  %v314_v4 = vld [vmem:[%s15073_s2 + $0x568] sm:$0xff]  ;;  %v57_v5 = vld [vmem:[%s15074_s0 + $0xe0] sm:$0xff]  ;;  %v339_v57 = vld [vmem:[%s15073_s2 + $0x630] sm:$0xff] }
  0x44   :  { %7858 = vmatprep.subr.bf16.mxu1 %v7857_v8  ;;  %v316_v8 = vld [vmem:[%s15073_s2 + $0x578] sm:$0xff]  ;;  %v78_v47 = vld [vmem:[%s15074_s0 + $0x188] sm:$0xff]  ;;  %v85_v61 = vld [vmem:[%s15074_s0 + $0x1c0] sm:$0xff] }
  0x45   :  { %669 = vmatmul.mubr.f32.vlgmr.msra.gmra.mrb[0].mxu0 %v29_v13  ;;  %v7877_v16 = vpack.c.bf16 %v316_v8, %v312_v7  ;;  %v86_v54 = vld [vmem:[%s15074_s0 + $0x1c8] sm:$0xff]  ;;  %v348_v0 = vld [vmem:[%s15073_s2 + $0x678] sm:$0xff]  ;;  %v347_v7 = vld [vmem:[%s15073_s2 + $0x670] sm:$0xff] }
  0x46   :  { %1313 = vmatmul.mubr.f32.vlgmr.msra.gmra.mrb[0].mxu1 %v29_v13  ;;  %7664 = vmatpush1.bf16.msra.mxu0 %v7663_v14  ;;  %v7681_v13 = vpack.c.bf16 %v314_v4, %v310_v3  ;;  %v311_v14 = vld [vmem:[%s15073_s2 + $0x550] sm:$0xff]  ;;  %v346_v60 = vld [vmem:[%s15073_s2 + $0x668] sm:$0xff]  ;;  %v345_v3 = vld [vmem:[%s15073_s2 + $0x660] sm:$0xff] }
  0x47   :  { %7860 = vmatpush1.bf16.msra.mxu1 %v7859_v17  ;;  %674 = vmatprep.mubr.f32.mxu0 %v37_v20  ;;  %v318_v17 = vld [vmem:[%s15073_s2 + $0x588] sm:$0xff]  ;;  %v7879_v23 = vpack.c.bf16 %v315_v15, %v311_v14  ;;  %v93_v4 = vld [vmem:[%s15074_s0 + $0x200] sm:$0xff]  ;;  %v356_v14 = vld [vmem:[%s15073_s2 + $0x6b8] sm:$0xff] }
  0x48   :  { %1318 = vmatprep.mubr.f32.mxu1 %v37_v20  ;;  %7666 = vmatprep.subr.bf16.mxu0 %v7665_v21  ;;  %v7683_v20 = vpack.c.bf16 %v313_v11, %v309_v10  ;;  %v320_v21 = vld [vmem:[%s15073_s2 + $0x598] sm:$0xff]  ;;  %v354_v10 = vld [vmem:[%s15073_s2 + $0x6a8] sm:$0xff] }
  0x49   :  { %675 = vmatmul.mubr.f32.gmra.mrb[2].mxu0 %v36_v27  ;;  %7862 = vmatprep.subr.bf16.mxu1 %v7861_v24  ;;  %v317_v24 = vld [vmem:[%s15073_s2 + $0x580] sm:$0xff]  ;;  %v7881_v30 = vpack.c.bf16 %v324_v22, %v320_v21  ;;  %v92_v11 = vld [vmem:[%s15074_s0 + $0x1f8] sm:$0xff]  ;;  %v355_v21 = vld [vmem:[%s15073_s2 + $0x6b0] sm:$0xff] }
  0x4a   :  { %1319 = vmatmul.mubr.f32.gmra.mrb[2].mxu1 %v36_v27  ;;  %7668 = vmatpush1.bf16.msra.mxu0 %v7667_v28  ;;  %v7685_v27 = vpack.c.bf16 %v322_v18, %v318_v17  ;;  %v319_v28 = vld [vmem:[%s15073_s2 + $0x590] sm:$0xff]  ;;  %v353_v17 = vld [vmem:[%s15073_s2 + $0x6a0] sm:$0xff]  ;;  %v100_v18 = vld [vmem:[%s15074_s0 + $0x238] sm:$0xff] }
  0x4b   :  { %7864 = vmatpush1.bf16.msra.mxu1 %v7863_v31  ;;  %680 = vmatprep.mubr.f32.mxu0 %v44_v34  ;;  %v326_v31 = vld [vmem:[%s15073_s2 + $0x5c8] sm:$0xff]  ;;  %v7883_v37 = vpack.c.bf16 %v323_v29, %v319_v28  ;;  %v364_v28 = vld [vmem:[%s15073_s2 + $0x6f8] sm:$0xff] }
  0x4c   :  { %1324 = vmatprep.mubr.f32.mxu1 %v44_v34  ;;  %7670 = vmatprep.subr.bf16.mxu0 %v7669_v35  ;;  %v7687_v34 = vpack.c.bf16 %v321_v25, %v317_v24  ;;  %v328_v35 = vld [vmem:[%s15073_s2 + $0x5d8] sm:$0xff]  ;;  %v362_v24 = vld [vmem:[%s15073_s2 + $0x6e8] sm:$0xff]  ;;  %v99_v25 = vld [vmem:[%s15074_s0 + $0x230] sm:$0xff] }
  0x4d   :  { %681 = vmatmul.mubr.f32.gmra.mrb[4].mxu0 %v43_v41  ;;  %7866 = vmatprep.subr.bf16.mxu1 %v7865_v38  ;;  %v325_v38 = vld [vmem:[%s15073_s2 + $0x5c0] sm:$0xff]  ;;  %v7885_v44 = vpack.c.bf16 %v332_v36, %v328_v35  ;;  %v363_v35 = vld [vmem:[%s15073_s2 + $0x6f0] sm:$0xff] }
  0x4e   :  { %1325 = vmatmul.mubr.f32.gmra.mrb[4].mxu1 %v43_v41  ;;  %7672 = vmatpush1.bf16.msra.mxu0 %v7671_v42  ;;  %v7689_v41 = vpack.c.bf16 %v330_v32, %v326_v31  ;;  %v327_v42 = vld [vmem:[%s15073_s2 + $0x5d0] sm:$0xff]  ;;  %v361_v31 = vld [vmem:[%s15073_s2 + $0x6e0] sm:$0xff] }
  0x4f   :  { %7868 = vmatpush1.bf16.msra.mxu1 %v7867_v45  ;;  %686 = vmatprep.mubr.f32.mxu0 %v51_v48  ;;  %v334_v45 = vld [vmem:[%s15073_s2 + $0x608] sm:$0xff]  ;;  %v7887_v51 = vpack.c.bf16 %v331_v43, %v327_v42  ;;  %v107_v32 = vld [vmem:[%s15074_s0 + $0x270] sm:$0xff]  ;;  %v372_v42 = vld [vmem:[%s15073_s2 + $0x738] sm:$0xff] }
  0x50   :  { %1330 = vmatprep.mubr.f32.mxu1 %v51_v48  ;;  %7674 = vmatprep.subr.bf16.mxu0 %v7673_v49  ;;  %v7691_v48 = vpack.c.bf16 %v329_v39, %v325_v38  ;;  %v336_v49 = vld [vmem:[%s15073_s2 + $0x618] sm:$0xff]  ;;  %v370_v38 = vld [vmem:[%s15073_s2 + $0x728] sm:$0xff] }
  0x51   :  { %687 = vmatmul.mubr.f32.gmra.mrb[6].mxu0 %v50_v55  ;;  %7870 = vmatprep.subr.bf16.mxu1 %v7869_v52  ;;  %v333_v52 = vld [vmem:[%s15073_s2 + $0x600] sm:$0xff]  ;;  %v7889_v58 = vpack.c.bf16 %v340_v50, %v336_v49  ;;  %v106_v39 = vld [vmem:[%s15074_s0 + $0x268] sm:$0xff]  ;;  %v371_v49 = vld [vmem:[%s15073_s2 + $0x730] sm:$0xff] }
  0x52   :  { %1331 = vmatmul.mubr.f32.gmra.mrb[6].mxu1 %v50_v55  ;;  %7676 = vmatpush1.bf16.msra.mxu0 %v7675_v56  ;;  %v7693_v55 = vpack.c.bf16 %v338_v46, %v334_v45  ;;  %v335_v56 = vld [vmem:[%s15073_s2 + $0x610] sm:$0xff]  ;;  %v369_v45 = vld [vmem:[%s15073_s2 + $0x720] sm:$0xff]  ;;  %v114_v46 = vld [vmem:[%s15074_s0 + $0x2a8] sm:$0xff] }
  0x53   :  { %7872 = vmatpush1.bf16.msra.mxu1 %v7871_v59  ;;  %692 = vmatprep.mubr.f32.mxu0 %v58_v62  ;;  %v342_v59 = vld [vmem:[%s15073_s2 + $0x648] sm:$0xff]  ;;  %v7891_v1 = vpack.c.bf16 %v339_v57, %v335_v56  ;;  %v380_v56 = vld [vmem:[%s15073_s2 + $0x778] sm:$0xff] }
  0x54   :  { %1336 = vmatprep.mubr.f32.mxu1 %v58_v62  ;;  %7678 = vmatprep.subr.bf16.mxu0 %v7677_v63  ;;  %v7695_v62 = vpack.c.bf16 %v337_v53, %v333_v52  ;;  %v344_v63 = vld [vmem:[%s15073_s2 + $0x658] sm:$0xff]  ;;  %v378_v52 = vld [vmem:[%s15073_s2 + $0x768] sm:$0xff]  ;;  %v113_v53 = vld [vmem:[%s15074_s0 + $0x2a0] sm:$0xff] }
  0x55   :  { %693 = vmatmul.mubr.f32.gmra.mrb[8].mxu0 %v57_v5  ;;  %7874 = vmatprep.subr.bf16.mxu1 %v7873_v2  ;;  %v341_v2 = vld [vmem:[%s15073_s2 + $0x640] sm:$0xff]  ;;  %v7893_v8 = vpack.c.bf16 %v348_v0, %v344_v63  ;;  %v379_v63 = vld [vmem:[%s15073_s2 + $0x770] sm:$0xff] }
  0x56   :  { %1337 = vmatmul.mubr.f32.gmra.mrb[8].mxu1 %v57_v5  ;;  %7680 = vmatpush1.bf16.msra.mxu0 %v7679_v6  ;;  %v7697_v5 = vpack.c.bf16 %v346_v60, %v342_v59  ;;  %v343_v6 = vld [vmem:[%s15073_s2 + $0x650] sm:$0xff]  ;;  %v377_v59 = vld [vmem:[%s15073_s2 + $0x760] sm:$0xff] }
  0x57   :  { %7876 = vmatpush1.bf16.msra.mxu1 %v7875_v9  ;;  %698 = vmatprep.mubr.f32.mxu0 %v65_v12  ;;  %v350_v9 = vld [vmem:[%s15073_s2 + $0x688] sm:$0xff]  ;;  %v7895_v15 = vpack.c.bf16 %v347_v7, %v343_v6  ;;  %v121_v60 = vld [vmem:[%s15074_s0 + $0x2e0] sm:$0xff]  ;;  %v388_v6 = vld [vmem:[%s15073_s2 + $0x7b8] sm:$0xff] }
  0x58   :  { %1342 = vmatprep.mubr.f32.mxu1 %v65_v12  ;;  %7682 = vmatprep.subr.bf16.mxu0 %v7681_v13  ;;  %v7699_v12 = vpack.c.bf16 %v345_v3, %v341_v2  ;;  %v352_v13 = vld [vmem:[%s15073_s2 + $0x698] sm:$0xff]  ;;  %v386_v2 = vld [vmem:[%s15073_s2 + $0x7a8] sm:$0xff] }
  0x59   :  { %699 = vmatmul.mubr.f32.gmra.mrb[10].mxu0 %v64_v19  ;;  %7878 = vmatprep.subr.bf16.mxu1 %v7877_v16  ;;  %v349_v16 = vld [vmem:[%s15073_s2 + $0x680] sm:$0xff]  ;;  %v7897_v22 = vpack.c.bf16 %v356_v14, %v352_v13  ;;  %v120_v3 = vld [vmem:[%s15074_s0 + $0x2d8] sm:$0xff]  ;;  %v387_v13 = vld [vmem:[%s15073_s2 + $0x7b0] sm:$0xff] }
  0x5a   :  { %1343 = vmatmul.mubr.f32.gmra.mrb[10].mxu1 %v64_v19  ;;  %7684 = vmatpush1.bf16.msra.mxu0 %v7683_v20  ;;  %v7701_v19 = vpack.c.bf16 %v354_v10, %v350_v9  ;;  %v351_v20 = vld [vmem:[%s15073_s2 + $0x690] sm:$0xff]  ;;  %v385_v9 = vld [vmem:[%s15073_s2 + $0x7a0] sm:$0xff]  ;;  %v128_v10 = vld [vmem:[%s15074_s0 + $0x318] sm:$0xff] }
  0x5b   :  { %7880 = vmatpush1.bf16.msra.mxu1 %v7879_v23  ;;  %704 = vmatprep.mubr.f32.mxu0 %v72_v26  ;;  %v358_v23 = vld [vmem:[%s15073_s2 + $0x6c8] sm:$0xff]  ;;  %v7899_v29 = vpack.c.bf16 %v355_v21, %v351_v20  ;;  %v396_v20 = vld [vmem:[%s15073_s2 + $0x7f8] sm:$0xff] }
  0x5c   :  { %1348 = vmatprep.mubr.f32.mxu1 %v72_v26  ;;  %7686 = vmatprep.subr.bf16.mxu0 %v7685_v27  ;;  %v7703_v26 = vpack.c.bf16 %v353_v17, %v349_v16  ;;  %v360_v27 = vld [vmem:[%s15073_s2 + $0x6d8] sm:$0xff]  ;;  %v394_v16 = vld [vmem:[%s15073_s2 + $0x7e8] sm:$0xff]  ;;  %v127_v17 = vld [vmem:[%s15074_s0 + $0x310] sm:$0xff] }
  0x5d   :  { %705 = vmatmul.mubr.f32.gmra.mrb[12].mxu0 %v71_v33  ;;  %7882 = vmatprep.subr.bf16.mxu1 %v7881_v30  ;;  %v357_v30 = vld [vmem:[%s15073_s2 + $0x6c0] sm:$0xff]  ;;  %v7901_v36 = vpack.c.bf16 %v364_v28, %v360_v27  ;;  %v395_v27 = vld [vmem:[%s15073_s2 + $0x7f0] sm:$0xff] }
  0x5e   :  { %1349 = vmatmul.mubr.f32.gmra.mrb[12].mxu1 %v71_v33  ;;  %7688 = vmatpush1.bf16.msra.mxu0 %v7687_v34  ;;  %v7705_v33 = vpack.c.bf16 %v362_v24, %v358_v23  ;;  %v359_v34 = vld [vmem:[%s15073_s2 + $0x6d0] sm:$0xff]  ;;  %v393_v23 = vld [vmem:[%s15073_s2 + $0x7e0] sm:$0xff] }
  0x5f   :  { %7884 = vmatpush1.bf16.msra.mxu1 %v7883_v37  ;;  %710 = vmatprep.mubr.f32.mxu0 %v79_v40  ;;  %v366_v37 = vld [vmem:[%s15073_s2 + $0x708] sm:$0xff]  ;;  %v7903_v43 = vpack.c.bf16 %v363_v35, %v359_v34  ;;  %v135_v24 = vld [vmem:[%s15074_s0 + $0x350] sm:$0xff]  ;;  %v404_v34 = vld [vmem:[%s15073_s2 + $0x838] sm:$0xff] }
  0x60   :  { %1354 = vmatprep.mubr.f32.mxu1 %v79_v40  ;;  %7690 = vmatprep.subr.bf16.mxu0 %v7689_v41  ;;  %v7707_v40 = vpack.c.bf16 %v361_v31, %v357_v30  ;;  %v368_v41 = vld [vmem:[%s15073_s2 + $0x718] sm:$0xff]  ;;  %v402_v30 = vld [vmem:[%s15073_s2 + $0x828] sm:$0xff] }
  0x61   :  { %711 = vmatmul.mubr.f32.gmra.mrb[14].mxu0 %v78_v47  ;;  %7886 = vmatprep.subr.bf16.mxu1 %v7885_v44  ;;  %v365_v44 = vld [vmem:[%s15073_s2 + $0x700] sm:$0xff]  ;;  %v7905_v50 = vpack.c.bf16 %v372_v42, %v368_v41  ;;  %v134_v31 = vld [vmem:[%s15074_s0 + $0x348] sm:$0xff]  ;;  %v403_v41 = vld [vmem:[%s15073_s2 + $0x830] sm:$0xff] }
  0x62   :  { %1355 = vmatmul.mubr.f32.gmra.mrb[14].mxu1 %v78_v47  ;;  %7692 = vmatpush1.bf16.msra.mxu0 %v7691_v48  ;;  %v7709_v47 = vpack.c.bf16 %v370_v38, %v366_v37  ;;  %v367_v48 = vld [vmem:[%s15073_s2 + $0x710] sm:$0xff]  ;;  %v401_v37 = vld [vmem:[%s15073_s2 + $0x820] sm:$0xff]  ;;  %v32_v38 = vld [vmem:[%s15074_s0 + $0x18] sm:$0xff] }
  0x63   :  { %7888 = vmatpush1.bf16.msra.mxu1 %v7887_v51  ;;  %716 = vmatprep.mubr.f32.mxu0 %v86_v54  ;;  %v374_v51 = vld [vmem:[%s15073_s2 + $0x748] sm:$0xff]  ;;  %v7907_v57 = vpack.c.bf16 %v371_v49, %v367_v48  ;;  %v412_v48 = vld [vmem:[%s15073_s2 + $0x878] sm:$0xff] }
  0x64   :  { %1360 = vmatprep.mubr.f32.mxu1 %v86_v54  ;;  %7694 = vmatprep.subr.bf16.mxu0 %v7693_v55  ;;  %v7711_v54 = vpack.c.bf16 %v369_v45, %v365_v44  ;;  %v376_v55 = vld [vmem:[%s15073_s2 + $0x758] sm:$0xff]  ;;  %v410_v44 = vld [vmem:[%s15073_s2 + $0x868] sm:$0xff]  ;;  %v31_v45 = vld [vmem:[%s15074_s0 + $0x10] sm:$0xff] }
  0x65   :  { %717 = vmatmul.mubr.f32.gmra.mrb[16].mxu0 %v85_v61  ;;  %7890 = vmatprep.subr.bf16.mxu1 %v7889_v58  ;;  %v373_v58 = vld [vmem:[%s15073_s2 + $0x740] sm:$0xff]  ;;  %v7909_v0 = vpack.c.bf16 %v380_v56, %v376_v55  ;;  %v411_v55 = vld [vmem:[%s15073_s2 + $0x870] sm:$0xff] }
  0x66   :  { %1361 = vmatmul.mubr.f32.gmra.mrb[16].mxu1 %v85_v61  ;;  %7696 = vmatpush1.bf16.msra.mxu0 %v7695_v62  ;;  %v7713_v61 = vpack.c.bf16 %v378_v52, %v374_v51  ;;  %v375_v62 = vld [vmem:[%s15073_s2 + $0x750] sm:$0xff]  ;;  %v409_v51 = vld [vmem:[%s15073_s2 + $0x860] sm:$0xff] }
  0x67   :  { %7892 = vmatpush1.bf16.msra.mxu1 %v7891_v1  ;;  %722 = vmatprep.mubr.f32.mxu0 %v93_v4  ;;  %v382_v1 = vld [vmem:[%s15073_s2 + $0x788] sm:$0xff]  ;;  %v7911_v7 = vpack.c.bf16 %v379_v63, %v375_v62  ;;  %v39_v52 = vld [vmem:[%s15074_s0 + $0x50] sm:$0xff]  ;;  %v420_v62 = vld [vmem:[%s15073_s2 + $0x8b8] sm:$0xff] }
  0x68   :  { %1366 = vmatprep.mubr.f32.mxu1 %v93_v4  ;;  %7698 = vmatprep.subr.bf16.mxu0 %v7697_v5  ;;  %v7715_v4 = vpack.c.bf16 %v377_v59, %v373_v58  ;;  %v384_v5 = vld [vmem:[%s15073_s2 + $0x798] sm:$0xff]  ;;  %v418_v58 = vld [vmem:[%s15073_s2 + $0x8a8] sm:$0xff] }
  0x69   :  { %723 = vmatmul.mubr.f32.gmra.mrb[18].mxu0 %v92_v11  ;;  %7894 = vmatprep.subr.bf16.mxu1 %v7893_v8  ;;  %v381_v8 = vld [vmem:[%s15073_s2 + $0x780] sm:$0xff]  ;;  %v7913_v14 = vpack.c.bf16 %v388_v6, %v384_v5  ;;  %v38_v59 = vld [vmem:[%s15074_s0 + $0x48] sm:$0xff]  ;;  %v419_v5 = vld [vmem:[%s15073_s2 + $0x8b0] sm:$0xff] }
  0x6a   :  { %1367 = vmatmul.mubr.f32.gmra.mrb[18].mxu1 %v92_v11  ;;  %7700 = vmatpush1.bf16.msra.mxu0 %v7699_v12  ;;  %v7717_v11 = vpack.c.bf16 %v386_v2, %v382_v1  ;;  %v383_v12 = vld [vmem:[%s15073_s2 + $0x790] sm:$0xff]  ;;  %v417_v1 = vld [vmem:[%s15073_s2 + $0x8a0] sm:$0xff]  ;;  %v46_v2 = vld [vmem:[%s15074_s0 + $0x88] sm:$0xff] }
  0x6b   :  { %7896 = vmatpush1.bf16.msra.mxu1 %v7895_v15  ;;  %728 = vmatprep.mubr.f32.mxu0 %v100_v18  ;;  %v390_v15 = vld [vmem:[%s15073_s2 + $0x7c8] sm:$0xff]  ;;  %v7915_v21 = vpack.c.bf16 %v387_v13, %v383_v12  ;;  %v428_v12 = vld [vmem:[%s15073_s2 + $0x8f8] sm:$0xff] }
  0x6c   :  { %1372 = vmatprep.mubr.f32.mxu1 %v100_v18  ;;  %7702 = vmatprep.subr.bf16.mxu0 %v7701_v19  ;;  %v7719_v18 = vpack.c.bf16 %v385_v9, %v381_v8  ;;  %v392_v19 = vld [vmem:[%s15073_s2 + $0x7d8] sm:$0xff]  ;;  %v426_v8 = vld [vmem:[%s15073_s2 + $0x8e8] sm:$0xff]  ;;  %v45_v9 = vld [vmem:[%s15074_s0 + $0x80] sm:$0xff] }
  0x6d   :  { %729 = vmatmul.mubr.f32.gmra.mrb[20].mxu0 %v99_v25  ;;  %7898 = vmatprep.subr.bf16.mxu1 %v7897_v22  ;;  %v389_v22 = vld [vmem:[%s15073_s2 + $0x7c0] sm:$0xff]  ;;  %v7917_v28 = vpack.c.bf16 %v396_v20, %v392_v19  ;;  %v427_v19 = vld [vmem:[%s15073_s2 + $0x8f0] sm:$0xff] }
  0x6e   :  { %1373 = vmatmul.mubr.f32.gmra.mrb[20].mxu1 %v99_v25  ;;  %7704 = vmatpush1.bf16.msra.mxu0 %v7703_v26  ;;  %v7721_v25 = vpack.c.bf16 %v394_v16, %v390_v15  ;;  %v391_v26 = vld [vmem:[%s15073_s2 + $0x7d0] sm:$0xff]  ;;  %v425_v15 = vld [vmem:[%s15073_s2 + $0x8e0] sm:$0xff] }
  0x6f   :  { %7900 = vmatpush1.bf16.msra.mxu1 %v7899_v29  ;;  %734 = vmatprep.mubr.f32.mxu0 %v107_v32  ;;  %v398_v29 = vld [vmem:[%s15073_s2 + $0x808] sm:$0xff]  ;;  %v7919_v35 = vpack.c.bf16 %v395_v27, %v391_v26  ;;  %v53_v16 = vld [vmem:[%s15074_s0 + $0xc0] sm:$0xff]  ;;  %v436_v26 = vld [vmem:[%s15073_s2 + $0x938] sm:$0xff] }
  0x70   :  { %1378 = vmatprep.mubr.f32.mxu1 %v107_v32  ;;  %7706 = vmatprep.subr.bf16.mxu0 %v7705_v33  ;;  %v7723_v32 = vpack.c.bf16 %v393_v23, %v389_v22  ;;  %v400_v33 = vld [vmem:[%s15073_s2 + $0x818] sm:$0xff]  ;;  %v434_v22 = vld [vmem:[%s15073_s2 + $0x928] sm:$0xff] }
  0x71   :  { %735 = vmatmul.mubr.f32.gmra.mrb[22].mxu0 %v106_v39  ;;  %7902 = vmatprep.subr.bf16.mxu1 %v7901_v36  ;;  %v397_v36 = vld [vmem:[%s15073_s2 + $0x800] sm:$0xff]  ;;  %v7921_v42 = vpack.c.bf16 %v404_v34, %v400_v33  ;;  %v52_v23 = vld [vmem:[%s15074_s0 + $0xb8] sm:$0xff]  ;;  %v435_v33 = vld [vmem:[%s15073_s2 + $0x930] sm:$0xff] }
  0x72   :  { %1379 = vmatmul.mubr.f32.gmra.mrb[22].mxu1 %v106_v39  ;;  %7708 = vmatpush1.bf16.msra.mxu0 %v7707_v40  ;;  %v7725_v39 = vpack.c.bf16 %v402_v30, %v398_v29  ;;  %v399_v40 = vld [vmem:[%s15073_s2 + $0x810] sm:$0xff]  ;;  %v433_v29 = vld [vmem:[%s15073_s2 + $0x920] sm:$0xff]  ;;  %v60_v30 = vld [vmem:[%s15074_s0 + $0xf8] sm:$0xff] }
  0x73   :  { %7904 = vmatpush1.bf16.msra.mxu1 %v7903_v43  ;;  %740 = vmatprep.mubr.f32.mxu0 %v114_v46  ;;  %v406_v43 = vld [vmem:[%s15073_s2 + $0x848] sm:$0xff]  ;;  %v7923_v49 = vpack.c.bf16 %v403_v41, %v399_v40  ;;  %v444_v40 = vld [vmem:[%s15073_s2 + $0x978] sm:$0xff] }
  0x74   :  { %1384 = vmatprep.mubr.f32.mxu1 %v114_v46  ;;  %7710 = vmatprep.subr.bf16.mxu0 %v7709_v47  ;;  %v7727_v46 = vpack.c.bf16 %v401_v37, %v397_v36  ;;  %v408_v47 = vld [vmem:[%s15073_s2 + $0x858] sm:$0xff]  ;;  %v442_v36 = vld [vmem:[%s15073_s2 + $0x968] sm:$0xff]  ;;  %v59_v37 = vld [vmem:[%s15074_s0 + $0xf0] sm:$0xff] }
  0x75   :  { %741 = vmatmul.mubr.f32.gmra.mrb[24].mxu0 %v113_v53  ;;  %7906 = vmatprep.subr.bf16.mxu1 %v7905_v50  ;;  %v405_v50 = vld [vmem:[%s15073_s2 + $0x840] sm:$0xff]  ;;  %v7925_v56 = vpack.c.bf16 %v412_v48, %v408_v47  ;;  %v443_v47 = vld [vmem:[%s15073_s2 + $0x970] sm:$0xff] }
  0x76   :  { %1385 = vmatmul.mubr.f32.gmra.mrb[24].mxu1 %v113_v53  ;;  %7712 = vmatpush1.bf16.msra.mxu0 %v7711_v54  ;;  %v7729_v53 = vpack.c.bf16 %v410_v44, %v406_v43  ;;  %v407_v54 = vld [vmem:[%s15073_s2 + $0x850] sm:$0xff]  ;;  %v441_v43 = vld [vmem:[%s15073_s2 + $0x960] sm:$0xff] }
  0x77   :  { %7908 = vmatpush1.bf16.msra.mxu1 %v7907_v57  ;;  %746 = vmatprep.mubr.f32.mxu0 %v121_v60  ;;  %v414_v57 = vld [vmem:[%s15073_s2 + $0x888] sm:$0xff]  ;;  %v7927_v63 = vpack.c.bf16 %v411_v55, %v407_v54  ;;  %v67_v44 = vld [vmem:[%s15074_s0 + $0x130] sm:$0xff]  ;;  %v452_v54 = vld [vmem:[%s15073_s2 + $0x9b8] sm:$0xff] }
  0x78   :  { %1390 = vmatprep.mubr.f32.mxu1 %v121_v60  ;;  %7714 = vmatprep.subr.bf16.mxu0 %v7713_v61  ;;  %v7731_v60 = vpack.c.bf16 %v409_v51, %v405_v50  ;;  %v416_v61 = vld [vmem:[%s15073_s2 + $0x898] sm:$0xff]  ;;  %v450_v50 = vld [vmem:[%s15073_s2 + $0x9a8] sm:$0xff] }
  0x79   :  { %747 = vmatmul.mubr.f32.gmra.mrb[26].mxu0 %v120_v3  ;;  %7910 = vmatprep.subr.bf16.mxu1 %v7909_v0  ;;  %v413_v0 = vld [vmem:[%s15073_s2 + $0x880] sm:$0xff]  ;;  %v7929_v6 = vpack.c.bf16 %v420_v62, %v416_v61  ;;  %v66_v51 = vld [vmem:[%s15074_s0 + $0x128] sm:$0xff]  ;;  %v451_v61 = vld [vmem:[%s15073_s2 + $0x9b0] sm:$0xff] }
  0x7a   :  { %1391 = vmatmul.mubr.f32.gmra.mrb[26].mxu1 %v120_v3  ;;  %7716 = vmatpush1.bf16.msra.mxu0 %v7715_v4  ;;  %v7733_v3 = vpack.c.bf16 %v418_v58, %v414_v57  ;;  %v415_v4 = vld [vmem:[%s15073_s2 + $0x890] sm:$0xff]  ;;  %v449_v57 = vld [vmem:[%s15073_s2 + $0x9a0] sm:$0xff]  ;;  %v74_v58 = vld [vmem:[%s15074_s0 + $0x168] sm:$0xff] }
  0x7b   :  { %7912 = vmatpush1.bf16.msra.mxu1 %v7911_v7  ;;  %752 = vmatprep.mubr.f32.mxu0 %v128_v10  ;;  %v422_v7 = vld [vmem:[%s15073_s2 + $0x8c8] sm:$0xff]  ;;  %v7931_v13 = vpack.c.bf16 %v419_v5, %v415_v4  ;;  %v460_v4 = vld [vmem:[%s15073_s2 + $0x9f8] sm:$0xff] }
  0x7c   :  { %1396 = vmatprep.mubr.f32.mxu1 %v128_v10  ;;  %7718 = vmatprep.subr.bf16.mxu0 %v7717_v11  ;;  %v7735_v10 = vpack.c.bf16 %v417_v1, %v413_v0  ;;  %v424_v11 = vld [vmem:[%s15073_s2 + $0x8d8] sm:$0xff]  ;;  %v458_v0 = vld [vmem:[%s15073_s2 + $0x9e8] sm:$0xff]  ;;  %v73_v1 = vld [vmem:[%s15074_s0 + $0x160] sm:$0xff] }
  0x7d   :  { %753 = vmatmul.mubr.f32.gmra.mrb[28].mxu0 %v127_v17  ;;  %7914 = vmatprep.subr.bf16.mxu1 %v7913_v14  ;;  %v421_v14 = vld [vmem:[%s15073_s2 + $0x8c0] sm:$0xff]  ;;  %v7933_v20 = vpack.c.bf16 %v428_v12, %v424_v11  ;;  %v459_v11 = vld [vmem:[%s15073_s2 + $0x9f0] sm:$0xff] }
  0x7e   :  { %1397 = vmatmul.mubr.f32.gmra.mrb[28].mxu1 %v127_v17  ;;  %7720 = vmatpush1.bf16.msra.mxu0 %v7719_v18  ;;  %v7737_v17 = vpack.c.bf16 %v426_v8, %v422_v7  ;;  %v423_v18 = vld [vmem:[%s15073_s2 + $0x8d0] sm:$0xff]  ;;  %v457_v7 = vld [vmem:[%s15073_s2 + $0x9e0] sm:$0xff] }
  0x7f   :  { %7916 = vmatpush1.bf16.msra.mxu1 %v7915_v21  ;;  %758 = vmatprep.mubr.f32.mxu0 %v135_v24  ;;  %v430_v21 = vld [vmem:[%s15073_s2 + $0x908] sm:$0xff]  ;;  %v7935_v27 = vpack.c.bf16 %v427_v19, %v423_v18  ;;  %v81_v8 = vld [vmem:[%s15074_s0 + $0x1a0] sm:$0xff]  ;;  %v468_v18 = vld [vmem:[%s15073_s2 + $0xa38] sm:$0xff] }
  0x80   :  { %1402 = vmatprep.mubr.f32.mxu1 %v135_v24  ;;  %7722 = vmatprep.subr.bf16.mxu0 %v7721_v25  ;;  %v7739_v24 = vpack.c.bf16 %v425_v15, %v421_v14  ;;  %v432_v25 = vld [vmem:[%s15073_s2 + $0x918] sm:$0xff]  ;;  %v466_v14 = vld [vmem:[%s15073_s2 + $0xa28] sm:$0xff] }
  0x81   :  { %759 = vmatmul.mubr.f32.gmra.mrb[30].mxu0 %v134_v31  ;;  %7918 = vmatprep.subr.bf16.mxu1 %v7917_v28  ;;  %v429_v28 = vld [vmem:[%s15073_s2 + $0x900] sm:$0xff]  ;;  %v7937_v34 = vpack.c.bf16 %v436_v26, %v432_v25  ;;  %v80_v15 = vld [vmem:[%s15074_s0 + $0x198] sm:$0xff]  ;;  %v467_v25 = vld [vmem:[%s15073_s2 + $0xa30] sm:$0xff] }
  0x82   :  { %1403 = vmatmul.mubr.f32.gmra.mrb[30].mxu1 %v134_v31  ;;  %7724 = vmatpush1.bf16.msra.mxu0 %v7723_v32  ;;  %v7741_v31 = vpack.c.bf16 %v434_v22, %v430_v21  ;;  %v431_v32 = vld [vmem:[%s15073_s2 + $0x910] sm:$0xff]  ;;  %v465_v21 = vld [vmem:[%s15073_s2 + $0xa20] sm:$0xff]  ;;  %v88_v22 = vld [vmem:[%s15074_s0 + $0x1d8] sm:$0xff] }
  0x83   :  { %7920 = vmatpush1.bf16.msra.mxu1 %v7919_v35  ;;  %829 = vmatprep.mubr.f32.mxu0 %v32_v38  ;;  %v438_v35 = vld [vmem:[%s15073_s2 + $0x948] sm:$0xff]  ;;  %v7939_v41 = vpack.c.bf16 %v435_v33, %v431_v32  ;;  %v476_v32 = vld [vmem:[%s15073_s2 + $0xa78] sm:$0xff] }
  0x84   :  { %1473 = vmatprep.mubr.f32.mxu1 %v32_v38  ;;  %7726 = vmatprep.subr.bf16.mxu0 %v7725_v39  ;;  %v7743_v38 = vpack.c.bf16 %v433_v29, %v429_v28  ;;  %v440_v39 = vld [vmem:[%s15073_s2 + $0x958] sm:$0xff]  ;;  %v474_v28 = vld [vmem:[%s15073_s2 + $0xa68] sm:$0xff]  ;;  %v87_v29 = vld [vmem:[%s15074_s0 + $0x1d0] sm:$0xff] }
  0x85   :  { %830 = vmatmul.mubr.f32.vlgmr.msra.gmra.mrb[0].mxu0 %v31_v45  ;;  %7922 = vmatprep.subr.bf16.mxu1 %v7921_v42  ;;  %v437_v42 = vld [vmem:[%s15073_s2 + $0x940] sm:$0xff]  ;;  %v7941_v48 = vpack.c.bf16 %v444_v40, %v440_v39  ;;  %v475_v39 = vld [vmem:[%s15073_s2 + $0xa70] sm:$0xff] }
  0x86   :  { %1474 = vmatmul.mubr.f32.vlgmr.msra.gmra.mrb[0].mxu1 %v31_v45  ;;  %7728 = vmatpush1.bf16.msra.mxu0 %v7727_v46  ;;  %v7745_v45 = vpack.c.bf16 %v442_v36, %v438_v35  ;;  %v439_v46 = vld [vmem:[%s15073_s2 + $0x950] sm:$0xff]  ;;  %v473_v35 = vld [vmem:[%s15073_s2 + $0xa60] sm:$0xff] }
  0x87   :  { %7924 = vmatpush1.bf16.msra.mxu1 %v7923_v49  ;;  %835 = vmatprep.mubr.f32.mxu0 %v39_v52  ;;  %v446_v49 = vld [vmem:[%s15073_s2 + $0x988] sm:$0xff]  ;;  %v7943_v55 = vpack.c.bf16 %v443_v47, %v439_v46  ;;  %v95_v36 = vld [vmem:[%s15074_s0 + $0x210] sm:$0xff]  ;;  %v484_v46 = vld [vmem:[%s15073_s2 + $0xab8] sm:$0xff] }
  0x88   :  { %1479 = vmatprep.mubr.f32.mxu1 %v39_v52  ;;  %7730 = vmatprep.subr.bf16.mxu0 %v7729_v53  ;;  %v7747_v52 = vpack.c.bf16 %v441_v43, %v437_v42  ;;  %v448_v53 = vld [vmem:[%s15073_s2 + $0x998] sm:$0xff]  ;;  %v482_v42 = vld [vmem:[%s15073_s2 + $0xaa8] sm:$0xff] }
  0x89   :  { %836 = vmatmul.mubr.f32.gmra.mrb[2].mxu0 %v38_v59  ;;  %7926 = vmatprep.subr.bf16.mxu1 %v7925_v56  ;;  %v445_v56 = vld [vmem:[%s15073_s2 + $0x980] sm:$0xff]  ;;  %v7945_v62 = vpack.c.bf16 %v452_v54, %v448_v53  ;;  %v94_v43 = vld [vmem:[%s15074_s0 + $0x208] sm:$0xff]  ;;  %v483_v53 = vld [vmem:[%s15073_s2 + $0xab0] sm:$0xff] }
  0x8a   :  { %1480 = vmatmul.mubr.f32.gmra.mrb[2].mxu1 %v38_v59  ;;  %7732 = vmatpush1.bf16.msra.mxu0 %v7731_v60  ;;  %v7749_v59 = vpack.c.bf16 %v450_v50, %v446_v49  ;;  %v447_v60 = vld [vmem:[%s15073_s2 + $0x990] sm:$0xff]  ;;  %v481_v49 = vld [vmem:[%s15073_s2 + $0xaa0] sm:$0xff]  ;;  %v102_v50 = vld [vmem:[%s15074_s0 + $0x248] sm:$0xff] }
  0x8b   :  { %7928 = vmatpush1.bf16.msra.mxu1 %v7927_v63  ;;  %841 = vmatprep.mubr.f32.mxu0 %v46_v2  ;;  %v454_v63 = vld [vmem:[%s15073_s2 + $0x9c8] sm:$0xff]  ;;  %v7947_v5 = vpack.c.bf16 %v451_v61, %v447_v60  ;;  %v492_v60 = vld [vmem:[%s15073_s2 + $0xaf8] sm:$0xff] }
  0x8c   :  { %1485 = vmatprep.mubr.f32.mxu1 %v46_v2  ;;  %7734 = vmatprep.subr.bf16.mxu0 %v7733_v3  ;;  %v7751_v2 = vpack.c.bf16 %v449_v57, %v445_v56  ;;  %v456_v3 = vld [vmem:[%s15073_s2 + $0x9d8] sm:$0xff]  ;;  %v490_v56 = vld [vmem:[%s15073_s2 + $0xae8] sm:$0xff]  ;;  %v101_v57 = vld [vmem:[%s15074_s0 + $0x240] sm:$0xff] }
  0x8d   :  { %842 = vmatmul.mubr.f32.gmra.mrb[4].mxu0 %v45_v9  ;;  %7930 = vmatprep.subr.bf16.mxu1 %v7929_v6  ;;  %v453_v6 = vld [vmem:[%s15073_s2 + $0x9c0] sm:$0xff]  ;;  %v7949_v12 = vpack.c.bf16 %v460_v4, %v456_v3  ;;  %v491_v3 = vld [vmem:[%s15073_s2 + $0xaf0] sm:$0xff] }
  0x8e   :  { %1486 = vmatmul.mubr.f32.gmra.mrb[4].mxu1 %v45_v9  ;;  %7736 = vmatpush1.bf16.msra.mxu0 %v7735_v10  ;;  %v7753_v9 = vpack.c.bf16 %v458_v0, %v454_v63  ;;  %v455_v10 = vld [vmem:[%s15073_s2 + $0x9d0] sm:$0xff]  ;;  %v489_v63 = vld [vmem:[%s15073_s2 + $0xae0] sm:$0xff] }
  0x8f   :  { %7932 = vmatpush1.bf16.msra.mxu1 %v7931_v13  ;;  %847 = vmatprep.mubr.f32.mxu0 %v53_v16  ;;  %v462_v13 = vld [vmem:[%s15073_s2 + $0xa08] sm:$0xff]  ;;  %v7951_v19 = vpack.c.bf16 %v459_v11, %v455_v10  ;;  %v109_v0 = vld [vmem:[%s15074_s0 + $0x280] sm:$0xff]  ;;  %v500_v10 = vld [vmem:[%s15073_s2 + $0xb38] sm:$0xff] }
  0x90   :  { %1491 = vmatprep.mubr.f32.mxu1 %v53_v16  ;;  %7738 = vmatprep.subr.bf16.mxu0 %v7737_v17  ;;  %v7755_v16 = vpack.c.bf16 %v457_v7, %v453_v6  ;;  %v464_v17 = vld [vmem:[%s15073_s2 + $0xa18] sm:$0xff]  ;;  %v498_v6 = vld [vmem:[%s15073_s2 + $0xb28] sm:$0xff] }
  0x91   :  { %848 = vmatmul.mubr.f32.gmra.mrb[6].mxu0 %v52_v23  ;;  %7934 = vmatprep.subr.bf16.mxu1 %v7933_v20  ;;  %v461_v20 = vld [vmem:[%s15073_s2 + $0xa00] sm:$0xff]  ;;  %v7953_v26 = vpack.c.bf16 %v468_v18, %v464_v17  ;;  %v108_v7 = vld [vmem:[%s15074_s0 + $0x278] sm:$0xff]  ;;  %v499_v17 = vld [vmem:[%s15073_s2 + $0xb30] sm:$0xff] }
  0x92   :  { %1492 = vmatmul.mubr.f32.gmra.mrb[6].mxu1 %v52_v23  ;;  %7740 = vmatpush1.bf16.msra.mxu0 %v7739_v24  ;;  %v7757_v23 = vpack.c.bf16 %v466_v14, %v462_v13  ;;  %v463_v24 = vld [vmem:[%s15073_s2 + $0xa10] sm:$0xff]  ;;  %v497_v13 = vld [vmem:[%s15073_s2 + $0xb20] sm:$0xff]  ;;  %v116_v14 = vld [vmem:[%s15074_s0 + $0x2b8] sm:$0xff] }
  0x93   :  { %7936 = vmatpush1.bf16.msra.mxu1 %v7935_v27  ;;  %853 = vmatprep.mubr.f32.mxu0 %v60_v30  ;;  %v470_v27 = vld [vmem:[%s15073_s2 + $0xa48] sm:$0xff]  ;;  %v7955_v33 = vpack.c.bf16 %v467_v25, %v463_v24  ;;  %v508_v24 = vld [vmem:[%s15073_s2 + $0xb78] sm:$0xff] }
  0x94   :  { %1497 = vmatprep.mubr.f32.mxu1 %v60_v30  ;;  %7742 = vmatprep.subr.bf16.mxu0 %v7741_v31  ;;  %v7759_v30 = vpack.c.bf16 %v465_v21, %v461_v20  ;;  %v472_v31 = vld [vmem:[%s15073_s2 + $0xa58] sm:$0xff]  ;;  %v506_v20 = vld [vmem:[%s15073_s2 + $0xb68] sm:$0xff]  ;;  %v115_v21 = vld [vmem:[%s15074_s0 + $0x2b0] sm:$0xff] }
  0x95   :  { %854 = vmatmul.mubr.f32.gmra.mrb[8].mxu0 %v59_v37  ;;  %7938 = vmatprep.subr.bf16.mxu1 %v7937_v34  ;;  %v469_v34 = vld [vmem:[%s15073_s2 + $0xa40] sm:$0xff]  ;;  %v7957_v40 = vpack.c.bf16 %v476_v32, %v472_v31  ;;  %v507_v31 = vld [vmem:[%s15073_s2 + $0xb70] sm:$0xff] }
  0x96   :  { %1498 = vmatmul.mubr.f32.gmra.mrb[8].mxu1 %v59_v37  ;;  %7744 = vmatpush1.bf16.msra.mxu0 %v7743_v38  ;;  %v7761_v37 = vpack.c.bf16 %v474_v28, %v470_v27  ;;  %v471_v38 = vld [vmem:[%s15073_s2 + $0xa50] sm:$0xff]  ;;  %v505_v27 = vld [vmem:[%s15073_s2 + $0xb60] sm:$0xff] }
  0x97   :  { %7940 = vmatpush1.bf16.msra.mxu1 %v7939_v41  ;;  %859 = vmatprep.mubr.f32.mxu0 %v67_v44  ;;  %v478_v41 = vld [vmem:[%s15073_s2 + $0xa88] sm:$0xff]  ;;  %v7959_v47 = vpack.c.bf16 %v475_v39, %v471_v38  ;;  %v123_v28 = vld [vmem:[%s15074_s0 + $0x2f0] sm:$0xff]  ;;  %v516_v38 = vld [vmem:[%s15073_s2 + $0xbb8] sm:$0xff] }
  0x98   :  { %1503 = vmatprep.mubr.f32.mxu1 %v67_v44  ;;  %7746 = vmatprep.subr.bf16.mxu0 %v7745_v45  ;;  %v7763_v44 = vpack.c.bf16 %v473_v35, %v469_v34  ;;  %v480_v45 = vld [vmem:[%s15073_s2 + $0xa98] sm:$0xff]  ;;  %v514_v34 = vld [vmem:[%s15073_s2 + $0xba8] sm:$0xff] }
  0x99   :  { %860 = vmatmul.mubr.f32.gmra.mrb[10].mxu0 %v66_v51  ;;  %7942 = vmatprep.subr.bf16.mxu1 %v7941_v48  ;;  %v477_v48 = vld [vmem:[%s15073_s2 + $0xa80] sm:$0xff]  ;;  %v7961_v54 = vpack.c.bf16 %v484_v46, %v480_v45  ;;  %v122_v35 = vld [vmem:[%s15074_s0 + $0x2e8] sm:$0xff]  ;;  %v515_v45 = vld [vmem:[%s15073_s2 + $0xbb0] sm:$0xff] }
  0x9a   :  { %1504 = vmatmul.mubr.f32.gmra.mrb[10].mxu1 %v66_v51  ;;  %7748 = vmatpush1.bf16.msra.mxu0 %v7747_v52  ;;  %v7765_v51 = vpack.c.bf16 %v482_v42, %v478_v41  ;;  %v479_v52 = vld [vmem:[%s15073_s2 + $0xa90] sm:$0xff]  ;;  %v513_v41 = vld [vmem:[%s15073_s2 + $0xba0] sm:$0xff]  ;;  %v130_v42 = vld [vmem:[%s15074_s0 + $0x328] sm:$0xff] }
  0x9b   :  { %7944 = vmatpush1.bf16.msra.mxu1 %v7943_v55  ;;  %865 = vmatprep.mubr.f32.mxu0 %v74_v58  ;;  %v486_v55 = vld [vmem:[%s15073_s2 + $0xac8] sm:$0xff]  ;;  %v7963_v61 = vpack.c.bf16 %v483_v53, %v479_v52  ;;  %v524_v52 = vld [vmem:[%s15073_s2 + $0xbf8] sm:$0xff] }
  0x9c   :  { %1509 = vmatprep.mubr.f32.mxu1 %v74_v58  ;;  %7750 = vmatprep.subr.bf16.mxu0 %v7749_v59  ;;  %v7767_v58 = vpack.c.bf16 %v481_v49, %v477_v48  ;;  %v488_v59 = vld [vmem:[%s15073_s2 + $0xad8] sm:$0xff]  ;;  %v522_v48 = vld [vmem:[%s15073_s2 + $0xbe8] sm:$0xff]  ;;  %v129_v49 = vld [vmem:[%s15074_s0 + $0x320] sm:$0xff] }
  0x9d   :  { %866 = vmatmul.mubr.f32.gmra.mrb[12].mxu0 %v73_v1  ;;  %7946 = vmatprep.subr.bf16.mxu1 %v7945_v62  ;;  %v485_v62 = vld [vmem:[%s15073_s2 + $0xac0] sm:$0xff]  ;;  %v7965_v4 = vpack.c.bf16 %v492_v60, %v488_v59  ;;  %v523_v59 = vld [vmem:[%s15073_s2 + $0xbf0] sm:$0xff] }
  0x9e   :  { %1510 = vmatmul.mubr.f32.gmra.mrb[12].mxu1 %v73_v1  ;;  %7752 = vmatpush1.bf16.msra.mxu0 %v7751_v2  ;;  %v7769_v1 = vpack.c.bf16 %v490_v56, %v486_v55  ;;  %v487_v2 = vld [vmem:[%s15073_s2 + $0xad0] sm:$0xff]  ;;  %v521_v55 = vld [vmem:[%s15073_s2 + $0xbe0] sm:$0xff] }
  0x9f   :  { %7948 = vmatpush1.bf16.msra.mxu1 %v7947_v5  ;;  %871 = vmatprep.mubr.f32.mxu0 %v81_v8  ;;  %v494_v5 = vld [vmem:[%s15073_s2 + $0xb08] sm:$0xff]  ;;  %v7967_v11 = vpack.c.bf16 %v491_v3, %v487_v2  ;;  %v137_v56 = vld [vmem:[%s15074_s0 + $0x360] sm:$0xff]  ;;  %v532_v2 = vld [vmem:[%s15073_s2 + $0xc38] sm:$0xff] }
  0xa0   :  { %1515 = vmatprep.mubr.f32.mxu1 %v81_v8  ;;  %7754 = vmatprep.subr.bf16.mxu0 %v7753_v9  ;;  %v7771_v8 = vpack.c.bf16 %v489_v63, %v485_v62  ;;  %v496_v9 = vld [vmem:[%s15073_s2 + $0xb18] sm:$0xff]  ;;  %v530_v62 = vld [vmem:[%s15073_s2 + $0xc28] sm:$0xff] }
  0xa1   :  { %872 = vmatmul.mubr.f32.gmra.mrb[14].mxu0 %v80_v15  ;;  %7950 = vmatprep.subr.bf16.mxu1 %v7949_v12  ;;  %v493_v12 = vld [vmem:[%s15073_s2 + $0xb00] sm:$0xff]  ;;  %v7969_v18 = vpack.c.bf16 %v500_v10, %v496_v9  ;;  %v136_v63 = vld [vmem:[%s15074_s0 + $0x358] sm:$0xff]  ;;  %v527_v9 = vld [vmem:[%s15073_s2 + $0xc10] sm:$0xff] }
  0xa2   :  { %1516 = vmatmul.mubr.f32.gmra.mrb[14].mxu1 %v80_v15  ;;  %7756 = vmatpush1.bf16.msra.mxu0 %v7755_v16  ;;  %v7773_v15 = vpack.c.bf16 %v498_v6, %v494_v5  ;;  %v495_v16 = vld [vmem:[%s15073_s2 + $0xb10] sm:$0xff]  ;;  %v529_v5 = vld [vmem:[%s15073_s2 + $0xc20] sm:$0xff]  ;;  %v34_v6 = vld [vmem:[%s15074_s0 + $0x28] sm:$0xff] }
  0xa3   :  { %7952 = vmatpush1.bf16.msra.mxu1 %v7951_v19  ;;  %877 = vmatprep.mubr.f32.mxu0 %v88_v22  ;;  %v502_v19 = vld [vmem:[%s15073_s2 + $0xb48] sm:$0xff]  ;;  %v7971_v25 = vpack.c.bf16 %v499_v17, %v495_v16  ;;  %v531_v10 = vld [vmem:[%s15073_s2 + $0xc30] sm:$0xff]  ;;  %v48_v16 = vld [vmem:[%s15074_s0 + $0x98] sm:$0xff] }
  0xa4   :  { %1521 = vmatprep.mubr.f32.mxu1 %v88_v22  ;;  %7758 = vmatprep.subr.bf16.mxu0 %v7757_v23  ;;  %v7775_v22 = vpack.c.bf16 %v497_v13, %v493_v12  ;;  %v504_v23 = vld [vmem:[%s15073_s2 + $0xb58] sm:$0xff]  ;;  %v41_v13 = vld [vmem:[%s15074_s0 + $0x60] sm:$0xff]  ;;  %v47_v17 = vld [vmem:[%s15074_s0 + $0x90] sm:$0xff] }
  0xa5   :  { %878 = vmatmul.mubr.f32.gmra.mrb[16].mxu0 %v87_v29  ;;  %7954 = vmatprep.subr.bf16.mxu1 %v7953_v26  ;;  %v501_v26 = vld [vmem:[%s15073_s2 + $0xb40] sm:$0xff]  ;;  %v7973_v32 = vpack.c.bf16 %v508_v24, %v504_v23  ;;  %v68_v23 = vld [vmem:[%s15074_s0 + $0x138] sm:$0xff] }
  0xa6   :  { %1522 = vmatmul.mubr.f32.gmra.mrb[16].mxu1 %v87_v29  ;;  %7760 = vmatpush1.bf16.msra.mxu0 %v7759_v30  ;;  %v7777_v29 = vpack.c.bf16 %v506_v20, %v502_v19  ;;  %v503_v30 = vld [vmem:[%s15073_s2 + $0xb50] sm:$0xff]  ;;  %v54_v19 = vld [vmem:[%s15074_s0 + $0xc8] sm:$0xff]  ;;  %v76_v24 = vld [vmem:[%s15074_s0 + $0x178] sm:$0xff] }
  0xa7   :  { %7956 = vmatpush1.bf16.msra.mxu1 %v7955_v33  ;;  %883 = vmatprep.mubr.f32.mxu0 %v95_v36  ;;  %v510_v33 = vld [vmem:[%s15073_s2 + $0xb88] sm:$0xff]  ;;  %v7975_v39 = vpack.c.bf16 %v507_v31, %v503_v30  ;;  %v97_v30 = vld [vmem:[%s15074_s0 + $0x220] sm:$0xff]  ;;  %v96_v31 = vld [vmem:[%s15074_s0 + $0x218] sm:$0xff] }
  0xa8   :  { %1527 = vmatprep.mubr.f32.mxu1 %v95_v36  ;;  %7762 = vmatprep.subr.bf16.mxu0 %v7761_v37  ;;  %v7779_v36 = vpack.c.bf16 %v505_v27, %v501_v26  ;;  %v512_v37 = vld [vmem:[%s15073_s2 + $0xb98] sm:$0xff]  ;;  %v62_v20 = vld [vmem:[%s15074_s0 + $0x108] sm:$0xff]  ;;  %v83_v26 = vld [vmem:[%s15074_s0 + $0x1b0] sm:$0xff] }
  0xa9   :  { %884 = vmatmul.mubr.f32.gmra.mrb[18].mxu0 %v94_v43  ;;  %7958 = vmatprep.subr.bf16.mxu1 %v7957_v40  ;;  %v509_v40 = vld [vmem:[%s15073_s2 + $0xb80] sm:$0xff]  ;;  %v7977_v46 = vpack.c.bf16 %v516_v38, %v512_v37  ;;  %v82_v27 = vld [vmem:[%s15074_s0 + $0x1a8] sm:$0xff] }
  0xaa   :  { %1528 = vmatmul.mubr.f32.gmra.mrb[18].mxu1 %v94_v43  ;;  %7764 = vmatpush1.bf16.msra.mxu0 %v7763_v44  ;;  %v7781_v43 = vpack.c.bf16 %v514_v34, %v510_v33  ;;  %v511_v44 = vld [vmem:[%s15073_s2 + $0xb90] sm:$0xff]  ;;  %v117_v37 = vld [vmem:[%s15074_s0 + $0x2c0] sm:$0xff] }
  0xab   :  { %7960 = vmatpush1.bf16.msra.mxu1 %v7959_v47  ;;  %889 = vmatprep.mubr.f32.mxu0 %v102_v50  ;;  %v518_v47 = vld [vmem:[%s15073_s2 + $0xbc8] sm:$0xff]  ;;  %v7979_v53 = vpack.c.bf16 %v515_v45, %v511_v44  ;;  %v103_v33 = vld [vmem:[%s15074_s0 + $0x250] sm:$0xff]  ;;  %v125_v38 = vld [vmem:[%s15074_s0 + $0x300] sm:$0xff]  ;;  %v9270_v44 = vmov 0.0  }
  0xac   :  { %1533 = vmatprep.mubr.f32.mxu1 %v102_v50  ;;  %7766 = vmatprep.subr.bf16.mxu0 %v7765_v51  ;;  %v7783_v50 = vpack.c.bf16 %v513_v41, %v509_v40  ;;  %v520_v51 = vld [vmem:[%s15073_s2 + $0xbd8] sm:$0xff]  ;;  %v111_v34 = vld [vmem:[%s15074_s0 + $0x290] sm:$0xff] }
  0xad   :  { %890 = vmatmul.mubr.f32.gmra.mrb[20].mxu0 %v101_v57  ;;  %7962 = vmatprep.subr.bf16.mxu1 %v7961_v54  ;;  %v517_v54 = vld [vmem:[%s15073_s2 + $0xbc0] sm:$0xff]  ;;  %v7981_v60 = vpack.c.bf16 %v524_v52, %v520_v51  ;;  %v132_v40 = vld [vmem:[%s15074_s0 + $0x338] sm:$0xff]  ;;  %v131_v41 = vld [vmem:[%s15074_s0 + $0x330] sm:$0xff] }
  0xae   :  { %1534 = vmatmul.mubr.f32.gmra.mrb[20].mxu1 %v101_v57  ;;  %7768 = vmatpush1.bf16.msra.mxu0 %v7767_v58  ;;  %v7785_v57 = vpack.c.bf16 %v522_v48, %v518_v47  ;;  %v519_v58 = vld [vmem:[%s15073_s2 + $0xbd0] sm:$0xff]  ;;  %v49_v47 = vld [vmem:[%s15074_s0 + $0xa0] sm:$0xff]  ;;  %v56_v48 = vld [vmem:[%s15074_s0 + $0xd8] sm:$0xff] }
  0xaf   :  { %7964 = vmatpush1.bf16.msra.mxu1 %v7963_v61  ;;  %895 = vmatprep.mubr.f32.mxu0 %v109_v0  ;;  %v526_v61 = vld [vmem:[%s15073_s2 + $0xc08] sm:$0xff]  ;;  %v7983_v3 = vpack.c.bf16 %v523_v59, %v519_v58  ;;  %v35_v45 = vld [vmem:[%s15074_s0 + $0x30] sm:$0xff]  ;;  %v77_v51 = vld [vmem:[%s15074_s0 + $0x180] sm:$0xff] }
  0xb0   :  { %1539 = vmatprep.mubr.f32.mxu1 %v109_v0  ;;  %7770 = vmatprep.subr.bf16.mxu0 %v7769_v1  ;;  %v7787_v0 = vpack.c.bf16 %v521_v55, %v517_v54  ;;  %v528_v1 = vld [vmem:[%s15073_s2 + $0xc18] sm:$0xff]  ;;  %v98_v54 = vld [vmem:[%s15074_s0 + $0x228] sm:$0xff]  ;;  %v105_v55 = vld [vmem:[%s15074_s0 + $0x260] sm:$0xff] }
  0xb1   :  { %896 = vmatmul.mubr.f32.gmra.mrb[22].mxu0 %v108_v7  ;;  %7966 = vmatprep.subr.bf16.mxu1 %v7965_v4  ;;  %v525_v4 = vld [vmem:[%s15073_s2 + $0xc00] sm:$0xff]  ;;  %v84_v52 = vld [vmem:[%s15074_s0 + $0x1b8] sm:$0xff]  ;;  %v126_v58 = vld [vmem:[%s15074_s0 + $0x308] sm:$0xff] }
  0xb2   :  { %1540 = vmatmul.mubr.f32.gmra.mrb[22].mxu1 %v108_v7  ;;  %7772 = vmatpush1.bf16.msra.mxu0 %v7771_v8  ;;  %v7789_v7 = vpack.c.bf16 %v530_v62, %v526_v61  ;;  %v7985_v8 = vpack.c.bf16 %v532_v2, %v528_v1  ;;  %v7791_v12 = vpack.c.bf16 %v529_v5, %v525_v4  ;;  %v133_v59 = vld [vmem:[%s15074_s0 + $0x340] sm:$0xff]  ;;  %v535_v61 = vlaneseq }
  0xb3   :  { %7968 = vmatpush1.bf16.msra.mxu1 %v7967_v11  ;;  %901 = vmatprep.mubr.f32.mxu0 %v116_v14  ;;  %v33_v11 = vld [vmem:[%s15074_s0 + $0x20] sm:$0xff] }
  0xb4   :  { %1545 = vmatprep.mubr.f32.mxu1 %v116_v14  ;;  %7774 = vmatprep.subr.bf16.mxu0 %v7773_v15  ;;  %v7987_v14 = vpack.c.bf16 %v531_v10, %v527_v9  ;;  %v40_v15 = vld [vmem:[%s15074_s0 + $0x58] sm:$0xff]  ;;  %v10896_v62 = vshrl.u32 %v535_v61, 7 }
  0xb5   :  { %902 = vmatmul.mubr.f32.gmra.mrb[24].mxu0 %v115_v21  ;;  %7970 = vmatprep.subr.bf16.mxu1 %v7969_v18  ;;  %v55_v18 = vld [vmem:[%s15074_s0 + $0xd0] sm:$0xff] }
  0xb6   :  { %1546 = vmatmul.mubr.f32.gmra.mrb[24].mxu1 %v115_v21  ;;  %7776 = vmatpush1.bf16.msra.mxu0 %v7775_v22  ;;  %v61_v21 = vld [vmem:[%s15074_s0 + $0x100] sm:$0xff]  ;;  %15230 = vst [vmem:[#allocation2_spill] sm:$0xff] %v10896_v62  ;;  %v10908_v2 = vsub.s32 2, %v10896_v62 }
  0xb7   :  { %7972 = vmatpush1.bf16.msra.mxu1 %v7971_v25  ;;  %907 = vmatprep.mubr.f32.mxu0 %v123_v28  ;;  %v69_v22 = vld [vmem:[%s15074_s0 + $0x140] sm:$0xff]  ;;  %v75_v25 = vld [vmem:[%s15074_s0 + $0x170] sm:$0xff] }
  0xb8   :  { %1551 = vmatprep.mubr.f32.mxu1 %v123_v28  ;;  %7778 = vmatprep.subr.bf16.mxu0 %v7777_v29  ;;  %v90_v28 = vld [vmem:[%s15074_s0 + $0x1e8] sm:$0xff]  ;;  %v89_v29 = vld [vmem:[%s15074_s0 + $0x1e0] sm:$0xff]  ;;  %15233 = vst [vmem:[#allocation5_spill] sm:$0xff] %v10908_v2 }
  0xb9   :  { %908 = vmatmul.mubr.f32.gmra.mrb[26].mxu0 %v122_v35  ;;  %7974 = vmatprep.subr.bf16.mxu1 %v7973_v32  ;;  %v104_v32 = vld [vmem:[%s15074_s0 + $0x258] sm:$0xff] }
  0xba   :  { %1552 = vmatmul.mubr.f32.gmra.mrb[26].mxu1 %v122_v35  ;;  %7780 = vmatpush1.bf16.msra.mxu0 %v7779_v36  ;;  %v110_v35 = vld [vmem:[%s15074_s0 + $0x288] sm:$0xff] }
  0xbb   :  { %7976 = vmatpush1.bf16.msra.mxu1 %v7975_v39  ;;  %913 = vmatprep.mubr.f32.mxu0 %v130_v42  ;;  %v118_v36 = vld [vmem:[%s15074_s0 + $0x2c8] sm:$0xff]  ;;  %v124_v39 = vld [vmem:[%s15074_s0 + $0x2f8] sm:$0xff] }
  0xbc   :  { %1557 = vmatprep.mubr.f32.mxu1 %v130_v42  ;;  %7782 = vmatprep.subr.bf16.mxu0 %v7781_v43  ;;  %v139_v42 = vld [vmem:[%s15074_s0 + $0x370] sm:$0xff]  ;;  %v138_v43 = vld [vmem:[%s15074_s0 + $0x368] sm:$0xff] }
  0xbd   :  { %914 = vmatmul.mubr.f32.gmra.mrb[28].mxu0 %v129_v49  ;;  %7978 = vmatprep.subr.bf16.mxu1 %v7977_v46  ;;  %v42_v46 = vld [vmem:[%s15074_s0 + $0x68] sm:$0xff] }
  0xbe   :  { %1558 = vmatmul.mubr.f32.gmra.mrb[28].mxu1 %v129_v49  ;;  %7784 = vmatpush1.bf16.msra.mxu0 %v7783_v50  ;;  %v63_v49 = vld [vmem:[%s15074_s0 + $0x110] sm:$0xff]  ;;  %v70_v50 = vld [vmem:[%s15074_s0 + $0x148] sm:$0xff] }
  0xbf   :  { %7980 = vmatpush1.bf16.msra.mxu1 %v7979_v53  ;;  %919 = vmatprep.mubr.f32.mxu0 %v137_v56  ;;  %v91_v53 = vld [vmem:[%s15074_s0 + $0x1f0] sm:$0xff] }
  0xc0   :  { %1563 = vmatprep.mubr.f32.mxu1 %v137_v56  ;;  %7786 = vmatprep.subr.bf16.mxu0 %v7785_v57  ;;  %v112_v56 = vld [vmem:[%s15074_s0 + $0x298] sm:$0xff]  ;;  %v119_v57 = vld [vmem:[%s15074_s0 + $0x2d0] sm:$0xff] }
  0xc1   :  { %920 = vmatmul.mubr.f32.gmra.mrb[30].mxu0 %v136_v63  ;;  %7982 = vmatprep.subr.bf16.mxu1 %v7981_v60  ;;  %v140_v60 = vld [vmem:[%s15074_s0 + $0x378] sm:$0xff] }
  0xc2   :  { %1564 = vmatmul.mubr.f32.gmra.mrb[30].mxu1 %v136_v63  ;;  %7788 = vmatpush1.bf16.msra.mxu0 %v7787_v0  ;;  %v10899_v63 = vsub.s32 0, %v10896_v62  ;;  %v10902_v0 = vsub.s32 3, %v10896_v62  ;;  %v533_v1 = vld [vmem:[%s15075_s6] ss:$8 sm:$0xf] }
  0xc3   :  { %7984 = vmatpush1.bf16.msra.mxu1 %v7983_v3  ;;  %990 = vmatprep.mubr.f32.mxu0 %v34_v6  ;;  %v10911_v3 = vsub.s32 1, %v10896_v62  ;;  %v10920_v9 = vrot.slane %v533_v1, %v10908_v2 }
  0xc4   :  { %1634 = vmatprep.mubr.f32.mxu1 %v34_v6  ;;  %7790 = vmatprep.subr.bf16.mxu0 %v7789_v7  ;;  %15231 = vst [vmem:[#allocation3_spill] sm:$0xff] %v10899_v63  ;;  %15232 = vst [vmem:[#allocation4_spill] sm:$0xff] %v10902_v0  ;;  %v10914_v5 = vrot.slane %v533_v1, %v10899_v63 }
  0xc5   :  { %991 = vmatmul.mubr.f32.vlgmr.msra.gmra.mrb[0].mxu0 %v33_v11  ;;  %7986 = vmatprep.subr.bf16.mxu1 %v7985_v8  ;;  %15234 = vst [vmem:[#allocation6_spill] sm:$0xff] %v10911_v3  ;;  %v10917_v8 = vrot.slane %v533_v1, %v10902_v0  ;;  %v10923_v10 = vrot.slane %v533_v1, %v10911_v3  ;;  %v15252_v3 = vmov 0.0|0.0  }
  0xc6   :  { %1635 = vmatmul.mubr.f32.vlgmr.msra.gmra.mrb[0].mxu1 %v33_v11  ;;  %7792 = vmatpush1.bf16.msra.mxu0 %v7791_v12 }
  0xc7   :  { %996 = vmatprep.mubr.f32.mxu0 %v41_v13  ;;  %1640 = vmatprep.mubr.f32.mxu1 %v41_v13 }
  0xc8   :  { %7988 = vmatpush1.bf16.msra.mxu1 %v7987_v14 }
  0xc9   :  { %997 = vmatmul.mubr.f32.gmra.mrb[2].mxu0 %v40_v15 }
  0xca   :  { %1641 = vmatmul.mubr.f32.gmra.mrb[2].mxu1 %v40_v15  ;;  %1002 = vmatprep.mubr.f32.mxu0 %v48_v16 }
  0xcb   :  { %1646 = vmatprep.mubr.f32.mxu1 %v48_v16 }
  0xcd   :  { %1003 = vmatmul.mubr.f32.gmra.mrb[4].mxu0 %v47_v17 }
  0xce   :  { %1647 = vmatmul.mubr.f32.gmra.mrb[4].mxu1 %v47_v17  ;;  %1008 = vmatprep.mubr.f32.mxu0 %v55_v18 }
  0xcf   :  { %1652 = vmatprep.mubr.f32.mxu1 %v55_v18 }
  0xd1   :  { %1009 = vmatmul.mubr.f32.gmra.mrb[6].mxu0 %v54_v19 }
  0xd2   :  { %1653 = vmatmul.mubr.f32.gmra.mrb[6].mxu1 %v54_v19  ;;  %1014 = vmatprep.mubr.f32.mxu0 %v62_v20 }
  0xd3   :  { %1658 = vmatprep.mubr.f32.mxu1 %v62_v20 }
  0xd5   :  { %1015 = vmatmul.mubr.f32.gmra.mrb[8].mxu0 %v61_v21 }
  0xd6   :  { %1659 = vmatmul.mubr.f32.gmra.mrb[8].mxu1 %v61_v21  ;;  %1020 = vmatprep.mubr.f32.mxu0 %v69_v22 }
  0xd7   :  { %1664 = vmatprep.mubr.f32.mxu1 %v69_v22 }
  0xd9   :  { %1021 = vmatmul.mubr.f32.gmra.mrb[10].mxu0 %v68_v23 }
  0xda   :  { %1665 = vmatmul.mubr.f32.gmra.mrb[10].mxu1 %v68_v23  ;;  %1026 = vmatprep.mubr.f32.mxu0 %v76_v24 }
  0xdb   :  { %1670 = vmatprep.mubr.f32.mxu1 %v76_v24 }
  0xdd   :  { %1027 = vmatmul.mubr.f32.gmra.mrb[12].mxu0 %v75_v25 }
  0xde   :  { %1671 = vmatmul.mubr.f32.gmra.mrb[12].mxu1 %v75_v25  ;;  %1032 = vmatprep.mubr.f32.mxu0 %v83_v26 }
  0xdf   :  { %1676 = vmatprep.mubr.f32.mxu1 %v83_v26 }
  0xe1   :  { %1033 = vmatmul.mubr.f32.gmra.mrb[14].mxu0 %v82_v27 }
  0xe2   :  { %1677 = vmatmul.mubr.f32.gmra.mrb[14].mxu1 %v82_v27  ;;  %1038 = vmatprep.mubr.f32.mxu0 %v90_v28 }
  0xe3   :  { %1682 = vmatprep.mubr.f32.mxu1 %v90_v28 }
  0xe5   :  { %1039 = vmatmul.mubr.f32.gmra.mrb[16].mxu0 %v89_v29 }
  0xe6   :  { %1683 = vmatmul.mubr.f32.gmra.mrb[16].mxu1 %v89_v29  ;;  %1044 = vmatprep.mubr.f32.mxu0 %v97_v30 }
  0xe7   :  { %1688 = vmatprep.mubr.f32.mxu1 %v97_v30 }
  0xe9   :  { %1045 = vmatmul.mubr.f32.gmra.mrb[18].mxu0 %v96_v31 }
  0xea   :  { %1689 = vmatmul.mubr.f32.gmra.mrb[18].mxu1 %v96_v31  ;;  %1050 = vmatprep.mubr.f32.mxu0 %v104_v32 }
  0xeb   :  { %1694 = vmatprep.mubr.f32.mxu1 %v104_v32 }
  0xed   :  { %1051 = vmatmul.mubr.f32.gmra.mrb[20].mxu0 %v103_v33 }
  0xee   :  { %1695 = vmatmul.mubr.f32.gmra.mrb[20].mxu1 %v103_v33  ;;  %1056 = vmatprep.mubr.f32.mxu0 %v111_v34 }
  0xef   :  { %1700 = vmatprep.mubr.f32.mxu1 %v111_v34 }
  0xf1   :  { %1057 = vmatmul.mubr.f32.gmra.mrb[22].mxu0 %v110_v35 }
  0xf2   :  { %1701 = vmatmul.mubr.f32.gmra.mrb[22].mxu1 %v110_v35  ;;  %1062 = vmatprep.mubr.f32.mxu0 %v118_v36 }
  0xf3   :  { %1706 = vmatprep.mubr.f32.mxu1 %v118_v36 }
  0xf5   :  { %1063 = vmatmul.mubr.f32.gmra.mrb[24].mxu0 %v117_v37 }
  0xf6   :  { %1707 = vmatmul.mubr.f32.gmra.mrb[24].mxu1 %v117_v37  ;;  %1068 = vmatprep.mubr.f32.mxu0 %v125_v38 }
  0xf7   :  { %1712 = vmatprep.mubr.f32.mxu1 %v125_v38 }
  0xf9   :  { %1069 = vmatmul.mubr.f32.gmra.mrb[26].mxu0 %v124_v39 }
  0xfa   :  { %1713 = vmatmul.mubr.f32.gmra.mrb[26].mxu1 %v124_v39  ;;  %1074 = vmatprep.mubr.f32.mxu0 %v132_v40 }
  0xfb   :  { %1718 = vmatprep.mubr.f32.mxu1 %v132_v40 }
  0xfd   :  { %1075 = vmatmul.mubr.f32.gmra.mrb[28].mxu0 %v131_v41 }
  0xfe   :  { %1719 = vmatmul.mubr.f32.gmra.mrb[28].mxu1 %v131_v41  ;;  %1080 = vmatprep.mubr.f32.mxu0 %v139_v42 }
  0xff   :  { %1724 = vmatprep.mubr.f32.mxu1 %v139_v42 }
 0x101   :  { %1081 = vmatmul.mubr.f32.gmra.mrb[30].mxu0 %v138_v43 }
 0x102   :  { %1725 = vmatmul.mubr.f32.gmra.mrb[30].mxu1 %v138_v43  ;;  %1151 = vmatprep.mubr.f32.mxu0 %v9270_v44 }
 0x103   :  { %1795 = vmatprep.mubr.f32.mxu1 %v9270_v44 }
 0x105   :  { %7078 = vmatmul.mubr.msk.f32.vlgmr.msra.gmra.mrb[0].mxu0 %vm555_vm0, %v35_v45 }
 0x106   :  { %7094 = vmatmul.mubr.msk.f32.vlgmr.msra.gmra.mrb[0].mxu1 %vm555_vm0, %v35_v45  ;;  %1157 = vmatprep.mubr.f32.mxu0 %v9270_v44 }
 0x107   :  { %1801 = vmatprep.mubr.f32.mxu1 %v9270_v44 }
 0x109   :  { %7079 = vmatmul.mubr.msk.f32.gmra.mrb[2].mxu0 %vm555_vm0, %v42_v46 }
 0x10a   :  { %7095 = vmatmul.mubr.msk.f32.gmra.mrb[2].mxu1 %vm555_vm0, %v42_v46  ;;  %1163 = vmatprep.mubr.f32.mxu0 %v9270_v44 }
 0x10b   :  { %1807 = vmatprep.mubr.f32.mxu1 %v9270_v44 }
 0x10d   :  { %7080 = vmatmul.mubr.msk.f32.gmra.mrb[4].mxu0 %vm555_vm0, %v49_v47 }
 0x10e   :  { %7096 = vmatmul.mubr.msk.f32.gmra.mrb[4].mxu1 %vm555_vm0, %v49_v47  ;;  %1169 = vmatprep.mubr.f32.mxu0 %v9270_v44 }
 0x10f   :  { %1813 = vmatprep.mubr.f32.mxu1 %v9270_v44 }
 0x111   :  { %7081 = vmatmul.mubr.msk.f32.gmra.mrb[6].mxu0 %vm555_vm0, %v56_v48 }
 0x112   :  { %7097 = vmatmul.mubr.msk.f32.gmra.mrb[6].mxu1 %vm555_vm0, %v56_v48  ;;  %1175 = vmatprep.mubr.f32.mxu0 %v9270_v44 }
 0x113   :  { %1819 = vmatprep.mubr.f32.mxu1 %v9270_v44 }
 0x115   :  { %7082 = vmatmul.mubr.msk.f32.gmra.mrb[8].mxu0 %vm555_vm0, %v63_v49 }
 0x116   :  { %7098 = vmatmul.mubr.msk.f32.gmra.mrb[8].mxu1 %vm555_vm0, %v63_v49  ;;  %1181 = vmatprep.mubr.f32.mxu0 %v9270_v44 }
 0x117   :  { %1825 = vmatprep.mubr.f32.mxu1 %v9270_v44 }
 0x119   :  { %7083 = vmatmul.mubr.msk.f32.gmra.mrb[10].mxu0 %vm555_vm0, %v70_v50 }
 0x11a   :  { %7099 = vmatmul.mubr.msk.f32.gmra.mrb[10].mxu1 %vm555_vm0, %v70_v50  ;;  %1187 = vmatprep.mubr.f32.mxu0 %v9270_v44 }
 0x11b   :  { %1831 = vmatprep.mubr.f32.mxu1 %v9270_v44 }
 0x11d   :  { %7084 = vmatmul.mubr.msk.f32.gmra.mrb[12].mxu0 %vm555_vm0, %v77_v51 }
 0x11e   :  { %7100 = vmatmul.mubr.msk.f32.gmra.mrb[12].mxu1 %vm555_vm0, %v77_v51  ;;  %1193 = vmatprep.mubr.f32.mxu0 %v9270_v44 }
 0x11f   :  { %1837 = vmatprep.mubr.f32.mxu1 %v9270_v44 }
 0x121   :  { %7085 = vmatmul.mubr.msk.f32.gmra.mrb[14].mxu0 %vm555_vm0, %v84_v52 }
 0x122   :  { %7101 = vmatmul.mubr.msk.f32.gmra.mrb[14].mxu1 %vm555_vm0, %v84_v52  ;;  %1199 = vmatprep.mubr.f32.mxu0 %v9270_v44 }
 0x123   :  { %1843 = vmatprep.mubr.f32.mxu1 %v9270_v44 }
 0x125   :  { %7086 = vmatmul.mubr.msk.f32.gmra.mrb[16].mxu0 %vm555_vm0, %v91_v53 }
 0x126   :  { %7102 = vmatmul.mubr.msk.f32.gmra.mrb[16].mxu1 %vm555_vm0, %v91_v53  ;;  %1205 = vmatprep.mubr.f32.mxu0 %v9270_v44 }
 0x127   :  { %1849 = vmatprep.mubr.f32.mxu1 %v9270_v44 }
 0x129   :  { %7087 = vmatmul.mubr.msk.f32.gmra.mrb[18].mxu0 %vm555_vm0, %v98_v54 }
 0x12a   :  { %7103 = vmatmul.mubr.msk.f32.gmra.mrb[18].mxu1 %vm555_vm0, %v98_v54  ;;  %1211 = vmatprep.mubr.f32.mxu0 %v9270_v44 }
 0x12b   :  { %1855 = vmatprep.mubr.f32.mxu1 %v9270_v44 }
 0x12d   :  { %7088 = vmatmul.mubr.msk.f32.gmra.mrb[20].mxu0 %vm555_vm0, %v105_v55 }
 0x12e   :  { %7104 = vmatmul.mubr.msk.f32.gmra.mrb[20].mxu1 %vm555_vm0, %v105_v55  ;;  %1217 = vmatprep.mubr.f32.mxu0 %v9270_v44 }
 0x12f   :  { %1861 = vmatprep.mubr.f32.mxu1 %v9270_v44 }
 0x131   :  { %7089 = vmatmul.mubr.msk.f32.gmra.mrb[22].mxu0 %vm555_vm0, %v112_v56 }
 0x132   :  { %7105 = vmatmul.mubr.msk.f32.gmra.mrb[22].mxu1 %vm555_vm0, %v112_v56  ;;  %1223 = vmatprep.mubr.f32.mxu0 %v9270_v44 }
 0x133   :  { %1867 = vmatprep.mubr.f32.mxu1 %v9270_v44 }
 0x135   :  { %7090 = vmatmul.mubr.msk.f32.gmra.mrb[24].mxu0 %vm555_vm0, %v119_v57 }
 0x136   :  { %7106 = vmatmul.mubr.msk.f32.gmra.mrb[24].mxu1 %vm555_vm0, %v119_v57  ;;  %1229 = vmatprep.mubr.f32.mxu0 %v9270_v44 }
 0x137   :  { %1873 = vmatprep.mubr.f32.mxu1 %v9270_v44 }
 0x139   :  { %7091 = vmatmul.mubr.msk.f32.gmra.mrb[26].mxu0 %vm555_vm0, %v126_v58 }
 0x13a   :  { %7107 = vmatmul.mubr.msk.f32.gmra.mrb[26].mxu1 %vm555_vm0, %v126_v58  ;;  %1235 = vmatprep.mubr.f32.mxu0 %v9270_v44 }
 0x13b   :  { %1879 = vmatprep.mubr.f32.mxu1 %v9270_v44 }
 0x13d   :  { %7092 = vmatmul.mubr.msk.f32.gmra.mrb[28].mxu0 %vm555_vm0, %v133_v59 }
 0x13e   :  { %7108 = vmatmul.mubr.msk.f32.gmra.mrb[28].mxu1 %vm555_vm0, %v133_v59  ;;  %1241 = vmatprep.mubr.f32.mxu0 %v9270_v44 }
 0x13f   :  { %1885 = vmatprep.mubr.f32.mxu1 %v9270_v44 }
 0x141   :  { %7093 = vmatmul.mubr.msk.f32.gmra.mrb[30].mxu0 %vm555_vm0, %v140_v60 }
 0x142   :  { %7109 = vmatmul.mubr.msk.f32.gmra.mrb[30].mxu1 %vm555_vm0, %v140_v60 }
 0x1d8   :  { %v1153_v4 = vpop.f32.mrb[0].mxu0 }
 0x1d9   :  { %v1797_v6 = vpop.f32.mrb[0].mxu1  ;;  %v1155_v7 = vpop.f32.mrb[1].mxu0  ;;  %v10926_v13 = vadd.f32 %v1153_v4, %v10914_v5 }
 0x1da   :  { %v1799_v11 = vpop.f32.mrb[1].mxu1  ;;  %v10935_v18 = vadd.f32 %v1797_v6, %v10920_v9  ;;  %v10938_v19 = vadd.f32 %v1155_v7, %v10923_v10 }
 0x1db   :  { %v10929_v14 = vadd.f32 %v1799_v11, %v10917_v8 }
 0x1dc   :  { %v1159_v12 = vpop.f32.mrb[2].mxu0 }
 0x1dd   :  { %15235 = vst [vmem:[#allocation7_spill] sm:$0xff] %v10929_v14  ;;  %v10932_v15 = vadd.f32 %v1159_v12, %v10914_v5  ;;  %v1803_v16 = vpop.f32.mrb[2].mxu1  ;;  %v1161_v17 = vpop.f32.mrb[3].mxu0  ;;  %v1959_v28 = vsel %vm555_vm0, %v10929_v14, 0.0 }
 0x1de   :  { %v10941_v20 = vadd.f32 %v1803_v16, %v10920_v9  ;;  %v10944_v21 = vadd.f32 %v1161_v17, %v10923_v10  ;;  %v1805_v22 = vpop.f32.mrb[3].mxu1 }
 0x1df   :  { %v1896_v23 = vadd.f32 %v10932_v15, %v10926_v13  ;;  %v10949_v24 = vadd.f32 %v1805_v22, %v10917_v8 }
 0x1e0   :  { %v1938_v25 = vadd.f32 %v10941_v20, %v10935_v18  ;;  %v1917_v26 = vadd.f32 %v10944_v21, %v10938_v19  ;;  %v1165_v27 = vpop.f32.mrb[4].mxu0 }
 0x1e1   :  { %15236 = vst [vmem:[#allocation8_spill] sm:$0xff] %v10949_v24  ;;  %v1960_v29 = vsel %vm555_vm0, %v10949_v24, 0.0  ;;  %v10960_v30 = vadd.f32 %v1165_v27, %v10914_v5  ;;  %v1809_v31 = vpop.f32.mrb[4].mxu1  ;;  %v1167_v32 = vpop.f32.mrb[5].mxu0 }
 0x1e2   :  { %v1961_v33 = vadd.f32 %v1960_v29, %v1959_v28  ;;  %v10963_v34 = vadd.f32 %v1809_v31, %v10920_v9  ;;  %v10966_v35 = vadd.f32 %v1167_v32, %v10923_v10  ;;  %v1811_v36 = vpop.f32.mrb[5].mxu1 }
 0x1e3   :  { %v1897_v37 = vadd.f32 %v10960_v30, %v1896_v23  ;;  %v10970_v38 = vadd.f32 %v1811_v36, %v10917_v8 }
 0x1e4   :  { %v1939_v39 = vadd.f32 %v10963_v34, %v1938_v25  ;;  %v1918_v40 = vadd.f32 %v10966_v35, %v1917_v26  ;;  %v1171_v41 = vpop.f32.mrb[6].mxu0 }
 0x1e5   :  { %15237 = vst [vmem:[#allocation9_spill] sm:$0xff] %v10970_v38  ;;  %v1962_v42 = vsel %vm555_vm0, %v10970_v38, 0.0  ;;  %v10977_v43 = vadd.f32 %v1171_v41, %v10914_v5  ;;  %v1815_v44 = vpop.f32.mrb[6].mxu1  ;;  %v1173_v45 = vpop.f32.mrb[7].mxu0 }
 0x1e6   :  { %v1963_v46 = vadd.f32 %v1962_v42, %v1961_v33  ;;  %v10980_v47 = vadd.f32 %v1815_v44, %v10920_v9  ;;  %v10983_v48 = vadd.f32 %v1173_v45, %v10923_v10  ;;  %v1817_v49 = vpop.f32.mrb[7].mxu1 }
 0x1e7   :  { %v1898_v50 = vadd.f32 %v10977_v43, %v1897_v37  ;;  %v10987_v51 = vadd.f32 %v1817_v49, %v10917_v8 }
 0x1e8   :  { %v1940_v52 = vadd.f32 %v10980_v47, %v1939_v39  ;;  %v1919_v53 = vadd.f32 %v10983_v48, %v1918_v40  ;;  %v1177_v54 = vpop.f32.mrb[8].mxu0 }
 0x1e9   :  { %15238 = vst [vmem:[#allocation10_spill] sm:$0xff] %v10987_v51  ;;  %v1964_v55 = vsel %vm555_vm0, %v10987_v51, 0.0  ;;  %v10994_v56 = vadd.f32 %v1177_v54, %v10914_v5  ;;  %v1821_v57 = vpop.f32.mrb[8].mxu1  ;;  %v1179_v58 = vpop.f32.mrb[9].mxu0 }
 0x1ea   :  { %v1965_v59 = vadd.f32 %v1964_v55, %v1963_v46  ;;  %v10997_v60 = vadd.f32 %v1821_v57, %v10920_v9  ;;  %v11000_v61 = vadd.f32 %v1179_v58, %v10923_v10  ;;  %v1823_v1 = vpop.f32.mrb[9].mxu1 }
 0x1eb   :  { %v1899_v4 = vadd.f32 %v10994_v56, %v1898_v50  ;;  %v11004_v6 = vadd.f32 %v1823_v1, %v10917_v8 }
 0x1ec   :  { %15239 = vst [vmem:[#allocation11_spill] sm:$0xff] %v11000_v61  ;;  %v1941_v7 = vadd.f32 %v10997_v60, %v1940_v52  ;;  %v1920_v11 = vadd.f32 %v11000_v61, %v1919_v53  ;;  %v1183_v12 = vpop.f32.mrb[10].mxu0 }
 0x1ed   :  { %15240 = vst [vmem:[#allocation12_spill] sm:$0xff] %v11004_v6  ;;  %v1966_v16 = vsel %vm555_vm0, %v11004_v6, 0.0  ;;  %v11011_v17 = vadd.f32 %v1183_v12, %v10914_v5  ;;  %v1827_v22 = vpop.f32.mrb[10].mxu1  ;;  %v1185_v23 = vpop.f32.mrb[11].mxu0  ;;  %v2571_v12 = vld [vmem:[%s15076_s3 + $0x100] sm:$0xff] }
 0x1ee   :  { %v1967_v25 = vadd.f32 %v1966_v16, %v1965_v59  ;;  %v11014_v26 = vadd.f32 %v1827_v22, %v10920_v9  ;;  %v11017_v27 = vadd.f32 %v1185_v23, %v10923_v10  ;;  %v1829_v28 = vpop.f32.mrb[11].mxu1  ;;  %v2572_v16 = vld [vmem:[%s15076_s3 + $0x108] sm:$0xff] }
 0x1ef   :  { %v1900_v29 = vadd.f32 %v11011_v17, %v1899_v4  ;;  %v11021_v31 = vadd.f32 %v1829_v28, %v10917_v8  ;;  %v2556_v28 = vld [vmem:[%s15076_s3 + $0x88] sm:$0xff] }
 0x1f0   :  { %15241 = vst [vmem:[#allocation13_spill] sm:$0xff] %v11017_v27  ;;  %v1942_v32 = vadd.f32 %v11014_v26, %v1941_v7  ;;  %v1921_v33 = vadd.f32 %v11017_v27, %v1920_v11  ;;  %v1189_v36 = vpop.f32.mrb[12].mxu0 }
 0x1f1   :  { %15242 = vst [vmem:[#allocation14_spill] sm:$0xff] %v11021_v31  ;;  %v1968_v37 = vsel %vm555_vm0, %v11021_v31, 0.0  ;;  %v11028_v39 = vadd.f32 %v1189_v36, %v10914_v5  ;;  %v1833_v40 = vpop.f32.mrb[12].mxu1  ;;  %v1191_v41 = vpop.f32.mrb[13].mxu0 }
 0x1f2   :  { %v1969_v42 = vadd.f32 %v1968_v37, %v1967_v25  ;;  %v11031_v44 = vadd.f32 %v1833_v40, %v10920_v9  ;;  %v11034_v45 = vadd.f32 %v1191_v41, %v10923_v10  ;;  %v1835_v46 = vpop.f32.mrb[13].mxu1  ;;  %v2555_v25 = vld [vmem:[%s15076_s3 + $0x80] sm:$0xff]  ;;  %v2540_v41 = vld [vmem:[%s15076_s3 + $0x8] sm:$0xff] }
 0x1f3   :  { %v1901_v49 = vadd.f32 %v11028_v39, %v1900_v29  ;;  %v11038_v50 = vadd.f32 %v1835_v46, %v10917_v8  ;;  %v8022_v29 = vpack.c.bf16 %v2572_v16, %v2571_v12  ;;  %v7989_v37 = vpack.c.bf16 %v2556_v28, %v2555_v25  ;;  %v2539_v40 = vld [vmem:[%s15076_s3] sm:$0xff]  ;;  %v2573_v12 = vld [vmem:[%s15076_s3 + $0x110] sm:$0xff]  ;;  %v2574_v16 = vld [vmem:[%s15076_s3 + $0x118] sm:$0xff] }
 0x1f4   :  { %15243 = vst [vmem:[#allocation15_spill] sm:$0xff] %v11034_v45  ;;  %v1943_v52 = vadd.f32 %v11031_v44, %v1942_v32  ;;  %v1922_v53 = vadd.f32 %v11034_v45, %v1921_v33  ;;  %v1195_v54 = vpop.f32.mrb[14].mxu0  ;;  %v2557_v28 = vld [vmem:[%s15076_s3 + $0x90] sm:$0xff] }
 0x1f5   :  { %15244 = vst [vmem:[#allocation16_spill] sm:$0xff] %v11038_v50  ;;  %v1970_v55 = vsel %vm555_vm0, %v11038_v50, 0.0  ;;  %v11045_v57 = vadd.f32 %v1195_v54, %v10914_v5  ;;  %v1839_v58 = vpop.f32.mrb[14].mxu1  ;;  %v1197_v59 = vpop.f32.mrb[15].mxu0  ;;  %v7991_v54 = vpack.c.bf16 %v2540_v41, %v2539_v40  ;;  %7990 = vmatprep.subr.bf16.mxu0 %v7989_v37 }
 0x1f6   :  { %v1971_v1 = vadd.f32 %v1970_v55, %v1969_v42  ;;  %v11048_v4 = vadd.f32 %v1839_v58, %v10920_v9  ;;  %v11051_v7 = vadd.f32 %v1197_v59, %v10923_v10  ;;  %v1841_v11 = vpop.f32.mrb[15].mxu1  ;;  %v15082_v42 = vmov 0.0|0.0  }
 0x1f7   :  { %v1902_v22 = vadd.f32 %v11045_v57, %v1901_v49  ;;  %v11061_v23 = vadd.f32 %v1841_v11, %v10917_v8  ;;  %8021 = vmatprep.subr.bf16.mxu1 %v15082_v42  ;;  %7992 = vmatpush3.bf16.msra.mxu0 %v7991_v54 }
 0x1f8   :  { %15245 = vst [vmem:[#allocation17_spill] sm:$0xff] %v11051_v7  ;;  %v1944_v32 = vadd.f32 %v11048_v4, %v1943_v52  ;;  %v1923_v33 = vadd.f32 %v11051_v7, %v1922_v53  ;;  %v1201_v36 = vpop.f32.mrb[16].mxu0  ;;  %8023 = vmatpush1.bf16.msra.mxu1 %v8022_v29  ;;  %v2558_v29 = vld [vmem:[%s15076_s3 + $0x98] sm:$0xff] }
 0x1f9   :  { %15246 = vst [vmem:[#allocation18_spill] sm:$0xff] %v11061_v23  ;;  %v1972_v46 = vsel %vm555_vm0, %v11061_v23, 0.0  ;;  %v11081_v49 = vadd.f32 %v1201_v36, %v10914_v5  ;;  %v1845_v52 = vpop.f32.mrb[16].mxu1  ;;  %v1203_v53 = vpop.f32.mrb[17].mxu0  ;;  %8024 = vmatprep.subr.bf16.mxu1 %v15082_v42  ;;  %v8025_v36 = vpack.c.bf16 %v2574_v16, %v2573_v12 }
 0x1fa   :  { %v1973_v55 = vadd.f32 %v1972_v46, %v1971_v1  ;;  %v11084_v58 = vadd.f32 %v1845_v52, %v10920_v9  ;;  %v11087_v59 = vadd.f32 %v1203_v53, %v10923_v10  ;;  %v1847_v11 = vpop.f32.mrb[17].mxu1  ;;  %v7993_v46 = vpack.c.bf16 %v2558_v29, %v2557_v28  ;;  %v2542_v52 = vld [vmem:[%s15076_s3 + $0x18] sm:$0xff] }
 0x1fb   :  { %v1903_v1 = vadd.f32 %v11081_v49, %v1902_v22  ;;  %v11098_v25 = vadd.f32 %v1847_v11, %v10917_v8  ;;  %v2541_v22 = vld [vmem:[%s15076_s3 + $0x10] sm:$0xff] }
 0x1fc   :  { %15247 = vst [vmem:[#allocation19_spill] sm:$0xff] %v11087_v59  ;;  %v1945_v37 = vadd.f32 %v11084_v58, %v1944_v32  ;;  %v1924_v40 = vadd.f32 %v11087_v59, %v1923_v33  ;;  %v1207_v41 = vpop.f32.mrb[18].mxu0  ;;  %v7995_v12 = vpack.c.bf16 %v2542_v52, %v2541_v22  ;;  %8026 = vmatpush1.bf16.msra.mxu1 %v8025_v36  ;;  %v2576_v22 = vld [vmem:[%s15076_s3 + $0x128] sm:$0xff] }
 0x1fd   :  { %15248 = vst [vmem:[#allocation20_spill] sm:$0xff] %v11098_v25  ;;  %v1974_v53 = vsel %vm555_vm0, %v11098_v25, 0.0  ;;  %v11117_v54 = vadd.f32 %v1207_v41, %v10914_v5  ;;  %v1851_v11 = vpop.f32.mrb[18].mxu1  ;;  %v1209_v32 = vpop.f32.mrb[19].mxu0  ;;  %7994 = vmatprep.subr.bf16.mxu0 %v7993_v46  ;;  %8027 = vmatprep.subr.bf16.mxu1 %v15082_v42  ;;  %v2575_v41 = vld [vmem:[%s15076_s3 + $0x120] sm:$0xff]  ;;  %v2560_v52 = vld [vmem:[%s15076_s3 + $0xa8] sm:$0xff] }
 0x1fe   :  { %v1975_v33 = vadd.f32 %v1974_v53, %v1973_v55  ;;  %v11120_v16 = vadd.f32 %v1851_v11, %v10920_v9  ;;  %v11123_v28 = vadd.f32 %v1209_v32, %v10923_v10  ;;  %v1853_v29 = vpop.f32.mrb[19].mxu1  ;;  %7996 = vmatpush3.bf16.msra.mxu0 %v7995_v12  ;;  %v2559_v46 = vld [vmem:[%s15076_s3 + $0xa0] sm:$0xff]  ;;  %v8028_v53 = vpack.c.bf16 %v2576_v22, %v2575_v41  ;;  %v2544_v12 = vld [vmem:[%s15076_s3 + $0x28] sm:$0xff] }
 0x1ff   :  { %v1904_v55 = vadd.f32 %v11117_v54, %v1903_v1  ;;  %v11134_v36 = vadd.f32 %v1853_v29, %v10917_v8  ;;  %v7997_v62 = vpack.c.bf16 %v2560_v52, %v2559_v46  ;;  %v2543_v1 = vld [vmem:[%s15076_s3 + $0x20] sm:$0xff] }
 0x200   :  { %15249 = vst [vmem:[#allocation21_spill] sm:$0xff] %v11123_v28  ;;  %v1946_v11 = vadd.f32 %v11120_v16, %v1945_v37  ;;  %v1925_v32 = vadd.f32 %v11123_v28, %v1924_v40  ;;  %v1213_v42 = vpop.f32.mrb[20].mxu0  ;;  %v7999_v22 = vpack.c.bf16 %v2544_v12, %v2543_v1  ;;  %8029 = vmatpush1.bf16.msra.mxu1 %v8028_v53  ;;  %v2578_v1 = vld [vmem:[%s15076_s3 + $0x138] sm:$0xff] }
 0x201   :  { %15250 = vst [vmem:[#allocation22_spill] sm:$0xff] %v11134_v36  ;;  %v1976_v29 = vsel %vm555_vm0, %v11134_v36, 0.0  ;;  %v11153_v0 = vadd.f32 %v1213_v42, %v10914_v5  ;;  %v1857_v41 = vpop.f32.mrb[20].mxu1  ;;  %v1215_v37 = vpop.f32.mrb[21].mxu0  ;;  %7998 = vmatprep.subr.bf16.mxu0 %v7997_v62  ;;  %8030 = vmatprep.subr.bf16.mxu1 %v15252_v3  ;;  %v2577_v42 = vld [vmem:[%s15076_s3 + $0x130] sm:$0xff]  ;;  %v2562_v12 = vld [vmem:[%s15076_s3 + $0xb8] sm:$0xff] }
 0x202   :  { %v1977_v40 = vadd.f32 %v1976_v29, %v1975_v33  ;;  %v11156_v46 = vadd.f32 %v1857_v41, %v10920_v9  ;;  %v11159_v52 = vadd.f32 %v1215_v37, %v10923_v10  ;;  %v1859_v2 = vpop.f32.mrb[21].mxu1  ;;  %8000 = vmatpush3.bf16.msra.mxu0 %v7999_v22  ;;  %v2561_v62 = vld [vmem:[%s15076_s3 + $0xb0] sm:$0xff]  ;;  %v8031_v29 = vpack.c.bf16 %v2578_v1, %v2577_v42 }
 0x203   :  { %v1905_v33 = vadd.f32 %v11153_v0, %v1904_v55  ;;  %v11170_v53 = vadd.f32 %v1859_v2, %v10917_v8  ;;  %v8001_v36 = vpack.c.bf16 %v2562_v12, %v2561_v62  ;;  %v2545_v2 = vld [vmem:[%s15076_s3 + $0x30] sm:$0xff]  ;;  %v2546_v55 = vld [vmem:[%s15076_s3 + $0x38] sm:$0xff] }
 0x204   :  { %15251 = vst [vmem:[#allocation23_spill] sm:$0xff] %v11159_v52  ;;  %v1947_v41 = vadd.f32 %v11156_v46, %v1946_v11  ;;  %v1926_v37 = vadd.f32 %v11159_v52, %v1925_v32  ;;  %v1219_v63 = vpop.f32.mrb[22].mxu0  ;;  %v8003_v1 = vpack.c.bf16 %v2546_v55, %v2545_v2  ;;  %8032 = vmatpush1.bf16.msra.mxu1 %v8031_v29  ;;  %v2580_v2 = vld [vmem:[%s15076_s3 + $0x148] sm:$0xff] }
 0x205   :  { %15253 = vst [vmem:[#allocation24_spill] sm:$0xff] %v11170_v53  ;;  %v1978_v22 = vsel %vm555_vm0, %v11170_v53, 0.0  ;;  %v11189_v25 = vadd.f32 %v1219_v63, %v10914_v5  ;;  %v1863_v42 = vpop.f32.mrb[22].mxu1  ;;  %v1221_v11 = vpop.f32.mrb[23].mxu0  ;;  %8002 = vmatprep.subr.bf16.mxu0 %v8001_v36  ;;  %8033 = vmatprep.subr.bf16.mxu1 %v15252_v3  ;;  %v2579_v63 = vld [vmem:[%s15076_s3 + $0x140] sm:$0xff]  ;;  %v2564_v55 = vld [vmem:[%s15076_s3 + $0xc8] sm:$0xff] }
 0x206   :  { %v1979_v32 = vadd.f32 %v1978_v22, %v1977_v40  ;;  %v11192_v62 = vadd.f32 %v1863_v42, %v10920_v9  ;;  %v11195_v12 = vadd.f32 %v1221_v11, %v10923_v10  ;;  %v1865_v23 = vpop.f32.mrb[23].mxu1  ;;  %8004 = vmatpush3.bf16.msra.mxu0 %v8003_v1  ;;  %v2563_v36 = vld [vmem:[%s15076_s3 + $0xc0] sm:$0xff]  ;;  %v8034_v22 = vpack.c.bf16 %v2580_v2, %v2579_v63 }
 0x207   :  { %v1906_v40 = vadd.f32 %v11189_v25, %v1905_v33  ;;  %v11206_v29 = vadd.f32 %v1865_v23, %v10917_v8  ;;  %v8005_v50 = vpack.c.bf16 %v2564_v55, %v2563_v36  ;;  %v2547_v23 = vld [vmem:[%s15076_s3 + $0x40] sm:$0xff]  ;;  %v2548_v33 = vld [vmem:[%s15076_s3 + $0x48] sm:$0xff] }
 0x208   :  { %15254 = vst [vmem:[#allocation25_spill] sm:$0xff] %v11195_v12  ;;  %v1948_v42 = vadd.f32 %v11192_v62, %v1947_v41  ;;  %v1927_v11 = vadd.f32 %v11195_v12, %v1926_v37  ;;  %v1225_v53 = vpop.f32.mrb[24].mxu0  ;;  %v8007_v2 = vpack.c.bf16 %v2548_v33, %v2547_v23  ;;  %8035 = vmatpush1.bf16.msra.mxu1 %v8034_v22  ;;  %v2582_v23 = vld [vmem:[%s15076_s3 + $0x158] sm:$0xff] }
 0x209   :  { %15255 = vst [vmem:[#allocation26_spill] sm:$0xff] %v11206_v29  ;;  %v1980_v1 = vsel %vm555_vm0, %v11206_v29, 0.0  ;;  %v11225_v31 = vadd.f32 %v1225_v53, %v10914_v5  ;;  %v1869_v63 = vpop.f32.mrb[24].mxu1  ;;  %v1227_v41 = vpop.f32.mrb[25].mxu0  ;;  %8006 = vmatprep.subr.bf16.mxu0 %v8005_v50  ;;  %8036 = vmatprep.subr.bf16.mxu1 %v15252_v3  ;;  %v2581_v53 = vld [vmem:[%s15076_s3 + $0x150] sm:$0xff]  ;;  %v2566_v33 = vld [vmem:[%s15076_s3 + $0xd8] sm:$0xff] }
 0x20a   :  { %v1981_v37 = vadd.f32 %v1980_v1, %v1979_v32  ;;  %v11228_v36 = vadd.f32 %v1869_v63, %v10920_v9  ;;  %v11231_v55 = vadd.f32 %v1227_v41, %v10923_v10  ;;  %v1871_v6 = vpop.f32.mrb[25].mxu1  ;;  %8008 = vmatpush3.bf16.msra.mxu0 %v8007_v2  ;;  %v2565_v50 = vld [vmem:[%s15076_s3 + $0xd0] sm:$0xff]  ;;  %v8037_v1 = vpack.c.bf16 %v2582_v23, %v2581_v53  ;;  %v2554_v12 = vld [vmem:[%s15076_s3 + $0x78] sm:$0xff] }
 0x20b   :  { %v1907_v32 = vadd.f32 %v11225_v31, %v1906_v40  ;;  %v11242_v22 = vadd.f32 %v1871_v6, %v10917_v8  ;;  %v8009_v51 = vpack.c.bf16 %v2566_v33, %v2565_v50  ;;  %v2549_v6 = vld [vmem:[%s15076_s3 + $0x50] sm:$0xff]  ;;  %v2550_v40 = vld [vmem:[%s15076_s3 + $0x58] sm:$0xff] }
 0x20c   :  { %15256 = vst [vmem:[#allocation27_spill] sm:$0xff] %v11231_v55  ;;  %v1949_v63 = vadd.f32 %v11228_v36, %v1948_v42  ;;  %v1928_v41 = vadd.f32 %v11231_v55, %v1927_v11  ;;  %v1231_v29 = vpop.f32.mrb[26].mxu0  ;;  %v8011_v23 = vpack.c.bf16 %v2550_v40, %v2549_v6  ;;  %8038 = vmatpush1.bf16.msra.mxu1 %v8037_v1  ;;  %v2552_v40 = vld [vmem:[%s15076_s3 + $0x68] sm:$0xff]  ;;  %v2585_v55 = vld [vmem:[%s15076_s3 + $0x170] sm:$0xff] }
 0x20d   :  { %15257 = vst [vmem:[#allocation28_spill] sm:$0xff] %v11242_v22  ;;  %v1982_v2 = vsel %vm555_vm0, %v11242_v22, 0.0  ;;  %v11261_v38 = vadd.f32 %v1231_v29, %v10914_v5  ;;  %v1875_v53 = vpop.f32.mrb[26].mxu1  ;;  %v1233_v42 = vpop.f32.mrb[27].mxu0  ;;  %8010 = vmatprep.subr.bf16.mxu0 %v8009_v51  ;;  %v2567_v22 = vld [vmem:[%s15076_s3 + $0xe0] sm:$0xff]  ;;  %v2568_v29 = vld [vmem:[%s15076_s3 + $0xe8] sm:$0xff]  ;;  %8039 = vmatprep.subr.bf16.mxu1 %v15252_v3 }
 0x20e   :  { %v1983_v11 = vadd.f32 %v1982_v2, %v1981_v37  ;;  %v11264_v50 = vadd.f32 %v1875_v53, %v10920_v9  ;;  %v11267_v33 = vadd.f32 %v1233_v42, %v10923_v10  ;;  %v1877_v24 = vpop.f32.mrb[27].mxu1  ;;  %v2551_v37 = vld [vmem:[%s15076_s3 + $0x60] sm:$0xff]  ;;  %8012 = vmatpush3.bf16.msra.mxu0 %v8011_v23  ;;  %v8013_v51 = vpack.c.bf16 %v2568_v29, %v2567_v22  ;;  %v2584_v53 = vld [vmem:[%s15076_s3 + $0x168] sm:$0xff]  ;;  %v2569_v22 = vld [vmem:[%s15076_s3 + $0xf0] sm:$0xff] }
 0x20f   :  { %v1908_v1 = vadd.f32 %v11261_v38, %v1907_v32  ;;  %v11281_v6 = vadd.f32 %v1877_v24, %v10917_v8  ;;  %v2583_v2 = vld [vmem:[%s15076_s3 + $0x160] sm:$0xff]  ;;  %v8015_v14 = vpack.c.bf16 %v2552_v40, %v2551_v37  ;;  %v2570_v29 = vld [vmem:[%s15076_s3 + $0xf8] sm:$0xff] }
 0x210   :  { %15258 = vst [vmem:[#allocation29_spill] sm:$0xff] %v11267_v33  ;;  %v1950_v42 = vadd.f32 %v11264_v50, %v1949_v63  ;;  %v1929_v32 = vadd.f32 %v11267_v33, %v1928_v41  ;;  %v1237_v24 = vpop.f32.mrb[28].mxu0  ;;  %v8040_v23 = vpack.c.bf16 %v2584_v53, %v2583_v2  ;;  %8014 = vmatprep.subr.bf16.mxu0 %v8013_v51  ;;  %v2586_v53 = vld [vmem:[%s15076_s3 + $0x178] sm:$0xff]  ;;  %v2553_v33 = vld [vmem:[%s15076_s3 + $0x70] sm:$0xff] }
 0x211   :  { %15259 = vst [vmem:[#allocation30_spill] sm:$0xff] %v11281_v6  ;;  %v1984_v63 = vsel %vm555_vm0, %v11281_v6, 0.0  ;;  %v11306_v41 = vadd.f32 %v1237_v24, %v10914_v5  ;;  %v1881_v37 = vpop.f32.mrb[28].mxu1  ;;  %v1239_v40 = vpop.f32.mrb[29].mxu0  ;;  %v8017_v2 = vpack.c.bf16 %v2570_v29, %v2569_v22  ;;  %v8043_v22 = vpack.c.bf16 %v2586_v53, %v2585_v55 }
 0x212   :  { %v1985_v6 = vadd.f32 %v1984_v63, %v1983_v11  ;;  %v11318_v24 = vadd.f32 %v1881_v37, %v10920_v9  ;;  %v11321_v52 = vadd.f32 %v1239_v40, %v10923_v10  ;;  %v1883_v51 = vpop.f32.mrb[29].mxu1  ;;  %8041 = vmatpush1.bf16.msra.mxu1 %v8040_v23  ;;  %8016 = vmatpush3.bf16.msra.mxu0 %v8015_v14  ;;  %v2587_v11 = vld [vmem:[%s15076_s3 + $0x180] sm:$0xff]  ;;  %v2588_v63 = vld [vmem:[%s15076_s3 + $0x188] sm:$0xff] }
 0x213   :  { %v1909_v29 = vadd.f32 %v11306_v41, %v1908_v1  ;;  %v11325_v28 = vadd.f32 %v1883_v51, %v10917_v8  ;;  %8042 = vmatprep.subr.bf16.mxu1 %v15252_v3  ;;  %v8019_v59 = vpack.c.bf16 %v2554_v12, %v2553_v33  ;;  %8018 = vmatprep.subr.bf16.mxu0 %v8017_v2 }
 0x214   :  { %15260 = vst [vmem:[#allocation31_spill] sm:$0xff] %v11321_v52  ;;  %v1951_v23 = vadd.f32 %v11318_v24, %v1950_v42  ;;  %v1930_v55 = vadd.f32 %v11321_v52, %v1929_v32  ;;  %v1243_v1 = vpop.f32.mrb[30].mxu0  ;;  %v8046_v42 = vpack.c.bf16 %v2588_v63, %v2587_v11 }
 0x215   :  { %15261 = vst [vmem:[#allocation32_spill] sm:$0xff] %v11325_v28  ;;  %v1986_v14 = vsel %vm555_vm0, %v11325_v28, 0.0  ;;  %v8078_v37 = vadd.f32 %v1243_v1, %v10914_v5  ;;  %v1887_v12 = vpop.f32.mrb[30].mxu1  ;;  %v1245_v33 = vpop.f32.mrb[31].mxu0 }
 0x216   :  { %v1987_v40 = vadd.f32 %v1986_v14, %v1985_v6  ;;  %v11340_v53 = vadd.f32 %v1887_v12, %v10920_v9  ;;  %v11343_v51 = vadd.f32 %v1245_v33, %v10923_v10  ;;  %v1889_v7 = vpop.f32.mrb[31].mxu1  ;;  %8044 = vmatpush1.bf16.msra.mxu1 %v8043_v22  ;;  %8020 = vmatpush3.bf16.msra.mxu0 %v8019_v59 }
 0x217   :  { %v1910_v32 = vadd.f32 %v8078_v37, %v1909_v29  ;;  %v11346_v2 = vadd.f32 %v1889_v7, %v10917_v8  ;;  %8045 = vmatprep.subr.bf16.mxu1 %v15252_v3 }
 0x218   :  { %15262 = vst [vmem:[#allocation33_spill] sm:$0xff] %v11343_v51  ;;  %v1952_v5 = vadd.f32 %v11340_v53, %v1951_v23  ;;  %v1931_v6 = vadd.f32 %v11343_v51, %v1930_v55 }
 0x219   :  { %15263 = vst [vmem:[#allocation34_spill] sm:$0xff] %v11346_v2  ;;  %v1911_v1 = vrot.slane %v1910_v32, 4  ;;  %v1988_v9 = vsel %vm555_vm0, %v11346_v2, 0.0 }
 0x21a   :  { %v1953_v10 = vrot.slane %v1952_v5, 4  ;;  %v1932_v14 = vrot.slane %v1931_v6, 4  ;;  %v1989_v12 = vadd.f32 %v1988_v9, %v1987_v40  ;;  %8047 = vmatpush1.bf16.msra.mxu1 %v8046_v42 }
 0x21b   :  { %v1912_v22 = vadd.f32 %v1911_v1, %v1910_v32 }
 0x21c   :  { %v1954_v29 = vadd.f32 %v1953_v10, %v1952_v5  ;;  %v1933_v11 = vadd.f32 %v1932_v14, %v1931_v6  ;;  %v1990_v8 = vrot.slane %v1989_v12, 4 }
 0x21d   :  { %v1913_v7 = vrot.slane %v1912_v22, 2 }
 0x21e   :  { %v1955_v59 = vrot.slane %v1954_v29, 2  ;;  %v1934_v63 = vrot.slane %v1933_v11, 2  ;;  %v1991_v3 = vadd.f32 %v1990_v8, %v1989_v12 }
 0x21f   :  { %v1914_v33 = vadd.f32 %v1913_v7, %v1912_v22 }
 0x220   :  { %v1956_v23 = vadd.f32 %v1955_v59, %v1954_v29  ;;  %v1935_v51 = vadd.f32 %v1934_v63, %v1933_v11  ;;  %v1992_v52 = vrot.slane %v1991_v3, 2 }
 0x221   :  { %v1915_v28 = vrot.slane %v1914_v33, 1 }
 0x222   :  { %v1957_v55 = vrot.slane %v1956_v23, 1  ;;  %v1936_v61 = vrot.slane %v1935_v51, 1  ;;  %v1993_v40 = vadd.f32 %v1992_v52, %v1991_v3 }
 0x223   :  { %v1916_v45 = vadd.f32 %v1915_v28, %v1914_v33 }
 0x224   :  { %v1958_v27 = vadd.f32 %v1957_v55, %v1956_v23  ;;  %v1994_v9 = vrot.slane %v1993_v40, 1 }
 0x225   :  { %v1997_v2 = vmul.f32 0.0078125, %v1916_v45 }
 0x226   :  { %v1999_v52 = vmul.f32 0.0078125, %v1958_v27  ;;  %v1995_v8 = vadd.f32 %v1994_v9, %v1993_v40 }
 0x227   :  { %v11354_v42 = vsub.f32 %v10926_v13, %v1997_v2  ;;  %v11357_v32 = vsub.f32 %v10932_v15, %v1997_v2  ;;  %v11360_v5 = vsub.f32 %v10960_v30, %v1997_v2  ;;  %v11363_v6 = vsub.f32 %v10977_v43, %v1997_v2 }
 0x228   :  { %v11366_v1 = vsub.f32 %v10994_v56, %v1997_v2  ;;  %v11369_v45 = vsub.f32 %v11011_v17, %v1997_v2  ;;  %v11372_v28 = vsub.f32 %v11028_v39, %v1997_v2  ;;  %v11375_v13 = vsub.f32 %v11045_v57, %v1997_v2 }
 0x229   :  { %v11378_v15 = vsub.f32 %v11081_v49, %v1997_v2  ;;  %v11381_v30 = vsub.f32 %v11117_v54, %v1997_v2  ;;  %v11384_v43 = vsub.f32 %v11153_v0, %v1997_v2  ;;  %v11387_v56 = vsub.f32 %v11189_v25, %v1997_v2 }
 0x22a   :  { %15264 = vst [vmem:[#allocation35_spill] sm:$0xff] %v11372_v28  ;;  %15265 = vst [vmem:[#allocation36_spill] sm:$0xff] %v11375_v13  ;;  %v11390_v17 = vsub.f32 %v11225_v31, %v1997_v2  ;;  %v11393_v39 = vsub.f32 %v11261_v38, %v1997_v2  ;;  %v11396_v57 = vsub.f32 %v11306_v41, %v1997_v2 }
 0x22b   :  { %15266 = vst [vmem:[#allocation37_spill] sm:$0xff] %v11378_v15  ;;  %15267 = vst [vmem:[#allocation38_spill] sm:$0xff] %v11381_v30  ;;  %v11398_v49 = vsub.f32 %v8078_v37, %v1997_v2  ;;  %v2065_v54 = vmul.f32 %v11354_v42, %v11354_v42  ;;  %v2069_v0 = vmul.f32 %v11357_v32, %v11357_v32 }
 0x22c   :  { %15268 = vst [vmem:[#allocation39_spill] sm:$0xff] %v11384_v43  ;;  %15269 = vst [vmem:[#allocation40_spill] sm:$0xff] %v11387_v56  ;;  %v2073_v25 = vmul.f32 %v11360_v5, %v11360_v5  ;;  %v2077_v31 = vmul.f32 %v11363_v6, %v11363_v6  ;;  %v1937_v38 = vadd.f32 %v1936_v61, %v1935_v51 }
 0x22d   :  { %15270 = vst [vmem:[#allocation41_spill] sm:$0xff] %v11390_v17  ;;  %15271 = vst [vmem:[#allocation42_spill] sm:$0xff] %v11393_v39  ;;  %v2129_v10 = vadd.f32 %v2069_v0, %v2065_v54  ;;  %v11409_v41 = vsub.f32 %v10935_v18, %v1999_v52  ;;  %v11412_v37 = vsub.f32 %v10941_v20, %v1999_v52 }
 0x22e   :  { %15272 = vst [vmem:[#allocation43_spill] sm:$0xff] %v11396_v57  ;;  %v11415_v2 = vsub.f32 %v10963_v34, %v1999_v52  ;;  %v11418_v27 = vsub.f32 %v10980_v47, %v1999_v52  ;;  %v11421_v14 = vsub.f32 %v10997_v60, %v1999_v52  ;;  %v11424_v12 = vsub.f32 %v11014_v26, %v1999_v52 }
 0x22f   :  { %v11427_v61 = vsub.f32 %v11031_v44, %v1999_v52  ;;  %v2130_v18 = vadd.f32 %v2129_v10, %v2073_v25  ;;  %v11430_v51 = vsub.f32 %v11048_v4, %v1999_v52  ;;  %v11433_v20 = vsub.f32 %v11084_v58, %v1999_v52  ;;  %v15287_v10 = vld [vmem:[#allocation15_spill] sm:$0xff] }
 0x230   :  { %v11436_v34 = vsub.f32 %v11120_v16, %v1999_v52  ;;  %v11439_v47 = vsub.f32 %v11156_v46, %v1999_v52  ;;  %v11442_v60 = vsub.f32 %v11192_v62, %v1999_v52  ;;  %v11445_v26 = vsub.f32 %v11228_v36, %v1999_v52 }
 0x231   :  { %15273 = vst [vmem:[#allocation44_spill] sm:$0xff] %v11427_v61  ;;  %15274 = vst [vmem:[#allocation45_spill] sm:$0xff] %v11430_v51  ;;  %v11448_v44 = vsub.f32 %v11264_v50, %v1999_v52  ;;  %v2081_v4 = vmul.f32 %v11366_v1, %v11366_v1  ;;  %v2131_v58 = vadd.f32 %v2130_v18, %v2077_v31  ;;  %v1998_v36 = vmul.f32 0.0078125, %v1937_v38  ;;  %v15285_v38 = vld [vmem:[#allocation13_spill] sm:$0xff] }
 0x232   :  { %15275 = vst [vmem:[#allocation46_spill] sm:$0xff] %v11433_v20  ;;  %15276 = vst [vmem:[#allocation47_spill] sm:$0xff] %v11436_v34  ;;  %v11453_v22 = vsub.f32 %v11318_v24, %v1999_v52  ;;  %v11456_v16 = vsub.f32 %v11340_v53, %v1999_v52  ;;  %v2067_v46 = vmul.f32 %v11409_v41, %v11409_v41  ;;  %v15283_v52 = vld [vmem:[#allocation11_spill] sm:$0xff]  ;;  %v15288_v18 = vld [vmem:[#allocation17_spill] sm:$0xff] }
 0x233   :  { %15277 = vst [vmem:[#allocation48_spill] sm:$0xff] %v11439_v47  ;;  %15278 = vst [vmem:[#allocation49_spill] sm:$0xff] %v11442_v60  ;;  %v2071_v62 = vmul.f32 %v11412_v37, %v11412_v37  ;;  %v2085_v50 = vmul.f32 %v11369_v45, %v11369_v45  ;;  %v2132_v29 = vadd.f32 %v2131_v58, %v2081_v4  ;;  %v15289_v58 = vld [vmem:[#allocation19_spill] sm:$0xff] }
 0x234   :  { %15279 = vst [vmem:[#allocation50_spill] sm:$0xff] %v11445_v26  ;;  %15280 = vst [vmem:[#allocation51_spill] sm:$0xff] %v11448_v44  ;;  %v2089_v11 = vmul.f32 %v11372_v28, %v11372_v28  ;;  %v2093_v24 = vmul.f32 %v11375_v13, %v11375_v13  ;;  %v2097_v53 = vmul.f32 %v11378_v15, %v11378_v15 }
 0x235   :  { %15281 = vst [vmem:[#allocation52_spill] sm:$0xff] %v11453_v22  ;;  %v2133_v7 = vadd.f32 %v2132_v29, %v2085_v50  ;;  %v2075_v59 = vmul.f32 %v11415_v2, %v11415_v2  ;;  %v2079_v63 = vmul.f32 %v11418_v27, %v11418_v27  ;;  %v2083_v3 = vmul.f32 %v11421_v14, %v11421_v14 }
 0x236   :  { %v2171_v33 = vadd.f32 %v2071_v62, %v2067_v46  ;;  %v11477_v23 = vsub.f32 %v10938_v19, %v1998_v36  ;;  %v11480_v55 = vsub.f32 %v10944_v21, %v1998_v36  ;;  %v11483_v54 = vsub.f32 %v10966_v35, %v1998_v36  ;;  %v15291_v46 = vld [vmem:[#allocation21_spill] sm:$0xff]  ;;  %v15293_v62 = vld [vmem:[#allocation23_spill] sm:$0xff] }
 0x237   :  { %v2134_v40 = vadd.f32 %v2133_v7, %v2089_v11  ;;  %v11486_v0 = vsub.f32 %v10983_v48, %v1998_v36  ;;  %v11489_v25 = vsub.f32 %v15283_v52, %v1998_v36  ;;  %v11492_v9 = vsub.f32 %v15285_v38, %v1998_v36  ;;  %v15294_v11 = vld [vmem:[#allocation25_spill] sm:$0xff] }
 0x238   :  { %v2172_v31 = vadd.f32 %v2171_v33, %v2075_v59  ;;  %v11495_v19 = vsub.f32 %v15287_v10, %v1998_v36  ;;  %v11498_v21 = vsub.f32 %v15288_v18, %v1998_v36  ;;  %v11501_v35 = vsub.f32 %v15289_v58, %v1998_v36  ;;  %v15295_v59 = vld [vmem:[#allocation27_spill] sm:$0xff]  ;;  %v15296_v52 = vld [vmem:[#allocation29_spill] sm:$0xff] }
 0x239   :  { %15282 = vst [vmem:[#allocation53_spill] sm:$0xff] %v11486_v0  ;;  %15284 = vst [vmem:[#allocation11_spill] sm:$0xff] %v11489_v25  ;;  %v2135_v4 = vadd.f32 %v2134_v40, %v2093_v24  ;;  %v11504_v48 = vsub.f32 %v15291_v46, %v1998_v36  ;;  %v11507_v50 = vsub.f32 %v15293_v62, %v1998_v36  ;;  %v15297_v10 = vld [vmem:[#allocation31_spill] sm:$0xff]  ;;  %v15298_v58 = vld [vmem:[#allocation33_spill] sm:$0xff] }
 0x23a   :  { %15286 = vst [vmem:[#allocation13_spill] sm:$0xff] %v11492_v9  ;;  %15290 = vst [vmem:[#allocation15_spill] sm:$0xff] %v11501_v35  ;;  %v2173_v29 = vadd.f32 %v2172_v31, %v2079_v63  ;;  %v11510_v7 = vsub.f32 %v15294_v11, %v1998_v36  ;;  %v11513_v33 = vsub.f32 %v15295_v59, %v1998_v36 }
 0x23b   :  { %15292 = vst [vmem:[#allocation17_spill] sm:$0xff] %v11504_v48  ;;  %v11516_v38 = vsub.f32 %v15296_v52, %v1998_v36  ;;  %v2101_v24 = vmul.f32 %v11381_v30, %v11381_v30  ;;  %v2136_v40 = vadd.f32 %v2135_v4, %v2097_v53  ;;  %v11521_v18 = vsub.f32 %v15297_v10, %v1998_v36 }
 0x23c   :  { %v11524_v46 = vsub.f32 %v15298_v58, %v1998_v36  ;;  %v2105_v63 = vmul.f32 %v11384_v43, %v11384_v43  ;;  %v2109_v31 = vmul.f32 %v11387_v56, %v11387_v56  ;;  %v2087_v62 = vmul.f32 %v11424_v12, %v11424_v12 }
 0x23d   :  { %v2174_v11 = vadd.f32 %v2173_v29, %v2083_v3  ;;  %v2113_v59 = vmul.f32 %v11390_v17, %v11390_v17  ;;  %v2137_v53 = vadd.f32 %v2136_v40, %v2101_v24  ;;  %v2066_v4 = vmul.f32 %v11477_v23, %v11477_v23 }
 0x23e   :  { %v2070_v36 = vmul.f32 %v11480_v55, %v11480_v55  ;;  %v2117_v52 = vmul.f32 %v11393_v39, %v11393_v39  ;;  %v2121_v10 = vmul.f32 %v11396_v57, %v11396_v57  ;;  %v2091_v58 = vmul.f32 %v11427_v61, %v11427_v61 }
 0x23f   :  { %v2175_v3 = vadd.f32 %v2174_v11, %v2087_v62  ;;  %v2125_v29 = vmul.f32 %v11398_v49, %v11398_v49  ;;  %v2138_v24 = vadd.f32 %v2137_v53, %v2105_v63  ;;  %v2095_v40 = vmul.f32 %v11430_v51, %v11430_v51 }
 0x240   :  { %v2099_v17 = vmul.f32 %v11433_v20, %v11433_v20  ;;  %v2103_v39 = vmul.f32 %v11436_v34, %v11436_v34  ;;  %v2107_v57 = vmul.f32 %v11439_v47, %v11439_v47  ;;  %v2111_v56 = vmul.f32 %v11442_v60, %v11442_v60  ;;  %v15299_v60 = vld [vmem:[#allocation7_spill] sm:$0xff] }
 0x241   :  { %v2176_v62 = vadd.f32 %v2175_v3, %v2091_v58  ;;  %v2139_v11 = vadd.f32 %v2138_v24, %v2109_v31  ;;  %v2074_v63 = vmul.f32 %v11483_v54, %v11483_v54  ;;  %v2150_v53 = vadd.f32 %v2070_v36, %v2066_v4  ;;  %v15300_v31 = vld [vmem:[#allocation8_spill] sm:$0xff]  ;;  %v15302_v24 = vld [vmem:[#allocation10_spill] sm:$0xff] }
 0x242   :  { %v2000_v43 = vmul.f32 0.0078125, %v1995_v8  ;;  %v2078_v20 = vmul.f32 %v11486_v0, %v11486_v0  ;;  %v2082_v34 = vmul.f32 %v11489_v25, %v11489_v25  ;;  %v2086_v47 = vmul.f32 %v11492_v9, %v11492_v9  ;;  %v15301_v8 = vld [vmem:[#allocation9_spill] sm:$0xff] }
 0x243   :  { %v2177_v51 = vadd.f32 %v2176_v62, %v2095_v40  ;;  %v2140_v61 = vadd.f32 %v2139_v11, %v2113_v59  ;;  %v2151_v30 = vadd.f32 %v2150_v53, %v2074_v63  ;;  %v15303_v62 = vld [vmem:[#allocation12_spill] sm:$0xff]  ;;  %v15304_v59 = vld [vmem:[#allocation14_spill] sm:$0xff] }
 0x244   :  { %v11565_v58 = vsub.f32 %v15299_v60, %v2000_v43  ;;  %v11568_v3 = vsub.f32 %v15300_v31, %v2000_v43  ;;  %v11571_v36 = vsub.f32 %v15301_v8, %v2000_v43  ;;  %v11574_v40 = vsub.f32 %v15302_v24, %v2000_v43  ;;  %v15305_v60 = vld [vmem:[#allocation16_spill] sm:$0xff]  ;;  %v15306_v31 = vld [vmem:[#allocation18_spill] sm:$0xff] }
 0x245   :  { %v2178_v4 = vadd.f32 %v2177_v51, %v2099_v17  ;;  %v11577_v15 = vsub.f32 %v15303_v62, %v2000_v43  ;;  %v2141_v13 = vadd.f32 %v2140_v61, %v2117_v52  ;;  %v2152_v28 = vadd.f32 %v2151_v30, %v2078_v20  ;;  %v15307_v51 = vld [vmem:[#allocation20_spill] sm:$0xff]  ;;  %v15308_v24 = vld [vmem:[#allocation22_spill] sm:$0xff] }
 0x246   :  { %v11580_v11 = vsub.f32 %v15304_v59, %v2000_v43  ;;  %v11583_v63 = vsub.f32 %v15305_v60, %v2000_v43  ;;  %v11586_v17 = vsub.f32 %v15306_v31, %v2000_v43  ;;  %v11589_v8 = vsub.f32 %v15307_v51, %v2000_v43  ;;  %v15309_v61 = vld [vmem:[#allocation24_spill] sm:$0xff]  ;;  %v15310_v20 = vld [vmem:[#allocation26_spill] sm:$0xff] }
 0x247   :  { %v2179_v53 = vadd.f32 %v2178_v4, %v2103_v39  ;;  %v11592_v9 = vsub.f32 %v15308_v24, %v2000_v43  ;;  %v2142_v62 = vadd.f32 %v2141_v13, %v2121_v10  ;;  %v2153_v25 = vadd.f32 %v2152_v28, %v2082_v34  ;;  %v15311_v60 = vld [vmem:[#allocation28_spill] sm:$0xff]  ;;  %v15312_v4 = vld [vmem:[#allocation30_spill] sm:$0xff] }
 0x248   :  { %v11595_v30 = vsub.f32 %v15309_v61, %v2000_v43  ;;  %v11598_v52 = vsub.f32 %v15310_v20, %v2000_v43  ;;  %v11601_v39 = vsub.f32 %v15311_v60, %v2000_v43  ;;  %v11604_v31 = vsub.f32 %v15312_v4, %v2000_v43  ;;  %v15313_v51 = vld [vmem:[#allocation32_spill] sm:$0xff]  ;;  %v15314_v34 = vld [vmem:[#allocation34_spill] sm:$0xff] }
 0x249   :  { %v2180_v59 = vadd.f32 %v2179_v53, %v2107_v57  ;;  %v11607_v0 = vsub.f32 %v15313_v51, %v2000_v43  ;;  %v2143_v24 = vadd.f32 %v2142_v62, %v2125_v29  ;;  %v2090_v28 = vmul.f32 %v11495_v19, %v11495_v19 }
 0x24a   :  { %v2154_v13 = vadd.f32 %v2153_v25, %v2086_v47  ;;  %v11612_v10 = vsub.f32 %v15314_v34, %v2000_v43  ;;  %v2115_v57 = vmul.f32 %v11445_v26, %v11445_v26  ;;  %v2094_v20 = vmul.f32 %v11498_v21, %v11498_v21 }
 0x24b   :  { %v2181_v53 = vadd.f32 %v2180_v59, %v2111_v56  ;;  %v2144_v61 = vrot.slane %v2143_v24, 4  ;;  %v2119_v4 = vmul.f32 %v11448_v44, %v11448_v44  ;;  %v2068_v62 = vmul.f32 %v11565_v58, %v11565_v58 }
 0x24c   :  { %v2155_v60 = vadd.f32 %v2154_v13, %v2090_v28  ;;  %v2072_v43 = vmul.f32 %v11568_v3, %v11568_v3  ;;  %v2098_v25 = vmul.f32 %v11501_v35, %v11501_v35  ;;  %v2123_v59 = vmul.f32 %v11453_v22, %v11453_v22 }
 0x24d   :  { %v2182_v29 = vadd.f32 %v2181_v53, %v2115_v57  ;;  %v2145_v47 = vadd.f32 %v2144_v61, %v2143_v24  ;;  %v2076_v28 = vmul.f32 %v11571_v36, %v11571_v36  ;;  %v2127_v34 = vmul.f32 %v11456_v16, %v11456_v16 }
 0x24e   :  { %v2156_v56 = vadd.f32 %v2155_v60, %v2094_v20  ;;  %v2102_v57 = vmul.f32 %v11504_v48, %v11504_v48  ;;  %v2080_v61 = vmul.f32 %v11574_v40, %v11574_v40  ;;  %v2192_v20 = vsel %vm555_vm0, %v2068_v62, 0.0 }
 0x24f   :  { %v2183_v51 = vadd.f32 %v2182_v29, %v2119_v4  ;;  %v2146_v13 = vrot.slane %v2145_v47, 2  ;;  %v2193_v60 = vsel %vm555_vm0, %v2072_v43, 0.0  ;;  %v2106_v29 = vmul.f32 %v11507_v50, %v11507_v50 }
 0x250   :  { %v2157_v53 = vadd.f32 %v2156_v56, %v2098_v25  ;;  %v2194_v44 = vadd.f32 %v2193_v60, %v2192_v20  ;;  %v2084_v35 = vmul.f32 %v11577_v15, %v11577_v15  ;;  %v2195_v25 = vsel %vm555_vm0, %v2076_v28, 0.0 }
 0x251   :  { %v2184_v24 = vadd.f32 %v2183_v51, %v2123_v59  ;;  %v2147_v4 = vadd.f32 %v2146_v13, %v2145_v47  ;;  %v2110_v59 = vmul.f32 %v11510_v7, %v11510_v7  ;;  %v2088_v43 = vmul.f32 %v11580_v11, %v11580_v11 }
 0x252   :  { %v2158_v22 = vadd.f32 %v2157_v53, %v2102_v57  ;;  %v2196_v62 = vadd.f32 %v2195_v25, %v2194_v44  ;;  %v2197_v47 = vsel %vm555_vm0, %v2080_v61, 0.0  ;;  %v2092_v28 = vmul.f32 %v11583_v63, %v11583_v63 }
 0x253   :  { %v2185_v26 = vadd.f32 %v2184_v24, %v2127_v34  ;;  %v2148_v56 = vrot.slane %v2147_v4, 1  ;;  %v2114_v34 = vmul.f32 %v11513_v33, %v11513_v33  ;;  %v2199_v20 = vsel %vm555_vm0, %v2084_v35, 0.0 }
 0x254   :  { %v2159_v51 = vadd.f32 %v2158_v22, %v2106_v29  ;;  %v2198_v53 = vadd.f32 %v2197_v47, %v2196_v62  ;;  %v2118_v44 = vmul.f32 %v11516_v38, %v11516_v38  ;;  %v2096_v61 = vmul.f32 %v11586_v17, %v11586_v17 }
 0x255   :  { %v2186_v48 = vrot.slane %v2185_v26, 4  ;;  %v2149_v13 = vadd.f32 %v2148_v56, %v2147_v4  ;;  %v2201_v4 = vsel %vm555_vm0, %v2088_v43, 0.0  ;;  %v2100_v35 = vmul.f32 %v11589_v8, %v11589_v8 }
 0x256   :  { %v2160_v57 = vadd.f32 %v2159_v51, %v2110_v59  ;;  %v2200_v29 = vadd.f32 %v2199_v20, %v2198_v53  ;;  %v2203_v62 = vsel %vm555_vm0, %v2092_v28, 0.0  ;;  %v2126_v47 = vmul.f32 %v11524_v46, %v11524_v46 }
 0x257   :  { %v2187_v24 = vadd.f32 %v2186_v48, %v2185_v26  ;;  %v2229_v22 = vmul.f32 0.0078125, %v2149_v13  ;;  %v2122_v26 = vmul.f32 %v11521_v18, %v11521_v18  ;;  %v2104_v43 = vmul.f32 %v11592_v9, %v11592_v9 }
 0x258   :  { %v2161_v60 = vadd.f32 %v2160_v57, %v2114_v34  ;;  %v2202_v59 = vadd.f32 %v2201_v4, %v2200_v29  ;;  %v2205_v53 = vsel %vm555_vm0, %v2096_v61, 0.0  ;;  %v2207_v28 = vsel %vm555_vm0, %v2100_v35, 0.0 }
 0x259   :  { %v2188_v25 = vrot.slane %v2187_v24, 2  ;;  %v2233_v56 = vadd.f32 1e-05, %v2229_v22  ;;  %v2112_v4 = vmul.f32 %v11598_v52, %v11598_v52  ;;  %v2116_v61 = vmul.f32 %v11601_v39, %v11601_v39 }
 0x25a   :  { %v2162_v48 = vadd.f32 %v2161_v60, %v2118_v44  ;;  %v2204_v34 = vadd.f32 %v2203_v62, %v2202_v59  ;;  %v2108_v44 = vmul.f32 %v11595_v30, %v11595_v30  ;;  %v2120_v35 = vmul.f32 %v11604_v31, %v11604_v31 }
 0x25b   :  { %v2189_v51 = vadd.f32 %v2188_v25, %v2187_v24  ;;  %8774 = vrsqrt.f32 %v2233_v56  ;;  %v2209_v56 = vsel %vm555_vm0, %v2104_v43, 0.0  ;;  %v2124_v43 = vmul.f32 %v11607_v0, %v11607_v0 }
 0x25c   :  { %v2163_v13 = vadd.f32 %v2162_v48, %v2122_v26  ;;  %v2206_v22 = vadd.f32 %v2205_v53, %v2204_v34 }
 0x25d   :  { %v2190_v57 = vrot.slane %v2189_v51, 1 }
 0x25e   :  { %v2164_v20 = vadd.f32 %v2163_v13, %v2126_v47  ;;  %v2208_v29 = vadd.f32 %v2207_v28, %v2206_v22  ;;  %v2213_v13 = vsel %vm555_vm0, %v2112_v4, 0.0 }
 0x25f   :  { %v2191_v24 = vadd.f32 %v2190_v57, %v2189_v51  ;;  %v2211_v51 = vsel %vm555_vm0, %v2108_v44, 0.0 }
 0x260   :  { %v2165_v60 = vrot.slane %v2164_v20, 4  ;;  %v2210_v48 = vadd.f32 %v2209_v56, %v2208_v29 }
 0x261   :  { %v2231_v25 = vmul.f32 0.0078125, %v2191_v24 }
 0x262   :  { %v2166_v26 = vadd.f32 %v2165_v60, %v2164_v20  ;;  %v2212_v47 = vadd.f32 %v2211_v51, %v2210_v48  ;;  %v2215_v20 = vsel %vm555_vm0, %v2116_v61, 0.0 }
 0x263   :  { %v2235_v59 = vadd.f32 1e-05, %v2231_v25 }
 0x264   :  { %v2167_v62 = vrot.slane %v2166_v26, 2  ;;  %v2214_v53 = vadd.f32 %v2213_v13, %v2212_v47 }
 0x265   :  { %8776 = vrsqrt.f32 %v2235_v59  ;;  %v11680_v34 = vpop.eup %8774 }
 0x266   :  { %v2168_v57 = vadd.f32 %v2167_v62, %v2166_v26  ;;  %v11687_v22 = vmul.f32 %v11680_v34, %v11398_v49  ;;  %v2241_v24 = vmul.f32 %v11680_v34, %v11354_v42  ;;  %v2245_v44 = vmul.f32 %v11680_v34, %v11357_v32 }
 0x267   :  { %v2249_v28 = vmul.f32 %v11680_v34, %v11360_v5  ;;  %v2216_v29 = vadd.f32 %v2215_v20, %v2214_v53  ;;  %v2253_v25 = vmul.f32 %v11680_v34, %v11363_v6  ;;  %v11699_v4 = vmul.f32 %v11680_v34, %v11366_v1  ;;  %v15316_v20 = vld [vmem:[#allocation3_spill] sm:$0xff] }
 0x268   :  { %v2169_v60 = vrot.slane %v2168_v57, 1  ;;  %v2128_v49 = vmul.f32 %v11612_v10, %v11612_v10  ;;  %v2217_v42 = vsel %vm555_vm0, %v2120_v35, 0.0  ;;  %v11706_v32 = vmul.f32 %v11680_v34, %v11369_v45 }
 0x269   :  { %v2218_v5 = vadd.f32 %v2217_v42, %v2216_v29  ;;  %v2219_v26 = vsel %vm555_vm0, %v2124_v43, 0.0  ;;  %v15317_v29 = vld [vmem:[#allocation6_spill] sm:$0xff] }
 0x26a   :  { %v2170_v56 = vadd.f32 %v2169_v60, %v2168_v57  ;;  %v2221_v6 = vsel %vm555_vm0, %v2128_v49, 0.0 }
 0x26b   :  { %v2220_v48 = vadd.f32 %v2219_v26, %v2218_v5 }
 0x26c   :  { %v2230_v61 = vmul.f32 0.0078125, %v2170_v56 }
 0x26d   :  { %v2222_v1 = vadd.f32 %v2221_v6, %v2220_v48 }
 0x26e   :  { %v2234_v59 = vadd.f32 1e-05, %v2230_v61 }
 0x26f   :  { %v11710_v51 = vpop.eup %8776  ;;  %v2223_v47 = vrot.slane %v2222_v1, 4 }
 0x270   :  { %v11714_v62 = vmul.f32 %v11710_v51, %v11456_v16  ;;  %8778 = vrsqrt.f32 %v2234_v59  ;;  %v2243_v45 = vmul.f32 %v11710_v51, %v11409_v41  ;;  %v11720_v35 = vmul.f32 %v11710_v51, %v11412_v37  ;;  %v7110_v37 = vld [vmem:[%s15075_s6 + $0x1] ss:$8 sm:$0xf] }
 0x271   :  { %v11724_v13 = vmul.f32 %v11710_v51, %v11415_v2  ;;  %v11728_v57 = vmul.f32 %v11710_v51, %v11418_v27  ;;  %v11732_v16 = vmul.f32 %v11710_v51, %v11421_v14  ;;  %v2224_v43 = vadd.f32 %v2223_v47, %v2222_v1  ;;  %v7111_v27 = vld [vmem:[%s15075_s6 + $0x2] ss:$8 sm:$0xf] }
 0x272   :  { %15315 = vst [vmem:[#allocation19_spill] sm:$0xff] %v11714_v62  ;;  %v11736_v41 = vmul.f32 %v11710_v51, %v11424_v12  ;;  %v11742_v60 = vrot.slane %v7110_v37, %v15316_v20  ;;  %v11748_v49 = vrot.slane %v7110_v37, %v15317_v29  ;;  %v11753_v56 = vrot.slane %v7111_v27, %v15317_v29  ;;  %v15318_v47 = vld [vmem:[#allocation53_spill] sm:$0xff] }
 0x273   :  { %v2225_v53 = vrot.slane %v2224_v43, 2  ;;  %v11757_v26 = vrot.slane %v7111_v27, %v15316_v20 }
 0x274   :  { %v2326_v5 = vmul.f32 %v11742_v60, %v2241_v24 }
 0x275   :  { %v2226_v2 = vadd.f32 %v2225_v53, %v2224_v43  ;;  %v15319_v43 = vld [vmem:[#allocation11_spill] sm:$0xff] }
 0x277   :  { %v2227_v14 = vrot.slane %v2226_v2, 1 }
 0x279   :  { %v2228_v12 = vadd.f32 %v2227_v14, %v2226_v2  ;;  %v15320_v2 = vld [vmem:[#allocation13_spill] sm:$0xff] }
 0x27a   :  { %v11750_v42 = vpop.eup %8778 }
 0x27b   :  { %v11761_v61 = vmul.f32 %v11750_v42, %v11524_v46  ;;  %v2242_v48 = vmul.f32 %v11750_v42, %v11477_v23  ;;  %v2246_v6 = vmul.f32 %v11750_v42, %v11480_v55  ;;  %v2250_v59 = vmul.f32 %v11750_v42, %v11483_v54 }
 0x27c   :  { %v2232_v1 = vmul.f32 0.0078125, %v2228_v12  ;;  %v2254_v24 = vmul.f32 %v11750_v42, %v15318_v47  ;;  %v2258_v53 = vmul.f32 %v11750_v42, %v15319_v43  ;;  %v2262_v46 = vmul.f32 %v11750_v42, %v15320_v2 }
 0x27d   :  { %v2327_v14 = vmul.f32 %v11748_v49, %v2242_v48  ;;  %v2331_v23 = vmul.f32 %v11748_v49, %v2246_v6  ;;  %v2266_v55 = vmul.f32 %v11750_v42, %v11495_v19  ;;  %v2411_v54 = vadd.f32 %v11757_v26, %v2326_v5 }
 0x27e   :  { %v2236_v29 = vadd.f32 1e-05, %v2232_v1  ;;  %v2330_v12 = vmul.f32 %v11742_v60, %v2245_v44  ;;  %v2335_v43 = vmul.f32 %v11748_v49, %v2250_v59  ;;  %v2334_v48 = vmul.f32 %v11742_v60, %v2249_v28 }
 0x27f   :  { %v2412_v47 = vadd.f32 %v11753_v56, %v2327_v14  ;;  %v2416_v20 = vadd.f32 %v11753_v56, %v2331_v23  ;;  %v2475_v62 = vmax.f32 %v2411_v54, 0.0  ;;  %v2339_v19 = vmul.f32 %v11748_v49, %v2254_v24  ;;  %v15321_v14 = vld [vmem:[#allocation5_spill] sm:$0xff] }
 0x280   :  { %8780 = vrsqrt.f32 %v2236_v29  ;;  %v2415_v6 = vadd.f32 %v11757_v26, %v2330_v12  ;;  %v2338_v1 = vmul.f32 %v11742_v60, %v2253_v25  ;;  %v2420_v44 = vadd.f32 %v11753_v56, %v2335_v43  ;;  %v15322_v12 = vld [vmem:[#allocation4_spill] sm:$0xff] }
 0x281   :  { %v2476_v2 = vmax.f32 %v2412_v47, 0.0  ;;  %v2480_v5 = vmax.f32 %v2416_v20, 0.0  ;;  %v11790_v23 = vrot.slane %v7110_v37, %v15321_v14  ;;  %v2419_v29 = vadd.f32 %v11757_v26, %v2334_v48 }
 0x282   :  { %v2342_v28 = vmul.f32 %v11742_v60, %v11699_v4  ;;  %v2479_v59 = vmax.f32 %v2415_v6, 0.0  ;;  %v2424_v54 = vadd.f32 %v11753_v56, %v2339_v19  ;;  %v2423_v24 = vadd.f32 %v11757_v26, %v2338_v1 }
 0x283   :  { %2702 = vmatprep.mubr.f32.mxu0 %v2476_v2  ;;  %v2343_v25 = vmul.f32 %v11748_v49, %v2258_v53  ;;  %v2484_v20 = vmax.f32 %v2420_v44, 0.0  ;;  %v11799_v47 = vrot.slane %v7110_v37, %v15322_v12  ;;  %v11805_v43 = vrot.slane %v7111_v27, %v15321_v14 }
 0x284   :  { %2703 = vmatmul.mubr.f32.vlgmr.msra.gmra.mrb[32].mxu0 %v2475_v62  ;;  %v11802_v62 = vrot.slane %v7111_v27, %v15322_v12  ;;  %v2328_v4 = vmul.f32 %v11790_v23, %v2243_v45  ;;  %v2483_v2 = vmax.f32 %v2419_v29, 0.0  ;;  %v2427_v48 = vadd.f32 %v11757_v26, %v2342_v28  ;;  %v15323_v28 = vld [vmem:[#allocation35_spill] sm:$0xff] }
 0x285   :  { %2707 = vmatprep.mubr.f32.mxu0 %v2480_v5  ;;  %v2346_v53 = vmul.f32 %v11742_v60, %v11706_v32  ;;  %v2488_v37 = vmax.f32 %v2424_v54, 0.0  ;;  %v2487_v19 = vmax.f32 %v2423_v24, 0.0  ;;  %v2428_v1 = vadd.f32 %v11753_v56, %v2343_v25 }
 0x286   :  { %v2347_v5 = vmul.f32 %v11748_v49, %v2262_v46  ;;  %v2351_v24 = vmul.f32 %v11748_v49, %v2266_v55 }
 0x287   :  { %v2492_v54 = vmax.f32 %v2428_v1, 0.0  ;;  %v15324_v1 = vld [vmem:[#allocation36_spill] sm:$0xff] }
 0x288   :  { %2708 = vmatmul.mubr.f32.gmra.mrb[34].mxu0 %v2479_v59  ;;  %v2413_v59 = vadd.f32 %v11805_v43, %v2328_v4 }
 0x289   :  { %2712 = vmatprep.mubr.f32.mxu0 %v2484_v20 }
 0x28a   :  { %v11811_v6 = vpop.eup %8780 }
 0x28b   :  { %v11817_v27 = vmul.f32 %v11811_v6, %v11612_v10  ;;  %v2244_v45 = vmul.f32 %v11811_v6, %v11565_v58  ;;  %v2248_v44 = vmul.f32 %v11811_v6, %v11568_v3  ;;  %v2252_v32 = vmul.f32 %v11811_v6, %v11571_v36 }
 0x28c   :  { %2713 = vmatmul.mubr.f32.gmra.mrb[36].mxu0 %v2483_v2  ;;  %v2260_v29 = vmul.f32 %v11811_v6, %v11577_v15  ;;  %v11829_v46 = vmul.f32 %v11811_v6, %v11580_v11  ;;  %v11833_v10 = vmul.f32 %v11811_v6, %v11583_v63  ;;  %v2265_v58 = vmul.f32 %v11680_v34, %v15323_v28 }
 0x28d   :  { %v2329_v3 = vmul.f32 %v11799_v47, %v2244_v45  ;;  %v2333_v36 = vmul.f32 %v11799_v47, %v2248_v44  ;;  %v2332_v15 = vmul.f32 %v11790_v23, %v11720_v35  ;;  %2717 = vmatprep.mubr.f32.mxu0 %v2488_v37  ;;  %v2432_v11 = vadd.f32 %v11753_v56, %v2347_v5 }
 0x28e   :  { %v2270_v63 = vmul.f32 %v11750_v42, %v11498_v21  ;;  %v2337_v4 = vmul.f32 %v11799_v47, %v2252_v32  ;;  %v2256_v2 = vmul.f32 %v11811_v6, %v11574_v40  ;;  %v2491_v35 = vmax.f32 %v2427_v48, 0.0 }
 0x28f   :  { %v2414_v25 = vadd.f32 %v11802_v62, %v2329_v3  ;;  %v2418_v20 = vadd.f32 %v11802_v62, %v2333_v36  ;;  %v2431_v37 = vadd.f32 %v11757_v26, %v2346_v53  ;;  %v2269_v5 = vmul.f32 %v11680_v34, %v15324_v1 }
 0x290   :  { %2718 = vmatmul.mubr.f32.gmra.mrb[38].mxu0 %v2487_v19  ;;  %v2417_v45 = vadd.f32 %v11805_v43, %v2332_v15  ;;  %v2336_v21 = vmul.f32 %v11790_v23, %v11724_v13  ;;  %v2350_v44 = vmul.f32 %v11742_v60, %v2265_v58  ;;  %v2477_v32 = vmax.f32 %v2413_v59, 0.0  ;;  %v15325_v19 = vld [vmem:[#allocation15_spill] sm:$0xff]  ;;  %v15326_v58 = vld [vmem:[#allocation37_spill] sm:$0xff] }
 0x291   :  { %v2478_v55 = vmax.f32 %v2414_v25, 0.0  ;;  %2722 = vmatprep.mubr.f32.mxu0 %v2492_v54  ;;  %v2496_v28 = vmax.f32 %v2432_v11, 0.0  ;;  %v2436_v40 = vadd.f32 %v11753_v56, %v2351_v24  ;;  %v2274_v48 = vmul.f32 %v11750_v42, %v15325_v19 }
 0x292   :  { %v2482_v53 = vmax.f32 %v2418_v20, 0.0  ;;  %v2422_v3 = vadd.f32 %v11802_v62, %v2337_v4  ;;  %v2341_v36 = vmul.f32 %v11799_v47, %v2256_v2  ;;  %v2355_v15 = vmul.f32 %v11748_v49, %v2270_v63  ;;  %v15327_v2 = vld [vmem:[#allocation17_spill] sm:$0xff] }
 0x293   :  { %7112 = vmatprep.mubr.msk.f32.mxu1 %vm555_vm0, %v2478_v55  ;;  %v2340_v13 = vmul.f32 %v11790_v23, %v11728_v57  ;;  %v2273_v59 = vmul.f32 %v11680_v34, %v15326_v58  ;;  %v2421_v54 = vadd.f32 %v11805_v43, %v2336_v21  ;;  %v2495_v11 = vmax.f32 %v2431_v37, 0.0 }
 0x294   :  { %2848 = vmatmul.mubr.f32.vlgmr.msra.gmra.mrb[32].mxu1 %v2477_v32  ;;  %2723 = vmatmul.mubr.f32.gmra.mrb[40].mxu0 %v2491_v35  ;;  %v2435_v24 = vadd.f32 %v11757_v26, %v2350_v44  ;;  %v2354_v25 = vmul.f32 %v11742_v60, %v2269_v5  ;;  %v2481_v20 = vmax.f32 %v2417_v45, 0.0  ;;  %v2500_v63 = vmax.f32 %v2436_v40, 0.0 }
 0x295   :  { %7113 = vmatprep.mubr.msk.f32.mxu1 %vm555_vm0, %v2482_v53  ;;  %2727 = vmatprep.mubr.f32.mxu0 %v2496_v28  ;;  %v2359_v4 = vmul.f32 %v11748_v49, %v2274_v48  ;;  %v2278_v57 = vmul.f32 %v11750_v42, %v15327_v2  ;;  %v2486_v35 = vmax.f32 %v2422_v3, 0.0  ;;  %v2426_v1 = vadd.f32 %v11802_v62, %v2341_v36  ;;  %v15328_v28 = vld [vmem:[#allocation38_spill] sm:$0xff] }
 0x296   :  { %v2345_v55 = vmul.f32 %v11799_v47, %v2260_v29  ;;  %v2440_v21 = vadd.f32 %v11753_v56, %v2355_v15  ;;  %v2425_v37 = vadd.f32 %v11805_v43, %v2340_v13  ;;  %v2344_v5 = vmul.f32 %v11790_v23, %v11732_v16 }
 0x297   :  { %v2499_v45 = vmax.f32 %v2435_v24, 0.0  ;;  %v2439_v44 = vadd.f32 %v11757_v26, %v2354_v25  ;;  %v2358_v32 = vmul.f32 %v11742_v60, %v2273_v59  ;;  %v2277_v29 = vmul.f32 %v11680_v34, %v15328_v28 }
 0x298   :  { %2853 = vmatmul.mubr.f32.gmra.mrb[34].mxu1 %v2481_v20  ;;  %2728 = vmatmul.mubr.f32.gmra.mrb[42].mxu0 %v2495_v11  ;;  %v2485_v40 = vmax.f32 %v2421_v54, 0.0  ;;  %v2444_v19 = vadd.f32 %v11753_v56, %v2359_v4  ;;  %v2363_v48 = vmul.f32 %v11748_v49, %v2278_v57  ;;  %v2282_v16 = vmul.f32 %v11750_v42, %v11507_v50  ;;  %v15329_v54 = vld [vmem:[#allocation44_spill] sm:$0xff]  ;;  %v15330_v4 = vld [vmem:[#allocation39_spill] sm:$0xff] }
 0x299   :  { %7114 = vmatprep.mubr.msk.f32.mxu1 %vm555_vm0, %v2486_v35  ;;  %2732 = vmatprep.mubr.f32.mxu0 %v2500_v63  ;;  %v2490_v53 = vmax.f32 %v2426_v1, 0.0  ;;  %v2430_v3 = vadd.f32 %v11802_v62, %v2345_v55  ;;  %v2349_v36 = vmul.f32 %v11799_v47, %v11829_v46  ;;  %v2504_v15 = vmax.f32 %v2440_v21, 0.0 }
 0x29a   :  { %v2489_v13 = vmax.f32 %v2425_v37, 0.0  ;;  %v2429_v58 = vadd.f32 %v11805_v43, %v2344_v5  ;;  %v2348_v59 = vmul.f32 %v11790_v23, %v11736_v41  ;;  %v2267_v11 = vmul.f32 %v11710_v51, %v15329_v54  ;;  %v15331_v37 = vld [vmem:[#allocation45_spill] sm:$0xff] }
 0x29b   :  { %v2272_v50 = vmul.f32 %v11811_v6, %v11586_v17  ;;  %v2503_v24 = vmax.f32 %v2439_v44, 0.0  ;;  %v2443_v46 = vadd.f32 %v11757_v26, %v2358_v32  ;;  %v2362_v25 = vmul.f32 %v11742_v60, %v2277_v29 }
 0x29c   :  { %2858 = vmatmul.mubr.f32.gmra.mrb[36].mxu1 %v2485_v40  ;;  %2733 = vmatmul.mubr.f32.gmra.mrb[44].mxu0 %v2499_v45  ;;  %v2353_v20 = vmul.f32 %v11799_v47, %v11833_v10  ;;  %v2508_v63 = vmax.f32 %v2444_v19, 0.0  ;;  %v2448_v41 = vadd.f32 %v11753_v56, %v2363_v48  ;;  %v2281_v2 = vmul.f32 %v11680_v34, %v15330_v4  ;;  %v15332_v19 = vld [vmem:[#allocation40_spill] sm:$0xff] }
 0x29d   :  { %7115 = vmatprep.mubr.msk.f32.mxu1 %vm555_vm0, %v2490_v53  ;;  %2737 = vmatprep.mubr.f32.mxu0 %v2504_v15  ;;  %v2494_v57 = vmax.f32 %v2430_v3, 0.0  ;;  %v2434_v35 = vadd.f32 %v11802_v62, %v2349_v36  ;;  %v2367_v1 = vmul.f32 %v11748_v49, %v2282_v16  ;;  %v2286_v17 = vmul.f32 %v11750_v42, %v11510_v7 }
 0x29e   :  { %v2493_v55 = vmax.f32 %v2429_v58, 0.0  ;;  %v2433_v21 = vadd.f32 %v11805_v43, %v2348_v59  ;;  %v2352_v10 = vmul.f32 %v11790_v23, %v2267_v11  ;;  %v2271_v5 = vmul.f32 %v11710_v51, %v15331_v37  ;;  %v15333_v58 = vld [vmem:[#allocation46_spill] sm:$0xff] }
 0x29f   :  { %v2357_v45 = vmul.f32 %v11799_v47, %v2272_v50  ;;  %v2276_v44 = vmul.f32 %v11811_v6, %v11589_v8  ;;  %v2507_v32 = vmax.f32 %v2443_v46, 0.0  ;;  %v2447_v7 = vadd.f32 %v11757_v26, %v2362_v25 }
 0x2a0   :  { %2863 = vmatmul.mubr.f32.gmra.mrb[38].mxu1 %v2489_v13  ;;  %2738 = vmatmul.mubr.f32.gmra.mrb[46].mxu0 %v2503_v24  ;;  %v2438_v28 = vadd.f32 %v11802_v62, %v2353_v20  ;;  %v2512_v29 = vmax.f32 %v2448_v41, 0.0  ;;  %v2366_v40 = vmul.f32 %v11742_v60, %v2281_v2  ;;  %v2285_v48 = vmul.f32 %v11680_v34, %v15332_v19  ;;  %v15334_v20 = vld [vmem:[#allocation41_spill] sm:$0xff] }
 0x2a1   :  { %7116 = vmatprep.mubr.msk.f32.mxu1 %vm555_vm0, %v2494_v57  ;;  %2742 = vmatprep.mubr.f32.mxu0 %v2508_v63  ;;  %v2498_v16 = vmax.f32 %v2434_v35, 0.0  ;;  %v2452_v53 = vadd.f32 %v11753_v56, %v2367_v1  ;;  %v2371_v3 = vmul.f32 %v11748_v49, %v2286_v17  ;;  %v2290_v36 = vmul.f32 %v11750_v42, %v11513_v33  ;;  %v15335_v1 = vld [vmem:[#allocation47_spill] sm:$0xff] }
 0x2a2   :  { %v2497_v8 = vmax.f32 %v2433_v21, 0.0  ;;  %v2437_v15 = vadd.f32 %v11805_v43, %v2352_v10  ;;  %v2356_v13 = vmul.f32 %v11790_v23, %v2271_v5  ;;  %v2275_v59 = vmul.f32 %v11710_v51, %v15333_v58  ;;  %v15338_v58 = vld [vmem:[#allocation43_spill] sm:$0xff] }
 0x2a3   :  { %v2442_v54 = vadd.f32 %v11802_v62, %v2357_v45  ;;  %v2361_v11 = vmul.f32 %v11799_v47, %v2276_v44  ;;  %v2280_v33 = vmul.f32 %v11811_v6, %v11592_v9  ;;  %v2511_v50 = vmax.f32 %v2447_v7, 0.0 }
 0x2a4   :  { %2868 = vmatmul.mubr.f32.gmra.mrb[40].mxu1 %v2493_v55  ;;  %2743 = vmatmul.mubr.f32.gmra.mrb[48].mxu0 %v2507_v32  ;;  %v2502_v24 = vmax.f32 %v2438_v28, 0.0  ;;  %v2451_v46 = vadd.f32 %v11757_v26, %v2366_v40  ;;  %v2370_v25 = vmul.f32 %v11742_v60, %v2285_v48  ;;  %v2289_v63 = vmul.f32 %v11680_v34, %v15334_v20  ;;  %v15336_v32 = vld [vmem:[#allocation42_spill] sm:$0xff] }
 0x2a5   :  { %7117 = vmatprep.mubr.msk.f32.mxu1 %vm555_vm0, %v2498_v16  ;;  %2747 = vmatprep.mubr.f32.mxu0 %v2512_v29  ;;  %v2516_v41 = vmax.f32 %v2452_v53, 0.0  ;;  %v2456_v4 = vadd.f32 %v11753_v56, %v2371_v3  ;;  %v2375_v2 = vmul.f32 %v11748_v49, %v2290_v36  ;;  %v2294_v57 = vmul.f32 %v11750_v42, %v11516_v38  ;;  %v15337_v36 = vld [vmem:[#allocation48_spill] sm:$0xff] }
 0x2a6   :  { %v2501_v35 = vmax.f32 %v2437_v15, 0.0  ;;  %v2360_v9 = vmul.f32 %v11790_v23, %v2275_v59  ;;  %v2279_v17 = vmul.f32 %v11710_v51, %v15335_v1  ;;  %v2284_v55 = vmul.f32 %v11811_v6, %v11595_v30 }
 0x2a7   :  { %v2506_v21 = vmax.f32 %v2442_v54, 0.0  ;;  %v2441_v10 = vadd.f32 %v11805_v43, %v2356_v13  ;;  %v2446_v37 = vadd.f32 %v11802_v62, %v2361_v11  ;;  %v2365_v38 = vmul.f32 %v11799_v47, %v2280_v33 }
 0x2a8   :  { %2873 = vmatmul.mubr.f32.gmra.mrb[42].mxu1 %v2497_v8  ;;  %2748 = vmatmul.mubr.f32.gmra.mrb[50].mxu0 %v2511_v50  ;;  %v2515_v5 = vmax.f32 %v2451_v46, 0.0  ;;  %v2455_v45 = vadd.f32 %v11757_v26, %v2370_v25  ;;  %v2374_v44 = vmul.f32 %v11742_v60, %v2289_v63  ;;  %v2293_v7 = vmul.f32 %v11680_v34, %v15336_v32 }
 0x2a9   :  { %7118 = vmatprep.mubr.msk.f32.mxu1 %vm555_vm0, %v2502_v24  ;;  %2752 = vmatprep.mubr.f32.mxu0 %v2516_v41  ;;  %v2520_v28 = vmax.f32 %v2456_v4, 0.0  ;;  %v2460_v30 = vadd.f32 %v11753_v56, %v2375_v2  ;;  %v2379_v29 = vmul.f32 %v11748_v49, %v2294_v57  ;;  %v2298_v40 = vmul.f32 %v11750_v42, %v11521_v18 }
 0x2aa   :  { %v2445_v19 = vadd.f32 %v11805_v43, %v2360_v9  ;;  %v2364_v48 = vmul.f32 %v11790_v23, %v2279_v17  ;;  %v2369_v16 = vmul.f32 %v11799_v47, %v2284_v55  ;;  %v2505_v53 = vmax.f32 %v2441_v10, 0.0 }
 0x2ab   :  { %v2450_v3 = vadd.f32 %v11802_v62, %v2365_v38  ;;  %v2283_v8 = vmul.f32 %v11710_v51, %v15337_v36  ;;  %v2288_v18 = vmul.f32 %v11811_v6, %v11598_v52  ;;  %v2519_v42 = vmax.f32 %v2455_v45, 0.0 }
 0x2ac   :  { %2878 = vmatmul.mubr.f32.gmra.mrb[44].mxu1 %v2501_v35  ;;  %2753 = vmatmul.mubr.f32.gmra.mrb[52].mxu0 %v2515_v5  ;;  %v2459_v15 = vadd.f32 %v11757_v26, %v2374_v44  ;;  %v2378_v13 = vmul.f32 %v11742_v60, %v2293_v7  ;;  %v2297_v59 = vmul.f32 %v11680_v34, %v15338_v58  ;;  %v2510_v54 = vmax.f32 %v2446_v37, 0.0  ;;  %v15339_v34 = vld [vmem:[#allocation49_spill] sm:$0xff] }
 0x2ad   :  { %7119 = vmatprep.mubr.msk.f32.mxu1 %vm555_vm0, %v2506_v21  ;;  %2757 = vmatprep.mubr.f32.mxu0 %v2520_v28  ;;  %v2524_v11 = vmax.f32 %v2460_v30, 0.0  ;;  %v2464_v33 = vadd.f32 %v11753_v56, %v2379_v29  ;;  %v2383_v50 = vmul.f32 %v11748_v49, %v2298_v40  ;;  %v2449_v24 = vadd.f32 %v11805_v43, %v2364_v48 }
 0x2ae   :  { %v2454_v46 = vadd.f32 %v11802_v62, %v2369_v16  ;;  %v2509_v52 = vmax.f32 %v2445_v19, 0.0  ;;  %v2368_v25 = vmul.f32 %v11790_v23, %v2283_v8  ;;  %v2373_v20 = vmul.f32 %v11799_v47, %v2288_v18 }
 0x2af   :  { %v2287_v63 = vmul.f32 %v11710_v51, %v15339_v34  ;;  %v2514_v41 = vmax.f32 %v2450_v3, 0.0  ;;  %v2523_v4 = vmax.f32 %v2459_v15, 0.0  ;;  %v2463_v2 = vadd.f32 %v11757_v26, %v2378_v13 }
 0x2b0   :  { %2883 = vmatmul.mubr.f32.gmra.mrb[46].mxu1 %v2505_v53  ;;  %2758 = vmatmul.mubr.f32.gmra.mrb[54].mxu0 %v2519_v42  ;;  %v2382_v57 = vmul.f32 %v11742_v60, %v2297_v59  ;;  %v2292_v35 = vmul.f32 %v11811_v6, %v11601_v39  ;;  %v2528_v9 = vmax.f32 %v2464_v33, 0.0  ;;  %v2468_v1 = vadd.f32 %v11753_v56, %v2383_v50  ;;  %v15340_v39 = vld [vmem:[#allocation50_spill] sm:$0xff]  ;;  %v15342_v42 = vld [vmem:[#allocation52_spill] sm:$0xff] }
 0x2b1   :  { %7120 = vmatprep.mubr.msk.f32.mxu1 %vm555_vm0, %v2510_v54  ;;  %2762 = vmatprep.mubr.f32.mxu0 %v2524_v11  ;;  %v2387_v17 = vmul.f32 %v11748_v49, %v11761_v61  ;;  %v2513_v55 = vmax.f32 %v2449_v24, 0.0  ;;  %v2518_v21 = vmax.f32 %v2454_v46, 0.0  ;;  %v2453_v10 = vadd.f32 %v11805_v43, %v2368_v25  ;;  %v15343_v46 = vld [vmem:[#allocation19_spill] sm:$0xff] }
 0x2b2   :  { %v2458_v37 = vadd.f32 %v11802_v62, %v2373_v20  ;;  %v2372_v38 = vmul.f32 %v11790_v23, %v2287_v63  ;;  %v2291_v5 = vmul.f32 %v11710_v51, %v15340_v39  ;;  %v2527_v45 = vmax.f32 %v2463_v2, 0.0 }
 0x2b3   :  { %v2467_v44 = vadd.f32 %v11757_v26, %v2382_v57  ;;  %v2386_v49 = vmul.f32 %v11742_v60, %v11687_v22  ;;  %v2377_v61 = vmul.f32 %v11799_v47, %v2292_v35  ;;  %v2296_v32 = vmul.f32 %v11811_v6, %v11604_v31  ;;  %v15341_v22 = vld [vmem:[#allocation51_spill] sm:$0xff] }
 0x2b4   :  { %2888 = vmatmul.mubr.f32.gmra.mrb[48].mxu1 %v2509_v52  ;;  %2763 = vmatmul.mubr.f32.gmra.mrb[56].mxu0 %v2523_v4  ;;  %v2532_v7 = vmax.f32 %v2468_v1, 0.0  ;;  %v2472_v28 = vadd.f32 %v11753_v56, %v2387_v17  ;;  %v2517_v30 = vmax.f32 %v2453_v10, 0.0  ;;  %v2522_v29 = vmax.f32 %v2458_v37, 0.0  ;;  %v12040_v1 = vld [vmem:[%s15075_s6 + $0x7] ss:$0 sm:$0xff] }
 0x2b5   :  { %7121 = vmatprep.mubr.msk.f32.mxu1 %vm555_vm0, %v2514_v41  ;;  %2767 = vmatprep.mubr.f32.mxu0 %v2528_v9  ;;  %v2457_v40 = vadd.f32 %v11805_v43, %v2372_v38  ;;  %v2376_v19 = vmul.f32 %v11790_v23, %v2291_v5  ;;  %v2295_v60 = vmul.f32 %v11710_v51, %v15341_v22  ;;  %v2531_v48 = vmax.f32 %v2467_v44, 0.0 }
 0x2b6   :  { %v2471_v31 = vadd.f32 %v11757_v26, %v2386_v49  ;;  %v2462_v16 = vadd.f32 %v11802_v62, %v2377_v61  ;;  %v2381_v56 = vmul.f32 %v11799_v47, %v2296_v32  ;;  %v2300_v53 = vmul.f32 %v11811_v6, %v11607_v0 }
 0x2b7   :  { %v2536_v3 = vmax.f32 %v2472_v28, 0.0  ;;  %v2521_v36 = vmax.f32 %v2457_v40, 0.0  ;;  %v2461_v8 = vadd.f32 %v11805_v43, %v2376_v19  ;;  %v2380_v18 = vmul.f32 %v11790_v23, %v2295_v60 }
 0x2b8   :  { %2893 = vmatmul.mubr.f32.gmra.mrb[50].mxu1 %v2513_v55  ;;  %2768 = vmatmul.mubr.f32.gmra.mrb[58].mxu0 %v2527_v45  ;;  %v2299_v26 = vmul.f32 %v11710_v51, %v15342_v42  ;;  %v2535_v15 = vmax.f32 %v2471_v31, 0.0  ;;  %v2526_v13 = vmax.f32 %v2462_v16, 0.0  ;;  %v2466_v58 = vadd.f32 %v11802_v62, %v2381_v56 }
 0x2b9   :  { %7122 = vmatprep.mubr.msk.f32.mxu1 %vm555_vm0, %v2518_v21  ;;  %2772 = vmatprep.mubr.f32.mxu0 %v2532_v7  ;;  %v2385_v0 = vmul.f32 %v11799_v47, %v2300_v53  ;;  %v2525_v6 = vmax.f32 %v2461_v8, 0.0  ;;  %v2465_v59 = vadd.f32 %v11805_v43, %v2380_v18  ;;  %v2389_v11 = vmul.f32 %v11799_v47, %v11817_v27 }
 0x2ba   :  { %v2384_v54 = vmul.f32 %v11790_v23, %v2299_v26  ;;  %v2530_v33 = vmax.f32 %v2466_v58, 0.0  ;;  %v2388_v52 = vmul.f32 %v11790_v23, %v15343_v46  ;;  %v9272_v16 = vmov 1  }
 0x2bb   :  { %v2470_v51 = vadd.f32 %v11802_v62, %v2385_v0  ;;  %v2529_v50 = vmax.f32 %v2465_v59, 0.0  ;;  %v2474_v20 = vadd.f32 %v11802_v62, %v2389_v11  ;;  %8502 = vset.pattern.permute.xlu1 %v9272_v16  ;;  %v15147_v56 = vmov 0  }
 0x2bc   :  { %2898 = vmatmul.mubr.f32.gmra.mrb[52].mxu1 %v2517_v30  ;;  %2773 = vmatmul.mubr.f32.gmra.mrb[60].mxu0 %v2531_v48  ;;  %v2469_v24 = vadd.f32 %v11805_v43, %v2384_v54  ;;  %v2473_v47 = vadd.f32 %v11805_v43, %v2388_v52 }
 0x2bd   :  { %7123 = vmatprep.mubr.msk.f32.mxu1 %vm555_vm0, %v2522_v29  ;;  %2777 = vmatprep.mubr.f32.mxu0 %v2536_v3  ;;  %v2534_v25 = vmax.f32 %v2470_v51, 0.0  ;;  %v2538_v27 = vmax.f32 %v2474_v20, 0.0 }
 0x2be   :  { %v2533_v34 = vmax.f32 %v2469_v24, 0.0  ;;  %v2537_v63 = vmax.f32 %v2473_v47, 0.0  ;;  %8501 = vset.pattern.permute.xlu0 %v15147_v56 }
 0x2c0   :  { %2903 = vmatmul.mubr.f32.gmra.mrb[54].mxu1 %v2521_v36  ;;  %2778 = vmatmul.mubr.f32.gmra.mrb[62].mxu0 %v2535_v15 }
 0x2c1   :  { %7124 = vmatprep.mubr.msk.f32.mxu1 %vm555_vm0, %v2526_v13 }
 0x2c4   :  { %2908 = vmatmul.mubr.f32.gmra.mrb[56].mxu1 %v2525_v6 }
 0x2c5   :  { %7125 = vmatprep.mubr.msk.f32.mxu1 %vm555_vm0, %v2530_v33 }
 0x2c8   :  { %2913 = vmatmul.mubr.f32.gmra.mrb[58].mxu1 %v2529_v50 }
 0x2c9   :  { %7126 = vmatprep.mubr.msk.f32.mxu1 %vm555_vm0, %v2534_v25 }
 0x2cc   :  { %2918 = vmatmul.mubr.f32.gmra.mrb[60].mxu1 %v2533_v34 }
 0x2cd   :  { %7127 = vmatprep.mubr.msk.f32.mxu1 %vm555_vm0, %v2538_v27 }
 0x2d0   :  { %2923 = vmatmul.mubr.f32.gmra.mrb[62].mxu1 %v2537_v63 }
 0x357   :  { %v7485_v41 = vpop.f32.mrb[32].mxu0 }
 0x358   :  { %v7486_v4 = vpop.f32.mrb[33].mxu0 }
 0x359   :  { %v7487_v2 = vadd.f32 %v7486_v4, %v7485_v41 }
 0x35b   :  { %v7488_v57 = vpop.f32.mrb[34].mxu0  ;;  %v2705_v55 = vadd.f32 %v7487_v2, %v12040_v1 }
 0x35c   :  { %v7489_v23 = vpop.f32.mrb[35].mxu0 }
 0x35d   :  { %v7490_v35 = vadd.f32 %v7489_v23, %v7488_v57 }
 0x35f   :  { %v7491_v9 = vpop.f32.mrb[36].mxu0  ;;  %v2710_v45 = vadd.f32 %v7490_v35, %v12040_v1 }
 0x360   :  { %v7492_v62 = vpop.f32.mrb[37].mxu0 }
 0x361   :  { %v7493_v43 = vadd.f32 %v7492_v62, %v7491_v9 }
 0x363   :  { %v7494_v17 = vpop.f32.mrb[38].mxu0  ;;  %v2715_v40 = vadd.f32 %v7493_v43, %v12040_v1 }
 0x364   :  { %v7495_v21 = vpop.f32.mrb[39].mxu0 }
 0x365   :  { %v7496_v10 = vadd.f32 %v7495_v21, %v7494_v17 }
 0x367   :  { %v2849_v37 = vpop.f32.mrb[32].mxu1  ;;  %v7497_v38 = vpop.f32.mrb[40].mxu0  ;;  %v2720_v8 = vadd.f32 %v7496_v10, %v12040_v1 }
 0x368   :  { %v12043_v39 = vadd.f32 %v2849_v37, %v2705_v55  ;;  %v2851_v5 = vpop.f32.mrb[33].mxu1  ;;  %v7498_v44 = vpop.f32.mrb[41].mxu0 }
 0x369   :  { %v7499_v49 = vadd.f32 %v7498_v44, %v7497_v38 }
 0x36a   :  { %2928 = vst [vmem:[%s15077_s8] sm:$0xff] %v12043_v39  ;;  %v2960_v61 = vmul.f32 0.5, %v12043_v39 }
 0x36b   :  { %v2854_v32 = vpop.f32.mrb[34].mxu1  ;;  %v7500_v7 = vpop.f32.mrb[42].mxu0  ;;  %v2725_v59 = vadd.f32 %v7499_v49, %v12040_v1 }
 0x36c   :  { %v2976_v28 = vmul.f32 1.442695, %v2960_v61  ;;  %v12051_v30 = vadd.f32 %v2854_v32, %v2710_v45  ;;  %v2856_v29 = vpop.f32.mrb[35].mxu1  ;;  %v7501_v19 = vpop.f32.mrb[43].mxu0 }
 0x36d   :  { %v7502_v22 = vadd.f32 %v7501_v19, %v7500_v7 }
 0x36e   :  { %8782 = vpow2.f32 %v2976_v28  ;;  %2929 = vst [vmem:[%s15077_s8 + $0x8] sm:$0xff] %v12051_v30  ;;  %v2961_v60 = vmul.f32 0.5, %v12051_v30 }
 0x36f   :  { %v2859_v48 = vpop.f32.mrb[36].mxu1  ;;  %v7503_v31 = vpop.f32.mrb[44].mxu0  ;;  %v2730_v20 = vadd.f32 %v7502_v22, %v12040_v1 }
 0x370   :  { %v2978_v53 = vmul.f32 1.442695, %v2961_v60  ;;  %v12061_v3 = vadd.f32 %v2859_v48, %v2715_v40  ;;  %v2861_v36 = vpop.f32.mrb[37].mxu1  ;;  %v7504_v18 = vpop.f32.mrb[45].mxu0 }
 0x371   :  { %v7505_v42 = vadd.f32 %v7504_v18, %v7503_v31 }
 0x372   :  { %8784 = vpow2.f32 %v2978_v53  ;;  %2930 = vst [vmem:[%s15077_s8 + $0x10] sm:$0xff] %v12061_v3  ;;  %v2962_v26 = vmul.f32 0.5, %v12061_v3 }
 0x373   :  { %v2864_v15 = vpop.f32.mrb[38].mxu1  ;;  %v7506_v13 = vpop.f32.mrb[46].mxu0  ;;  %v2735_v35 = vadd.f32 %v7505_v42, %v12040_v1 }
 0x374   :  { %v2980_v58 = vmul.f32 1.442695, %v2962_v26  ;;  %v12069_v0 = vadd.f32 %v2864_v15, %v2720_v8  ;;  %v2866_v6 = vpop.f32.mrb[39].mxu1  ;;  %v7507_v54 = vpop.f32.mrb[47].mxu0 }
 0x375   :  { %v7508_v11 = vadd.f32 %v7507_v54, %v7506_v13 }
 0x376   :  { %8786 = vpow2.f32 %v2980_v58  ;;  %2931 = vst [vmem:[%s15077_s8 + $0x18] sm:$0xff] %v12069_v0  ;;  %v2963_v33 = vmul.f32 0.5, %v12069_v0 }
 0x377   :  { %v2869_v51 = vpop.f32.mrb[40].mxu1  ;;  %v7509_v50 = vpop.f32.mrb[48].mxu0  ;;  %v2740_v5 = vadd.f32 %v7508_v11, %v12040_v1 }
 0x378   :  { %v8783_v24 = vpop.eup %8782  ;;  %v2982_v46 = vmul.f32 1.442695, %v2963_v33  ;;  %v12077_v52 = vadd.f32 %v2869_v51, %v2725_v59  ;;  %v2871_v25 = vpop.f32.mrb[41].mxu1 }
 0x379   :  { %v7510_v34 = vpop.f32.mrb[49].mxu0  ;;  %3024 = vrot.lane.b32.xlu0 %v8783_v24, %s9274_s14 }
 0x37a   :  { %v7511_v47 = vadd.f32 %v7510_v34, %v7509_v50  ;;  %8788 = vpow2.f32 %v2982_v46  ;;  %2932 = vst [vmem:[%s15077_s8 + $0x20] sm:$0xff] %v12077_v52  ;;  %v2964_v27 = vmul.f32 0.5, %v12077_v52 }
 0x37b   :  { %v2874_v63 = vpop.f32.mrb[42].mxu1  ;;  %v7512_v41 = vpop.f32.mrb[50].mxu0 }
 0x37c   :  { %v8785_v4 = vpop.eup %8784  ;;  %v2984_v2 = vmul.f32 1.442695, %v2964_v27  ;;  %v12086_v57 = vadd.f32 %v2874_v63, %v2730_v20  ;;  %v2876_v23 = vpop.f32.mrb[43].mxu1  ;;  %v2745_v19 = vadd.f32 %v7511_v47, %v12040_v1 }
 0x37d   :  { %v7513_v9 = vpop.f32.mrb[51].mxu0  ;;  %3026 = vrot.lane.b32.xlu0 %v8785_v4, %s9274_s14 }
 0x37e   :  { %v7514_v62 = vadd.f32 %v7513_v9, %v7512_v41  ;;  %8790 = vpow2.f32 %v2984_v2  ;;  %2933 = vst [vmem:[%s15077_s8 + $0x28] sm:$0xff] %v12086_v57  ;;  %v2965_v43 = vmul.f32 0.5, %v12086_v57 }
 0x37f   :  { %v2879_v17 = vpop.f32.mrb[44].mxu1  ;;  %v7515_v55 = vpop.f32.mrb[52].mxu0 }
 0x380   :  { %v8787_v21 = vpop.eup %8786  ;;  %v2986_v10 = vmul.f32 1.442695, %v2965_v43  ;;  %v12095_v37 = vadd.f32 %v2879_v17, %v2735_v35  ;;  %v2881_v38 = vpop.f32.mrb[45].mxu1  ;;  %v2750_v26 = vadd.f32 %v7514_v62, %v12040_v1 }
 0x381   :  { %v7516_v45 = vpop.f32.mrb[53].mxu0  ;;  %3028 = vrot.lane.b32.xlu1 %v8787_v21, %s9274_s14 }
 0x382   :  { %v7517_v44 = vadd.f32 %v7516_v45, %v7515_v55  ;;  %8792 = vpow2.f32 %v2986_v10  ;;  %2934 = vst [vmem:[%s15077_s8 + $0x30] sm:$0xff] %v12095_v37  ;;  %v2966_v49 = vmul.f32 0.5, %v12095_v37 }
 0x383   :  { %v2884_v61 = vpop.f32.mrb[46].mxu1  ;;  %v7518_v32 = vpop.f32.mrb[54].mxu0 }
 0x384   :  { %v8789_v7 = vpop.eup %8788  ;;  %v2988_v28 = vmul.f32 1.442695, %v2966_v49  ;;  %v12104_v29 = vadd.f32 %v2884_v61, %v2740_v5  ;;  %v2886_v40 = vpop.f32.mrb[47].mxu1  ;;  %v2755_v50 = vadd.f32 %v7517_v44, %v12040_v1 }
 0x385   :  { %v7519_v22 = vpop.f32.mrb[55].mxu0  ;;  %3030 = vrot.lane.b32.xlu1 %v8789_v7, %s9274_s14 }
 0x386   :  { %v7520_v60 = vadd.f32 %v7519_v22, %v7518_v32  ;;  %8794 = vpow2.f32 %v2988_v28  ;;  %2935 = vst [vmem:[%s15077_s8 + $0x38] sm:$0xff] %v12104_v29  ;;  %v2967_v48 = vmul.f32 0.5, %v12104_v29 }
 0x387   :  { %v2889_v31 = vpop.f32.mrb[48].mxu1  ;;  %v7521_v53 = vpop.f32.mrb[56].mxu0 }
 0x388   :  { %v8791_v36 = vpop.eup %8790  ;;  %v2990_v8 = vmul.f32 1.442695, %v2967_v48  ;;  %v12113_v18 = vadd.f32 %v2889_v31, %v2745_v19  ;;  %v2891_v42 = vpop.f32.mrb[49].mxu1  ;;  %v2760_v4 = vadd.f32 %v7520_v60, %v12040_v1 }
 0x389   :  { %v7522_v15 = vpop.f32.mrb[57].mxu0  ;;  %3032 = vrot.lane.b32.xlu0 %v8791_v36, %s9274_s14 }
 0x38a   :  { %v7523_v13 = vadd.f32 %v7522_v15, %v7521_v53  ;;  %8796 = vpow2.f32 %v2990_v8  ;;  %2936 = vst [vmem:[%s15077_s8 + $0x40] sm:$0xff] %v12113_v18  ;;  %v2968_v58 = vmul.f32 0.5, %v12113_v18 }
 0x38b   :  { %v2894_v6 = vpop.f32.mrb[50].mxu1  ;;  %v7524_v59 = vpop.f32.mrb[58].mxu0 }
 0x38c   :  { %v8793_v54 = vpop.eup %8792  ;;  %v2992_v11 = vmul.f32 1.442695, %v2968_v58  ;;  %v12122_v33 = vadd.f32 %v2894_v6, %v2750_v26  ;;  %v2896_v51 = vpop.f32.mrb[51].mxu1  ;;  %v2765_v10 = vadd.f32 %v7523_v13, %v12040_v1 }
 0x38d   :  { %v7525_v24 = vpop.f32.mrb[59].mxu0  ;;  %3034 = vrot.lane.b32.xlu1 %v8793_v54, %s9274_s14 }
 0x38e   :  { %v7526_v46 = vadd.f32 %v7525_v24, %v7524_v59  ;;  %8798 = vpow2.f32 %v2992_v11  ;;  %2937 = vst [vmem:[%s15077_s8 + $0x48] sm:$0xff] %v12122_v33  ;;  %v2969_v25 = vmul.f32 0.5, %v12122_v33 }
 0x38f   :  { %v2899_v20 = vpop.f32.mrb[52].mxu1  ;;  %v7527_v34 = vpop.f32.mrb[60].mxu0 }
 0x390   :  { %v8795_v47 = vpop.eup %8794  ;;  %v2994_v27 = vmul.f32 1.442695, %v2969_v25  ;;  %v12131_v63 = vadd.f32 %v2899_v20, %v2755_v50  ;;  %v2901_v41 = vpop.f32.mrb[53].mxu1  ;;  %v2770_v28 = vadd.f32 %v7526_v46, %v12040_v1 }
 0x391   :  { %v7528_v2 = vpop.f32.mrb[61].mxu0  ;;  %3036 = vrot.lane.b32.xlu0 %v8795_v47, %s9274_s14  ;;  %v2944_v47 = vld [vmem:[%s15078_s1] sm:$0xff] }
 0x392   :  { %v7529_v23 = vadd.f32 %v7528_v2, %v7527_v34  ;;  %8800 = vpow2.f32 %v2994_v27  ;;  %2938 = vst [vmem:[%s15077_s8 + $0x50] sm:$0xff] %v12131_v63  ;;  %v2970_v35 = vmul.f32 0.5, %v12131_v63 }
 0x393   :  { %v2904_v9 = vpop.f32.mrb[54].mxu1  ;;  %v7530_v62 = vpop.f32.mrb[62].mxu0 }
 0x394   :  { %v8797_v43 = vpop.eup %8796  ;;  %v2996_v17 = vmul.f32 1.442695, %v2970_v35  ;;  %v12140_v55 = vadd.f32 %v2904_v9, %v2760_v4  ;;  %v2906_v21 = vpop.f32.mrb[55].mxu1  ;;  %v2775_v53 = vadd.f32 %v7529_v23, %v12040_v1  ;;  %v2945_v4 = vld [vmem:[%s15078_s1 + $0x8] sm:$0xff]  ;;  %v2946_v9 = vld [vmem:[%s15078_s1 + $0x10] sm:$0xff] }
 0x395   :  { %v7531_v38 = vpop.f32.mrb[63].mxu0  ;;  %3038 = vrot.lane.b32.xlu1 %v8797_v43, %s9274_s14 }
 0x396   :  { %v7532_v5 = vadd.f32 %v7531_v38, %v7530_v62  ;;  %8802 = vpow2.f32 %v2996_v17  ;;  %2939 = vst [vmem:[%s15077_s8 + $0x58] sm:$0xff] %v12140_v55  ;;  %v2971_v45 = vmul.f32 0.5, %v12140_v55 }
 0x397   :  { %v2909_v44 = vpop.f32.mrb[56].mxu1 }
 0x398   :  { %v8799_v49 = vpop.eup %8798  ;;  %v2998_v61 = vmul.f32 1.442695, %v2971_v45  ;;  %v12149_v32 = vadd.f32 %v2909_v44, %v2765_v10  ;;  %v2911_v7 = vpop.f32.mrb[57].mxu1  ;;  %v2780_v58 = vadd.f32 %v7532_v5, %v12040_v1 }
 0x399   :  { %3040 = vrot.lane.b32.xlu0 %v8799_v49, %s9274_s14 }
 0x39a   :  { %8804 = vpow2.f32 %v2998_v61  ;;  %2940 = vst [vmem:[%s15077_s8 + $0x60] sm:$0xff] %v12149_v32  ;;  %v2972_v40 = vmul.f32 0.5, %v12149_v32  ;;  %v2949_v61 = vld [vmem:[%s15078_s1 + $0x28] sm:$0xff] }
 0x39b   :  { %v2914_v19 = vpop.f32.mrb[58].mxu1 }
 0x39c   :  { %v8801_v22 = vpop.eup %8800  ;;  %v3000_v60 = vmul.f32 1.442695, %v2972_v40  ;;  %v12158_v48 = vadd.f32 %v2914_v19, %v2770_v28  ;;  %v2916_v31 = vpop.f32.mrb[59].mxu1 }
 0x39d   :  { %3042 = vrot.lane.b32.xlu1 %v8801_v22, %s9274_s14 }
 0x39e   :  { %8806 = vpow2.f32 %v3000_v60  ;;  %2941 = vst [vmem:[%s15077_s8 + $0x68] sm:$0xff] %v12158_v48  ;;  %v2973_v36 = vmul.f32 0.5, %v12158_v48 }
 0x39f   :  { %v2919_v8 = vpop.f32.mrb[60].mxu1 }
 0x3a0   :  { %v8803_v42 = vpop.eup %8802  ;;  %v3002_v26 = vmul.f32 1.442695, %v2973_v36  ;;  %v12167_v15 = vadd.f32 %v2919_v8, %v2775_v53  ;;  %v2921_v13 = vpop.f32.mrb[61].mxu1  ;;  %v2953_v36 = vld [vmem:[%s15078_s1 + $0x48] sm:$0xff] }
 0x3a1   :  { %3044 = vrot.lane.b32.xlu0 %v8803_v42, %s9274_s14  ;;  %v2952_v13 = vld [vmem:[%s15078_s1 + $0x40] sm:$0xff] }
 0x3a2   :  { %8808 = vpow2.f32 %v3002_v26  ;;  %2942 = vst [vmem:[%s15077_s8 + $0x70] sm:$0xff] %v12167_v15  ;;  %v2974_v6 = vmul.f32 0.5, %v12167_v15 }
 0x3a3   :  { %v2924_v59 = vpop.f32.mrb[62].mxu1 }
 0x3a4   :  { %v8805_v54 = vpop.eup %8804  ;;  %v3004_v11 = vmul.f32 1.442695, %v2974_v6  ;;  %v12176_v51 = vadd.f32 %v2924_v59, %v2780_v58  ;;  %v2926_v50 = vpop.f32.mrb[63].mxu1 }
 0x3a5   :  { %3046 = vrot.lane.b32.xlu1 %v8805_v54, %s9274_s14 }
 0x3a6   :  { %8810 = vpow2.f32 %v3004_v11  ;;  %2943 = vst [vmem:[%s15077_s8 + $0x78] sm:$0xff] %v12176_v51  ;;  %v2975_v1 = vmul.f32 0.5, %v12176_v51 }
 0x3a8   :  { %v8807_v24 = vpop.eup %8806  ;;  %v3006_v46 = vmul.f32 1.442695, %v2975_v1 }
 0x3a9   :  { %3048 = vrot.lane.b32.xlu0 %v8807_v24, %s9274_s14 }
 0x3aa   :  { %8812 = vpow2.f32 %v3006_v46 }
 0x3ac   :  { %v8809_v25 = vpop.eup %8808 }
 0x3ad   :  { %3050 = vrot.lane.b32.xlu1 %v8809_v25, %s9274_s14 }
 0x3b0   :  { %v8811_v20 = vpop.eup %8810 }
 0x3b1   :  { %3052 = vrot.lane.b32.xlu0 %v8811_v20, %s9274_s14 }
 0x3b4   :  { %v8813_v34 = vpop.eup %8812 }
 0x3b5   :  { %3054 = vrot.lane.b32.xlu1 %v8813_v34, %s9274_s14  ;;  %v2955_v34 = vld [vmem:[%s15078_s1 + $0x58] sm:$0xff] }
 0x3eb   :  { %v3025_v27 = vpop.permute.xlu0 %3024 }
 0x3ec   :  { %v3072_v41 = vmul.f32 %v3025_v27, %v2944_v47 }
 0x3ee   :  { %v3088_v2 = vadd.f32 %v3072_v41, %v12043_v39  ;;  %v2947_v39 = vld [vmem:[%s15078_s1 + $0x18] sm:$0xff] }
 0x3ef   :  { %v3027_v23 = vpop.permute.xlu0 %3026 }
 0x3f0   :  { %v3073_v35 = vmul.f32 %v3027_v23, %v2945_v4  ;;  %3273 = vperm.xlu1 %8502, %v3088_v2   ;;  %3107 = vperm.xlu0 %8501, %v3088_v2   ;;  %v2958_v4 = vld [vmem:[%s15078_s1 + $0x70] sm:$0xff] }
 0x3f2   :  { %v3089_v62 = vadd.f32 %v3073_v35, %v12051_v30  ;;  %v2948_v30 = vld [vmem:[%s15078_s1 + $0x20] sm:$0xff] }
 0x3f3   :  { %v3029_v43 = vpop.permute.xlu1 %3028  ;;  %v3104_v35 = vld [vmem:[%s15079_s4] ss:$2 sm:$0xf] }
 0x3f4   :  { %v3074_v17 = vmul.f32 %v3029_v43, %v2946_v9  ;;  %8503 = vset.pattern.permute.xlu1 %v15147_v56  ;;  %8504 = vset.pattern.permute.xlu0 %v9272_v16  ;;  %v12294_v43 = vld [vmem:[%s15075_s6 + $0x3] ss:$8 sm:$0xf] }
 0x3f5   :  { %3277 = vperm.xlu0 %8504, %v3089_v62   ;;  %3112 = vperm.xlu1 %8503, %v3089_v62  }
 0x3f6   :  { %v3090_v21 = vadd.f32 %v3074_v17, %v12061_v3  ;;  %v2950_v3 = vld [vmem:[%s15078_s1 + $0x30] sm:$0xff] }
 0x3f7   :  { %v3031_v10 = vpop.permute.xlu1 %3030 }
 0x3f8   :  { %v3075_v38 = vmul.f32 %v3031_v10, %v2947_v39 }
 0x3f9   :  { %3117 = vperm.xlu1 %8503, %v3090_v21   ;;  %8506 = vset.pattern.permute.xlu0 %v15147_v56 }
 0x3fa   :  { %v3091_v5 = vadd.f32 %v3075_v38, %v12069_v0  ;;  %v12300_v38 = vrot.slane %v12294_v43, %v15321_v14 }
 0x3fb   :  { %v3033_v45 = vpop.permute.xlu0 %3032 }
 0x3fc   :  { %v3076_v44 = vmul.f32 %v3033_v45, %v2948_v30  ;;  %3122 = vperm.xlu0 %8506, %v3091_v5  }
 0x3fd   :  { %8505 = vset.pattern.permute.xlu1 %v9272_v16 }
 0x3fe   :  { %v3092_v49 = vadd.f32 %v3076_v44, %v12077_v52  ;;  %3281 = vperm.xlu1 %8505, %v3090_v21   ;;  %v2951_v52 = vld [vmem:[%s15078_s1 + $0x38] sm:$0xff] }
 0x3ff   :  { %v3035_v0 = vpop.permute.xlu1 %3034 }
 0x400   :  { %8508 = vset.pattern.permute.xlu0 %v9272_v16  ;;  %v3077_v40 = vmul.f32 %v3035_v0, %v2949_v61  ;;  %v12309_v0 = vrot.slane %v12294_v43, %v15322_v12 }
 0x401   :  { %3289 = vperm.xlu0 %8508, %v3092_v49  }
 0x402   :  { %3285 = vperm.xlu1 %8505, %v3091_v5   ;;  %v3093_v31 = vadd.f32 %v3077_v40, %v12086_v57  ;;  %v2954_v57 = vld [vmem:[%s15078_s1 + $0x50] sm:$0xff] }
 0x403   :  { %v3037_v7 = vpop.permute.xlu0 %3036 }
 0x404   :  { %v3078_v28 = vmul.f32 %v3037_v7, %v2950_v3 }
 0x405   :  { %8510 = vset.pattern.permute.xlu0 %v15147_v56 }
 0x406   :  { %v3094_v19 = vadd.f32 %v3078_v28, %v12095_v37  ;;  %8507 = vset.pattern.permute.xlu1 %v15147_v56 }
 0x407   :  { %v3039_v22 = vpop.permute.xlu1 %3038  ;;  %3127 = vperm.xlu1 %8507, %v3092_v49  }
 0x408   :  { %v3079_v60 = vmul.f32 %v3039_v22, %v2951_v52  ;;  %3137 = vperm.xlu0 %8510, %v3094_v19  }
 0x40a   :  { %v3095_v53 = vadd.f32 %v3079_v60, %v12104_v29 }
 0x40b   :  { %3132 = vperm.xlu1 %8507, %v3093_v31   ;;  %v3041_v8 = vpop.permute.xlu0 %3040 }
 0x40c   :  { %8512 = vset.pattern.permute.xlu0 %v9272_v16  ;;  %v3080_v59 = vmul.f32 %v3041_v8, %v2952_v13 }
 0x40d   :  { %3301 = vperm.xlu0 %8512, %v3095_v53  }
 0x40e   :  { %v3096_v54 = vadd.f32 %v3080_v59, %v12113_v18  ;;  %v2959_v18 = vld [vmem:[%s15078_s1 + $0x78] sm:$0xff] }
 0x40f   :  { %v3043_v37 = vpop.permute.xlu1 %3042  ;;  %8509 = vset.pattern.permute.xlu1 %v9272_v16 }
 0x410   :  { %v3081_v42 = vmul.f32 %v3043_v37, %v2953_v36  ;;  %3293 = vperm.xlu1 %8509, %v3093_v31  }
 0x411   :  { %8514 = vset.pattern.permute.xlu0 %v15147_v56 }
 0x412   :  { %v3097_v29 = vadd.f32 %v3081_v42, %v12122_v33  ;;  %v2956_v33 = vld [vmem:[%s15078_s1 + $0x60] sm:$0xff] }
 0x413   :  { %v3045_v26 = vpop.permute.xlu0 %3044 }
 0x414   :  { %v3082_v58 = vmul.f32 %v3045_v26, %v2954_v57  ;;  %3297 = vperm.xlu1 %8509, %v3094_v19   ;;  %3152 = vperm.xlu0 %8514, %v3097_v29   ;;  %v15344_v26 = vld [vmem:[#allocation3_spill] sm:$0xff] }
 0x416   :  { %v3098_v6 = vadd.f32 %v3082_v58, %v12131_v63  ;;  %v2957_v63 = vld [vmem:[%s15078_s1 + $0x68] sm:$0xff] }
 0x417   :  { %v3047_v11 = vpop.permute.xlu1 %3046 }
 0x418   :  { %8511 = vset.pattern.permute.xlu1 %v15147_v56  ;;  %8516 = vset.pattern.permute.xlu0 %v9272_v16  ;;  %v3083_v27 = vmul.f32 %v3047_v11, %v2955_v34 }
 0x419   :  { %3142 = vperm.xlu1 %8511, %v3095_v53   ;;  %3313 = vperm.xlu0 %8516, %v3098_v6  }
 0x41a   :  { %v3099_v41 = vadd.f32 %v3083_v27, %v12140_v55  ;;  %v7128_v55 = vld [vmem:[%s15079_s4 + $0x1] ss:$2 sm:$0xf] }
 0x41b   :  { %v3049_v50 = vpop.permute.xlu0 %3048  ;;  %v12280_v9 = vrot.slane %v7128_v55, %v15321_v14  ;;  %v12283_v62 = vrot.slane %v7128_v55, %v15322_v12  ;;  %v12335_v13 = vrot.slane %v7128_v55, %v15344_v26 }
 0x41c   :  { %v3084_v1 = vmul.f32 %v3049_v50, %v2956_v33  ;;  %v12346_v50 = vrot.slane %v3104_v35, %v15344_v26 }
 0x41d   :  { %3147 = vperm.xlu1 %8511, %v3096_v54   ;;  %8518 = vset.pattern.permute.xlu0 %v15147_v56 }
 0x41e   :  { %v3100_v24 = vadd.f32 %v3084_v1, %v12149_v32 }
 0x41f   :  { %v3051_v46 = vpop.permute.xlu1 %3050 }
 0x420   :  { %v3085_v25 = vmul.f32 %v3051_v46, %v2957_v63  ;;  %3167 = vperm.xlu0 %8518, %v3100_v24  }
 0x421   :  { %8513 = vset.pattern.permute.xlu1 %v9272_v16 }
 0x422   :  { %v3101_v20 = vadd.f32 %v3085_v25, %v12158_v48  ;;  %3305 = vperm.xlu1 %8513, %v3096_v54  }
 0x423   :  { %v3053_v2 = vpop.permute.xlu0 %3052 }
 0x424   :  { %8520 = vset.pattern.permute.xlu0 %v9272_v16  ;;  %v3086_v23 = vmul.f32 %v3053_v2, %v2958_v4 }
 0x425   :  { %3325 = vperm.xlu0 %8520, %v3101_v20  }
 0x426   :  { %3309 = vperm.xlu1 %8513, %v3097_v29  }
 0x427   :  { %v3055_v32 = vpop.permute.xlu1 %3054 }
 0x428   :  { %v3087_v47 = vmul.f32 %v3055_v32, %v2959_v18 }
 0x429   :  { %8522 = vset.pattern.permute.xlu0 %v15147_v56 }
 0x42a   :  { %v3103_v48 = vadd.f32 %v3087_v47, %v12176_v51  ;;  %8515 = vset.pattern.permute.xlu1 %v15147_v56  ;;  %v3102_v51 = vadd.f32 %v3086_v23, %v12167_v15  ;;  %v12286_v15 = vrot.slane %v3104_v35, %v15321_v14 }
 0x42b   :  { %3157 = vperm.xlu1 %8515, %v3098_v6  }
 0x42c   :  { %3182 = vperm.xlu0 %8522, %v3103_v48  }
 0x42f   :  { %3162 = vperm.xlu1 %8515, %v3099_v41  }
 0x430   :  { %8523 = vset.pattern.permute.xlu0 %v9272_v16 }
 0x433   :  { %8517 = vset.pattern.permute.xlu1 %v9272_v16 }
 0x434   :  { %3317 = vperm.xlu1 %8517, %v3099_v41  }
 0x438   :  { %3321 = vperm.xlu1 %8517, %v3100_v24  }
 0x43c   :  { %8519 = vset.pattern.permute.xlu1 %v15147_v56 }
 0x43d   :  { %3172 = vperm.xlu1 %8519, %v3101_v20   ;;  %v15345_v20 = vld [vmem:[#allocation6_spill] sm:$0xff] }
 0x43e   :  { %v12355_v18 = vrot.slane %v7128_v55, %v15345_v20  ;;  %v12359_v32 = vrot.slane %v3104_v35, %v15345_v20 }
 0x441   :  { %3177 = vperm.xlu1 %8519, %v3102_v51  }
 0x445   :  { %8521 = vset.pattern.permute.xlu1 %v9272_v16  ;;  %v12289_v16 = vrot.slane %v3104_v35, %v15322_v12 }
 0x446   :  { %3329 = vperm.xlu1 %8521, %v3102_v51  }
 0x44a   :  { %3333 = vperm.xlu1 %8521, %v3103_v48  }
 0x46f   :  { %v3274_v17 = vpop.permute.xlu1 %3273  ;;  %v3108_v39 = vpop.permute.xlu0 %3107 }
 0x470   :  { %v3359_v21 = vmul.f32 %v12280_v9, %v3274_v17  ;;  %v3360_v10 = vmul.f32 %v12283_v62, %v3274_v17  ;;  %v3208_v30 = vmul.f32 %v12286_v15, %v3108_v39  ;;  %v3209_v5 = vmul.f32 %v12289_v16, %v3108_v39 }
 0x471   :  { %v3357_v34 = vmul.f32 %v12335_v13, %v3274_v17  ;;  %v3206_v2 = vmul.f32 %v12346_v50, %v3108_v39 }
 0x472   :  { %v3423_v45 = vadd.f32 %v3359_v21, %v3208_v30  ;;  %v3424_v44 = vadd.f32 %v3360_v10, %v3209_v5  ;;  %v12383_v5 = vrot.slane %v12294_v43, %v15344_v26 }
 0x474   :  { %v3113_v49 = vpop.permute.xlu1 %3112  ;;  %v3278_v3 = vpop.permute.xlu0 %3277  ;;  %v12305_v61 = vadd.f32 %v12300_v38, %v3423_v45  ;;  %v12318_v60 = vadd.f32 %v12309_v0, %v3424_v44 }
 0x475   :  { %v3212_v7 = vmul.f32 %v12286_v15, %v3113_v49  ;;  %v3213_v28 = vmul.f32 %v12289_v16, %v3113_v49  ;;  %v3363_v40 = vmul.f32 %v12280_v9, %v3278_v3  ;;  %v3364_v52 = vmul.f32 %v12283_v62, %v3278_v3 }
 0x476   :  { %v3639_v58 = vsel %vm555_vm0, %v12318_v60, 0.0  ;;  %v3210_v27 = vmul.f32 %v12346_v50, %v3113_v49  ;;  %v3361_v48 = vmul.f32 %v12335_v13, %v3278_v3  ;;  %v3211_v35 = vmul.f32 %v12359_v32, %v3113_v49 }
 0x477   :  { %v3427_v22 = vadd.f32 %v3363_v40, %v3212_v7  ;;  %v3428_v31 = vadd.f32 %v3364_v52, %v3213_v28  ;;  %v3362_v21 = vmul.f32 %v12355_v18, %v3278_v3  ;;  %v3358_v28 = vmul.f32 %v12355_v18, %v3274_v17 }
 0x478   :  { %v12315_v19 = vpop.permute.xlu1 %3117  ;;  %v3207_v40 = vmul.f32 %v12359_v32, %v3108_v39  ;;  %v3425_v52 = vadd.f32 %v3361_v48, %v3210_v27 }
 0x479   :  { %v3216_v53 = vmul.f32 %v12286_v15, %v12315_v19  ;;  %v12323_v36 = vadd.f32 %v12300_v38, %v3427_v22  ;;  %v12328_v37 = vadd.f32 %v12309_v0, %v3428_v31  ;;  %v3217_v54 = vmul.f32 %v12289_v16, %v12315_v19 }
 0x47a   :  { %v3426_v39 = vadd.f32 %v3362_v21, %v3211_v35  ;;  %v12420_v27 = vadd.f32 %v12383_v5, %v3425_v52  ;;  %v3214_v48 = vmul.f32 %v12346_v50, %v12315_v19 }
 0x47b   :  { %v12325_v8 = vpop.permute.xlu0 %3122  ;;  %v3618_v57 = vadd.f32 %v12323_v36, %v12305_v61  ;;  %v3640_v6 = vsel %vm555_vm0, %v12328_v37, 0.0 }
 0x47c   :  { %v3220_v42 = vmul.f32 %v12286_v15, %v12325_v8  ;;  %v3641_v33 = vadd.f32 %v3640_v6, %v3639_v58  ;;  %v3221_v23 = vmul.f32 %v12289_v16, %v12325_v8  ;;  %v8526_v6 = vld [vmem:[%s15080_s5 + $0x4] ss:$28 sps:$4 sm:$0xff]   ;;  %15346 = vst [vmem:[#allocation21_spill] sm:$0xff] %v12420_v27 }
 0x47d   :  { %v3282_v29 = vpop.permute.xlu1 %3281  ;;  %5414 = vmatprep.subr.bf16.mxu0 %v8526_v6  ;;  %v3219_v6 = vmul.f32 %v12359_v32, %v12325_v8 }
 0x47e   :  { %v3367_v59 = vmul.f32 %v12280_v9, %v3282_v29  ;;  %v3368_v11 = vmul.f32 %v12283_v62, %v3282_v29 }
 0x480   :  { %v3431_v1 = vadd.f32 %v3367_v59, %v3216_v53  ;;  %v12348_v63 = vpop.permute.xlu0 %3289  ;;  %v3432_v24 = vadd.f32 %v3368_v11, %v3217_v54  ;;  %v12410_v59 = vrot.slane %v12294_v43, %v15345_v20 }
 0x481   :  { %v3375_v46 = vmul.f32 %v12280_v9, %v12348_v63  ;;  %v12352_v25 = vpop.permute.xlu1 %3285  ;;  %v3376_v22 = vmul.f32 %v12283_v62, %v12348_v63 }
 0x482   :  { %v12362_v47 = vadd.f32 %v12300_v38, %v3431_v1  ;;  %v12367_v41 = vadd.f32 %v12309_v0, %v3432_v24  ;;  %v3371_v4 = vmul.f32 %v12280_v9, %v12352_v25  ;;  %v3372_v55 = vmul.f32 %v12283_v62, %v12352_v25  ;;  %v8524_v24 = vld [vmem:[%s15080_s5] ss:$28 sps:$4 sm:$0xff]  }
 0x483   :  { %5415 = vmatpush1.bf16.msra.mxu0 %v8524_v24  ;;  %v12445_v21 = vadd.f32 %v12410_v59, %v3426_v39 }
 0x484   :  { %v3619_v51 = vadd.f32 %v3618_v57, %v12362_v47  ;;  %v3642_v10 = vsel %vm555_vm0, %v12367_v41, 0.0  ;;  %v3435_v30 = vadd.f32 %v3371_v4, %v3220_v42  ;;  %v3436_v44 = vadd.f32 %v3372_v55, %v3221_v23  ;;  %v8529_v4 = vld [vmem:[%s15080_s5 + $0xc] ss:$28 sps:$4 sm:$0xff]  }
 0x485   :  { %v3643_v45 = vadd.f32 %v3642_v10, %v3641_v33  ;;  %v3421_v42 = vadd.f32 %v3357_v34, %v3206_v2  ;;  %v3365_v57 = vmul.f32 %v12335_v13, %v3282_v29  ;;  %v3422_v34 = vadd.f32 %v3358_v28, %v3207_v40  ;;  %15348 = vst [vmem:[#allocation25_spill] sm:$0xff] %v12445_v21 }
 0x486   :  { %v12385_v7 = vpop.permute.xlu1 %3127  ;;  %v12390_v49 = vadd.f32 %v12300_v38, %v3435_v30  ;;  %v12397_v31 = vadd.f32 %v12309_v0, %v3436_v44  ;;  %v3366_v2 = vmul.f32 %v12355_v18, %v3282_v29  ;;  %v3215_v29 = vmul.f32 %v12359_v32, %v12315_v19  ;;  %5640 = vmatprep.subr.bf16.mxu1 %v8529_v4  ;;  %v8535_v44 = vld [vmem:[%s15080_s5 + $0x44] ss:$28 sps:$4 sm:$0xff]  }
 0x487   :  { %v12392_v3 = vpop.permute.xlu0 %3137  ;;  %v3224_v53 = vmul.f32 %v12286_v15, %v12385_v7  ;;  %v3225_v17 = vmul.f32 %v12289_v16, %v12385_v7  ;;  %v12442_v35 = vadd.f32 %v12383_v5, %v3421_v42  ;;  %v3429_v10 = vadd.f32 %v3365_v57, %v3214_v48 }
 0x488   :  { %v3620_v58 = vadd.f32 %v3619_v51, %v12390_v49  ;;  %v3644_v33 = vsel %vm555_vm0, %v12397_v31, 0.0  ;;  %v12439_v55 = vmul.f32 %v12286_v15, %v12392_v3  ;;  %v3369_v28 = vmul.f32 %v12335_v13, %v12352_v25 }
 0x489   :  { %v3439_v54 = vadd.f32 %v3375_v46, %v3224_v53  ;;  %v3440_v11 = vadd.f32 %v3376_v22, %v3225_v17  ;;  %v3645_v43 = vadd.f32 %v3644_v33, %v3643_v45  ;;  %v8527_v46 = vld [vmem:[%s15080_s5 + $0x8] ss:$28 sps:$4 sm:$0xff]   ;;  %15347 = vst [vmem:[#allocation23_spill] sm:$0xff] %v12442_v35  ;;  %v8532_v45 = vld [vmem:[%s15080_s5 + $0x3c] ss:$28 sps:$4 sm:$0xff]   ;;  %v12471_v17 = vadd.f32 %v12410_v59, %v3422_v34 }
 0x48a   :  { %v12414_v1 = vpop.permute.xlu1 %3132  ;;  %5641 = vmatpush1.bf16.msra.mxu1 %v8527_v46  ;;  %v8530_v22 = vld [vmem:[%s15080_s5 + $0x38] ss:$28 sps:$4 sm:$0xff]   ;;  %v8533_v53 = vld [vmem:[%s15080_s5 + $0x40] ss:$28 sps:$4 sm:$0xff]   ;;  %v3218_v42 = vmul.f32 %v12346_v50, %v12325_v8  ;;  %5416 = vmatprep.subr.bf16.mxu0 %v8532_v45  ;;  %v3430_v33 = vadd.f32 %v3366_v2, %v3215_v29  ;;  %v12496_v46 = vadd.f32 %v12383_v5, %v3429_v10  ;;  %v8536_v45 = vld [vmem:[%s15080_s5 + $0x70] ss:$28 sps:$4 sm:$0xff]  }
 0x48b   :  { %v12432_v23 = vadd.f32 %v12300_v38, %v3439_v54  ;;  %v12435_v51 = vadd.f32 %v12309_v0, %v3440_v11  ;;  %v3228_v52 = vmul.f32 %v12286_v15, %v12414_v1  ;;  %15349 = vst [vmem:[#allocation27_spill] sm:$0xff] %v12471_v17  ;;  %5642 = vmatprep.subr.bf16.mxu1 %v8535_v44  ;;  %v8538_v8 = vld [vmem:[%s15080_s5 + $0x74] ss:$28 sps:$4 sm:$0xff]  }
 0x48c   :  { %v12449_v30 = vpop.permute.xlu0 %3301  ;;  %v3597_v11 = vadd.f32 %v12445_v21, %v12471_v17  ;;  %v3229_v24 = vmul.f32 %v12289_v16, %v12414_v1  ;;  %5417 = vmatpush1.bf16.msra.mxu0 %v8530_v22  ;;  %15350 = vst [vmem:[#allocation29_spill] sm:$0xff] %v12496_v46  ;;  %v3370_v4 = vmul.f32 %v12355_v18, %v12352_v25  ;;  %v8539_v44 = vld [vmem:[%s15080_s5 + $0x78] ss:$28 sps:$4 sm:$0xff]  }
 0x48d   :  { %v3621_v40 = vadd.f32 %v3620_v58, %v12432_v23  ;;  %v3646_v19 = vsel %vm555_vm0, %v12435_v51, 0.0  ;;  %v3576_v58 = vadd.f32 %v12420_v27, %v12442_v35  ;;  %v12481_v54 = vmul.f32 %v12280_v9, %v12449_v30  ;;  %5418 = vmatprep.subr.bf16.mxu0 %v8538_v8  ;;  %v8571_v17 = vld [vmem:[%s15080_s5 + $0x194] ss:$28 sps:$4 sm:$0xff]  }
 0x48e   :  { %v3647_v39 = vadd.f32 %v3646_v19, %v3645_v43  ;;  %v8541_v43 = vld [vmem:[%s15080_s5 + $0x7c] ss:$28 sps:$4 sm:$0xff]   ;;  %v3433_v2 = vadd.f32 %v3369_v28, %v3218_v42  ;;  %v3222_v29 = vmul.f32 %v12346_v50, %v12385_v7  ;;  %5643 = vmatpush1.bf16.msra.mxu1 %v8533_v53  ;;  %v3373_v10 = vmul.f32 %v12335_v13, %v12348_v63 }
 0x48f   :  { %v3294_v57 = vpop.permute.xlu1 %3293  ;;  %5644 = vmatprep.subr.bf16.mxu1 %v8541_v43  ;;  %v12513_v25 = vadd.f32 %v12410_v59, %v3430_v33  ;;  %v3374_v28 = vmul.f32 %v12355_v18, %v12348_v63  ;;  %v3223_v53 = vmul.f32 %v12359_v32, %v12385_v7  ;;  %v3233_v42 = vmul.f32 %v12289_v16, %v12392_v3  ;;  %v8544_v7 = vld [vmem:[%s15080_s5 + $0xac] ss:$28 sps:$4 sm:$0xff]  }
 0x490   :  { %v3379_v34 = vmul.f32 %v12280_v9, %v3294_v57  ;;  %v3380_v48 = vmul.f32 %v12283_v62, %v3294_v57  ;;  %5419 = vmatpush1.bf16.msra.mxu0 %v8536_v45  ;;  %v3434_v8 = vadd.f32 %v3370_v4, %v3219_v6  ;;  %v12541_v43 = vadd.f32 %v12383_v5, %v3433_v2  ;;  %v8542_v45 = vld [vmem:[%s15080_s5 + $0xa8] ss:$28 sps:$4 sm:$0xff]  }
 0x491   :  { %15351 = vst [vmem:[#allocation31_spill] sm:$0xff] %v12513_v25  ;;  %5420 = vmatprep.subr.bf16.mxu0 %v8544_v7  ;;  %v3598_v4 = vadd.f32 %v3597_v11, %v12513_v25  ;;  %v3438_v2 = vadd.f32 %v3374_v28, %v3223_v53  ;;  %v3378_v26 = vmul.f32 %v12355_v18, %v3294_v57  ;;  %v8550_v11 = vld [vmem:[%s15080_s5 + $0xe4] ss:$28 sps:$4 sm:$0xff]  }
 0x492   :  { %v3443_v19 = vadd.f32 %v3379_v34, %v3228_v52  ;;  %v3444_v22 = vadd.f32 %v3380_v48, %v3229_v24  ;;  %v8547_v34 = vld [vmem:[%s15080_s5 + $0xb4] ss:$28 sps:$4 sm:$0xff]   ;;  %v3577_v48 = vadd.f32 %v3576_v58, %v12496_v46  ;;  %15352 = vst [vmem:[#allocation33_spill] sm:$0xff] %v12541_v43  ;;  %5645 = vmatpush1.bf16.msra.mxu1 %v8539_v44 }
 0x493   :  { %v12510_v56 = vpop.permute.xlu1 %3297  ;;  %v12521_v14 = vpop.permute.xlu0 %3152  ;;  %5646 = vmatprep.subr.bf16.mxu1 %v8547_v34  ;;  %v3226_v53 = vmul.f32 %v12346_v50, %v12414_v1  ;;  %v3227_v7 = vmul.f32 %v12359_v32, %v12414_v1 }
 0x494   :  { %v12524_v52 = vadd.f32 %v12300_v38, %v3443_v19  ;;  %v12527_v24 = vadd.f32 %v12309_v0, %v3444_v22  ;;  %v3383_v33 = vmul.f32 %v12280_v9, %v12510_v56  ;;  %v3384_v63 = vmul.f32 %v12283_v62, %v12510_v56  ;;  %v8545_v22 = vld [vmem:[%s15080_s5 + $0xb0] ss:$28 sps:$4 sm:$0xff]   ;;  %5421 = vmatpush1.bf16.msra.mxu0 %v8542_v45 }
 0x495   :  { %v3437_v19 = vadd.f32 %v3373_v10, %v3222_v29  ;;  %v3377_v29 = vmul.f32 %v12335_v13, %v3294_v57  ;;  %v3578_v57 = vadd.f32 %v3577_v48, %v12541_v43  ;;  %5422 = vmatprep.subr.bf16.mxu0 %v8550_v11  ;;  %v3388_v45 = vmul.f32 %v12283_v62, %v12449_v30 }
 0x496   :  { %v3622_v12 = vadd.f32 %v3621_v40, %v12524_v52  ;;  %v3648_v20 = vsel %vm555_vm0, %v12527_v24, 0.0  ;;  %v3447_v58 = vadd.f32 %v3383_v33, %v12439_v55  ;;  %v3448_v6 = vadd.f32 %v3384_v63, %v3233_v42  ;;  %5647 = vmatpush1.bf16.msra.mxu1 %v8545_v22  ;;  %v8548_v33 = vld [vmem:[%s15080_s5 + $0xe0] ss:$28 sps:$4 sm:$0xff]   ;;  %v8551_v63 = vld [vmem:[%s15080_s5 + $0xe8] ss:$28 sps:$4 sm:$0xff]  }
 0x497   :  { %v3649_v44 = vadd.f32 %v3648_v20, %v3647_v39  ;;  %v12566_v55 = vmul.f32 %v12286_v15, %v12521_v14  ;;  %v8553_v20 = vld [vmem:[%s15080_s5 + $0xec] ss:$28 sps:$4 sm:$0xff]   ;;  %v12575_v39 = vadd.f32 %v12410_v59, %v3434_v8  ;;  %v12579_v28 = vadd.f32 %v12383_v5, %v3437_v19 }
 0x498   :  { %v12555_v10 = vpop.permute.xlu1 %3142  ;;  %v12559_v40 = vadd.f32 %v12300_v38, %v3447_v58  ;;  %v12562_v46 = vadd.f32 %v12309_v0, %v3448_v6  ;;  %v12583_v42 = vpop.permute.xlu0 %3313  ;;  %5648 = vmatprep.subr.bf16.mxu1 %v8553_v20  ;;  %v12599_v19 = vadd.f32 %v12410_v59, %v3438_v2  ;;  %v3442_v6 = vadd.f32 %v3378_v26, %v3227_v7  ;;  %v8556_v2 = vld [vmem:[%s15080_s5 + $0x11c] ss:$28 sps:$4 sm:$0xff]  }
 0x499   :  { %15355 = vst [vmem:[#allocation9_spill] sm:$0xff] %v12575_v39  ;;  %15356 = vst [vmem:[#allocation10_spill] sm:$0xff] %v12579_v28  ;;  %v3236_v8 = vmul.f32 %v12286_v15, %v12555_v10  ;;  %v3237_v1 = vmul.f32 %v12289_v16, %v12555_v10  ;;  %v12610_v11 = vmul.f32 %v12280_v9, %v12583_v42  ;;  %5423 = vmatpush1.bf16.msra.mxu0 %v8548_v33  ;;  %v8557_v33 = vld [vmem:[%s15080_s5 + $0x120] ss:$28 sps:$4 sm:$0xff]  }
 0x49a   :  { %15353 = vst [vmem:[#allocation7_spill] sm:$0xff] %v12559_v40  ;;  %15354 = vst [vmem:[#allocation8_spill] sm:$0xff] %v12562_v46  ;;  %v3623_v34 = vadd.f32 %v3622_v12, %v12559_v40  ;;  %v3650_v48 = vsel %vm555_vm0, %v12562_v46, 0.0  ;;  %v3441_v12 = vadd.f32 %v3377_v29, %v3226_v53  ;;  %v3599_v20 = vadd.f32 %v3598_v4, %v12575_v39  ;;  %v8554_v53 = vld [vmem:[%s15080_s5 + $0x118] ss:$28 sps:$4 sm:$0xff]  }
 0x49b   :  { %15357 = vst [vmem:[#allocation12_spill] sm:$0xff] %v12599_v19  ;;  %v3651_v22 = vadd.f32 %v3650_v48, %v3649_v44  ;;  %v3451_v43 = vadd.f32 %v12481_v54, %v3236_v8  ;;  %v8559_v44 = vld [vmem:[%s15080_s5 + $0x124] ss:$28 sps:$4 sm:$0xff]   ;;  %v3381_v26 = vmul.f32 %v12335_v13, %v12510_v56  ;;  %v3382_v54 = vmul.f32 %v12355_v18, %v12510_v56 }
 0x49c   :  { %v12605_v58 = vpop.permute.xlu1 %3147  ;;  %v3452_v29 = vadd.f32 %v3388_v45, %v3237_v1  ;;  %5649 = vmatpush1.bf16.msra.mxu1 %v8551_v63  ;;  %v3230_v7 = vmul.f32 %v12346_v50, %v12392_v3  ;;  %5424 = vmatprep.subr.bf16.mxu0 %v8556_v2  ;;  %v3579_v63 = vadd.f32 %v3578_v57, %v12579_v28 }
 0x49d   :  { %v12632_v4 = vadd.f32 %v12300_v38, %v3451_v43  ;;  %v3240_v48 = vmul.f32 %v12286_v15, %v12605_v58  ;;  %v3600_v8 = vadd.f32 %v3599_v20, %v12599_v19  ;;  %v3231_v45 = vmul.f32 %v12359_v32, %v12392_v3  ;;  %5650 = vmatprep.subr.bf16.mxu1 %v8559_v44  ;;  %v8562_v3 = vld [vmem:[%s15080_s5 + $0x154] ss:$28 sps:$4 sm:$0xff]  }
 0x49e   :  { %v12643_v1 = vadd.f32 %v12309_v0, %v3452_v29  ;;  %v12646_v43 = vadd.f32 %v12383_v5, %v3441_v12  ;;  %v12649_v39 = vadd.f32 %v12410_v59, %v3442_v6  ;;  %5425 = vmatpush1.bf16.msra.mxu0 %v8554_v53  ;;  %v8565_v12 = vld [vmem:[%s15080_s5 + $0x15c] ss:$28 sps:$4 sm:$0xff]   ;;  %v3445_v44 = vadd.f32 %v3381_v26, %v3230_v7  ;;  %v8560_v29 = vld [vmem:[%s15080_s5 + $0x150] ss:$28 sps:$4 sm:$0xff]  }
 0x49f   :  { %15358 = vst [vmem:[#allocation14_spill] sm:$0xff] %v12632_v4  ;;  %v12636_v56 = vpop.permute.xlu0 %3167  ;;  %v3624_v25 = vadd.f32 %v3623_v34, %v12632_v4  ;;  %v3446_v20 = vadd.f32 %v3382_v54, %v3231_v45  ;;  %v3241_v34 = vmul.f32 %v12289_v16, %v12605_v58  ;;  %v8563_v53 = vld [vmem:[%s15080_s5 + $0x158] ss:$28 sps:$4 sm:$0xff]   ;;  %5426 = vmatprep.subr.bf16.mxu0 %v8562_v3 }
 0x4a0   :  { %15359 = vst [vmem:[#allocation16_spill] sm:$0xff] %v12643_v1  ;;  %15360 = vst [vmem:[#allocation18_spill] sm:$0xff] %v12646_v43  ;;  %v12654_v57 = vmul.f32 %v12286_v15, %v12636_v56  ;;  %v3652_v6 = vsel %vm555_vm0, %v12643_v1, 0.0  ;;  %5651 = vmatpush1.bf16.msra.mxu1 %v8557_v33  ;;  %v3385_v54 = vmul.f32 %v12335_v13, %v12449_v30 }
 0x4a1   :  { %15361 = vst [vmem:[#allocation20_spill] sm:$0xff] %v12649_v39  ;;  %v3306_v2 = vpop.permute.xlu1 %3305  ;;  %v3653_v19 = vadd.f32 %v3652_v6, %v3651_v22  ;;  %5652 = vmatprep.subr.bf16.mxu1 %v8565_v12  ;;  %v3386_v33 = vmul.f32 %v12355_v18, %v12449_v30  ;;  %v3234_v7 = vmul.f32 %v12346_v50, %v12555_v10  ;;  %v8568_v30 = vld [vmem:[%s15080_s5 + $0x18c] ss:$28 sps:$4 sm:$0xff]  }
 0x4a2   :  { %v3391_v28 = vmul.f32 %v12280_v9, %v3306_v2  ;;  %v3392_v26 = vmul.f32 %v12283_v62, %v3306_v2  ;;  %v3235_v45 = vmul.f32 %v12359_v32, %v12555_v10  ;;  %v3580_v22 = vadd.f32 %v3579_v63, %v12646_v43  ;;  %5427 = vmatpush1.bf16.msra.mxu0 %v8560_v29 }
 0x4a3   :  { %v3601_v6 = vadd.f32 %v3600_v8, %v12649_v39  ;;  %v12695_v10 = vadd.f32 %v12383_v5, %v3445_v44  ;;  %v12698_v63 = vadd.f32 %v12410_v59, %v3446_v20  ;;  %v8566_v8 = vld [vmem:[%s15080_s5 + $0x188] ss:$28 sps:$4 sm:$0xff]   ;;  %v8569_v44 = vld [vmem:[%s15080_s5 + $0x190] ss:$28 sps:$4 sm:$0xff]   ;;  %v12716_v20 = vmul.f32 %v12359_v32, %v12521_v14  ;;  %5428 = vmatprep.subr.bf16.mxu0 %v8568_v30 }
 0x4a4   :  { %v12682_v21 = vpop.permute.xlu0 %3325  ;;  %v3455_v3 = vadd.f32 %v3391_v28, %v3240_v48  ;;  %v3456_v12 = vadd.f32 %v3392_v26, %v3241_v34  ;;  %v12702_v28 = vmul.f32 %v12346_v50, %v12521_v14  ;;  %5653 = vmatpush1.bf16.msra.mxu1 %v8563_v53  ;;  %v3245_v34 = vmul.f32 %v12289_v16, %v12521_v14 }
 0x4a5   :  { %v12686_v27 = vpop.permute.xlu1 %3309  ;;  %15362 = vst [vmem:[#allocation22_spill] sm:$0xff] %v12695_v10  ;;  %15363 = vst [vmem:[#allocation24_spill] sm:$0xff] %v12698_v63  ;;  %v12706_v48 = vmul.f32 %v12280_v9, %v12682_v21  ;;  %v3449_v26 = vadd.f32 %v3385_v54, %v3234_v7  ;;  %v3450_v39 = vadd.f32 %v3386_v33, %v3235_v45  ;;  %5654 = vmatprep.subr.bf16.mxu1 %v8571_v17  ;;  %v8574_v54 = vld [vmem:[%s15080_s5 + $0x1c4] ss:$28 sps:$4 sm:$0xff]   ;;  %v8577_v33 = vld [vmem:[%s15080_s5 + $0x1cc] ss:$28 sps:$4 sm:$0xff]  }
 0x4a6   :  { %v12721_v29 = vadd.f32 %v12300_v38, %v3455_v3  ;;  %v12724_v53 = vadd.f32 %v12309_v0, %v3456_v12  ;;  %v3395_v43 = vmul.f32 %v12280_v9, %v12686_v27  ;;  %v3396_v35 = vmul.f32 %v12283_v62, %v12686_v27  ;;  %5429 = vmatpush1.bf16.msra.mxu0 %v8566_v8  ;;  %v8575_v8 = vld [vmem:[%s15080_s5 + $0x1c8] ss:$28 sps:$4 sm:$0xff]  }
 0x4a7   :  { %v3389_v1 = vmul.f32 %v12335_v13, %v3306_v2  ;;  %v3390_v14 = vmul.f32 %v12355_v18, %v3306_v2  ;;  %v3581_v17 = vadd.f32 %v3580_v22, %v12695_v10  ;;  %v3400_v22 = vmul.f32 %v12283_v62, %v12583_v42  ;;  %5430 = vmatprep.subr.bf16.mxu0 %v8574_v54 }
 0x4a8   :  { %15364 = vst [vmem:[#allocation26_spill] sm:$0xff] %v12721_v29  ;;  %15365 = vst [vmem:[#allocation28_spill] sm:$0xff] %v12724_v53  ;;  %v3625_v3 = vadd.f32 %v3624_v25, %v12721_v29  ;;  %v3654_v12 = vsel %vm555_vm0, %v12724_v53, 0.0  ;;  %v3459_v45 = vadd.f32 %v3395_v43, %v12566_v55  ;;  %v3460_v2 = vadd.f32 %v3396_v35, %v3245_v34  ;;  %v8572_v25 = vld [vmem:[%s15080_s5 + $0x1c0] ss:$28 sps:$4 sm:$0xff]  }
 0x4a9   :  { %v3655_v7 = vadd.f32 %v3654_v12, %v3653_v19  ;;  %5655 = vmatpush1.bf16.msra.mxu1 %v8569_v44  ;;  %v3602_v53 = vadd.f32 %v3601_v6, %v12698_v63  ;;  %v3238_v55 = vmul.f32 %v12346_v50, %v12605_v58  ;;  %v3239_v35 = vmul.f32 %v12359_v32, %v12605_v58  ;;  %v8583_v63 = vld [vmem:[%s15080_s5 + $0x204] ss:$28 sps:$4 sm:$0xff]  }
 0x4aa   :  { %v12743_v30 = vpop.permute.xlu1 %3157  ;;  %v12759_v19 = vadd.f32 %v12300_v38, %v3459_v45  ;;  %v12762_v43 = vadd.f32 %v12309_v0, %v3460_v2  ;;  %5656 = vmatprep.subr.bf16.mxu1 %v8577_v33  ;;  %v12769_v34 = vadd.f32 %v12383_v5, %v3449_v26  ;;  %v12772_v12 = vadd.f32 %v12410_v59, %v3450_v39  ;;  %v8580_v2 = vld [vmem:[%s15080_s5 + $0x1fc] ss:$28 sps:$4 sm:$0xff]  }
 0x4ab   :  { %v3248_v44 = vmul.f32 %v12286_v15, %v12743_v30  ;;  %v3249_v6 = vmul.f32 %v12289_v16, %v12743_v30  ;;  %v3453_v58 = vadd.f32 %v3389_v1, %v3238_v55  ;;  %v3454_v54 = vadd.f32 %v3390_v14, %v3239_v35  ;;  %v12774_v45 = vpop.permute.xlu0 %3182  ;;  %5431 = vmatpush1.bf16.msra.mxu0 %v8572_v25  ;;  %v8578_v25 = vld [vmem:[%s15080_s5 + $0x1f8] ss:$28 sps:$4 sm:$0xff]   ;;  %v8581_v55 = vld [vmem:[%s15080_s5 + $0x200] ss:$28 sps:$4 sm:$0xff]  }
 0x4ac   :  { %15366 = vst [vmem:[#allocation30_spill] sm:$0xff] %v12759_v19  ;;  %15367 = vst [vmem:[#allocation32_spill] sm:$0xff] %v12762_v43  ;;  %v3626_v33 = vadd.f32 %v3625_v3, %v12759_v19  ;;  %v3656_v26 = vsel %vm555_vm0, %v12762_v43, 0.0  ;;  %v3397_v3 = vmul.f32 %v12335_v13, %v12583_v42  ;;  %v3393_v35 = vmul.f32 %v12335_v13, %v12686_v27 }
 0x4ad   :  { %15368 = vst [vmem:[#allocation34_spill] sm:$0xff] %v12769_v34  ;;  %15369 = vst [vmem:[#allocation53_spill] sm:$0xff] %v12772_v12  ;;  %v3463_v39 = vadd.f32 %v12610_v11, %v3248_v44  ;;  %v3464_v1 = vadd.f32 %v3400_v22, %v3249_v6  ;;  %5657 = vmatpush1.bf16.msra.mxu1 %v8575_v8  ;;  %v3394_v11 = vmul.f32 %v12355_v18, %v12686_v27 }
 0x4ae   :  { %v12786_v14 = vpop.permute.xlu1 %3162  ;;  %v3657_v22 = vadd.f32 %v3656_v26, %v3655_v7  ;;  %5432 = vmatprep.subr.bf16.mxu0 %v8580_v2  ;;  %v3398_v8 = vmul.f32 %v12355_v18, %v12583_v42  ;;  %v12810_v10 = vmul.f32 %v12286_v15, %v12774_v45  ;;  %5658 = vmatprep.subr.bf16.mxu1 %v8583_v63  ;;  %v8586_v2 = vld [vmem:[%s15080_s5 + $0x234] ss:$28 sps:$4 sm:$0xff]   ;;  %v8589_v63 = vld [vmem:[%s15080_s5 + $0x23c] ss:$28 sps:$4 sm:$0xff]  }
 0x4af   :  { %v12803_v44 = vadd.f32 %v12300_v38, %v3463_v39  ;;  %v12806_v6 = vadd.f32 %v12309_v0, %v3464_v1  ;;  %v3582_v43 = vadd.f32 %v3581_v17, %v12769_v34  ;;  %v3603_v27 = vadd.f32 %v3602_v53, %v12772_v12  ;;  %5433 = vmatpush1.bf16.msra.mxu0 %v8578_v25  ;;  %v8584_v39 = vld [vmem:[%s15080_s5 + $0x230] ss:$28 sps:$4 sm:$0xff]   ;;  %v8587_v1 = vld [vmem:[%s15080_s5 + $0x238] ss:$28 sps:$4 sm:$0xff]  }
 0x4b0   :  { %v12816_v7 = vmul.f32 %v12346_v50, %v12636_v56  ;;  %v12819_v42 = vadd.f32 %v12383_v5, %v3453_v58  ;;  %v12828_v17 = vadd.f32 %v12410_v59, %v3454_v54  ;;  %v3252_v58 = vmul.f32 %v12286_v15, %v12786_v14  ;;  %5434 = vmatprep.subr.bf16.mxu0 %v8586_v2 }
 0x4b1   :  { %15370 = vst [vmem:[#allocation11_spill] sm:$0xff] %v12803_v44  ;;  %15371 = vst [vmem:[#allocation13_spill] sm:$0xff] %v12806_v6  ;;  %v3627_v53 = vadd.f32 %v3626_v33, %v12803_v44  ;;  %v3658_v26 = vsel %vm555_vm0, %v12806_v6, 0.0  ;;  %5659 = vmatpush1.bf16.msra.mxu1 %v8581_v55  ;;  %v3457_v54 = vadd.f32 %v3393_v35, %v12702_v28 }
 0x4b2   :  { %15372 = vst [vmem:[#allocation35_spill] sm:$0xff] %v12819_v42  ;;  %15373 = vst [vmem:[#allocation36_spill] sm:$0xff] %v12828_v17  ;;  %v3458_v25 = vadd.f32 %v3394_v11, %v12716_v20  ;;  %v3659_v33 = vadd.f32 %v3658_v26, %v3657_v22  ;;  %5660 = vmatprep.subr.bf16.mxu1 %v8589_v63  ;;  %v3246_v34 = vmul.f32 %v12346_v50, %v12743_v30  ;;  %v8592_v11 = vld [vmem:[%s15080_s5 + $0x26c] ss:$28 sps:$4 sm:$0xff]   ;;  %v8595_v22 = vld [vmem:[%s15080_s5 + $0x274] ss:$28 sps:$4 sm:$0xff]  }
 0x4b3   :  { %v3318_v12 = vpop.permute.xlu1 %3317  ;;  %v3253_v55 = vmul.f32 %v12289_v16, %v12786_v14  ;;  %v12851_v19 = vmul.f32 %v12359_v32, %v12636_v56  ;;  %v3257_v28 = vmul.f32 %v12289_v16, %v12636_v56  ;;  %v12857_v20 = vmul.f32 %v12335_v13, %v12682_v21  ;;  %5435 = vmatpush1.bf16.msra.mxu0 %v8584_v39  ;;  %v8593_v39 = vld [vmem:[%s15080_s5 + $0x270] ss:$28 sps:$4 sm:$0xff]  }
 0x4b4   :  { %v3403_v6 = vmul.f32 %v12280_v9, %v3318_v12  ;;  %v3404_v44 = vmul.f32 %v12283_v62, %v3318_v12  ;;  %v3247_v35 = vmul.f32 %v12359_v32, %v12743_v30  ;;  %v12869_v2 = vmul.f32 %v12355_v18, %v12682_v21  ;;  %v8590_v30 = vld [vmem:[%s15080_s5 + $0x268] ss:$28 sps:$4 sm:$0xff]   ;;  %5436 = vmatprep.subr.bf16.mxu0 %v8592_v11 }
 0x4b5   :  { %v12873_v56 = vmul.f32 %v12283_v62, %v12682_v21  ;;  %5661 = vmatpush1.bf16.msra.mxu1 %v8587_v1  ;;  %v3583_v29 = vadd.f32 %v3582_v43, %v12819_v42  ;;  %v3604_v4 = vadd.f32 %v3603_v27, %v12828_v17  ;;  %v12884_v46 = vadd.f32 %v12383_v5, %v3457_v54 }
 0x4b6   :  { %v3467_v63 = vadd.f32 %v3403_v6, %v3252_v58  ;;  %v3468_v26 = vadd.f32 %v3404_v44, %v3253_v55  ;;  %5662 = vmatprep.subr.bf16.mxu1 %v8595_v22  ;;  %v12887_v44 = vadd.f32 %v12410_v59, %v3458_v25  ;;  %v3461_v6 = vadd.f32 %v3397_v3, %v3246_v34  ;;  %v8598_v25 = vld [vmem:[%s15080_s5 + $0x2a4] ss:$28 sps:$4 sm:$0xff]   ;;  %v8601_v34 = vld [vmem:[%s15080_s5 + $0x2ac] ss:$28 sps:$4 sm:$0xff]  }
 0x4b7   :  { %v3322_v21 = vpop.permute.xlu1 %3321  ;;  %v3462_v55 = vadd.f32 %v3398_v8, %v3247_v35  ;;  %v3401_v43 = vmul.f32 %v12335_v13, %v3318_v12  ;;  %5437 = vmatpush1.bf16.msra.mxu0 %v8590_v30  ;;  %v3250_v3 = vmul.f32 %v12346_v50, %v12786_v14  ;;  %v3402_v8 = vmul.f32 %v12355_v18, %v3318_v12  ;;  %v8596_v22 = vld [vmem:[%s15080_s5 + $0x2a0] ss:$28 sps:$4 sm:$0xff]  }
 0x4b8   :  { %v12890_v58 = vadd.f32 %v12300_v38, %v3467_v63  ;;  %v12893_v1 = vadd.f32 %v12309_v0, %v3468_v26  ;;  %v3407_v27 = vmul.f32 %v12280_v9, %v3322_v21  ;;  %v3408_v54 = vmul.f32 %v12283_v62, %v3322_v21  ;;  %v8599_v63 = vld [vmem:[%s15080_s5 + $0x2a8] ss:$28 sps:$4 sm:$0xff]   ;;  %5438 = vmatprep.subr.bf16.mxu0 %v8598_v25 }
 0x4b9   :  { %5663 = vmatpush1.bf16.msra.mxu1 %v8593_v39  ;;  %v3405_v30 = vmul.f32 %v12335_v13, %v3322_v21  ;;  %v3406_v17 = vmul.f32 %v12355_v18, %v3322_v21  ;;  %v3605_v39 = vadd.f32 %v3604_v4, %v12887_v44  ;;  %v3251_v42 = vmul.f32 %v12359_v32, %v12786_v14  ;;  %v8602_v4 = vld [vmem:[%s15080_s5 + $0x2d8] ss:$28 sps:$4 sm:$0xff]  }
 0x4ba   :  { %15374 = vst [vmem:[#allocation15_spill] sm:$0xff] %v12890_v58  ;;  %15375 = vst [vmem:[#allocation37_spill] sm:$0xff] %v12893_v1  ;;  %v3628_v35 = vadd.f32 %v3627_v53, %v12890_v58  ;;  %v3660_v11 = vsel %vm555_vm0, %v12893_v1, 0.0  ;;  %v3471_v12 = vadd.f32 %v3407_v27, %v12654_v57  ;;  %v3584_v53 = vadd.f32 %v3583_v29, %v12884_v46  ;;  %v8604_v29 = vld [vmem:[%s15080_s5 + $0x2dc] ss:$28 sps:$4 sm:$0xff]  }
 0x4bb   :  { %v3661_v26 = vadd.f32 %v3660_v11, %v3659_v33  ;;  %v3472_v1 = vadd.f32 %v3408_v54, %v3257_v28  ;;  %5664 = vmatprep.subr.bf16.mxu1 %v8601_v34  ;;  %v12924_v40 = vadd.f32 %v12383_v5, %v3461_v6  ;;  %v12927_v33 = vadd.f32 %v12410_v59, %v3462_v55  ;;  %v8607_v27 = vld [vmem:[%s15080_s5 + $0x2e4] ss:$28 sps:$4 sm:$0xff]   ;;  %v8610_v34 = vld [vmem:[%s15080_s5 + $0x314] ss:$28 sps:$4 sm:$0xff]  }
 0x4bc   :  { %v3173_v58 = vpop.permute.xlu1 %3172  ;;  %v3465_v21 = vadd.f32 %v3401_v43, %v3250_v3  ;;  %v12930_v57 = vadd.f32 %v12300_v38, %v3471_v12  ;;  %5439 = vmatpush1.bf16.msra.mxu0 %v8596_v22  ;;  %v3466_v14 = vadd.f32 %v3402_v8, %v3251_v42  ;;  %v8605_v43 = vld [vmem:[%s15080_s5 + $0x2e0] ss:$28 sps:$4 sm:$0xff]   ;;  %v3469_v54 = vadd.f32 %v3405_v30, %v12816_v7  ;;  %v8608_v11 = vld [vmem:[%s15080_s5 + $0x310] ss:$28 sps:$4 sm:$0xff]  }
 0x4bd   :  { %15376 = vst [vmem:[#allocation17_spill] sm:$0xff] %v12927_v33  ;;  %v12939_v28 = vadd.f32 %v12309_v0, %v3472_v1  ;;  %v3260_v6 = vmul.f32 %v12286_v15, %v3173_v58  ;;  %v3261_v55 = vmul.f32 %v12289_v16, %v3173_v58  ;;  %5665 = vmatpush1.bf16.msra.mxu1 %v8599_v63  ;;  %v8613_v3 = vld [vmem:[%s15080_s5 + $0x31c] ss:$28 sps:$4 sm:$0xff]  }
 0x4be   :  { %v3470_v42 = vadd.f32 %v3406_v17, %v12851_v19  ;;  %v3629_v1 = vadd.f32 %v3628_v35, %v12930_v57  ;;  %v3258_v25 = vmul.f32 %v12346_v50, %v3173_v58  ;;  %5440 = vmatprep.subr.bf16.mxu0 %v8604_v29  ;;  %v3259_v7 = vmul.f32 %v12359_v32, %v3173_v58 }
 0x4bf   :  { %v3662_v8 = vsel %vm555_vm0, %v12939_v28, 0.0  ;;  %v3475_v19 = vadd.f32 %v12706_v48, %v3260_v6  ;;  %v3476_v17 = vadd.f32 %v12873_v56, %v3261_v55  ;;  %5666 = vmatprep.subr.bf16.mxu1 %v8607_v27  ;;  %v3585_v22 = vadd.f32 %v3584_v53, %v12924_v40  ;;  %v8611_v48 = vld [vmem:[%s15080_s5 + $0x318] ss:$28 sps:$4 sm:$0xff]   ;;  %v8616_v56 = vld [vmem:[%s15080_s5 + $0x34c] ss:$28 sps:$4 sm:$0xff]  }
 0x4c0   :  { %v3178_v35 = vpop.permute.xlu1 %3177  ;;  %v3606_v63 = vadd.f32 %v3605_v39, %v12927_v33  ;;  %v12971_v30 = vmul.f32 %v12346_v50, %v12774_v45  ;;  %v3663_v12 = vadd.f32 %v3662_v8, %v3661_v26  ;;  %5441 = vmatpush1.bf16.msra.mxu0 %v8602_v4  ;;  %v12980_v58 = vadd.f32 %v12383_v5, %v3465_v21  ;;  %v8619_v4 = vld [vmem:[%s15080_s5 + $0x354] ss:$28 sps:$4 sm:$0xff]   ;;  %v8614_v55 = vld [vmem:[%s15080_s5 + $0x348] ss:$28 sps:$4 sm:$0xff]  }
 0x4c1   :  { %v12983_v53 = vadd.f32 %v12300_v38, %v3475_v19  ;;  %v12986_v39 = vadd.f32 %v12309_v0, %v3476_v17  ;;  %v3264_v26 = vmul.f32 %v12286_v15, %v3178_v35  ;;  %5667 = vmatpush1.bf16.msra.mxu1 %v8605_v43  ;;  %v12993_v29 = vadd.f32 %v12410_v59, %v3466_v14 }
 0x4c2   :  { %v12996_v6 = vadd.f32 %v12383_v5, %v3469_v54  ;;  %v3473_v21 = vadd.f32 %v12857_v20, %v3258_v25  ;;  %5442 = vmatprep.subr.bf16.mxu0 %v8610_v34  ;;  %5668 = vmatprep.subr.bf16.mxu1 %v8613_v3  ;;  %v13003_v15 = vadd.f32 %v12410_v59, %v3470_v42 }
 0x4c3   :  { %v3474_v43 = vadd.f32 %v12869_v2, %v3259_v7  ;;  %v3630_v27 = vadd.f32 %v3629_v1, %v12983_v53  ;;  %v3664_v14 = vsel %vm555_vm0, %v12986_v39, 0.0  ;;  %v3262_v8 = vmul.f32 %v12346_v50, %v3178_v35  ;;  %v8617_v7 = vld [vmem:[%s15080_s5 + $0x350] ss:$28 sps:$4 sm:$0xff]   ;;  %v8622_v50 = vld [vmem:[%s15080_s5 + $0x384] ss:$28 sps:$4 sm:$0xff]  }
 0x4c4   :  { %v3665_v54 = vadd.f32 %v3664_v14, %v3663_v12  ;;  %v3263_v20 = vmul.f32 %v12359_v32, %v3178_v35  ;;  %v3265_v25 = vmul.f32 %v12289_v16, %v3178_v35  ;;  %5443 = vmatpush1.bf16.msra.mxu0 %v8608_v11  ;;  %v3586_v19 = vadd.f32 %v3585_v22, %v12980_v58 }
 0x4c5   :  { %v3330_v34 = vpop.permute.xlu1 %3329  ;;  %5669 = vmatpush1.bf16.msra.mxu1 %v8611_v48  ;;  %v3607_v17 = vadd.f32 %v3606_v63, %v12993_v29  ;;  %v13025_v35 = vadd.f32 %v12383_v5, %v3473_v21  ;;  %5444 = vmatprep.subr.bf16.mxu0 %v8616_v56  ;;  %v3267_v33 = vmul.f32 %v12359_v32, %v12774_v45 }
 0x4c6   :  { %v3413_v3 = vmul.f32 %v12335_v13, %v3330_v34  ;;  %v3414_v42 = vmul.f32 %v12355_v18, %v3330_v34  ;;  %v3415_v2 = vmul.f32 %v12280_v9, %v3330_v34  ;;  %v3416_v1 = vmul.f32 %v12283_v62, %v3330_v34  ;;  %5670 = vmatprep.subr.bf16.mxu1 %v8619_v4  ;;  %v8625_v34 = vld [vmem:[%s15080_s5 + $0x38c] ss:$28 sps:$4 sm:$0xff]  }
 0x4c7   :  { %v3269_v22 = vmul.f32 %v12289_v16, %v12774_v45  ;;  %v3587_v63 = vadd.f32 %v3586_v19, %v12996_v6  ;;  %v3608_v21 = vadd.f32 %v3607_v17, %v13003_v15  ;;  %v13037_v4 = vadd.f32 %v12410_v59, %v3474_v43 }
 0x4c8   :  { %v3477_v11 = vadd.f32 %v3413_v3, %v3262_v8  ;;  %v3478_v12 = vadd.f32 %v3414_v42, %v3263_v20  ;;  %v3479_v48 = vadd.f32 %v3415_v2, %v3264_v26  ;;  %v3480_v14 = vadd.f32 %v3416_v1, %v3265_v25  ;;  %5445 = vmatpush1.bf16.msra.mxu0 %v8614_v55 }
 0x4c9   :  { %v3334_v56 = vpop.permute.xlu1 %3333  ;;  %5671 = vmatpush1.bf16.msra.mxu1 %v8617_v7  ;;  %5527 = vmatprep.subr.bf16.mxu0 %v8622_v50  ;;  %v3588_v43 = vadd.f32 %v3587_v63, %v13025_v35 }
 0x4ca   :  { %v13040_v26 = vadd.f32 %v12383_v5, %v3477_v11  ;;  %v13043_v8 = vadd.f32 %v12300_v38, %v3479_v48  ;;  %v13046_v32 = vadd.f32 %v12309_v0, %v3480_v14  ;;  %v3417_v16 = vmul.f32 %v12335_v13, %v3334_v56  ;;  %5753 = vmatprep.subr.bf16.mxu1 %v8625_v34 }
 0x4cb   :  { %v3418_v45 = vmul.f32 %v12355_v18, %v3334_v56  ;;  %v3419_v20 = vmul.f32 %v12280_v9, %v3334_v56  ;;  %v3420_v55 = vmul.f32 %v12283_v62, %v3334_v56  ;;  %v13054_v25 = vadd.f32 %v12410_v59, %v3478_v12 }
 0x4cc   :  { %v3666_v3 = vsel %vm555_vm0, %v13046_v32, 0.0  ;;  %v3631_v42 = vadd.f32 %v3630_v27, %v13043_v8  ;;  %v3481_v13 = vadd.f32 %v3417_v16, %v12971_v30  ;;  %v3609_v62 = vadd.f32 %v3608_v21, %v13037_v4 }
 0x4cd   :  { %v3482_v2 = vadd.f32 %v3418_v45, %v3267_v33  ;;  %v3483_v18 = vadd.f32 %v3419_v20, %v12810_v10  ;;  %v3484_v9 = vadd.f32 %v3420_v55, %v3269_v22  ;;  %v3589_v1 = vadd.f32 %v3588_v43, %v13040_v26 }
 0x4ce   :  { %v13064_v7 = vadd.f32 %v12383_v5, %v3481_v13  ;;  %v3610_v33 = vadd.f32 %v3609_v62, %v13054_v25  ;;  %v3667_v10 = vadd.f32 %v3666_v3, %v3665_v54 }
 0x4cf   :  { %v13067_v50 = vadd.f32 %v12410_v59, %v3482_v2  ;;  %v13070_v19 = vadd.f32 %v12300_v38, %v3483_v18  ;;  %v13073_v27 = vadd.f32 %v12309_v0, %v3484_v9 }
 0x4d0   :  { %v3590_v30 = vadd.f32 %v3589_v1, %v13064_v7 }
 0x4d1   :  { %v3632_v17 = vadd.f32 %v3631_v42, %v13070_v19  ;;  %v3668_v5 = vsel %vm555_vm0, %v13073_v27, 0.0  ;;  %v3611_v11 = vadd.f32 %v3610_v33, %v13067_v50 }
 0x4d2   :  { %v3669_v59 = vadd.f32 %v3668_v5, %v3667_v10  ;;  %v3591_v38 = vrot.slane %v3590_v30, 4 }
 0x4d3   :  { %v3633_v12 = vrot.slane %v3632_v17, 4  ;;  %v3612_v34 = vrot.slane %v3611_v11, 4 }
 0x4d4   :  { %v3670_v48 = vrot.slane %v3669_v59, 4  ;;  %v3592_v21 = vadd.f32 %v3591_v38, %v3590_v30 }
 0x4d5   :  { %v3634_v14 = vadd.f32 %v3633_v12, %v3632_v17  ;;  %v3613_v56 = vadd.f32 %v3612_v34, %v3611_v11  ;;  %v15392_v12 = vld [vmem:[#allocation14_spill] sm:$0xff] }
 0x4d6   :  { %v3671_v0 = vadd.f32 %v3670_v48, %v3669_v59  ;;  %v3593_v55 = vrot.slane %v3592_v21, 2 }
 0x4d7   :  { %v3635_v22 = vrot.slane %v3634_v14, 2  ;;  %v3614_v3 = vrot.slane %v3613_v56, 2 }
 0x4d8   :  { %v3672_v63 = vrot.slane %v3671_v0, 2  ;;  %v3594_v18 = vadd.f32 %v3593_v55, %v3592_v21 }
 0x4d9   :  { %v3636_v54 = vadd.f32 %v3635_v22, %v3634_v14  ;;  %v3615_v62 = vadd.f32 %v3614_v3, %v3613_v56 }
 0x4da   :  { %v3673_v16 = vadd.f32 %v3672_v63, %v3671_v0  ;;  %v15397_v63 = vld [vmem:[#allocation30_spill] sm:$0xff] }
 0x4db   :  { %v3637_v45 = vrot.slane %v3636_v54, 1  ;;  %v3616_v5 = vrot.slane %v3615_v62, 1 }
 0x4dc   :  { %v3674_v20 = vrot.slane %v3673_v16, 1 }
 0x4dd   :  { %v3638_v43 = vadd.f32 %v3637_v45, %v3636_v54  ;;  %v3617_v22 = vadd.f32 %v3616_v5, %v3615_v62  ;;  %v15398_v54 = vld [vmem:[#allocation32_spill] sm:$0xff] }
 0x4de   :  { %v3675_v42 = vadd.f32 %v3674_v20, %v3673_v16  ;;  %v15400_v16 = vld [vmem:[#allocation11_spill] sm:$0xff]  ;;  %v15402_v20 = vld [vmem:[#allocation13_spill] sm:$0xff] }
 0x4df   :  { %v3678_v13 = vmul.f32 0.0078125, %v3638_v43  ;;  %v15404_v43 = vld [vmem:[#allocation15_spill] sm:$0xff] }
 0x4e0   :  { %v13081_v2 = vmul.f32 0.0078125, %v3675_v42  ;;  %v15406_v42 = vld [vmem:[#allocation37_spill] sm:$0xff] }
 0x4e1   :  { %v13084_v9 = vsub.f32 %v12305_v61, %v3678_v13  ;;  %v13091_v33 = vsub.f32 %v12323_v36, %v3678_v13  ;;  %v13098_v30 = vsub.f32 %v12362_v47, %v3678_v13  ;;  %v13105_v61 = vsub.f32 %v12390_v49, %v3678_v13  ;;  %v15389_v49 = vld [vmem:[#allocation7_spill] sm:$0xff] }
 0x4e2   :  { %v13088_v1 = vsub.f32 %v12318_v60, %v13081_v2  ;;  %v13095_v10 = vsub.f32 %v12328_v37, %v13081_v2  ;;  %v13102_v17 = vsub.f32 %v12367_v41, %v13081_v2  ;;  %v13109_v60 = vsub.f32 %v12397_v31, %v13081_v2  ;;  %v15390_v31 = vld [vmem:[#allocation8_spill] sm:$0xff] }
 0x4e3   :  { %15377 = vst [vmem:[#allocation38_spill] sm:$0xff] %v13084_v9  ;;  %15379 = vst [vmem:[#allocation39_spill] sm:$0xff] %v13091_v33  ;;  %v13112_v36 = vsub.f32 %v12432_v23, %v3678_v13  ;;  %v13116_v37 = vsub.f32 %v12435_v51, %v13081_v2  ;;  %v3595_v47 = vrot.slane %v3594_v18, 1  ;;  %v13119_v11 = vsub.f32 %v12524_v52, %v3678_v13  ;;  %v15393_v51 = vld [vmem:[#allocation16_spill] sm:$0xff]  ;;  %v15394_v52 = vld [vmem:[#allocation26_spill] sm:$0xff] }
 0x4e4   :  { %15378 = vst [vmem:[#allocation44_spill] sm:$0xff] %v13088_v1  ;;  %15380 = vst [vmem:[#allocation45_spill] sm:$0xff] %v13095_v10  ;;  %v13123_v41 = vsub.f32 %v12527_v24, %v13081_v2  ;;  %v13126_v59 = vsub.f32 %v15389_v49, %v3678_v13  ;;  %v13130_v23 = vsub.f32 %v15390_v31, %v13081_v2  ;;  %v15395_v24 = vld [vmem:[#allocation28_spill] sm:$0xff]  ;;  %v3677_v49 = vmul.f32 0.0078125, %v3617_v22 }
 0x4e5   :  { %15381 = vst [vmem:[#allocation40_spill] sm:$0xff] %v13098_v30  ;;  %15382 = vst [vmem:[#allocation46_spill] sm:$0xff] %v13102_v17  ;;  %v13133_v48 = vsub.f32 %v15392_v12, %v3678_v13  ;;  %v13137_v38 = vsub.f32 %v15393_v51, %v13081_v2  ;;  %v13140_v14 = vsub.f32 %v15394_v52, %v3678_v13 }
 0x4e6   :  { %15383 = vst [vmem:[#allocation41_spill] sm:$0xff] %v13105_v61  ;;  %15384 = vst [vmem:[#allocation47_spill] sm:$0xff] %v13109_v60  ;;  %v13144_v34 = vsub.f32 %v15395_v24, %v13081_v2  ;;  %v3596_v0 = vadd.f32 %v3595_v47, %v3594_v18  ;;  %v13147_v21 = vsub.f32 %v15397_v63, %v3678_v13 }
 0x4e7   :  { %15385 = vst [vmem:[#allocation42_spill] sm:$0xff] %v13112_v36  ;;  %15386 = vst [vmem:[#allocation48_spill] sm:$0xff] %v13116_v37  ;;  %v13151_v56 = vsub.f32 %v15398_v54, %v13081_v2  ;;  %v13154_v45 = vsub.f32 %v15400_v16, %v3678_v13  ;;  %v13158_v55 = vsub.f32 %v15402_v20, %v13081_v2 }
 0x4e8   :  { %15387 = vst [vmem:[#allocation43_spill] sm:$0xff] %v13119_v11  ;;  %15388 = vst [vmem:[#allocation49_spill] sm:$0xff] %v13123_v41  ;;  %v13161_v3 = vsub.f32 %v15404_v43, %v3678_v13  ;;  %v13165_v18 = vsub.f32 %v15406_v42, %v13081_v2  ;;  %v13168_v62 = vsub.f32 %v12930_v57, %v3678_v13  ;;  %v3676_v5 = vmul.f32 0.0078125, %v3596_v0  ;;  %v15414_v57 = vld [vmem:[#allocation23_spill] sm:$0xff]  ;;  %v15418_v0 = vld [vmem:[#allocation21_spill] sm:$0xff] }
 0x4e9   :  { %15391 = vst [vmem:[#allocation50_spill] sm:$0xff] %v13130_v23  ;;  %15396 = vst [vmem:[#allocation51_spill] sm:$0xff] %v13144_v34  ;;  %v13172_v47 = vsub.f32 %v12939_v28, %v13081_v2  ;;  %v13175_v31 = vsub.f32 %v12983_v53, %v3678_v13  ;;  %v13179_v12 = vsub.f32 %v12986_v39, %v13081_v2  ;;  %v15416_v28 = vld [vmem:[#allocation27_spill] sm:$0xff]  ;;  %v15420_v53 = vld [vmem:[#allocation25_spill] sm:$0xff] }
 0x4ea   :  { %15399 = vst [vmem:[#allocation52_spill] sm:$0xff] %v13151_v56  ;;  %15401 = vst [vmem:[#allocation19_spill] sm:$0xff] %v13154_v45  ;;  %v13182_v51 = vsub.f32 %v13043_v8, %v3678_v13  ;;  %v13185_v52 = vsub.f32 %v13070_v19, %v3678_v13  ;;  %v13188_v24 = vsub.f32 %v15414_v57, %v3676_v5  ;;  %v15422_v39 = vld [vmem:[#allocation29_spill] sm:$0xff]  ;;  %v15424_v8 = vld [vmem:[#allocation31_spill] sm:$0xff] }
 0x4eb   :  { %15403 = vst [vmem:[#allocation7_spill] sm:$0xff] %v13158_v55  ;;  %15405 = vst [vmem:[#allocation8_spill] sm:$0xff] %v13161_v3  ;;  %v13191_v63 = vsub.f32 %v15416_v28, %v3677_v49  ;;  %v13194_v22 = vsub.f32 %v15418_v0, %v3676_v5  ;;  %v13197_v54 = vsub.f32 %v15420_v53, %v3677_v49  ;;  %v15426_v19 = vld [vmem:[#allocation33_spill] sm:$0xff]  ;;  %v15430_v57 = vld [vmem:[#allocation10_spill] sm:$0xff] }
 0x4ec   :  { %15407 = vst [vmem:[#allocation14_spill] sm:$0xff] %v13165_v18  ;;  %15408 = vst [vmem:[#allocation16_spill] sm:$0xff] %v13168_v62  ;;  %v13200_v16 = vsub.f32 %v15422_v39, %v3676_v5  ;;  %v13203_v20 = vsub.f32 %v15424_v8, %v3677_v49  ;;  %v13206_v13 = vsub.f32 %v15426_v19, %v3676_v5  ;;  %v15428_v43 = vld [vmem:[#allocation9_spill] sm:$0xff]  ;;  %v15432_v0 = vld [vmem:[#allocation12_spill] sm:$0xff] }
 0x4ed   :  { %15409 = vst [vmem:[#allocation26_spill] sm:$0xff] %v13172_v47  ;;  %15410 = vst [vmem:[#allocation28_spill] sm:$0xff] %v13175_v31  ;;  %v13209_v42 = vsub.f32 %v15428_v43, %v3677_v49  ;;  %v13212_v28 = vsub.f32 %v15430_v57, %v3676_v5  ;;  %v15434_v53 = vld [vmem:[#allocation18_spill] sm:$0xff]  ;;  %v15436_v39 = vld [vmem:[#allocation20_spill] sm:$0xff] }
 0x4ee   :  { %15411 = vst [vmem:[#allocation30_spill] sm:$0xff] %v13179_v12  ;;  %15412 = vst [vmem:[#allocation32_spill] sm:$0xff] %v13182_v51  ;;  %v13218_v51 = vsub.f32 %v15434_v53, %v3676_v5  ;;  %v13221_v12 = vsub.f32 %v15436_v39, %v3677_v49  ;;  %v15438_v8 = vld [vmem:[#allocation22_spill] sm:$0xff]  ;;  %v15440_v19 = vld [vmem:[#allocation24_spill] sm:$0xff]  ;;  %v13242_v39 = vsub.f32 %v12884_v46, %v3676_v5 }
 0x4ef   :  { %15413 = vst [vmem:[#allocation11_spill] sm:$0xff] %v13185_v52  ;;  %15415 = vst [vmem:[#allocation13_spill] sm:$0xff] %v13188_v24  ;;  %v13215_v52 = vsub.f32 %v15432_v0, %v3677_v49  ;;  %v13224_v31 = vsub.f32 %v15438_v8, %v3676_v5  ;;  %v13227_v47 = vsub.f32 %v15440_v19, %v3677_v49  ;;  %v15441_v43 = vld [vmem:[#allocation34_spill] sm:$0xff]  ;;  %v15442_v57 = vld [vmem:[#allocation53_spill] sm:$0xff] }
 0x4f0   :  { %15417 = vst [vmem:[#allocation15_spill] sm:$0xff] %v13191_v63  ;;  %15419 = vst [vmem:[#allocation37_spill] sm:$0xff] %v13194_v22  ;;  %v13230_v62 = vsub.f32 %v15441_v43, %v3676_v5  ;;  %v13233_v18 = vsub.f32 %v15442_v57, %v3677_v49  ;;  %v15443_v0 = vld [vmem:[#allocation35_spill] sm:$0xff]  ;;  %v15444_v53 = vld [vmem:[#allocation36_spill] sm:$0xff]  ;;  %v13245_v8 = vsub.f32 %v12887_v44, %v3677_v49 }
 0x4f1   :  { %15421 = vst [vmem:[#allocation23_spill] sm:$0xff] %v13197_v54  ;;  %15423 = vst [vmem:[#allocation27_spill] sm:$0xff] %v13200_v16  ;;  %v13236_v3 = vsub.f32 %v15443_v0, %v3676_v5  ;;  %v13239_v55 = vsub.f32 %v15444_v53, %v3677_v49  ;;  %v13248_v19 = vsub.f32 %v12924_v40, %v3676_v5  ;;  %v15445_v43 = vld [vmem:[#allocation17_spill] sm:$0xff] }
 0x4f2   :  { %15425 = vst [vmem:[#allocation21_spill] sm:$0xff] %v13203_v20  ;;  %15427 = vst [vmem:[#allocation25_spill] sm:$0xff] %v13206_v13  ;;  %v13251_v45 = vsub.f32 %v15445_v43, %v3677_v49  ;;  %v13254_v57 = vsub.f32 %v12980_v58, %v3676_v5  ;;  %v13257_v0 = vsub.f32 %v12993_v29, %v3677_v49 }
 0x4f3   :  { %15429 = vst [vmem:[#allocation29_spill] sm:$0xff] %v13209_v42  ;;  %15431 = vst [vmem:[#allocation31_spill] sm:$0xff] %v13212_v28  ;;  %v13260_v53 = vsub.f32 %v12996_v6, %v3676_v5  ;;  %v13263_v46 = vsub.f32 %v13003_v15, %v3677_v49  ;;  %v13266_v44 = vsub.f32 %v13025_v35, %v3676_v5 }
 0x4f4   :  { %15433 = vst [vmem:[#allocation33_spill] sm:$0xff] %v13215_v52  ;;  %15435 = vst [vmem:[#allocation9_spill] sm:$0xff] %v13218_v51  ;;  %v13269_v40 = vsub.f32 %v13037_v4, %v3677_v49  ;;  %v13272_v43 = vsub.f32 %v13040_v26, %v3676_v5  ;;  %v13275_v58 = vsub.f32 %v13054_v25, %v3677_v49 }
 0x4f5   :  { %15437 = vst [vmem:[#allocation10_spill] sm:$0xff] %v13221_v12  ;;  %15439 = vst [vmem:[#allocation12_spill] sm:$0xff] %v13224_v31  ;;  %v13279_v29 = vsub.f32 %v13046_v32, %v13081_v2  ;;  %v13282_v6 = vsub.f32 %v13064_v7, %v3676_v5  ;;  %v13285_v15 = vsub.f32 %v13067_v50, %v3677_v49 }
 0x4f6   :  { %v13289_v35 = vsub.f32 %v13073_v27, %v13081_v2  ;;  %v3744_v4 = vmul.f32 %v13188_v24, %v13188_v24  ;;  %v3745_v26 = vmul.f32 %v13191_v63, %v13191_v63  ;;  %v3746_v32 = vmul.f32 %v13084_v9, %v13084_v9 }
 0x4f7   :  { %15446 = vst [vmem:[#allocation18_spill] sm:$0xff] %v13285_v15  ;;  %v3747_v25 = vmul.f32 %v13088_v1, %v13088_v1  ;;  %v3748_v7 = vmul.f32 %v13194_v22, %v13194_v22  ;;  %v3749_v50 = vmul.f32 %v13197_v54, %v13197_v54  ;;  %v3750_v27 = vmul.f32 %v13091_v33, %v13091_v33 }
 0x4f8   :  { %15447 = vst [vmem:[#allocation20_spill] sm:$0xff] %v13289_v35  ;;  %v3751_v2 = vmul.f32 %v13095_v10, %v13095_v10  ;;  %v3752_v5 = vmul.f32 %v13200_v16, %v13200_v16  ;;  %v3753_v49 = vmul.f32 %v13203_v20, %v13203_v20  ;;  %v3754_v9 = vmul.f32 %v13098_v30, %v13098_v30 }
 0x4f9   :  { %v3755_v1 = vmul.f32 %v13102_v17, %v13102_v17  ;;  %v3756_v54 = vmul.f32 %v13206_v13, %v13206_v13  ;;  %v3757_v33 = vmul.f32 %v13209_v42, %v13209_v42  ;;  %v3758_v10 = vmul.f32 %v13105_v61, %v13105_v61 }
 0x4fa   :  { %v3759_v16 = vmul.f32 %v13109_v60, %v13109_v60  ;;  %v3760_v20 = vmul.f32 %v13212_v28, %v13212_v28  ;;  %v3761_v30 = vmul.f32 %v13215_v52, %v13215_v52  ;;  %v3762_v17 = vmul.f32 %v13112_v36, %v13112_v36 }
 0x4fb   :  { %v3763_v13 = vmul.f32 %v13116_v37, %v13116_v37  ;;  %v3764_v42 = vmul.f32 %v13218_v51, %v13218_v51  ;;  %v3765_v61 = vmul.f32 %v13221_v12, %v13221_v12  ;;  %v3766_v60 = vmul.f32 %v13119_v11, %v13119_v11 }
 0x4fc   :  { %v3767_v28 = vmul.f32 %v13123_v41, %v13123_v41  ;;  %v3768_v52 = vmul.f32 %v13224_v31, %v13224_v31  ;;  %v3808_v63 = vadd.f32 %v3748_v7, %v3744_v4  ;;  %v3829_v36 = vadd.f32 %v3749_v50, %v3745_v26 }
 0x4fd   :  { %v3850_v22 = vadd.f32 %v3750_v27, %v3746_v32  ;;  %v3871_v37 = vsel %vm555_vm0, %v3747_v25, 0.0  ;;  %v3769_v51 = vmul.f32 %v13227_v47, %v13227_v47  ;;  %v3770_v12 = vmul.f32 %v13126_v59, %v13126_v59 }
 0x4fe   :  { %v3771_v11 = vmul.f32 %v13130_v23, %v13130_v23  ;;  %v3872_v24 = vsel %vm555_vm0, %v3751_v2, 0.0  ;;  %v3809_v41 = vadd.f32 %v3808_v63, %v3752_v5  ;;  %v3830_v35 = vadd.f32 %v3829_v36, %v3753_v49 }
 0x4ff   :  { %v3851_v15 = vadd.f32 %v3850_v22, %v3754_v9  ;;  %v3873_v31 = vadd.f32 %v3872_v24, %v3871_v37  ;;  %v3772_v4 = vmul.f32 %v13230_v62, %v13230_v62  ;;  %v3773_v26 = vmul.f32 %v13233_v18, %v13233_v18 }
 0x500   :  { %v3774_v32 = vmul.f32 %v13133_v48, %v13133_v48  ;;  %v3874_v25 = vsel %vm555_vm0, %v3755_v1, 0.0  ;;  %v3810_v7 = vadd.f32 %v3809_v41, %v3756_v54  ;;  %v3831_v50 = vadd.f32 %v3830_v35, %v3757_v33 }
 0x501   :  { %v3852_v27 = vadd.f32 %v3851_v15, %v3758_v10  ;;  %v3875_v23 = vadd.f32 %v3874_v25, %v3873_v31  ;;  %v3775_v36 = vmul.f32 %v13137_v38, %v13137_v38  ;;  %v3776_v9 = vmul.f32 %v13236_v3, %v13236_v3 }
 0x502   :  { %v3777_v37 = vmul.f32 %v13239_v55, %v13239_v55  ;;  %v3876_v24 = vsel %vm555_vm0, %v3759_v16, 0.0  ;;  %v3811_v63 = vadd.f32 %v3810_v7, %v3760_v20  ;;  %v3832_v22 = vadd.f32 %v3831_v50, %v3761_v30 }
 0x503   :  { %v3853_v2 = vadd.f32 %v3852_v27, %v3762_v17  ;;  %v3877_v5 = vadd.f32 %v3876_v24, %v3875_v23  ;;  %v3778_v1 = vmul.f32 %v13140_v14, %v13140_v14  ;;  %v3779_v33 = vmul.f32 %v13144_v34, %v13144_v34  ;;  %v15470_v34 = vld [vmem:[#allocation33_spill] sm:$0xff] }
 0x504   :  { %v3780_v10 = vmul.f32 %v13242_v39, %v13242_v39  ;;  %v3878_v41 = vsel %vm555_vm0, %v3763_v13, 0.0  ;;  %v3812_v31 = vadd.f32 %v3811_v63, %v3764_v42  ;;  %v3833_v54 = vadd.f32 %v3832_v22, %v3765_v61  ;;  %v15448_v13 = vld [vmem:[#allocation19_spill] sm:$0xff] }
 0x505   :  { %v3854_v15 = vadd.f32 %v3853_v2, %v3766_v60  ;;  %v3879_v35 = vadd.f32 %v3878_v41, %v3877_v5  ;;  %v3781_v30 = vmul.f32 %v13245_v8, %v13245_v8  ;;  %v3782_v17 = vmul.f32 %v13147_v21, %v13147_v21 }
 0x506   :  { %v3783_v23 = vmul.f32 %v13151_v56, %v13151_v56  ;;  %v3880_v16 = vsel %vm555_vm0, %v3767_v28, 0.0  ;;  %v3813_v20 = vadd.f32 %v3812_v31, %v3768_v52  ;;  %v3834_v49 = vadd.f32 %v3833_v54, %v3769_v51  ;;  %v15449_v28 = vld [vmem:[#allocation7_spill] sm:$0xff] }
 0x507   :  { %v3855_v25 = vadd.f32 %v3854_v15, %v3770_v12  ;;  %v3881_v7 = vadd.f32 %v3880_v16, %v3879_v35  ;;  %v3784_v61 = vmul.f32 %v13248_v19, %v13248_v19  ;;  %v3785_v60 = vmul.f32 %v13251_v45, %v13251_v45 }
 0x508   :  { %v3786_v42 = vmul.f32 %v15448_v13, %v15448_v13  ;;  %v3882_v50 = vsel %vm555_vm0, %v3771_v11, 0.0  ;;  %v3814_v27 = vadd.f32 %v3813_v20, %v3772_v4  ;;  %v3835_v24 = vadd.f32 %v3834_v49, %v3773_v26  ;;  %v15450_v11 = vld [vmem:[#allocation8_spill] sm:$0xff]  ;;  %v15451_v26 = vld [vmem:[#allocation14_spill] sm:$0xff] }
 0x509   :  { %v3856_v63 = vadd.f32 %v3855_v25, %v3774_v32  ;;  %v3883_v22 = vadd.f32 %v3882_v50, %v3881_v7  ;;  %v3787_v51 = vmul.f32 %v15449_v28, %v15449_v28  ;;  %v3788_v12 = vmul.f32 %v13254_v57, %v13254_v57 }
 0x50a   :  { %v3789_v52 = vmul.f32 %v13257_v0, %v13257_v0  ;;  %v3884_v2 = vsel %vm555_vm0, %v3775_v36, 0.0  ;;  %v3815_v5 = vadd.f32 %v3814_v27, %v3776_v9  ;;  %v3836_v41 = vadd.f32 %v3835_v24, %v3777_v37  ;;  %v15452_v9 = vld [vmem:[#allocation16_spill] sm:$0xff] }
 0x50b   :  { %v3857_v31 = vadd.f32 %v3856_v63, %v3778_v1  ;;  %v3885_v54 = vadd.f32 %v3884_v2, %v3883_v22  ;;  %v3790_v4 = vmul.f32 %v15450_v11, %v15450_v11  ;;  %v3791_v32 = vmul.f32 %v15451_v26, %v15451_v26  ;;  %v15453_v1 = vld [vmem:[#allocation26_spill] sm:$0xff] }
 0x50c   :  { %v3792_v15 = vmul.f32 %v13260_v53, %v13260_v53  ;;  %v3886_v35 = vsel %vm555_vm0, %v3779_v33, 0.0  ;;  %v3816_v16 = vadd.f32 %v3815_v5, %v3780_v10  ;;  %v3837_v20 = vadd.f32 %v3836_v41, %v3781_v30  ;;  %v15454_v30 = vld [vmem:[#allocation28_spill] sm:$0xff] }
 0x50d   :  { %v3858_v49 = vadd.f32 %v3857_v31, %v3782_v17  ;;  %v3887_v25 = vadd.f32 %v3886_v35, %v3885_v54  ;;  %v3793_v36 = vmul.f32 %v13263_v46, %v13263_v46  ;;  %v3794_v37 = vmul.f32 %v15452_v9, %v15452_v9 }
 0x50e   :  { %v3795_v7 = vmul.f32 %v15453_v1, %v15453_v1  ;;  %v3888_v50 = vsel %vm555_vm0, %v3783_v23, 0.0  ;;  %v3817_v27 = vadd.f32 %v3816_v16, %v3784_v61  ;;  %v3838_v24 = vadd.f32 %v3837_v20, %v3785_v60  ;;  %v15455_v23 = vld [vmem:[#allocation30_spill] sm:$0xff] }
 0x50f   :  { %v3859_v63 = vadd.f32 %v3858_v49, %v3786_v42  ;;  %v3889_v22 = vadd.f32 %v3888_v50, %v3887_v25  ;;  %v3796_v33 = vmul.f32 %v13266_v44, %v13266_v44  ;;  %v3797_v10 = vmul.f32 %v13269_v40, %v13269_v40 }
 0x510   :  { %v3798_v17 = vmul.f32 %v15454_v30, %v15454_v30  ;;  %v3890_v2 = vsel %vm555_vm0, %v3787_v51, 0.0  ;;  %v3818_v5 = vadd.f32 %v3817_v27, %v3788_v12  ;;  %v3839_v41 = vadd.f32 %v3838_v24, %v3789_v52  ;;  %v15456_v51 = vld [vmem:[#allocation32_spill] sm:$0xff] }
 0x511   :  { %v3860_v31 = vadd.f32 %v3859_v63, %v3790_v4  ;;  %v3891_v54 = vadd.f32 %v3890_v2, %v3889_v22  ;;  %v3799_v61 = vmul.f32 %v15455_v23, %v15455_v23  ;;  %v3800_v60 = vmul.f32 %v13272_v43, %v13272_v43  ;;  %v15459_v2 = vld [vmem:[#allocation20_spill] sm:$0xff] }
 0x512   :  { %v3801_v42 = vmul.f32 %v13275_v58, %v13275_v58  ;;  %v3892_v35 = vsel %vm555_vm0, %v3791_v32, 0.0  ;;  %v3819_v16 = vadd.f32 %v3818_v5, %v3792_v15  ;;  %v3840_v20 = vadd.f32 %v3839_v41, %v3793_v36  ;;  %v15457_v32 = vld [vmem:[#allocation18_spill] sm:$0xff]  ;;  %v15458_v36 = vld [vmem:[#allocation11_spill] sm:$0xff] }
 0x513   :  { %v3861_v49 = vadd.f32 %v3860_v31, %v3794_v37  ;;  %v3893_v25 = vadd.f32 %v3892_v35, %v3891_v54  ;;  %v3802_v12 = vmul.f32 %v15456_v51, %v15456_v51  ;;  %v3803_v52 = vmul.f32 %v13279_v29, %v13279_v29 }
 0x514   :  { %v3804_v4 = vmul.f32 %v13282_v6, %v13282_v6  ;;  %v3894_v50 = vsel %vm555_vm0, %v3795_v7, 0.0  ;;  %v3820_v27 = vadd.f32 %v3819_v16, %v3796_v33  ;;  %v3841_v24 = vadd.f32 %v3840_v20, %v3797_v10 }
 0x515   :  { %v3862_v63 = vadd.f32 %v3861_v49, %v3798_v17  ;;  %v3895_v22 = vadd.f32 %v3894_v50, %v3893_v25  ;;  %v3805_v15 = vmul.f32 %v15457_v32, %v15457_v32  ;;  %v3806_v37 = vmul.f32 %v15458_v36, %v15458_v36 }
 0x516   :  { %v3807_v5 = vmul.f32 %v15459_v2, %v15459_v2  ;;  %v3896_v41 = vsel %vm555_vm0, %v3799_v61, 0.0  ;;  %v3821_v31 = vadd.f32 %v3820_v27, %v3800_v60  ;;  %v3842_v54 = vadd.f32 %v3841_v24, %v3801_v42 }
 0x517   :  { %v3863_v35 = vadd.f32 %v3862_v63, %v3802_v12  ;;  %v3897_v23 = vadd.f32 %v3896_v41, %v3895_v22  ;;  %v3898_v7 = vsel %vm555_vm0, %v3803_v52, 0.0 }
 0x518   :  { %v3822_v33 = vadd.f32 %v3821_v31, %v3804_v4  ;;  %v3843_v10 = vadd.f32 %v3842_v54, %v3805_v15  ;;  %v3900_v20 = vsel %vm555_vm0, %v3807_v5, 0.0 }
 0x519   :  { %v3864_v17 = vadd.f32 %v3863_v35, %v3806_v37  ;;  %v3899_v16 = vadd.f32 %v3898_v7, %v3897_v23 }
 0x51a   :  { %v3823_v49 = vrot.slane %v3822_v33, 4  ;;  %v3844_v25 = vrot.slane %v3843_v10, 4 }
 0x51b   :  { %v3865_v50 = vrot.slane %v3864_v17, 4  ;;  %v3901_v1 = vadd.f32 %v3900_v20, %v3899_v16 }
 0x51c   :  { %v3824_v26 = vadd.f32 %v3823_v49, %v3822_v33  ;;  %v3845_v28 = vadd.f32 %v3844_v25, %v3843_v10  ;;  %v15460_v49 = vld [vmem:[#allocation3_spill] sm:$0xff] }
 0x51d   :  { %v3866_v56 = vadd.f32 %v3865_v50, %v3864_v17  ;;  %v3902_v61 = vrot.slane %v3901_v1, 4 }
 0x51e   :  { %v3825_v60 = vrot.slane %v3824_v26, 2  ;;  %v3846_v42 = vrot.slane %v3845_v28, 2 }
 0x51f   :  { %v3867_v12 = vrot.slane %v3866_v56, 2  ;;  %v3903_v27 = vadd.f32 %v3902_v61, %v3901_v1  ;;  %v15461_v61 = vld [vmem:[#allocation6_spill] sm:$0xff] }
 0x520   :  { %v3826_v24 = vadd.f32 %v3825_v60, %v3824_v26  ;;  %v3847_v52 = vadd.f32 %v3846_v42, %v3845_v28  ;;  %v13443_v28 = vld [vmem:[%s15075_s6 + $0x5] ss:$8 sm:$0xf] }
 0x521   :  { %v3868_v4 = vadd.f32 %v3867_v12, %v3866_v56  ;;  %v3904_v63 = vrot.slane %v3903_v27, 2  ;;  %v13438_v56 = vld [vmem:[%s15075_s6 + $0x4] ss:$8 sm:$0xf]  ;;  %v13457_v42 = vrot.slane %v13443_v28, %v15461_v61 }
 0x522   :  { %v3827_v22 = vrot.slane %v3826_v24, 1  ;;  %v3848_v23 = vrot.slane %v3847_v52, 1  ;;  %v13447_v25 = vrot.slane %v13438_v56, %v15460_v49  ;;  %v13453_v60 = vrot.slane %v13438_v56, %v15461_v61 }
 0x523   :  { %v3869_v15 = vrot.slane %v3868_v4, 1  ;;  %v3905_v37 = vadd.f32 %v3904_v63, %v3903_v27 }
 0x524   :  { %v3828_v5 = vadd.f32 %v3827_v22, %v3826_v24  ;;  %v3849_v41 = vadd.f32 %v3848_v23, %v3847_v52  ;;  %v15462_v24 = vld [vmem:[#allocation13_spill] sm:$0xff]  ;;  %v13471_v22 = vrot.slane %v13443_v28, %v15460_v49 }
 0x525   :  { %v3870_v31 = vadd.f32 %v3869_v15, %v3868_v4  ;;  %v3906_v54 = vrot.slane %v3905_v37, 1  ;;  %v15463_v4 = vld [vmem:[#allocation37_spill] sm:$0xff]  ;;  %v15464_v15 = vld [vmem:[#allocation15_spill] sm:$0xff] }
 0x526   :  { %v3908_v7 = vmul.f32 0.0078125, %v3828_v5  ;;  %v3909_v33 = vmul.f32 0.0078125, %v3849_v41  ;;  %v15465_v5 = vld [vmem:[#allocation23_spill] sm:$0xff] }
 0x527   :  { %v3907_v35 = vadd.f32 %v3906_v54, %v3905_v37  ;;  %v3910_v10 = vmul.f32 0.0078125, %v3870_v31  ;;  %v15467_v54 = vld [vmem:[#allocation27_spill] sm:$0xff] }
 0x528   :  { %v3912_v16 = vadd.f32 1e-05, %v3908_v7  ;;  %v3913_v20 = vadd.f32 1e-05, %v3909_v33 }
 0x529   :  { %v3911_v17 = vmul.f32 0.0078125, %v3907_v35  ;;  %v3914_v1 = vadd.f32 1e-05, %v3910_v10 }
 0x52a   :  { %8814 = vrsqrt.f32 %v3912_v16  ;;  %v15468_v16 = vld [vmem:[#allocation29_spill] sm:$0xff] }
 0x52b   :  { %v3915_v26 = vadd.f32 1e-05, %v3911_v17  ;;  %8816 = vrsqrt.f32 %v3913_v20 }
 0x52c   :  { %8818 = vrsqrt.f32 %v3914_v1 }
 0x52d   :  { %8820 = vrsqrt.f32 %v3915_v26 }
 0x534   :  { %v13449_v50 = vpop.eup %8814 }
 0x535   :  { %v13459_v12 = vpop.eup %8816  ;;  %v13463_v27 = vmul.f32 %v13449_v50, %v13282_v6  ;;  %v3920_v52 = vmul.f32 %v13449_v50, %v15462_v24  ;;  %v3924_v63 = vmul.f32 %v13449_v50, %v15463_v4  ;;  %v15466_v6 = vld [vmem:[#allocation21_spill] sm:$0xff]  ;;  %v3928_v35 = vmul.f32 %v13449_v50, %v15467_v54 }
 0x536   :  { %v13473_v23 = vpop.eup %8818  ;;  %v3921_v37 = vmul.f32 %v13459_v12, %v15464_v15  ;;  %v3925_v41 = vmul.f32 %v13459_v12, %v15465_v5  ;;  %v3929_v31 = vmul.f32 %v13459_v12, %v15466_v6  ;;  %v3933_v20 = vmul.f32 %v13459_v12, %v15468_v16 }
 0x537   :  { %v13483_v7 = vpop.eup %8820  ;;  %v13487_v33 = vmul.f32 %v13473_v23, %v15458_v36  ;;  %v4005_v10 = vmul.f32 %v13447_v25, %v3920_v52  ;;  %v4009_v17 = vmul.f32 %v13447_v25, %v3924_v63  ;;  %v15469_v63 = vld [vmem:[#allocation25_spill] sm:$0xff] }
 0x538   :  { %v13495_v1 = vmul.f32 %v13483_v7, %v15459_v2  ;;  %v4006_v26 = vmul.f32 %v13453_v60, %v3921_v37  ;;  %v4010_v24 = vmul.f32 %v13453_v60, %v3925_v41  ;;  %v4014_v4 = vmul.f32 %v13453_v60, %v3929_v31 }
 0x539   :  { %v4090_v36 = vadd.f32 %v13471_v22, %v4005_v10  ;;  %v4094_v15 = vadd.f32 %v13471_v22, %v4009_v17  ;;  %v4018_v52 = vmul.f32 %v13453_v60, %v3933_v20  ;;  %v3932_v5 = vmul.f32 %v13449_v50, %v15469_v63 }
 0x53a   :  { %v4091_v6 = vadd.f32 %v13457_v42, %v4006_v26  ;;  %v4095_v2 = vadd.f32 %v13457_v42, %v4010_v24  ;;  %v4099_v54 = vadd.f32 %v13457_v42, %v4014_v4  ;;  %v4013_v37 = vmul.f32 %v13447_v25, %v3928_v35  ;;  %v8620_v35 = vld [vmem:[%s15080_s5 + $0x380] ss:$28 sps:$4 sm:$0xff]  }
 0x53b   :  { %v4154_v41 = vmax.f32 %v4090_v36, 0.0  ;;  %v4158_v16 = vmax.f32 %v4094_v15, 0.0  ;;  %v4103_v31 = vadd.f32 %v13457_v42, %v4018_v52  ;;  %v4017_v10 = vmul.f32 %v13447_v25, %v3932_v5  ;;  %v15471_v4 = vld [vmem:[#allocation10_spill] sm:$0xff]  ;;  %v15472_v15 = vld [vmem:[#allocation31_spill] sm:$0xff] }
 0x53c   :  { %v4155_v17 = vmax.f32 %v4091_v6, 0.0  ;;  %v4159_v61 = vmax.f32 %v4095_v2, 0.0  ;;  %v4163_v20 = vmax.f32 %v4099_v54, 0.0  ;;  %v3937_v26 = vmul.f32 %v13459_v12, %v15470_v34  ;;  %v8623_v5 = vld [vmem:[%s15080_s5 + $0x388] ss:$28 sps:$4 sm:$0xff]   ;;  %v15473_v2 = vld [vmem:[#allocation9_spill] sm:$0xff] }
 0x53d   :  { %v13511_v49 = vpack.c.bf16 %v4158_v16, %v4154_v41  ;;  %v4167_v63 = vmax.f32 %v4103_v31, 0.0  ;;  %v3941_v36 = vmul.f32 %v13459_v12, %v15471_v4  ;;  %v3936_v52 = vmul.f32 %v13449_v50, %v15472_v15  ;;  %v8628_v16 = vld [vmem:[%s15080_s5 + $0x3bc] ss:$28 sps:$4 sm:$0xff]  }
 0x53e   :  { %v13515_v24 = vpack.c.bf16 %v4159_v61, %v4155_v17  ;;  %v4098_v6 = vadd.f32 %v13471_v22, %v4013_v37  ;;  %v4102_v34 = vadd.f32 %v13471_v22, %v4017_v10  ;;  %v4022_v61 = vmul.f32 %v13453_v60, %v3937_v26  ;;  %v8631_v37 = vld [vmem:[%s15080_s5 + $0x3c4] ss:$28 sps:$4 sm:$0xff]  }
 0x53f   :  { %v3940_v54 = vmul.f32 %v13449_v50, %v15473_v2  ;;  %v13534_v41 = vpack.c.bf16 %v4167_v63, %v4163_v20  ;;  %v4026_v31 = vmul.f32 %v13453_v60, %v3941_v36  ;;  %v3945_v10 = vmul.f32 %v13459_v12, %v13227_v47  ;;  %v8626_v63 = vld [vmem:[%s15080_s5 + $0x3b8] ss:$28 sps:$4 sm:$0xff]  }
 0x540   :  { %5446 = vmatprep.mubr.bf16.mxu0 %v13515_v24  ;;  %5672 = vmatprep.mubr.bf16.mxu1 %v13515_v24  ;;  %v4107_v17 = vadd.f32 %v13457_v42, %v4022_v61  ;;  %v4021_v20 = vmul.f32 %v13447_v25, %v3936_v52  ;;  %v3949_v47 = vmul.f32 %v13459_v12, %v13233_v18  ;;  %v4162_v36 = vmax.f32 %v4098_v6, 0.0  ;;  %v8634_v52 = vld [vmem:[%s15080_s5 + $0x3f4] ss:$28 sps:$4 sm:$0xff]  }
 0x541   :  { %15474 = vst [vmem:[#allocation22_spill] sm:$0xff] %v13534_v41  ;;  %5447 = vmatmul.mubr.bf16.vlgmr.msra.gmra.mrb[64].mxu0 %v13511_v49  ;;  %5673 = vmatmul.mubr.bf16.vlgmr.msra.gmra.mrb[64].mxu1 %v13511_v49  ;;  %v4111_v26 = vadd.f32 %v13457_v42, %v4026_v31  ;;  %v4025_v4 = vmul.f32 %v13447_v25, %v3940_v54  ;;  %v4166_v15 = vmax.f32 %v4102_v34, 0.0  ;;  %v15475_v2 = vld [vmem:[#allocation12_spill] sm:$0xff] }
 0x542   :  { %5456 = vmatprep.mubr.bf16.mxu0 %v13534_v41  ;;  %5528 = vmatpush1.bf16.msra.mxu0 %v8620_v35  ;;  %v8629_v35 = vld [vmem:[%s15080_s5 + $0x3c0] ss:$28 sps:$4 sm:$0xff]   ;;  %v4030_v61 = vmul.f32 %v13453_v60, %v3945_v10  ;;  %v3944_v54 = vmul.f32 %v13449_v50, %v15475_v2  ;;  %v4171_v18 = vmax.f32 %v4107_v17, 0.0  ;;  %v4034_v6 = vmul.f32 %v13453_v60, %v3949_v47  ;;  %v8643_v47 = vld [vmem:[%s15080_s5 + $0x434] ss:$28 sps:$4 sm:$0xff]  }
 0x543   :  { %5682 = vmatprep.mubr.bf16.mxu1 %v13534_v41  ;;  %5754 = vmatpush1.bf16.msra.mxu1 %v8623_v5  ;;  %v4175_v31 = vmax.f32 %v4111_v26, 0.0  ;;  %v8637_v5 = vld [vmem:[%s15080_s5 + $0x3fc] ss:$28 sps:$4 sm:$0xff]   ;;  %v3948_v34 = vmul.f32 %v13449_v50, %v13230_v62  ;;  %v4106_v41 = vadd.f32 %v13471_v22, %v4021_v20  ;;  %v3953_v10 = vmul.f32 %v13459_v12, %v13239_v55  ;;  %v8632_v62 = vld [vmem:[%s15080_s5 + $0x3f0] ss:$28 sps:$4 sm:$0xff]  }
 0x544   :  { %5529 = vmatprep.subr.bf16.mxu0 %v8628_v16  ;;  %5755 = vmatprep.subr.bf16.mxu1 %v8631_v37  ;;  %v4110_v16 = vadd.f32 %v13471_v22, %v4025_v4  ;;  %v4115_v17 = vadd.f32 %v13457_v42, %v4030_v61  ;;  %v4029_v37 = vmul.f32 %v13447_v25, %v3944_v54  ;;  %v8635_v55 = vld [vmem:[%s15080_s5 + $0x3f8] ss:$28 sps:$4 sm:$0xff]  }
 0x545   :  { %v3957_v26 = vmul.f32 %v13459_v12, %v13245_v8  ;;  %v13581_v2 = vpack.c.bf16 %v4166_v15, %v4162_v36  ;;  %v4119_v20 = vadd.f32 %v13457_v42, %v4034_v6  ;;  %v13591_v4 = vpack.c.bf16 %v4175_v31, %v4171_v18  ;;  %v8640_v8 = vld [vmem:[%s15080_s5 + $0x42c] ss:$28 sps:$4 sm:$0xff]  }
 0x546   :  { %5530 = vmatpush1.bf16.msra.mxu0 %v8626_v63  ;;  %v4033_v63 = vmul.f32 %v13447_v25, %v3948_v34  ;;  %v4038_v36 = vmul.f32 %v13453_v60, %v3953_v10  ;;  %v3956_v61 = vmul.f32 %v13449_v50, %v13242_v39  ;;  %v3961_v54 = vmul.f32 %v13459_v12, %v13251_v45  ;;  %v8638_v39 = vld [vmem:[%s15080_s5 + $0x428] ss:$28 sps:$4 sm:$0xff]   ;;  %v8641_v45 = vld [vmem:[%s15080_s5 + $0x430] ss:$28 sps:$4 sm:$0xff]  }
 0x547   :  { %5756 = vmatpush1.bf16.msra.mxu1 %v8629_v35  ;;  %5531 = vmatprep.subr.bf16.mxu0 %v8634_v52  ;;  %v4042_v15 = vmul.f32 %v13453_v60, %v3957_v26  ;;  %v3952_v35 = vmul.f32 %v13449_v50, %v13236_v3  ;;  %v4170_v52 = vmax.f32 %v4106_v41, 0.0  ;;  %v4174_v18 = vmax.f32 %v4110_v16, 0.0  ;;  %v8649_v26 = vld [vmem:[%s15080_s5 + $0x46c] ss:$28 sps:$4 sm:$0xff]  }
 0x548   :  { %5757 = vmatprep.subr.bf16.mxu1 %v8637_v5  ;;  %v4179_v31 = vmax.f32 %v4115_v17, 0.0  ;;  %v4114_v5 = vadd.f32 %v13471_v22, %v4029_v37  ;;  %v4183_v6 = vmax.f32 %v4119_v20, 0.0  ;;  %v4118_v41 = vadd.f32 %v13471_v22, %v4033_v63  ;;  %v8646_v37 = vld [vmem:[%s15080_s5 + $0x464] ss:$28 sps:$4 sm:$0xff]  }
 0x549   :  { %5457 = vmatmul.mubr.bf16.gmra.mrb[68].mxu0 %v13581_v2  ;;  %5683 = vmatmul.mubr.bf16.gmra.mrb[68].mxu1 %v13581_v2  ;;  %v4037_v3 = vmul.f32 %v13447_v25, %v3952_v35  ;;  %v4041_v34 = vmul.f32 %v13447_v25, %v3956_v61  ;;  %v3965_v10 = vmul.f32 %v13459_v12, %v13257_v0 }
 0x54a   :  { %5466 = vmatprep.mubr.bf16.mxu0 %v13591_v4  ;;  %5692 = vmatprep.mubr.bf16.mxu1 %v13591_v4  ;;  %v4123_v16 = vadd.f32 %v13457_v42, %v4038_v36  ;;  %v4127_v17 = vadd.f32 %v13457_v42, %v4042_v15  ;;  %v3960_v63 = vmul.f32 %v13449_v50, %v13248_v19  ;;  %v4178_v61 = vmax.f32 %v4114_v5, 0.0  ;;  %v8647_v19 = vld [vmem:[%s15080_s5 + $0x468] ss:$28 sps:$4 sm:$0xff]  }
 0x54b   :  { %5532 = vmatpush1.bf16.msra.mxu0 %v8632_v62  ;;  %5758 = vmatpush1.bf16.msra.mxu1 %v8635_v55  ;;  %v4046_v62 = vmul.f32 %v13453_v60, %v3961_v54  ;;  %v4122_v55 = vadd.f32 %v13471_v22, %v4037_v3  ;;  %v4126_v0 = vadd.f32 %v13471_v22, %v4041_v34  ;;  %v8644_v54 = vld [vmem:[%s15080_s5 + $0x460] ss:$28 sps:$4 sm:$0xff]   ;;  %v4182_v3 = vmax.f32 %v4118_v41, 0.0 }
 0x54c   :  { %5533 = vmatprep.subr.bf16.mxu0 %v8640_v8  ;;  %5759 = vmatprep.subr.bf16.mxu1 %v8643_v47  ;;  %v4050_v20 = vmul.f32 %v13453_v60, %v3965_v10  ;;  %v3964_v8 = vmul.f32 %v13449_v50, %v13254_v57  ;;  %v15476_v47 = vld [vmem:[#allocation4_spill] sm:$0xff]  ;;  %v13643_v15 = vpack.c.bf16 %v4174_v18, %v4170_v52  ;;  %v4187_v34 = vmax.f32 %v4123_v16, 0.0  ;;  %v8655_v5 = vld [vmem:[%s15080_s5 + $0x4a4] ss:$28 sps:$4 sm:$0xff]   ;;  %v15477_v16 = vld [vmem:[#allocation5_spill] sm:$0xff] }
 0x54d   :  { %v13641_v36 = vrot.slane %v13438_v56, %v15476_v47  ;;  %v13645_v35 = vpack.c.bf16 %v4183_v6, %v4179_v31  ;;  %v3969_v57 = vmul.f32 %v13459_v12, %v13263_v46  ;;  %v4131_v52 = vadd.f32 %v13457_v42, %v4046_v62  ;;  %v8652_v31 = vld [vmem:[%s15080_s5 + $0x49c] ss:$28 sps:$4 sm:$0xff]  }
 0x54e   :  { %v4135_v18 = vadd.f32 %v13457_v42, %v4050_v20  ;;  %v4191_v46 = vmax.f32 %v4127_v17, 0.0  ;;  %v4186_v6 = vmax.f32 %v4122_v55, 0.0  ;;  %v4049_v41 = vmul.f32 %v13447_v25, %v3964_v8  ;;  %v8650_v17 = vld [vmem:[%s15080_s5 + $0x498] ss:$28 sps:$4 sm:$0xff]  }
 0x54f   :  { %5534 = vmatpush1.bf16.msra.mxu0 %v8638_v39  ;;  %5760 = vmatpush1.bf16.msra.mxu1 %v8641_v45  ;;  %v4190_v39 = vmax.f32 %v4126_v0, 0.0  ;;  %v4045_v45 = vmul.f32 %v13447_v25, %v3960_v63  ;;  %v3973_v10 = vmul.f32 %v13459_v12, %v13269_v40  ;;  %v4054_v62 = vmul.f32 %v13453_v60, %v3969_v57  ;;  %v8658_v8 = vld [vmem:[%s15080_s5 + $0x4d4] ss:$28 sps:$4 sm:$0xff]  }
 0x550   :  { %5535 = vmatprep.subr.bf16.mxu0 %v8646_v37  ;;  %5761 = vmatprep.subr.bf16.mxu1 %v8649_v26  ;;  %v13673_v37 = vrot.slane %v13438_v56, %v15477_v16  ;;  %v8653_v26 = vld [vmem:[%s15080_s5 + $0x4a0] ss:$28 sps:$4 sm:$0xff]   ;;  %v13684_v55 = vrot.slane %v13443_v28, %v15476_v47  ;;  %v13688_v40 = vrot.slane %v13443_v28, %v15477_v16  ;;  %v4195_v20 = vmax.f32 %v4131_v52, 0.0 }
 0x551   :  { %5467 = vmatmul.mubr.bf16.gmra.mrb[72].mxu0 %v13643_v15  ;;  %5693 = vmatmul.mubr.bf16.gmra.mrb[72].mxu1 %v13643_v15  ;;  %v13692_v56 = vmul.f32 %v13459_v12, %v15457_v32  ;;  %v13694_v0 = vpack.c.bf16 %v4182_v3, %v4178_v61  ;;  %v4199_v63 = vmax.f32 %v4135_v18, 0.0  ;;  %v13702_v28 = vpack.c.bf16 %v4191_v46, %v4187_v34  ;;  %v15478_v46 = vld [vmem:[#allocation44_spill] sm:$0xff] }
 0x552   :  { %5476 = vmatprep.mubr.bf16.mxu0 %v13645_v35  ;;  %5702 = vmatprep.mubr.bf16.mxu1 %v13645_v35  ;;  %v13707_v32 = vadd.f32 %v13471_v22, %v4045_v45  ;;  %v3976_v61 = vmul.f32 %v13449_v50, %v13272_v43  ;;  %v13712_v57 = vadd.f32 %v13471_v22, %v4049_v41  ;;  %v8656_v43 = vld [vmem:[%s15080_s5 + $0x4d0] ss:$28 sps:$4 sm:$0xff]  }
 0x553   :  { %5536 = vmatpush1.bf16.msra.mxu0 %v8644_v54  ;;  %5762 = vmatpush1.bf16.msra.mxu1 %v8647_v19  ;;  %v8661_v54 = vld [vmem:[%s15080_s5 + $0x4dc] ss:$28 sps:$4 sm:$0xff]   ;;  %v13704_v19 = vpack.c.bf16 %v4190_v39, %v4186_v6  ;;  %v4058_v3 = vmul.f32 %v13453_v60, %v3973_v10  ;;  %v3968_v52 = vmul.f32 %v13449_v50, %v13260_v53  ;;  %v8664_v39 = vld [vmem:[%s15080_s5 + $0x50c] ss:$28 sps:$4 sm:$0xff]   ;;  %v8667_v45 = vld [vmem:[%s15080_s5 + $0x514] ss:$28 sps:$4 sm:$0xff]  }
 0x554   :  { %5537 = vmatprep.subr.bf16.mxu0 %v8652_v31  ;;  %5763 = vmatprep.subr.bf16.mxu1 %v8655_v5  ;;  %v4065_v34 = vmul.f32 %v13447_v25, %v13463_v27  ;;  %v13720_v18 = vadd.f32 %v13457_v42, %v4054_v62  ;;  %v8659_v31 = vld [vmem:[%s15080_s5 + $0x4d8] ss:$28 sps:$4 sm:$0xff]   ;;  %v4061_v5 = vmul.f32 %v13447_v25, %v3976_v61 }
 0x555   :  { %v3923_v53 = vmul.f32 %v13483_v7, %v15478_v46  ;;  %v13731_v6 = vpack.c.bf16 %v4199_v63, %v4195_v20  ;;  %v13735_v27 = vmul.f32 %v13449_v50, %v13266_v44  ;;  %v15479_v44 = vld [vmem:[#allocation45_spill] sm:$0xff]  ;;  %v13754_v62 = vmul.f32 %v13447_v25, %v3968_v52  ;;  %v15480_v63 = vld [vmem:[#allocation38_spill] sm:$0xff]  ;;  %v8665_v52 = vld [vmem:[%s15080_s5 + $0x510] ss:$28 sps:$4 sm:$0xff]  }
 0x556   :  { %v4150_v41 = vadd.f32 %v13471_v22, %v4065_v34  ;;  %v3927_v50 = vmul.f32 %v13483_v7, %v15479_v44  ;;  %v3977_v34 = vmul.f32 %v13459_v12, %v13275_v58  ;;  %v4198_v44 = vmax.f32 %v13712_v57, 0.0  ;;  %v8670_v58 = vld [vmem:[%s15080_s5 + $0x544] ss:$28 sps:$4 sm:$0xff]   ;;  %v8673_v12 = vld [vmem:[%s15080_s5 + $0x54c] ss:$28 sps:$4 sm:$0xff]  }
 0x557   :  { %5538 = vmatpush1.bf16.msra.mxu0 %v8650_v17  ;;  %5764 = vmatpush1.bf16.msra.mxu1 %v8653_v26  ;;  %v4146_v17 = vadd.f32 %v13471_v22, %v4061_v5  ;;  %v4008_v26 = vmul.f32 %v13641_v36, %v3923_v53  ;;  %v8662_v5 = vld [vmem:[%s15080_s5 + $0x508] ss:$28 sps:$4 sm:$0xff]   ;;  %v4143_v16 = vadd.f32 %v13457_v42, %v4058_v3 }
 0x558   :  { %5539 = vmatprep.subr.bf16.mxu0 %v8658_v8  ;;  %5765 = vmatprep.subr.bf16.mxu1 %v8661_v54  ;;  %v4214_v20 = vmax.f32 %v4150_v41, 0.0  ;;  %v3922_v8 = vmul.f32 %v13473_v23, %v15480_v63  ;;  %v15481_v54 = vld [vmem:[#allocation39_spill] sm:$0xff]  ;;  %v4012_v53 = vmul.f32 %v13641_v36, %v3927_v50 }
 0x559   :  { %5477 = vmatmul.mubr.bf16.gmra.mrb[76].mxu0 %v13694_v0  ;;  %5703 = vmatmul.mubr.bf16.gmra.mrb[76].mxu1 %v13694_v0  ;;  %v3926_v61 = vmul.f32 %v13473_v23, %v15481_v54  ;;  %v4210_v46 = vmax.f32 %v4146_v17, 0.0  ;;  %v4093_v41 = vadd.f32 %v13684_v55, %v4008_v26  ;;  %v15482_v17 = vld [vmem:[#allocation46_spill] sm:$0xff] }
 0x55a   :  { %5486 = vmatprep.mubr.bf16.mxu0 %v13702_v28  ;;  %5712 = vmatprep.mubr.bf16.mxu1 %v13702_v28  ;;  %v3931_v50 = vmul.f32 %v13483_v7, %v15482_v17  ;;  %v4097_v57 = vadd.f32 %v13684_v55, %v4012_v53  ;;  %v8671_v53 = vld [vmem:[%s15080_s5 + $0x548] ss:$28 sps:$4 sm:$0xff]  }
 0x55b   :  { %5540 = vmatpush1.bf16.msra.mxu0 %v8656_v43  ;;  %5766 = vmatpush1.bf16.msra.mxu1 %v8659_v31  ;;  %v4007_v43 = vmul.f32 %v13673_v37, %v3922_v8  ;;  %v4011_v31 = vmul.f32 %v13673_v37, %v3926_v61  ;;  %v13781_v26 = vpack.c.bf16 %v4214_v20, %v4210_v46  ;;  %v15484_v8 = vld [vmem:[#allocation40_spill] sm:$0xff]  ;;  %v8668_v20 = vld [vmem:[%s15080_s5 + $0x540] ss:$28 sps:$4 sm:$0xff]  }
 0x55c   :  { %5541 = vmatprep.subr.bf16.mxu0 %v8664_v39  ;;  %5767 = vmatprep.subr.bf16.mxu1 %v8667_v45  ;;  %v4157_v39 = vmax.f32 %v4093_v41, 0.0  ;;  %v15483_v45 = vld [vmem:[#allocation47_spill] sm:$0xff]  ;;  %v4016_v47 = vmul.f32 %v13641_v36, %v3931_v50  ;;  %v3930_v61 = vmul.f32 %v13473_v23, %v15484_v8  ;;  %v4161_v46 = vmax.f32 %v4097_v57, 0.0  ;;  %v8677_v50 = vld [vmem:[%s15080_s5 + $0x1d8] ss:$28 sps:$4 sm:$0xff]  }
 0x55d   :  { %v3935_v63 = vmul.f32 %v13483_v7, %v15483_v45  ;;  %v4092_v54 = vadd.f32 %v13688_v40, %v4007_v43  ;;  %v4096_v10 = vadd.f32 %v13688_v40, %v4011_v31  ;;  %v15485_v43 = vld [vmem:[#allocation41_spill] sm:$0xff] }
 0x55e   :  { %v3934_v31 = vmul.f32 %v13473_v23, %v15485_v43  ;;  %v4015_v57 = vmul.f32 %v13673_v37, %v3930_v61  ;;  %v4207_v43 = vmax.f32 %v4143_v16, 0.0  ;;  %v4138_v16 = vadd.f32 %v13471_v22, %v13754_v62 }
 0x55f   :  { %5542 = vmatpush1.bf16.msra.mxu0 %v8662_v5  ;;  %5768 = vmatpush1.bf16.msra.mxu1 %v8665_v52  ;;  %v4020_v41 = vmul.f32 %v13641_v36, %v3935_v63  ;;  %v4156_v17 = vmax.f32 %v4092_v54, 0.0  ;;  %v4160_v3 = vmax.f32 %v4096_v10, 0.0  ;;  %v8676_v5 = vld [vmem:[%s15080_s5 + $0x14] ss:$28 sps:$4 sm:$0xff]   ;;  %v4101_v52 = vadd.f32 %v13684_v55, %v4016_v47 }
 0x560   :  { %5543 = vmatprep.subr.bf16.mxu0 %v8670_v58  ;;  %5769 = vmatprep.subr.bf16.mxu1 %v8673_v12  ;;  %v4203_v58 = vmax.f32 %v13720_v18, 0.0  ;;  %v13812_v12 = vpack.c.bf16 %v4161_v46, %v4157_v39  ;;  %v4019_v45 = vmul.f32 %v13673_v37, %v3934_v31  ;;  %v4057_v47 = vmul.f32 %v13447_v25, %v13735_v27  ;;  %v15486_v46 = vld [vmem:[#allocation42_spill] sm:$0xff]  ;;  %v15487_v27 = vld [vmem:[#allocation43_spill] sm:$0xff] }
 0x561   :  { %5487 = vmatmul.mubr.bf16.gmra.mrb[80].mxu0 %v13704_v19  ;;  %5713 = vmatmul.mubr.bf16.gmra.mrb[80].mxu1 %v13704_v19  ;;  %v4105_v10 = vadd.f32 %v13684_v55, %v4020_v41  ;;  %v13820_v63 = vpack.c.bf16 %v4160_v3, %v4156_v17  ;;  %v4165_v54 = vmax.f32 %v4101_v52, 0.0  ;;  %v4100_v8 = vadd.f32 %v13688_v40, %v4015_v57 }
 0x562   :  { %5496 = vmatprep.mubr.bf16.mxu0 %v13731_v6  ;;  %5722 = vmatprep.mubr.bf16.mxu1 %v13731_v6  ;;  %v4066_v18 = vmul.f32 %v13453_v60, %v13692_v56  ;;  %v4104_v61 = vadd.f32 %v13688_v40, %v4019_v45  ;;  %v3938_v41 = vmul.f32 %v13473_v23, %v15486_v46 }
 0x563   :  { %5544 = vmatpush1.bf16.msra.mxu0 %v8668_v20  ;;  %5770 = vmatpush1.bf16.msra.mxu1 %v8671_v53  ;;  %v4169_v39 = vmax.f32 %v4105_v10, 0.0  ;;  %v4062_v31 = vmul.f32 %v13453_v60, %v3977_v34  ;;  %v4164_v25 = vmax.f32 %v4100_v8, 0.0  ;;  %v3942_v17 = vmul.f32 %v13473_v23, %v15487_v27 }
 0x564   :  { %5866 = vmatprep.subr.bf16.mxu0 %v8676_v5  ;;  %7533 = vmatprep.subr.bf16.mxu1 %v8677_v50  ;;  %v4168_v56 = vmax.f32 %v4104_v61, 0.0  ;;  %v4023_v20 = vmul.f32 %v13673_v37, %v3938_v41  ;;  %v15488_v53 = vmax.f32 %v13707_v32, 0.0  ;;  %v4142_v60 = vadd.f32 %v13471_v22, %v4057_v47 }
 0x565   :  { %v13831_v3 = vpack.c.bf16 %v4169_v39, %v4165_v54  ;;  %v4027_v34 = vmul.f32 %v13673_v37, %v3942_v17  ;;  %v4151_v5 = vadd.f32 %v13457_v42, %v4066_v18  ;;  %v3946_v10 = vmul.f32 %v13473_v23, %v13126_v59 }
 0x566   :  { %v13836_v52 = vpack.c.bf16 %v4198_v44, %v15488_v53  ;;  %v13843_v50 = vpack.c.bf16 %v4168_v56, %v4164_v25  ;;  %v4108_v57 = vadd.f32 %v13688_v40, %v4023_v20  ;;  %v13848_v45 = vpack.c.bf16 %v4207_v43, %v4203_v58 }
 0x567   :  { %v4147_v32 = vadd.f32 %v13457_v42, %v4062_v31  ;;  %v4112_v44 = vadd.f32 %v13688_v40, %v4027_v34  ;;  %v3950_v62 = vmul.f32 %v13473_v23, %v13133_v48  ;;  %v4031_v47 = vmul.f32 %v13673_v37, %v3946_v10 }
 0x568   :  { %v4172_v22 = vmax.f32 %v4108_v57, 0.0  ;;  %v4202_v59 = vmax.f32 %v4138_v16, 0.0  ;;  %v4206_v54 = vmax.f32 %v4142_v60, 0.0  ;;  %v4215_v42 = vmax.f32 %v4151_v5, 0.0 }
 0x569   :  { %5497 = vmatmul.mubr.bf16.gmra.mrb[84].mxu0 %v13836_v52  ;;  %5723 = vmatmul.mubr.bf16.gmra.mrb[84].mxu1 %v13836_v52  ;;  %v4176_v58 = vmax.f32 %v4112_v44, 0.0  ;;  %v4035_v8 = vmul.f32 %v13673_v37, %v3950_v62  ;;  %v4116_v18 = vadd.f32 %v13688_v40, %v4031_v47  ;;  %v4211_v39 = vmax.f32 %v4147_v32, 0.0  ;;  %v15489_v47 = vld [vmem:[#allocation48_spill] sm:$0xff] }
 0x56a   :  { %5506 = vmatprep.mubr.bf16.mxu0 %v13848_v45  ;;  %5732 = vmatprep.mubr.bf16.mxu1 %v13848_v45  ;;  %v3954_v48 = vmul.f32 %v13473_v23, %v13140_v14  ;;  %v3958_v46 = vmul.f32 %v13473_v23, %v13147_v21  ;;  %v13870_v27 = vpack.c.bf16 %v4206_v54, %v4202_v59 }
 0x56b   :  { %v13861_v61 = vpack.c.bf16 %v4176_v58, %v4172_v22  ;;  %v4120_v41 = vadd.f32 %v13688_v40, %v4035_v8  ;;  %v4180_v43 = vmax.f32 %v4116_v18, 0.0  ;;  %v13872_v56 = vpack.c.bf16 %v4215_v42, %v4211_v39  ;;  %v15490_v42 = vld [vmem:[#allocation49_spill] sm:$0xff] }
 0x56c   :  { %v4039_v31 = vmul.f32 %v13673_v37, %v3954_v48  ;;  %v4043_v25 = vmul.f32 %v13673_v37, %v3958_v46  ;;  %v3962_v14 = vmul.f32 %v13473_v23, %v15448_v13  ;;  %v3966_v16 = vmul.f32 %v13473_v23, %v15450_v11 }
 0x56d   :  { %v4184_v17 = vmax.f32 %v4120_v41, 0.0  ;;  %v3970_v44 = vmul.f32 %v13473_v23, %v15452_v9  ;;  %v3974_v22 = vmul.f32 %v13473_v23, %v15454_v30  ;;  %v3979_v62 = vmul.f32 %v13483_v7, %v13279_v29 }
 0x56e   :  { %v4124_v20 = vadd.f32 %v13688_v40, %v4039_v31  ;;  %v4128_v53 = vadd.f32 %v13688_v40, %v4043_v25  ;;  %v4047_v5 = vmul.f32 %v13673_v37, %v3962_v14  ;;  %v4051_v57 = vmul.f32 %v13673_v37, %v3966_v16 }
 0x56f   :  { %v13880_v21 = vpack.c.bf16 %v4184_v17, %v4180_v43  ;;  %v3939_v59 = vmul.f32 %v13483_v7, %v15489_v47  ;;  %v4055_v54 = vmul.f32 %v13673_v37, %v3970_v44  ;;  %v3943_v8 = vmul.f32 %v13483_v7, %v15490_v42  ;;  %v8685_v44 = vld [vmem:[%s15080_s5 + $0x210] ss:$28 sps:$4 sm:$0xff]  }
 0x570   :  { %v4188_v60 = vmax.f32 %v4124_v20, 0.0  ;;  %v4192_v34 = vmax.f32 %v4128_v53, 0.0  ;;  %v4132_v10 = vadd.f32 %v13688_v40, %v4047_v5  ;;  %v4136_v32 = vadd.f32 %v13688_v40, %v4051_v57  ;;  %v8674_v5 = vld [vmem:[%s15080_s5 + $0x10] ss:$28 sps:$4 sm:$0xff]  }
 0x571   :  { %5507 = vmatmul.mubr.bf16.gmra.mrb[88].mxu0 %v13870_v27  ;;  %5733 = vmatmul.mubr.bf16.gmra.mrb[88].mxu1 %v13870_v27  ;;  %v4059_v18 = vmul.f32 %v13673_v37, %v3974_v22  ;;  %v4064_v9 = vmul.f32 %v13641_v36, %v3979_v62  ;;  %v4068_v39 = vmul.f32 %v13641_v36, %v13495_v1 }
 0x572   :  { %5516 = vmatprep.mubr.bf16.mxu0 %v13872_v56  ;;  %5742 = vmatprep.mubr.bf16.mxu1 %v13872_v56  ;;  %v13888_v13 = vpack.c.bf16 %v4192_v34, %v4188_v60  ;;  %v4196_v11 = vmax.f32 %v4132_v10, 0.0  ;;  %v4200_v58 = vmax.f32 %v4136_v32, 0.0  ;;  %v4140_v30 = vadd.f32 %v13688_v40, %v4055_v54  ;;  %v8681_v10 = vld [vmem:[%s15080_s5 + $0x4c] ss:$28 sps:$4 sm:$0xff]  }
 0x573   :  { %v3978_v48 = vmul.f32 %v13473_v23, %v15456_v51  ;;  %v4144_v46 = vadd.f32 %v13688_v40, %v4059_v18  ;;  %v4149_v1 = vadd.f32 %v13684_v55, %v4064_v9  ;;  %v4153_v41 = vadd.f32 %v13684_v55, %v4068_v39  ;;  %v8693_v9 = vld [vmem:[%s15080_s5 + $0x248] ss:$28 sps:$4 sm:$0xff]   ;;  %v8682_v39 = vld [vmem:[%s15080_s5 + $0x80] ss:$28 sps:$4 sm:$0xff]  }
 0x574   :  { %v13909_v29 = vpack.c.bf16 %v4200_v58, %v4196_v11  ;;  %v4024_v43 = vmul.f32 %v13641_v36, %v3939_v59  ;;  %v4204_v31 = vmax.f32 %v4140_v30, 0.0  ;;  %v4067_v51 = vmul.f32 %v13673_v37, %v13487_v33  ;;  %v8678_v33 = vld [vmem:[%s15080_s5 + $0x18] ss:$28 sps:$4 sm:$0xff]   ;;  %v15491_v11 = vld [vmem:[#allocation50_spill] sm:$0xff] }
 0x575   :  { %v4063_v25 = vmul.f32 %v13673_v37, %v3978_v48  ;;  %v4028_v23 = vmul.f32 %v13641_v36, %v3943_v8  ;;  %v4208_v17 = vmax.f32 %v4144_v46, 0.0  ;;  %v4213_v20 = vmax.f32 %v4149_v1, 0.0  ;;  %v8679_v59 = vld [vmem:[%s15080_s5 + $0x48] ss:$28 sps:$4 sm:$0xff]   ;;  %v15493_v1 = vld [vmem:[#allocation52_spill] sm:$0xff] }
 0x576   :  { %v4217_v53 = vmax.f32 %v4153_v41, 0.0  ;;  %v4152_v16 = vadd.f32 %v13688_v40, %v4067_v51  ;;  %v3947_v22 = vmul.f32 %v13483_v7, %v15491_v11  ;;  %v3951_v62 = vmul.f32 %v13483_v7, %v13137_v38  ;;  %v8686_v38 = vld [vmem:[%s15080_s5 + $0x50] ss:$28 sps:$4 sm:$0xff]   ;;  %v8684_v58 = vld [vmem:[%s15080_s5 + $0x84] ss:$28 sps:$4 sm:$0xff]  }
 0x577   :  { %v4148_v14 = vadd.f32 %v13688_v40, %v4063_v25  ;;  %v13928_v60 = vpack.c.bf16 %v4208_v17, %v4204_v31  ;;  %v4109_v40 = vadd.f32 %v13684_v55, %v4024_v43  ;;  %v4113_v32 = vadd.f32 %v13684_v55, %v4028_v23  ;;  %v8694_v30 = vld [vmem:[%s15080_s5 + $0x88] ss:$28 sps:$4 sm:$0xff]   ;;  %v8689_v31 = vld [vmem:[%s15080_s5 + $0xbc] ss:$28 sps:$4 sm:$0xff]  }
 0x578   :  { %v13930_v34 = vpack.c.bf16 %v4217_v53, %v4213_v20  ;;  %v4216_v57 = vmax.f32 %v4152_v16, 0.0  ;;  %v4032_v8 = vmul.f32 %v13641_v36, %v3947_v22  ;;  %v4036_v18 = vmul.f32 %v13641_v36, %v3951_v62  ;;  %v15492_v48 = vld [vmem:[#allocation51_spill] sm:$0xff]  ;;  %v8701_v23 = vld [vmem:[%s15080_s5 + $0x280] ss:$28 sps:$4 sm:$0xff]   ;;  %v8687_v17 = vld [vmem:[%s15080_s5 + $0xb8] ss:$28 sps:$4 sm:$0xff]  }
 0x579   :  { %5517 = vmatmul.mubr.bf16.gmra.mrb[92].mxu0 %v13781_v26  ;;  %5743 = vmatmul.mubr.bf16.gmra.mrb[92].mxu1 %v13781_v26  ;;  %v4212_v37 = vmax.f32 %v4148_v14, 0.0  ;;  %v4173_v54 = vmax.f32 %v4109_v40, 0.0  ;;  %v4177_v42 = vmax.f32 %v4113_v32, 0.0  ;;  %v3955_v46 = vmul.f32 %v13483_v7, %v15492_v48  ;;  %v8702_v14 = vld [vmem:[%s15080_s5 + $0xc0] ss:$28 sps:$4 sm:$0xff]   ;;  %v15494_v32 = vld [vmem:[#allocation7_spill] sm:$0xff] }
 0x57a   :  { %7309 = vmatprep.mubr.msk.bf16.mxu0 %vm555_vm0, %v13812_v12  ;;  %7317 = vmatprep.mubr.msk.bf16.mxu1 %vm555_vm0, %v13812_v12  ;;  %v3959_v41 = vmul.f32 %v13483_v7, %v15493_v1  ;;  %v4117_v25 = vadd.f32 %v13684_v55, %v4032_v8  ;;  %v4121_v51 = vadd.f32 %v13684_v55, %v4036_v18  ;;  %v8692_v16 = vld [vmem:[%s15080_s5 + $0xf4] ss:$28 sps:$4 sm:$0xff]   ;;  %v8697_v62 = vld [vmem:[%s15080_s5 + $0x12c] ss:$28 sps:$4 sm:$0xff]  }
 0x57b   :  { %v13952_v47 = vpack.c.bf16 %v4216_v57, %v4212_v37  ;;  %v13982_v43 = vpack.c.bf16 %v4177_v42, %v4173_v54  ;;  %v4040_v20 = vmul.f32 %v13641_v36, %v3955_v46  ;;  %v8709_v37 = vld [vmem:[%s15080_s5 + $0x2b8] ss:$28 sps:$4 sm:$0xff]   ;;  %v8690_v57 = vld [vmem:[%s15080_s5 + $0xf0] ss:$28 sps:$4 sm:$0xff]   ;;  %v8695_v54 = vld [vmem:[%s15080_s5 + $0x128] ss:$28 sps:$4 sm:$0xff]  }
 0x57c   :  { %v4044_v53 = vmul.f32 %v13641_v36, %v3959_v41  ;;  %v8710_v11 = vld [vmem:[%s15080_s5 + $0xf8] ss:$28 sps:$4 sm:$0xff]   ;;  %v8725_v48 = vld [vmem:[%s15080_s5 + $0x328] ss:$28 sps:$4 sm:$0xff]   ;;  %v8698_v46 = vld [vmem:[%s15080_s5 + $0x160] ss:$28 sps:$4 sm:$0xff]  }
 0x57e   :  { %v4129_v40 = vadd.f32 %v13684_v55, %v4044_v53 }
 0x580   :  { %v4193_v8 = vmax.f32 %v4129_v40, 0.0  ;;  %v8706_v40 = vld [vmem:[%s15080_s5 + $0x1d0] ss:$28 sps:$4 sm:$0xff]  }
 0x581   :  { %5560 = vmatmul.mubr.bf16.vlgmr.msra.gmra.mrb[64].mxu0 %v13820_v63  ;;  %5786 = vmatmul.mubr.bf16.vlgmr.msra.gmra.mrb[64].mxu1 %v13820_v63 }
 0x582   :  { %7310 = vmatprep.mubr.msk.bf16.mxu0 %vm555_vm0, %v13831_v3  ;;  %7318 = vmatprep.mubr.msk.bf16.mxu1 %vm555_vm0, %v13831_v3 }
 0x583   :  { %5867 = vmatpush1.bf16.msra.mxu0 %v8674_v5  ;;  %7534 = vmatpush3.bf16.msra.mxu1 %v8678_v33  ;;  %v4181_v5 = vmax.f32 %v4117_v25, 0.0  ;;  %v4185_v33 = vmax.f32 %v4121_v51, 0.0  ;;  %v8705_v25 = vld [vmem:[%s15080_s5 + $0x19c] ss:$28 sps:$4 sm:$0xff]  }
 0x584   :  { %5868 = vmatprep.subr.bf16.mxu0 %v8681_v10  ;;  %7535 = vmatprep.subr.bf16.mxu1 %v8685_v44  ;;  %v4125_v10 = vadd.f32 %v13684_v55, %v4040_v20  ;;  %v3963_v44 = vmul.f32 %v13483_v7, %v15494_v32  ;;  %v15497_v20 = vld [vmem:[#allocation30_spill] sm:$0xff] }
 0x585   :  { %v14022_v22 = vpack.c.bf16 %v4185_v33, %v4181_v5  ;;  %v3975_v53 = vmul.f32 %v13483_v7, %v15497_v20  ;;  %v8708_v5 = vld [vmem:[%s15080_s5 + $0x1d4] ss:$28 sps:$4 sm:$0xff]   ;;  %v15499_v20 = vld [vmem:[#allocation22_spill] sm:$0xff] }
 0x586   :  { %v4189_v42 = vmax.f32 %v4125_v10, 0.0  ;;  %v4048_v18 = vmul.f32 %v13641_v36, %v3963_v44  ;;  %v8713_v44 = vld [vmem:[%s15080_s5 + $0x20c] ss:$28 sps:$4 sm:$0xff]  }
 0x587   :  { %5869 = vmatpush1.bf16.msra.mxu0 %v8679_v59  ;;  %7536 = vmatpush3.bf16.msra.mxu1 %v8686_v38  ;;  %v15495_v59 = vld [vmem:[#allocation14_spill] sm:$0xff]  ;;  %v4060_v10 = vmul.f32 %v13641_v36, %v3975_v53 }
 0x588   :  { %5870 = vmatprep.subr.bf16.mxu0 %v8684_v58  ;;  %7537 = vmatprep.subr.bf16.mxu1 %v8693_v9  ;;  %v3967_v38 = vmul.f32 %v13483_v7, %v15495_v59  ;;  %v8717_v58 = vld [vmem:[%s15080_s5 + $0x2f0] ss:$28 sps:$4 sm:$0xff]   ;;  %v14055_v1 = vpack.c.bf16 %v4193_v8, %v4189_v42  ;;  %v4133_v41 = vadd.f32 %v13684_v55, %v4048_v18  ;;  %v15498_v59 = vmov 0   ;;  %v8721_v8 = vld [vmem:[%s15080_s5 + $0x27c] ss:$28 sps:$4 sm:$0xff]  }
 0x589   :  { %5570 = vmatmul.mubr.bf16.gmra.mrb[68].mxu0 %v13843_v50  ;;  %5796 = vmatmul.mubr.bf16.gmra.mrb[68].mxu1 %v13843_v50  ;;  %v8718_v9 = vld [vmem:[%s15080_s5 + $0x130] ss:$28 sps:$4 sm:$0xff]   ;;  %v8719_v18 = vld [vmem:[%s15080_s5 + $0x278] ss:$28 sps:$4 sm:$0xff]   ;;  %v8742_v53 = vld [vmem:[%s15080_s5 + $0x3c8] ss:$28 sps:$4 sm:$0xff]  }
 0x58a   :  { %7311 = vmatprep.mubr.msk.bf16.mxu0 %vm555_vm0, %v13982_v43  ;;  %7319 = vmatprep.mubr.msk.bf16.mxu1 %vm555_vm0, %v13982_v43  ;;  %v4197_v33 = vmax.f32 %v4133_v41, 0.0  ;;  %v8730_v41 = vld [vmem:[%s15080_s5 + $0x320] ss:$28 sps:$4 sm:$0xff]  }
 0x58b   :  { %5871 = vmatpush1.bf16.msra.mxu0 %v8682_v39  ;;  %7538 = vmatpush3.bf16.msra.mxu1 %v8694_v30  ;;  %v8700_v39 = vld [vmem:[%s15080_s5 + $0x164] ss:$28 sps:$4 sm:$0xff]   ;;  %v4052_v30 = vmul.f32 %v13641_v36, %v3967_v38 }
 0x58c   :  { %5872 = vmatprep.subr.bf16.mxu0 %v8689_v31  ;;  %7539 = vmatprep.subr.bf16.mxu1 %v8701_v23  ;;  %v8726_v31 = vld [vmem:[%s15080_s5 + $0x168] ss:$28 sps:$4 sm:$0xff]  }
 0x58d   :  { %v4137_v51 = vadd.f32 %v13684_v55, %v4052_v30  ;;  %v15496_v23 = vld [vmem:[#allocation26_spill] sm:$0xff]  ;;  %v8729_v30 = vld [vmem:[%s15080_s5 + $0x2ec] ss:$28 sps:$4 sm:$0xff]  }
 0x58f   :  { %5873 = vmatpush1.bf16.msra.mxu0 %v8687_v17  ;;  %7540 = vmatpush3.bf16.msra.mxu1 %v8702_v14  ;;  %v3971_v17 = vmul.f32 %v13483_v7, %v15496_v23  ;;  %v8733_v14 = vld [vmem:[%s15080_s5 + $0x360] ss:$28 sps:$4 sm:$0xff]   ;;  %v8703_v7 = vld [vmem:[%s15080_s5 + $0x198] ss:$28 sps:$4 sm:$0xff]   ;;  %v8738_v23 = vld [vmem:[%s15080_s5 + $0x390] ss:$28 sps:$4 sm:$0xff]  }
 0x590   :  { %5874 = vmatprep.subr.bf16.mxu0 %v8692_v16  ;;  %7541 = vmatprep.subr.bf16.mxu1 %v8709_v37  ;;  %v8734_v16 = vld [vmem:[%s15080_s5 + $0x1a0] ss:$28 sps:$4 sm:$0xff]   ;;  %v4201_v37 = vmax.f32 %v4137_v51, 0.0  ;;  %v8740_v51 = vld [vmem:[%s15080_s5 + $0x394] ss:$28 sps:$4 sm:$0xff]  }
 0x591   :  { %5580 = vmatmul.mubr.bf16.gmra.mrb[72].mxu0 %v13861_v61  ;;  %5806 = vmatmul.mubr.bf16.gmra.mrb[72].mxu1 %v13861_v61 }
 0x592   :  { %7312 = vmatprep.mubr.msk.bf16.mxu0 %vm555_vm0, %v14022_v22  ;;  %7320 = vmatprep.mubr.msk.bf16.mxu1 %vm555_vm0, %v14022_v22  ;;  %v14092_v32 = vpack.c.bf16 %v4201_v37, %v4197_v33  ;;  %v8750_v33 = vld [vmem:[%s15080_s5 + $0x438] ss:$28 sps:$4 sm:$0xff]   ;;  %v8753_v37 = vld [vmem:[%s15080_s5 + $0x440] ss:$28 sps:$4 sm:$0xff]  }
 0x593   :  { %5875 = vmatpush1.bf16.msra.mxu0 %v8690_v57  ;;  %7542 = vmatpush3.bf16.msra.mxu1 %v8710_v11  ;;  %v4056_v57 = vmul.f32 %v13641_v36, %v3971_v17  ;;  %v8711_v36 = vld [vmem:[%s15080_s5 + $0x208] ss:$28 sps:$4 sm:$0xff]  }
 0x594   :  { %5876 = vmatprep.subr.bf16.mxu0 %v8697_v62  ;;  %7543 = vmatprep.subr.bf16.mxu1 %v8717_v58  ;;  %v4145_v62 = vadd.f32 %v13684_v55, %v4060_v10  ;;  %v8744_v17 = vld [vmem:[%s15080_s5 + $0x3cc] ss:$28 sps:$4 sm:$0xff]  }
 0x595   :  { %v4141_v11 = vadd.f32 %v13684_v55, %v4056_v57  ;;  %v8716_v55 = vld [vmem:[%s15080_s5 + $0x244] ss:$28 sps:$4 sm:$0xff]   ;;  %v8756_v57 = vld [vmem:[%s15080_s5 + $0x474] ss:$28 sps:$4 sm:$0xff]   ;;  %v8760_v10 = vld [vmem:[%s15080_s5 + $0x4ac] ss:$28 sps:$4 sm:$0xff]  }
 0x596   :  { %v4209_v58 = vmax.f32 %v4145_v62, 0.0  ;;  %v8768_v62 = vld [vmem:[%s15080_s5 + $0x51c] ss:$28 sps:$4 sm:$0xff]  }
 0x597   :  { %5877 = vmatpush1.bf16.msra.mxu0 %v8695_v54  ;;  %7544 = vmatpush3.bf16.msra.mxu1 %v8718_v9  ;;  %v4205_v38 = vmax.f32 %v4141_v11, 0.0  ;;  %v8714_v54 = vld [vmem:[%s15080_s5 + $0x240] ss:$28 sps:$4 sm:$0xff]   ;;  %v8724_v9 = vld [vmem:[%s15080_s5 + $0x2b4] ss:$28 sps:$4 sm:$0xff]  }
 0x598   :  { %5878 = vmatprep.subr.bf16.mxu0 %v8700_v39  ;;  %7545 = vmatprep.subr.bf16.mxu1 %v8725_v48  ;;  %v8722_v39 = vld [vmem:[%s15080_s5 + $0x2b0] ss:$28 sps:$4 sm:$0xff]   ;;  %v8727_v48 = vld [vmem:[%s15080_s5 + $0x2e8] ss:$28 sps:$4 sm:$0xff]  }
 0x599   :  { %5590 = vmatmul.mubr.bf16.gmra.mrb[76].mxu0 %v13880_v21  ;;  %5816 = vmatmul.mubr.bf16.gmra.mrb[76].mxu1 %v13880_v21  ;;  %v14115_v42 = vpack.c.bf16 %v4209_v58, %v4205_v38  ;;  %v8764_v11 = vld [vmem:[%s15080_s5 + $0x4e4] ss:$28 sps:$4 sm:$0xff]   ;;  %v8772_v38 = vld [vmem:[%s15080_s5 + $0x554] ss:$28 sps:$4 sm:$0xff]  }
 0x59a   :  { %7313 = vmatprep.mubr.msk.bf16.mxu0 %vm555_vm0, %v14055_v1  ;;  %7321 = vmatprep.mubr.msk.bf16.mxu1 %vm555_vm0, %v14055_v1 }
 0x59b   :  { %5879 = vmatpush1.bf16.msra.mxu0 %v8698_v46  ;;  %7546 = vmatpush3.bf16.msra.mxu1 %v8726_v31  ;;  %v8732_v46 = vld [vmem:[%s15080_s5 + $0x324] ss:$28 sps:$4 sm:$0xff]   ;;  %v8737_v31 = vld [vmem:[%s15080_s5 + $0x35c] ss:$28 sps:$4 sm:$0xff]  }
 0x59c   :  { %5880 = vmatprep.subr.bf16.mxu0 %v8705_v25  ;;  %7547 = vmatprep.subr.bf16.mxu1 %v8733_v14  ;;  %v8735_v25 = vld [vmem:[%s15080_s5 + $0x358] ss:$28 sps:$4 sm:$0xff]   ;;  %v8745_v14 = vld [vmem:[%s15080_s5 + $0x3d0] ss:$28 sps:$4 sm:$0xff]  }
 0x59f   :  { %5881 = vmatpush1.bf16.msra.mxu0 %v8703_v7  ;;  %7548 = vmatpush3.bf16.msra.mxu1 %v8734_v16  ;;  %v8748_v7 = vld [vmem:[%s15080_s5 + $0x404] ss:$28 sps:$4 sm:$0xff]  }
 0x5a0   :  { %5882 = vmatprep.subr.bf16.mxu0 %v8708_v5  ;;  %6189 = vmatprep.subr.bf16.mxu1 %v15498_v59  ;;  %v8749_v16 = vld [vmem:[%s15080_s5 + $0x408] ss:$28 sps:$4 sm:$0xff]   ;;  %v8752_v5 = vld [vmem:[%s15080_s5 + $0x43c] ss:$28 sps:$4 sm:$0xff]  }
 0x5a1   :  { %5600 = vmatmul.mubr.bf16.gmra.mrb[80].mxu0 %v13888_v13  ;;  %5826 = vmatmul.mubr.bf16.gmra.mrb[80].mxu1 %v13888_v13 }
 0x5a2   :  { %7314 = vmatprep.mubr.msk.bf16.mxu0 %vm555_vm0, %v14092_v32  ;;  %7322 = vmatprep.mubr.msk.bf16.mxu1 %vm555_vm0, %v14092_v32 }
 0x5a3   :  { %5883 = vmatpush1.bf16.msra.mxu0 %v8706_v40  ;;  %v8758_v40 = vld [vmem:[%s15080_s5 + $0x4a8] ss:$28 sps:$4 sm:$0xff]  }
 0x5a4   :  { %5884 = vmatprep.subr.bf16.mxu0 %v8713_v44  ;;  %v8761_v44 = vld [vmem:[%s15080_s5 + $0x4b0] ss:$28 sps:$4 sm:$0xff]  }
 0x5a7   :  { %5885 = vmatpush1.bf16.msra.mxu0 %v8711_v36  ;;  %v8766_v36 = vld [vmem:[%s15080_s5 + $0x518] ss:$28 sps:$4 sm:$0xff]  }
 0x5a8   :  { %5886 = vmatprep.subr.bf16.mxu0 %v8716_v55  ;;  %v8769_v55 = vld [vmem:[%s15080_s5 + $0x520] ss:$28 sps:$4 sm:$0xff]  }
 0x5a9   :  { %5610 = vmatmul.mubr.bf16.gmra.mrb[84].mxu0 %v13909_v29  ;;  %5836 = vmatmul.mubr.bf16.gmra.mrb[84].mxu1 %v13909_v29 }
 0x5aa   :  { %7315 = vmatprep.mubr.msk.bf16.mxu0 %vm555_vm0, %v14115_v42  ;;  %7323 = vmatprep.mubr.msk.bf16.mxu1 %vm555_vm0, %v14115_v42 }
 0x5ab   :  { %5887 = vmatpush1.bf16.msra.mxu0 %v8714_v54 }
 0x5ac   :  { %5888 = vmatprep.subr.bf16.mxu0 %v8721_v8 }
 0x5af   :  { %5889 = vmatpush1.bf16.msra.mxu0 %v8719_v18 }
 0x5b0   :  { %5890 = vmatprep.subr.bf16.mxu0 %v8724_v9 }
 0x5b1   :  { %5620 = vmatmul.mubr.bf16.gmra.mrb[88].mxu0 %v13928_v60  ;;  %5846 = vmatmul.mubr.bf16.gmra.mrb[88].mxu1 %v13928_v60 }
 0x5b2   :  { %7316 = vmatprep.mubr.msk.bf16.mxu0 %vm555_vm0, %v13930_v34  ;;  %7324 = vmatprep.mubr.msk.bf16.mxu1 %vm555_vm0, %v13930_v34 }
 0x5b3   :  { %5891 = vmatpush1.bf16.msra.mxu0 %v8722_v39 }
 0x5b4   :  { %5892 = vmatprep.subr.bf16.mxu0 %v8729_v30 }
 0x5b7   :  { %5893 = vmatpush1.bf16.msra.mxu0 %v8727_v48 }
 0x5b8   :  { %5894 = vmatprep.subr.bf16.mxu0 %v8732_v46 }
 0x5b9   :  { %5630 = vmatmul.mubr.bf16.gmra.mrb[92].mxu0 %v13952_v47  ;;  %5856 = vmatmul.mubr.bf16.gmra.mrb[92].mxu1 %v13952_v47 }
 0x5ba   :  { %5898 = vmatprep.mubr.bf16.mxu0 %v13515_v24  ;;  %6124 = vmatprep.mubr.bf16.mxu1 %v13515_v24  ;;  %v8741_v24 = vld [vmem:[%s15080_s5 + $0x398] ss:$28 sps:$4 sm:$0xff]  }
 0x5bb   :  { %5895 = vmatpush1.bf16.msra.mxu0 %v8730_v41 }
 0x5bc   :  { %5896 = vmatprep.subr.bf16.mxu0 %v8737_v31 }
 0x5bf   :  { %5897 = vmatpush1.bf16.msra.mxu0 %v8735_v25 }
 0x5c0   :  { %5979 = vmatprep.subr.bf16.mxu0 %v8740_v51 }
 0x5c1   :  { %6125 = vmatmul.mubr.bf16.vlgmr.msra.gmra.mrb[96].mxu1 %v13511_v49 }
 0x5c2   :  { %5899 = vmatmul.mubr.bf16.vlgmr.msra.gmra.mrb[96].mxu0 %v13511_v49  ;;  %6132 = vmatprep.mubr.bf16.mxu1 %v15499_v20  ;;  %v8746_v49 = vld [vmem:[%s15080_s5 + $0x400] ss:$28 sps:$4 sm:$0xff]  }
 0x5c3   :  { %5908 = vmatprep.mubr.bf16.mxu0 %v15499_v20  ;;  %5980 = vmatpush1.bf16.msra.mxu0 %v8738_v23 }
 0x5c4   :  { %6190 = vmatpush1.bf16.msra.mxu1 %v8741_v24  ;;  %5981 = vmatprep.subr.bf16.mxu0 %v8744_v17 }
 0x5c5   :  { %6191 = vmatprep.subr.bf16.mxu1 %v15498_v59 }
 0x5c7   :  { %5982 = vmatpush1.bf16.msra.mxu0 %v8742_v53 }
 0x5c8   :  { %6192 = vmatpush1.bf16.msra.mxu1 %v8745_v14  ;;  %5983 = vmatprep.subr.bf16.mxu0 %v8748_v7 }
 0x5c9   :  { %6133 = vmatmul.mubr.bf16.gmra.mrb[100].mxu1 %v13581_v2  ;;  %6193 = vmatprep.subr.bf16.mxu1 %v15498_v59 }
 0x5ca   :  { %5909 = vmatmul.mubr.bf16.gmra.mrb[100].mxu0 %v13581_v2  ;;  %6140 = vmatprep.mubr.bf16.mxu1 %v13591_v4  ;;  %v8754_v2 = vld [vmem:[%s15080_s5 + $0x470] ss:$28 sps:$4 sm:$0xff]  }
 0x5cb   :  { %5918 = vmatprep.mubr.bf16.mxu0 %v13591_v4  ;;  %5984 = vmatpush1.bf16.msra.mxu0 %v8746_v49  ;;  %v8757_v4 = vld [vmem:[%s15080_s5 + $0x478] ss:$28 sps:$4 sm:$0xff]  }
 0x5cc   :  { %6194 = vmatpush1.bf16.msra.mxu1 %v8749_v16  ;;  %5985 = vmatprep.subr.bf16.mxu0 %v8752_v5 }
 0x5cd   :  { %6195 = vmatprep.subr.bf16.mxu1 %v15498_v59 }
 0x5cf   :  { %5986 = vmatpush1.bf16.msra.mxu0 %v8750_v33 }
 0x5d0   :  { %6196 = vmatpush1.bf16.msra.mxu1 %v8753_v37  ;;  %5987 = vmatprep.subr.bf16.mxu0 %v8756_v57 }
 0x5d1   :  { %6141 = vmatmul.mubr.bf16.gmra.mrb[104].mxu1 %v13643_v15  ;;  %6197 = vmatprep.subr.bf16.mxu1 %v15498_v59 }
 0x5d2   :  { %5919 = vmatmul.mubr.bf16.gmra.mrb[104].mxu0 %v13643_v15  ;;  %6148 = vmatprep.mubr.bf16.mxu1 %v13645_v35  ;;  %v8762_v15 = vld [vmem:[%s15080_s5 + $0x4e0] ss:$28 sps:$4 sm:$0xff]  }
 0x5d3   :  { %5928 = vmatprep.mubr.bf16.mxu0 %v13645_v35  ;;  %5988 = vmatpush1.bf16.msra.mxu0 %v8754_v2  ;;  %v8765_v35 = vld [vmem:[%s15080_s5 + $0x4e8] ss:$28 sps:$4 sm:$0xff]  }
 0x5d4   :  { %6198 = vmatpush1.bf16.msra.mxu1 %v8757_v4  ;;  %5989 = vmatprep.subr.bf16.mxu0 %v8760_v10 }
 0x5d5   :  { %6199 = vmatprep.subr.bf16.mxu1 %v15498_v59 }
 0x5d7   :  { %5990 = vmatpush1.bf16.msra.mxu0 %v8758_v40 }
 0x5d8   :  { %6200 = vmatpush1.bf16.msra.mxu1 %v8761_v44  ;;  %5991 = vmatprep.subr.bf16.mxu0 %v8764_v11 }
 0x5d9   :  { %6149 = vmatmul.mubr.bf16.gmra.mrb[108].mxu1 %v13694_v0  ;;  %6201 = vmatprep.subr.bf16.mxu1 %v15498_v59 }
 0x5da   :  { %5929 = vmatmul.mubr.bf16.gmra.mrb[108].mxu0 %v13694_v0  ;;  %6156 = vmatprep.mubr.bf16.mxu1 %v13702_v28  ;;  %v8770_v0 = vld [vmem:[%s15080_s5 + $0x550] ss:$28 sps:$4 sm:$0xff]  }
 0x5db   :  { %5938 = vmatprep.mubr.bf16.mxu0 %v13702_v28  ;;  %5992 = vmatpush1.bf16.msra.mxu0 %v8762_v15  ;;  %v8773_v28 = vld [vmem:[%s15080_s5 + $0x558] ss:$28 sps:$4 sm:$0xff]  }
 0x5dc   :  { %6202 = vmatpush1.bf16.msra.mxu1 %v8765_v35  ;;  %5993 = vmatprep.subr.bf16.mxu0 %v8768_v62 }
 0x5dd   :  { %6203 = vmatprep.subr.bf16.mxu1 %v15498_v59 }
 0x5df   :  { %5994 = vmatpush1.bf16.msra.mxu0 %v8766_v36 }
 0x5e0   :  { %6204 = vmatpush1.bf16.msra.mxu1 %v8769_v55  ;;  %5995 = vmatprep.subr.bf16.mxu0 %v8772_v38 }
 0x5e1   :  { %6157 = vmatmul.mubr.bf16.gmra.mrb[112].mxu1 %v13704_v19  ;;  %6205 = vmatprep.subr.bf16.mxu1 %v15498_v59 }
 0x5e2   :  { %5939 = vmatmul.mubr.bf16.gmra.mrb[112].mxu0 %v13704_v19  ;;  %6164 = vmatprep.mubr.bf16.mxu1 %v13731_v6  ;;  %v7132_v19 = vld [vmem:[%s15075_s6 + $0x6] ss:$8 sm:$0xf] }
 0x5e3   :  { %5948 = vmatprep.mubr.bf16.mxu0 %v13731_v6  ;;  %5996 = vmatpush1.bf16.msra.mxu0 %v8770_v0  ;;  %v7133_v6 = vld [vmem:[%s15075_s6 + $0x6] ss:$8 sm:$0x70] }
 0x5e4   :  { %6206 = vmatpush1.bf16.msra.mxu1 %v8773_v28 }
 0x5e9   :  { %6165 = vmatmul.mubr.bf16.gmra.mrb[116].mxu1 %v13836_v52 }
 0x5ea   :  { %5949 = vmatmul.mubr.bf16.gmra.mrb[116].mxu0 %v13836_v52  ;;  %6172 = vmatprep.mubr.bf16.mxu1 %v13848_v45 }
 0x5eb   :  { %5958 = vmatprep.mubr.bf16.mxu0 %v13848_v45 }
 0x5f1   :  { %6173 = vmatmul.mubr.bf16.gmra.mrb[120].mxu1 %v13870_v27 }
 0x5f2   :  { %5959 = vmatmul.mubr.bf16.gmra.mrb[120].mxu0 %v13870_v27  ;;  %6180 = vmatprep.mubr.bf16.mxu1 %v13872_v56 }
 0x5f3   :  { %5968 = vmatprep.mubr.bf16.mxu0 %v13872_v56 }
 0x5f9   :  { %6181 = vmatmul.mubr.bf16.gmra.mrb[124].mxu1 %v13781_v26 }
 0x5fa   :  { %5969 = vmatmul.mubr.bf16.gmra.mrb[124].mxu0 %v13781_v26  ;;  %7333 = vmatprep.mubr.msk.bf16.mxu1 %vm555_vm0, %v13812_v12  ;;  %v14336_v26 = vor.u32 %v7133_v6, %v7132_v19 }
 0x5fb   :  { %7325 = vmatprep.mubr.msk.bf16.mxu0 %vm555_vm0, %v13812_v12  ;;  %v15500_v12 = vld [vmem:[#allocation3_spill] sm:$0xff] }
 0x601   :  { %6222 = vmatmul.mubr.bf16.vlgmr.msra.gmra.mrb[128].mxu1 %v13820_v63 }
 0x602   :  { %6012 = vmatmul.mubr.bf16.vlgmr.msra.gmra.mrb[96].mxu0 %v13820_v63  ;;  %7334 = vmatprep.mubr.msk.bf16.mxu1 %vm555_vm0, %v13831_v3  ;;  %v14340_v63 = vrot.slane %v14336_v26, %v15500_v12 }
 0x603   :  { %7326 = vmatprep.mubr.msk.bf16.mxu0 %vm555_vm0, %v13831_v3  ;;  %v15501_v3 = vld [vmem:[#allocation5_spill] sm:$0xff] }
 0x604   :  { %v14344_v52 = vrot.slane %v14336_v26, %v15501_v3 }
 0x609   :  { %6230 = vmatmul.mubr.bf16.gmra.mrb[132].mxu1 %v13843_v50 }
 0x60a   :  { %6022 = vmatmul.mubr.bf16.gmra.mrb[100].mxu0 %v13843_v50  ;;  %7335 = vmatprep.mubr.msk.bf16.mxu1 %vm555_vm0, %v13982_v43  ;;  %v15502_v50 = vld [vmem:[#allocation6_spill] sm:$0xff] }
 0x60b   :  { %7327 = vmatprep.mubr.msk.bf16.mxu0 %vm555_vm0, %v13982_v43  ;;  %v14348_v45 = vrot.slane %v14336_v26, %v15502_v50 }
 0x611   :  { %6238 = vmatmul.mubr.bf16.gmra.mrb[136].mxu1 %v13861_v61 }
 0x612   :  { %6032 = vmatmul.mubr.bf16.gmra.mrb[104].mxu0 %v13861_v61  ;;  %7336 = vmatprep.mubr.msk.bf16.mxu1 %vm555_vm0, %v14022_v22  ;;  %v15503_v61 = vld [vmem:[#allocation4_spill] sm:$0xff] }
 0x613   :  { %7328 = vmatprep.mubr.msk.bf16.mxu0 %vm555_vm0, %v14022_v22  ;;  %v14352_v27 = vrot.slane %v14336_v26, %v15503_v61 }
 0x619   :  { %6246 = vmatmul.mubr.bf16.gmra.mrb[140].mxu1 %v13880_v21 }
 0x61a   :  { %6042 = vmatmul.mubr.bf16.gmra.mrb[108].mxu0 %v13880_v21  ;;  %7337 = vmatprep.mubr.msk.bf16.mxu1 %vm555_vm0, %v14055_v1 }
 0x61b   :  { %7329 = vmatprep.mubr.msk.bf16.mxu0 %vm555_vm0, %v14055_v1 }
 0x621   :  { %6254 = vmatmul.mubr.bf16.gmra.mrb[144].mxu1 %v13888_v13 }
 0x622   :  { %6052 = vmatmul.mubr.bf16.gmra.mrb[112].mxu0 %v13888_v13  ;;  %7338 = vmatprep.mubr.msk.bf16.mxu1 %vm555_vm0, %v14092_v32 }
 0x623   :  { %7330 = vmatprep.mubr.msk.bf16.mxu0 %vm555_vm0, %v14092_v32 }
 0x629   :  { %6262 = vmatmul.mubr.bf16.gmra.mrb[148].mxu1 %v13909_v29 }
 0x62a   :  { %6062 = vmatmul.mubr.bf16.gmra.mrb[116].mxu0 %v13909_v29  ;;  %7339 = vmatprep.mubr.msk.bf16.mxu1 %vm555_vm0, %v14115_v42 }
 0x62b   :  { %7331 = vmatprep.mubr.msk.bf16.mxu0 %vm555_vm0, %v14115_v42 }
 0x631   :  { %6270 = vmatmul.mubr.bf16.gmra.mrb[152].mxu1 %v13928_v60 }
 0x632   :  { %6072 = vmatmul.mubr.bf16.gmra.mrb[120].mxu0 %v13928_v60  ;;  %7340 = vmatprep.mubr.msk.bf16.mxu1 %vm555_vm0, %v13930_v34 }
 0x633   :  { %7332 = vmatprep.mubr.msk.bf16.mxu0 %vm555_vm0, %v13930_v34 }
 0x639   :  { %6278 = vmatmul.mubr.bf16.gmra.mrb[156].mxu1 %v13952_v47 }
 0x63a   :  { %6082 = vmatmul.mubr.bf16.gmra.mrb[124].mxu0 %v13952_v47 }
 0x654   :  { %v5561_v56 = vpop.f32.mrb[64].mxu0  ;;  %v5787_v21 = vpop.f32.mrb[64].mxu1 }
 0x655   :  { %v8112_v13 = vadd.f32 %v5561_v56, %v14340_v63  ;;  %v8144_v29 = vadd.f32 %v5787_v21, %v14344_v52  ;;  %v5563_v60 = vpop.f32.mrb[65].mxu0  ;;  %v5789_v34 = vpop.f32.mrb[65].mxu1 }
 0x656   :  { %v8113_v47 = vadd.f32 %v5563_v60, %v14348_v45  ;;  %v8145_v43 = vadd.f32 %v5789_v34, %v14352_v27  ;;  %v5565_v22 = vpop.f32.mrb[66].mxu0  ;;  %v5791_v1 = vpop.f32.mrb[66].mxu1 }
 0x657   :  { %v7341_v32 = vmul.f32 -1.442695, %v8112_v13  ;;  %v7343_v59 = vmul.f32 -1.442695, %v8144_v29  ;;  %v8114_v58 = vadd.f32 %v5565_v22, %v14340_v63  ;;  %v8146_v54 = vadd.f32 %v5791_v1, %v14344_v52  ;;  %v5567_v42 = vpop.f32.mrb[67].mxu0  ;;  %v5793_v8 = vpop.f32.mrb[67].mxu1 }
 0x658   :  { %v7342_v18 = vmul.f32 -1.442695, %v8113_v47  ;;  %v7344_v9 = vmul.f32 -1.442695, %v8145_v43  ;;  %v8115_v39 = vadd.f32 %v5567_v42, %v14348_v45  ;;  %v8147_v30 = vadd.f32 %v5793_v8, %v14352_v27 }
 0x659   :  { %8822 = vpow2.f32 %v7341_v32  ;;  %v7348_v48 = vmul.f32 -1.442695, %v8114_v58  ;;  %v7350_v46 = vmul.f32 -1.442695, %v8146_v54 }
 0x65a   :  { %8824 = vpow2.f32 %v7343_v59  ;;  %v7349_v41 = vmul.f32 -1.442695, %v8115_v39  ;;  %v7351_v31 = vmul.f32 -1.442695, %v8147_v30 }
 0x65b   :  { %8826 = vpow2.f32 %v7342_v18 }
 0x65c   :  { %8828 = vpow2.f32 %v7344_v9  ;;  %v5571_v25 = vpop.f32.mrb[68].mxu0  ;;  %v5797_v51 = vpop.f32.mrb[68].mxu1 }
 0x65d   :  { %8830 = vpow2.f32 %v7348_v48  ;;  %v8116_v23 = vadd.f32 %v5571_v25, %v14340_v63  ;;  %v8148_v24 = vadd.f32 %v5797_v51, %v14344_v52  ;;  %v5573_v17 = vpop.f32.mrb[69].mxu0  ;;  %v5799_v20 = vpop.f32.mrb[69].mxu1 }
 0x65e   :  { %8832 = vpow2.f32 %v7350_v46  ;;  %v8117_v53 = vadd.f32 %v5573_v17, %v14348_v45  ;;  %v8149_v14 = vadd.f32 %v5799_v20, %v14352_v27  ;;  %v5575_v7 = vpop.f32.mrb[70].mxu0  ;;  %v5801_v49 = vpop.f32.mrb[70].mxu1 }
 0x65f   :  { %8834 = vpow2.f32 %v7349_v41  ;;  %v7355_v16 = vmul.f32 -1.442695, %v8116_v23  ;;  %v7357_v5 = vmul.f32 -1.442695, %v8148_v24  ;;  %v8118_v33 = vadd.f32 %v5575_v7, %v14340_v63  ;;  %v5577_v37 = vpop.f32.mrb[71].mxu0  ;;  %v5803_v57 = vpop.f32.mrb[71].mxu1 }
 0x660   :  { %8836 = vpow2.f32 %v7351_v31  ;;  %v7356_v2 = vmul.f32 -1.442695, %v8117_v53  ;;  %v7358_v4 = vmul.f32 -1.442695, %v8149_v14  ;;  %v8150_v22 = vadd.f32 %v5801_v49, %v14344_v52 }
 0x661   :  { %8838 = vpow2.f32 %v7355_v16  ;;  %v7362_v10 = vmul.f32 -1.442695, %v8118_v33  ;;  %v8119_v59 = vadd.f32 %v5577_v37, %v14348_v45  ;;  %v8151_v8 = vadd.f32 %v5803_v57, %v14352_v27 }
 0x662   :  { %8840 = vpow2.f32 %v7357_v5  ;;  %v7364_v51 = vmul.f32 -1.442695, %v8150_v22 }
 0x663   :  { %v8823_v40 = vpop.eup %8822  ;;  %8842 = vpow2.f32 %v7356_v2  ;;  %v7363_v14 = vmul.f32 -1.442695, %v8119_v59  ;;  %v7365_v5 = vmul.f32 -1.442695, %v8151_v8 }
 0x664   :  { %v8825_v44 = vpop.eup %8824  ;;  %v6622_v11 = vadd.f32 1.0, %v8823_v40  ;;  %8844 = vpow2.f32 %v7358_v4  ;;  %v5581_v15 = vpop.f32.mrb[72].mxu0 }
 0x665   :  { %v5807_v35 = vpop.f32.mrb[72].mxu1  ;;  %v8827_v62 = vpop.eup %8826  ;;  %v6624_v36 = vadd.f32 1.0, %v8825_v44  ;;  %8846 = vpow2.f32 %v7362_v10  ;;  %v8120_v48 = vadd.f32 %v5581_v15, %v14340_v63 }
 0x666   :  { %v5583_v55 = vpop.f32.mrb[73].mxu0  ;;  %v5809_v38 = vpop.f32.mrb[73].mxu1  ;;  %8848 = vrcp.f32 %v6622_v11  ;;  %v6623_v28 = vadd.f32 1.0, %v8827_v62  ;;  %v8152_v23 = vadd.f32 %v5807_v35, %v14344_v52 }
 0x667   :  { %v8829_v0 = vpop.eup %8828  ;;  %v5585_v19 = vpop.f32.mrb[74].mxu0  ;;  %8850 = vrcp.f32 %v6624_v36  ;;  %v8121_v7 = vadd.f32 %v5583_v55, %v14348_v45  ;;  %v8153_v33 = vadd.f32 %v5809_v38, %v14352_v27  ;;  %v7369_v57 = vmul.f32 -1.442695, %v8120_v48 }
 0x668   :  { %v14367_v6 = vpop.f32.mrb[74].mxu1  ;;  %v8831_v12 = vpop.eup %8830  ;;  %v6625_v3 = vadd.f32 1.0, %v8829_v0  ;;  %8852 = vrcp.f32 %v6623_v28  ;;  %v8122_v2 = vadd.f32 %v5585_v19, %v14340_v63  ;;  %v7371_v10 = vmul.f32 -1.442695, %v8152_v23 }
 0x669   :  { %v14369_v50 = vpop.f32.mrb[75].mxu0  ;;  %v8833_v61 = vpop.eup %8832  ;;  %v6629_v56 = vadd.f32 1.0, %v8831_v12  ;;  %v8154_v40 = vadd.f32 %v14367_v6, %v14344_v52  ;;  %v7370_v11 = vmul.f32 -1.442695, %v8121_v7  ;;  %v7372_v55 = vmul.f32 -1.442695, %v8153_v33 }
 0x66a   :  { %v14371_v21 = vpop.f32.mrb[75].mxu1  ;;  %v8835_v13 = vpop.eup %8834  ;;  %8854 = vrcp.f32 %v6625_v3  ;;  %v6631_v29 = vadd.f32 1.0, %v8833_v61  ;;  %v8123_v15 = vadd.f32 %v14369_v50, %v14348_v45  ;;  %v7376_v6 = vmul.f32 -1.442695, %v8122_v2 }
 0x66b   :  { %v8837_v60 = vpop.eup %8836  ;;  %8856 = vrcp.f32 %v6629_v56  ;;  %v6630_v34 = vadd.f32 1.0, %v8835_v13  ;;  %v8155_v38 = vadd.f32 %v14371_v21, %v14352_v27  ;;  %v7378_v56 = vmul.f32 -1.442695, %v8154_v40 }
 0x66c   :  { %v8839_v47 = vpop.eup %8838  ;;  %8858 = vrcp.f32 %v6631_v29  ;;  %v6632_v43 = vadd.f32 1.0, %v8837_v60  ;;  %v5591_v58 = vpop.f32.mrb[76].mxu0 }
 0x66d   :  { %v8841_v1 = vpop.eup %8840  ;;  %8860 = vrcp.f32 %v6630_v34  ;;  %v6636_v32 = vadd.f32 1.0, %v8839_v47  ;;  %v5817_v18 = vpop.f32.mrb[76].mxu1  ;;  %v8124_v12 = vadd.f32 %v5591_v58, %v14340_v63  ;;  %v7377_v34 = vmul.f32 -1.442695, %v8123_v15 }
 0x66e   :  { %v8843_v54 = vpop.eup %8842  ;;  %8862 = vrcp.f32 %v6632_v43  ;;  %v6638_v42 = vadd.f32 1.0, %v8841_v1  ;;  %v14376_v9 = vpop.f32.mrb[77].mxu0  ;;  %v8156_v21 = vadd.f32 %v5817_v18, %v14344_v52  ;;  %v7379_v43 = vmul.f32 -1.442695, %v8155_v38 }
 0x66f   :  { %v8845_v39 = vpop.eup %8844  ;;  %8864 = vrcp.f32 %v6636_v32  ;;  %v6637_v30 = vadd.f32 1.0, %v8843_v54  ;;  %v14379_v46 = vpop.f32.mrb[77].mxu1  ;;  %v7383_v32 = vmul.f32 -1.442695, %v8124_v12 }
 0x670   :  { %v14381_v41 = vpop.f32.mrb[78].mxu0  ;;  %v8847_v31 = vpop.eup %8846  ;;  %8866 = vrcp.f32 %v6638_v42  ;;  %v6639_v25 = vadd.f32 1.0, %v8845_v39  ;;  %v7385_v58 = vmul.f32 -1.442695, %v8156_v21  ;;  %v8157_v2 = vadd.f32 %v14379_v46, %v14352_v27 }
 0x671   :  { %v14384_v24 = vpop.f32.mrb[78].mxu1  ;;  %v14386_v17 = vpop.f32.mrb[79].mxu0  ;;  %8868 = vrcp.f32 %v6637_v30  ;;  %v6643_v53 = vadd.f32 1.0, %v8847_v31 }
 0x672   :  { %v8849_v20 = vpop.eup %8848  ;;  %v14389_v49 = vpop.f32.mrb[79].mxu1  ;;  %8870 = vrcp.f32 %v6639_v25 }
 0x673   :  { %v8851_v16 = vpop.eup %8850  ;;  %6958 = vst [vmem:[%s15081_s7] sm:$0xff] %v8849_v20  ;;  %8872 = vrcp.f32 %v6643_v53 }
 0x674   :  { %v8853_v37 = vpop.eup %8852  ;;  %6960 = vst [vmem:[%s15081_s7 + $0x10] sm:$0xff] %v8851_v16  ;;  %8874 = vpow2.f32 %v7364_v51  ;;  %v14409_v35 = vpop.f32.mrb[80].mxu0 }
 0x675   :  { %v8855_v4 = vpop.eup %8854  ;;  %6959 = vst [vmem:[%s15081_s7 + $0x8] sm:$0xff] %v8853_v37  ;;  %8876 = vpow2.f32 %v7363_v14  ;;  %v14411_v62 = vpop.f32.mrb[80].mxu1 }
 0x676   :  { %v8857_v44 = vpop.eup %8856  ;;  %6961 = vst [vmem:[%s15081_s7 + $0x18] sm:$0xff] %v8855_v4  ;;  %8878 = vpow2.f32 %v7365_v5  ;;  %v14418_v0 = vpop.f32.mrb[81].mxu0  ;;  %v8125_v5 = vadd.f32 %v14376_v9, %v14348_v45 }
 0x677   :  { %v8859_v36 = vpop.eup %8858  ;;  %6965 = vst [vmem:[%s15081_s7 + $0x38] sm:$0xff] %v8857_v44  ;;  %v14420_v28 = vpop.f32.mrb[81].mxu1  ;;  %8880 = vpow2.f32 %v7369_v57 }
 0x678   :  { %v8861_v19 = vpop.eup %8860  ;;  %6967 = vst [vmem:[%s15081_s7 + $0x48] sm:$0xff] %v8859_v36  ;;  %v14426_v3 = vpop.f32.mrb[82].mxu0  ;;  %8882 = vpow2.f32 %v7371_v10 }
 0x679   :  { %v14428_v50 = vpop.f32.mrb[82].mxu1  ;;  %v8863_v61 = vpop.eup %8862  ;;  %6966 = vst [vmem:[%s15081_s7 + $0x40] sm:$0xff] %v8861_v19  ;;  %8884 = vpow2.f32 %v7370_v11  ;;  %v7384_v19 = vmul.f32 -1.442695, %v8125_v5 }
 0x67a   :  { %v14434_v13 = vpop.f32.mrb[83].mxu0  ;;  %v5833_v29 = vpop.f32.mrb[83].mxu1  ;;  %6968 = vst [vmem:[%s15081_s7 + $0x50] sm:$0xff] %v8863_v61  ;;  %8886 = vpow2.f32 %v7372_v55  ;;  %v14485_v61 = vmul.f32 -1.442695, %v8157_v2 }
 0x67b   :  { %v8865_v60 = vpop.eup %8864  ;;  %v14443_v22 = vadd.f32 %v5833_v29, %v14352_v27  ;;  %8888 = vpow2.f32 %v7376_v6 }
 0x67c   :  { %v8867_v47 = vpop.eup %8866  ;;  %6972 = vst [vmem:[%s15081_s7 + $0x70] sm:$0xff] %v8865_v60  ;;  %8890 = vpow2.f32 %v7378_v56  ;;  %v5611_v42 = vpop.f32.mrb[84].mxu0  ;;  %v8126_v56 = vadd.f32 %v14381_v41, %v14340_v63 }
 0x67d   :  { %v8869_v1 = vpop.eup %8868  ;;  %6974 = vst [vmem:[%s15081_s7 + $0x80] sm:$0xff] %v8867_v47  ;;  %8892 = vpow2.f32 %v7377_v34  ;;  %v5837_v8 = vpop.f32.mrb[84].mxu1  ;;  %v14458_v39 = vadd.f32 %v5611_v42, %v14340_v63  ;;  %v8158_v34 = vadd.f32 %v14384_v24, %v14344_v52  ;;  %v8127_v24 = vadd.f32 %v14386_v17, %v14348_v45 }
 0x67e   :  { %v8871_v59 = vpop.eup %8870  ;;  %6973 = vst [vmem:[%s15081_s7 + $0x78] sm:$0xff] %v8869_v1  ;;  %8894 = vpow2.f32 %v7379_v43  ;;  %v14461_v30 = vadd.f32 %v5837_v8, %v14344_v52  ;;  %v5613_v48 = vpop.f32.mrb[85].mxu0 }
 0x67f   :  { %v8873_v54 = vpop.eup %8872  ;;  %6975 = vst [vmem:[%s15081_s7 + $0x88] sm:$0xff] %v8871_v59  ;;  %v5839_v31 = vpop.f32.mrb[85].mxu1  ;;  %8896 = vpow2.f32 %v7383_v32  ;;  %v14464_v23 = vadd.f32 %v5613_v48, %v14348_v45 }
 0x680   :  { %v8875_v18 = vpop.eup %8874  ;;  %6979 = vst [vmem:[%s15081_s7 + $0xa8] sm:$0xff] %v8873_v54  ;;  %v14467_v20 = vadd.f32 %v5839_v31, %v14352_v27  ;;  %v5615_v53 = vpop.f32.mrb[86].mxu0  ;;  %8898 = vpow2.f32 %v7385_v58 }
 0x681   :  { %v8877_v25 = vpop.eup %8876  ;;  %v6645_v51 = vadd.f32 1.0, %v8875_v18  ;;  %v5841_v14 = vpop.f32.mrb[86].mxu1  ;;  %v14474_v44 = vadd.f32 %v5615_v53, %v14340_v63 }
 0x682   :  { %v8879_v7 = vpop.eup %8878  ;;  %v6644_v16 = vadd.f32 1.0, %v8877_v25  ;;  %v5617_v33 = vpop.f32.mrb[87].mxu0  ;;  %v14477_v11 = vadd.f32 %v5841_v14, %v14344_v52  ;;  %v7390_v14 = vmul.f32 -1.442695, %v8126_v56 }
 0x683   :  { %v8881_v37 = vpop.eup %8880  ;;  %8900 = vrcp.f32 %v6645_v51  ;;  %v6646_v57 = vadd.f32 1.0, %v8879_v7  ;;  %v5843_v4 = vpop.f32.mrb[87].mxu1  ;;  %v14480_v36 = vadd.f32 %v5617_v33, %v14348_v45  ;;  %v8159_v7 = vadd.f32 %v14389_v49, %v14352_v27 }
 0x684   :  { %v8883_v10 = vpop.eup %8882  ;;  %8902 = vrcp.f32 %v6644_v16  ;;  %v6650_v40 = vadd.f32 1.0, %v8881_v37  ;;  %v14483_v55 = vadd.f32 %v5843_v4, %v14352_v27  ;;  %v5621_v21 = vpop.f32.mrb[88].mxu0  ;;  %v8128_v37 = vadd.f32 %v14409_v35, %v14340_v63 }
 0x685   :  { %v8885_v15 = vpop.eup %8884  ;;  %8904 = vrcp.f32 %v6646_v57  ;;  %v6652_v9 = vadd.f32 1.0, %v8883_v10  ;;  %v14492_v47 = vadd.f32 %v5621_v21, %v14340_v63  ;;  %v5847_v43 = vpop.f32.mrb[88].mxu1  ;;  %v8160_v35 = vadd.f32 %v14411_v62, %v14344_v52 }
 0x686   :  { %v8887_v46 = vpop.eup %8886  ;;  %8906 = vrcp.f32 %v6650_v40  ;;  %v6651_v38 = vadd.f32 1.0, %v8885_v15  ;;  %v5623_v1 = vpop.f32.mrb[89].mxu0  ;;  %v14495_v58 = vadd.f32 %v5847_v43, %v14344_v52  ;;  %v7392_v40 = vmul.f32 -1.442695, %v8158_v34 }
 0x687   :  { %v8889_v6 = vpop.eup %8888  ;;  %8908 = vrcp.f32 %v6652_v9  ;;  %v6653_v12 = vadd.f32 1.0, %v8887_v46  ;;  %v14498_v41 = vadd.f32 %v5623_v1, %v14348_v45  ;;  %v5849_v54 = vpop.f32.mrb[89].mxu1  ;;  %v7391_v46 = vmul.f32 -1.442695, %v8127_v24 }
 0x688   :  { %v8891_v29 = vpop.eup %8890  ;;  %8910 = vrcp.f32 %v6651_v38  ;;  %v6657_v60 = vadd.f32 1.0, %v8889_v6  ;;  %v5625_v42 = vpop.f32.mrb[90].mxu0  ;;  %v14503_v48 = vadd.f32 %v5849_v54, %v14352_v27  ;;  %v7393_v38 = vmul.f32 -1.442695, %v8159_v7 }
 0x689   :  { %v8893_v32 = vpop.eup %8892  ;;  %8912 = vrcp.f32 %v6653_v12  ;;  %v6659_v59 = vadd.f32 1.0, %v8891_v29  ;;  %v5851_v31 = vpop.f32.mrb[90].mxu1  ;;  %v14510_v17 = vadd.f32 %v5625_v42, %v14340_v63  ;;  %v8129_v6 = vadd.f32 %v14418_v0, %v14348_v45 }
 0x68a   :  { %v8895_v8 = vpop.eup %8894  ;;  %8914 = vrcp.f32 %v6657_v60  ;;  %v6658_v18 = vadd.f32 1.0, %v8893_v32  ;;  %v5627_v25 = vpop.f32.mrb[91].mxu0  ;;  %v14513_v4 = vadd.f32 %v5851_v31, %v14344_v52  ;;  %v8161_v62 = vadd.f32 %v14420_v28, %v14352_v27 }
 0x68b   :  { %v8897_v51 = vpop.eup %8896  ;;  %8916 = vrcp.f32 %v6659_v59  ;;  %v6660_v53 = vadd.f32 1.0, %v8895_v8  ;;  %v5853_v16 = vpop.f32.mrb[91].mxu1  ;;  %v14516_v10 = vadd.f32 %v5627_v25, %v14348_v45  ;;  %v7397_v1 = vmul.f32 -1.442695, %v8128_v37 }
 0x68c   :  { %v8899_v5 = vpop.eup %8898  ;;  %8918 = vrcp.f32 %v6658_v18  ;;  %v6664_v33 = vadd.f32 1.0, %v8897_v51  ;;  %v14524_v15 = vadd.f32 %v5853_v16, %v14352_v27  ;;  %v5631_v12 = vpop.f32.mrb[92].mxu0  ;;  %v7399_v42 = vmul.f32 -1.442695, %v8160_v35 }
 0x68d   :  { %v8901_v57 = vpop.eup %8900  ;;  %8920 = vrcp.f32 %v6660_v53  ;;  %v6666_v2 = vadd.f32 1.0, %v8899_v5  ;;  %v5857_v56 = vpop.f32.mrb[92].mxu1  ;;  %v14537_v29 = vadd.f32 %v5631_v12, %v14340_v63  ;;  %v8130_v8 = vadd.f32 %v14426_v3, %v14340_v63 }
 0x68e   :  { %v8903_v49 = vpop.eup %8902  ;;  %6981 = vst [vmem:[%s15081_s7 + $0xb8] sm:$0xff] %v8901_v57  ;;  %8922 = vrcp.f32 %v6664_v33  ;;  %v14540_v60 = vadd.f32 %v5857_v56, %v14344_v52  ;;  %v5633_v34 = vpop.f32.mrb[93].mxu0  ;;  %v7398_v25 = vmul.f32 -1.442695, %v8129_v6  ;;  %v8162_v51 = vadd.f32 %v14428_v50, %v14344_v52 }
 0x68f   :  { %v8905_v9 = vpop.eup %8904  ;;  %6980 = vst [vmem:[%s15081_s7 + $0xb0] sm:$0xff] %v8903_v49  ;;  %8924 = vrcp.f32 %v6666_v2  ;;  %v5859_v43 = vpop.f32.mrb[93].mxu1 }
 0x690   :  { %v8907_v21 = vpop.eup %8906  ;;  %6982 = vst [vmem:[%s15081_s7 + $0xc0] sm:$0xff] %v8905_v9  ;;  %8926 = vpow2.f32 %v7384_v19  ;;  %v14547_v19 = vadd.f32 %v5633_v34, %v14348_v45  ;;  %v14550_v28 = vadd.f32 %v5859_v43, %v14352_v27  ;;  %v5635_v32 = vpop.f32.mrb[94].mxu0 }
 0x691   :  { %v8909_v0 = vpop.eup %8908  ;;  %6986 = vst [vmem:[%s15081_s7 + $0xe0] sm:$0xff] %v8907_v21  ;;  %8928 = vpow2.f32 %v14485_v61  ;;  %v5861_v59 = vpop.f32.mrb[94].mxu1  ;;  %v14558_v61 = vadd.f32 %v5635_v32, %v14340_v63  ;;  %v8131_v63 = vadd.f32 %v14434_v13, %v14348_v45  ;;  %v7404_v13 = vmul.f32 -1.442695, %v8130_v8 }
 0x692   :  { %v8911_v54 = vpop.eup %8910  ;;  %6988 = vst [vmem:[%s15081_s7 + $0xf0] sm:$0xff] %v8909_v0  ;;  %8930 = vpow2.f32 %v7390_v14  ;;  %v5637_v18 = vpop.f32.mrb[95].mxu0  ;;  %v14566_v53 = vadd.f32 %v5861_v59, %v14344_v52  ;;  %v7400_v52 = vmul.f32 -1.442695, %v8161_v62 }
 0x693   :  { %v5863_v24 = vpop.f32.mrb[95].mxu1  ;;  %v8913_v31 = vpop.eup %8912  ;;  %6987 = vst [vmem:[%s15081_s7 + $0xe8] sm:$0xff] %v8911_v54  ;;  %8932 = vpow2.f32 %v7392_v40  ;;  %v14574_v3 = vadd.f32 %v5637_v18, %v14348_v45  ;;  %v7406_v45 = vmul.f32 -1.442695, %v8162_v51  ;;  %v7405_v37 = vmul.f32 -1.442695, %v8131_v63 }
 0x694   :  { %v8915_v14 = vpop.eup %8914  ;;  %6989 = vst [vmem:[%s15081_s7 + $0xf8] sm:$0xff] %v8913_v31  ;;  %8934 = vpow2.f32 %v7391_v46  ;;  %v14577_v7 = vadd.f32 %v5863_v24, %v14352_v27  ;;  %v7549_v27 = vpop.f32.mrb[96].mxu1 }
 0x695   :  { %v8917_v16 = vpop.eup %8916  ;;  %6993 = vst [vmem:[%s15081_s7 + $0x118] sm:$0xff] %v8915_v14  ;;  %8936 = vpow2.f32 %v7393_v38  ;;  %v7550_v57 = vpop.f32.mrb[97].mxu1 }
 0x696   :  { %v8919_v50 = vpop.eup %8918  ;;  %6995 = vst [vmem:[%s15081_s7 + $0x128] sm:$0xff] %v8917_v16  ;;  %8938 = vpow2.f32 %v7397_v1  ;;  %v14594_v49 = vadd.f32 %v7550_v57, %v7549_v27  ;;  %v7552_v40 = vpop.f32.mrb[98].mxu1 }
 0x697   :  { %v8921_v5 = vpop.eup %8920  ;;  %6994 = vst [vmem:[%s15081_s7 + $0x120] sm:$0xff] %v8919_v50  ;;  %8940 = vpow2.f32 %v7399_v42  ;;  %v7553_v9 = vpop.f32.mrb[99].mxu1 }
 0x698   :  { %v8923_v33 = vpop.eup %8922  ;;  %6996 = vst [vmem:[%s15081_s7 + $0x130] sm:$0xff] %v8921_v5  ;;  %8942 = vpow2.f32 %v7398_v25  ;;  %v14599_v6 = vadd.f32 %v7553_v9, %v7552_v40  ;;  %v7411_v40 = vmul.f32 -1.442695, %v14458_v39 }
 0x699   :  { %v8925_v2 = vpop.eup %8924  ;;  %7000 = vst [vmem:[%s15081_s7 + $0x150] sm:$0xff] %v8923_v33  ;;  %8944 = vpow2.f32 %v7400_v52 }
 0x69a   :  { %v8927_v35 = vpop.eup %8926  ;;  %7002 = vst [vmem:[%s15081_s7 + $0x160] sm:$0xff] %v8925_v2  ;;  %8946 = vpow2.f32 %v7404_v13 }
 0x69b   :  { %v8929_v46 = vpop.eup %8928  ;;  %v6665_v38 = vadd.f32 1.0, %v8927_v35  ;;  %8948 = vpow2.f32 %v7406_v45 }
 0x69c   :  { %v8931_v12 = vpop.eup %8930  ;;  %v6667_v56 = vadd.f32 1.0, %v8929_v46  ;;  %8950 = vpow2.f32 %v7405_v37  ;;  %v7555_v32 = vpop.f32.mrb[100].mxu1  ;;  %v7407_v37 = vmul.f32 -1.442695, %v14443_v22  ;;  %v7413_v46 = vmul.f32 -1.442695, %v14461_v30 }
 0x69d   :  { %v8933_v21 = vpop.eup %8932  ;;  %8952 = vrcp.f32 %v6665_v38  ;;  %v6671_v62 = vadd.f32 1.0, %v8931_v12  ;;  %v7556_v42 = vpop.f32.mrb[101].mxu1  ;;  %v7412_v22 = vmul.f32 -1.442695, %v14464_v23  ;;  %v7414_v30 = vmul.f32 -1.442695, %v14467_v20 }
 0x69e   :  { %v8935_v34 = vpop.eup %8934  ;;  %8954 = vrcp.f32 %v6667_v56  ;;  %v6673_v43 = vadd.f32 1.0, %v8933_v21  ;;  %v14601_v24 = vadd.f32 %v7556_v42, %v7555_v32  ;;  %v7558_v31 = vpop.f32.mrb[102].mxu1  ;;  %v7418_v23 = vmul.f32 -1.442695, %v14474_v44 }
 0x69f   :  { %v8937_v0 = vpop.eup %8936  ;;  %8956 = vrcp.f32 %v6671_v62  ;;  %v6672_v1 = vadd.f32 1.0, %v8935_v34  ;;  %v7559_v14 = vpop.f32.mrb[103].mxu1  ;;  %v7419_v32 = vmul.f32 -1.442695, %v14480_v36  ;;  %v7421_v44 = vmul.f32 -1.442695, %v14483_v55 }
 0x6a0   :  { %v8939_v59 = vpop.eup %8938  ;;  %8958 = vrcp.f32 %v6673_v43  ;;  %v6674_v54 = vadd.f32 1.0, %v8937_v0  ;;  %v14603_v52 = vadd.f32 %v7559_v14, %v7558_v31  ;;  %v7427_v36 = vmul.f32 -1.442695, %v14495_v58 }
 0x6a1   :  { %v8941_v8 = vpop.eup %8940  ;;  %8960 = vrcp.f32 %v6672_v1  ;;  %v6678_v18 = vadd.f32 1.0, %v8939_v59  ;;  %v7420_v1 = vmul.f32 -1.442695, %v14477_v11  ;;  %v7425_v11 = vmul.f32 -1.442695, %v14492_v47 }
 0x6a2   :  { %v8943_v25 = vpop.eup %8942  ;;  %8962 = vrcp.f32 %v6674_v54  ;;  %v6680_v51 = vadd.f32 1.0, %v8941_v8  ;;  %v7426_v55 = vmul.f32 -1.442695, %v14498_v41  ;;  %v7428_v58 = vmul.f32 -1.442695, %v14503_v48 }
 0x6a3   :  { %v8945_v63 = vpop.eup %8944  ;;  %8964 = vrcp.f32 %v6678_v18  ;;  %v6679_v16 = vadd.f32 1.0, %v8943_v25 }
 0x6a4   :  { %v8947_v50 = vpop.eup %8946  ;;  %8966 = vrcp.f32 %v6680_v51  ;;  %v6681_v13 = vadd.f32 1.0, %v8945_v63  ;;  %v7561_v35 = vpop.f32.mrb[104].mxu1 }
 0x6a5   :  { %v8949_v5 = vpop.eup %8948  ;;  %8968 = vrcp.f32 %v6679_v16  ;;  %v6685_v45 = vadd.f32 1.0, %v8947_v50  ;;  %v7562_v38 = vpop.f32.mrb[105].mxu1 }
 0x6a6   :  { %v8951_v27 = vpop.eup %8950  ;;  %8970 = vrcp.f32 %v6681_v13  ;;  %v6687_v33 = vadd.f32 1.0, %v8949_v5  ;;  %v14615_v56 = vadd.f32 %v7562_v38, %v7561_v35  ;;  %v7564_v39 = vpop.f32.mrb[106].mxu1 }
 0x6a7   :  { %v8953_v57 = vpop.eup %8952  ;;  %8972 = vrcp.f32 %v6685_v45  ;;  %v6686_v2 = vadd.f32 1.0, %v8951_v27  ;;  %v7565_v62 = vpop.f32.mrb[107].mxu1 }
 0x6a8   :  { %v8955_v9 = vpop.eup %8954  ;;  %7001 = vst [vmem:[%s15081_s7 + $0x158] sm:$0xff] %v8953_v57  ;;  %8974 = vrcp.f32 %v6687_v33  ;;  %v14625_v43 = vadd.f32 %v7565_v62, %v7564_v39 }
 0x6a9   :  { %v8957_v12 = vpop.eup %8956  ;;  %7003 = vst [vmem:[%s15081_s7 + $0x168] sm:$0xff] %v8955_v9  ;;  %8976 = vrcp.f32 %v6686_v2 }
 0x6aa   :  { %v8959_v21 = vpop.eup %8958  ;;  %7007 = vst [vmem:[%s15081_s7 + $0x188] sm:$0xff] %v8957_v12  ;;  %8978 = vpow2.f32 %v7407_v37 }
 0x6ab   :  { %v8961_v34 = vpop.eup %8960  ;;  %7009 = vst [vmem:[%s15081_s7 + $0x198] sm:$0xff] %v8959_v21  ;;  %8980 = vpow2.f32 %v7411_v40 }
 0x6ac   :  { %v8963_v0 = vpop.eup %8962  ;;  %7008 = vst [vmem:[%s15081_s7 + $0x190] sm:$0xff] %v8961_v34  ;;  %8982 = vpow2.f32 %v7413_v46  ;;  %v7567_v42 = vpop.f32.mrb[108].mxu1 }
 0x6ad   :  { %v8965_v20 = vpop.eup %8964  ;;  %7010 = vst [vmem:[%s15081_s7 + $0x1a0] sm:$0xff] %v8963_v0  ;;  %8984 = vpow2.f32 %v7412_v22  ;;  %v7568_v18 = vpop.f32.mrb[109].mxu1 }
 0x6ae   :  { %v8967_v59 = vpop.eup %8966  ;;  %7014 = vst [vmem:[%s15081_s7 + $0x1c0] sm:$0xff] %v8965_v20  ;;  %8986 = vpow2.f32 %v7414_v30  ;;  %v14651_v25 = vadd.f32 %v7568_v18, %v7567_v42  ;;  %v7570_v47 = vpop.f32.mrb[110].mxu1  ;;  %v7432_v42 = vmul.f32 -1.442695, %v14510_v17  ;;  %v7435_v17 = vmul.f32 -1.442695, %v14524_v15 }
 0x6af   :  { %v8969_v54 = vpop.eup %8968  ;;  %7016 = vst [vmem:[%s15081_s7 + $0x1d0] sm:$0xff] %v8967_v59  ;;  %8988 = vpow2.f32 %v7418_v23  ;;  %v7571_v14 = vpop.f32.mrb[111].mxu1 }
 0x6b0   :  { %v8971_v8 = vpop.eup %8970  ;;  %7015 = vst [vmem:[%s15081_s7 + $0x1c8] sm:$0xff] %v8969_v54  ;;  %8990 = vpow2.f32 %v7420_v1  ;;  %v14660_v16 = vadd.f32 %v7571_v14, %v7570_v47 }
 0x6b1   :  { %v8973_v31 = vpop.eup %8972  ;;  %7017 = vst [vmem:[%s15081_s7 + $0x1d8] sm:$0xff] %v8971_v8  ;;  %8992 = vpow2.f32 %v7419_v32 }
 0x6b2   :  { %v8975_v51 = vpop.eup %8974  ;;  %7021 = vst [vmem:[%s15081_s7 + $0x1f8] sm:$0xff] %v8973_v31  ;;  %8994 = vpow2.f32 %v7421_v44  ;;  %v7434_v31 = vmul.f32 -1.442695, %v14513_v4 }
 0x6b3   :  { %v8977_v63 = vpop.eup %8976  ;;  %7023 = vst [vmem:[%s15081_s7 + $0x208] sm:$0xff] %v8975_v51  ;;  %8996 = vpow2.f32 %v7425_v11 }
 0x6b4   :  { %v8979_v41 = vpop.eup %8978  ;;  %7022 = vst [vmem:[%s15081_s7 + $0x200] sm:$0xff] %v8977_v63  ;;  %8998 = vpow2.f32 %v7427_v36  ;;  %v7573_v33 = vpop.f32.mrb[112].mxu1 }
 0x6b5   :  { %v8981_v50 = vpop.eup %8980  ;;  %v6688_v13 = vadd.f32 1.0, %v8979_v41  ;;  %9000 = vpow2.f32 %v7426_v55  ;;  %v7574_v2 = vpop.f32.mrb[113].mxu1 }
 0x6b6   :  { %v8983_v5 = vpop.eup %8982  ;;  %v6692_v48 = vadd.f32 1.0, %v8981_v50  ;;  %9002 = vpow2.f32 %v7428_v58  ;;  %v14665_v9 = vadd.f32 %v7574_v2, %v7573_v33  ;;  %v7576_v46 = vpop.f32.mrb[114].mxu1  ;;  %v7433_v58 = vmul.f32 -1.442695, %v14516_v10 }
 0x6b7   :  { %v8985_v45 = vpop.eup %8984  ;;  %9004 = vrcp.f32 %v6688_v13  ;;  %v6694_v27 = vadd.f32 1.0, %v8983_v5  ;;  %v7577_v22 = vpop.f32.mrb[115].mxu1  ;;  %v7439_v50 = vmul.f32 -1.442695, %v14537_v29  ;;  %v7441_v13 = vmul.f32 -1.442695, %v14540_v60 }
 0x6b8   :  { %v8987_v37 = vpop.eup %8986  ;;  %9006 = vrcp.f32 %v6692_v48  ;;  %v6693_v57 = vadd.f32 1.0, %v8985_v45  ;;  %v14667_v30 = vadd.f32 %v7577_v22, %v7576_v46  ;;  %v15504_v5 = vld [vmem:[#allocation2_spill] sm:$0xff]  ;;  %v7440_v45 = vmul.f32 -1.442695, %v14547_v19 }
 0x6b9   :  { %v8989_v40 = vpop.eup %8988  ;;  %9008 = vrcp.f32 %v6694_v27  ;;  %v6695_v35 = vadd.f32 1.0, %v8987_v37  ;;  %v4481_v15 = vsub.s32 6, %v15504_v5  ;;  %v7442_v29 = vmul.f32 -1.442695, %v14550_v28 }
 0x6ba   :  { %v8991_v38 = vpop.eup %8990  ;;  %9010 = vrcp.f32 %v6693_v57  ;;  %v6699_v12 = vadd.f32 1.0, %v8989_v40  ;;  %v7446_v37 = vmul.f32 -1.442695, %v14558_v61  ;;  %v7448_v19 = vmul.f32 -1.442695, %v14566_v53 }
 0x6bb   :  { %v8993_v39 = vpop.eup %8992  ;;  %9012 = vrcp.f32 %v6695_v35  ;;  %v6701_v21 = vadd.f32 1.0, %v8991_v38  ;;  %v14709_v35 = vrot.slane %v14336_v26, %v4481_v15  ;;  %v7447_v61 = vmul.f32 -1.442695, %v14574_v3 }
 0x6bc   :  { %v8995_v62 = vpop.eup %8994  ;;  %9014 = vrcp.f32 %v6699_v12  ;;  %v6700_v34 = vadd.f32 1.0, %v8993_v39  ;;  %v7579_v44 = vpop.f32.mrb[116].mxu1  ;;  %v7449_v53 = vmul.f32 -1.442695, %v14577_v7 }
 0x6bd   :  { %v8997_v23 = vpop.eup %8996  ;;  %9016 = vrcp.f32 %v6701_v21  ;;  %v6702_v0 = vadd.f32 1.0, %v8995_v62  ;;  %v7580_v8 = vpop.f32.mrb[117].mxu1 }
 0x6be   :  { %v8999_v1 = vpop.eup %8998  ;;  %9018 = vrcp.f32 %v6700_v34  ;;  %v6706_v20 = vadd.f32 1.0, %v8997_v23  ;;  %v14671_v55 = vadd.f32 %v7580_v8, %v7579_v44  ;;  %v7582_v47 = vpop.f32.mrb[118].mxu1 }
 0x6bf   :  { %v9001_v32 = vpop.eup %9000  ;;  %9020 = vrcp.f32 %v6702_v0  ;;  %v6708_v59 = vadd.f32 1.0, %v8999_v1  ;;  %v7583_v14 = vpop.f32.mrb[119].mxu1 }
 0x6c0   :  { %v9003_v54 = vpop.eup %9002  ;;  %9022 = vrcp.f32 %v6706_v20  ;;  %v6707_v11 = vadd.f32 1.0, %v9001_v32  ;;  %v14681_v4 = vadd.f32 %v7583_v14, %v7582_v47 }
 0x6c1   :  { %v9005_v36 = vpop.eup %9004  ;;  %9024 = vrcp.f32 %v6708_v59  ;;  %v6709_v18 = vadd.f32 1.0, %v9003_v54 }
 0x6c2   :  { %v9007_v51 = vpop.eup %9006  ;;  %7024 = vst [vmem:[%s15081_s7 + $0x210] sm:$0xff] %v9005_v36  ;;  %9026 = vrcp.f32 %v6707_v11 }
 0x6c3   :  { %v9009_v63 = vpop.eup %9008  ;;  %7028 = vst [vmem:[%s15081_s7 + $0x230] sm:$0xff] %v9007_v51  ;;  %9028 = vrcp.f32 %v6709_v18 }
 0x6c4   :  { %v9011_v41 = vpop.eup %9010  ;;  %7030 = vst [vmem:[%s15081_s7 + $0x240] sm:$0xff] %v9009_v63  ;;  %9030 = vpow2.f32 %v7432_v42  ;;  %v7585_v33 = vpop.f32.mrb[120].mxu1  ;;  %v4473_v42 = vsub.s32 4, %v15504_v5 }
 0x6c5   :  { %v9013_v10 = vpop.eup %9012  ;;  %7029 = vst [vmem:[%s15081_s7 + $0x238] sm:$0xff] %v9011_v41  ;;  %9032 = vpow2.f32 %v7434_v31  ;;  %v7586_v57 = vpop.f32.mrb[121].mxu1  ;;  %v4477_v31 = vsub.s32 5, %v15504_v5 }
 0x6c6   :  { %v9015_v48 = vpop.eup %9014  ;;  %7031 = vst [vmem:[%s15081_s7 + $0x248] sm:$0xff] %v9013_v10  ;;  %9034 = vpow2.f32 %v7433_v58  ;;  %v7587_v40 = vadd.f32 %v7586_v57, %v7585_v33  ;;  %v7588_v28 = vpop.f32.mrb[122].mxu1  ;;  %v14740_v10 = vrot.slane %v14336_v26, %v4473_v42  ;;  %v6135_v42 = vadd.f32 %v14601_v24, %v14709_v35 }
 0x6c7   :  { %v9017_v27 = vpop.eup %9016  ;;  %7035 = vst [vmem:[%s15081_s7 + $0x268] sm:$0xff] %v9015_v48  ;;  %9036 = vpow2.f32 %v7435_v17  ;;  %v7589_v38 = vpop.f32.mrb[123].mxu1  ;;  %v6127_v48 = vadd.f32 %v14594_v49, %v14709_v35 }
 0x6c8   :  { %v9019_v60 = vpop.eup %9018  ;;  %7037 = vst [vmem:[%s15081_s7 + $0x278] sm:$0xff] %v9017_v27  ;;  %9038 = vpow2.f32 %v7439_v50  ;;  %v7590_v22 = vadd.f32 %v7589_v38, %v7588_v28  ;;  %v14720_v39 = vadd.f32 %v7587_v40, %v14709_v35 }
 0x6c9   :  { %v9021_v2 = vpop.eup %9020  ;;  %7036 = vst [vmem:[%s15081_s7 + $0x270] sm:$0xff] %v9019_v60  ;;  %9040 = vpow2.f32 %v7441_v13 }
 0x6ca   :  { %v9023_v46 = vpop.eup %9022  ;;  %7038 = vst [vmem:[%s15081_s7 + $0x280] sm:$0xff] %v9021_v2  ;;  %9042 = vpow2.f32 %v7440_v45  ;;  %v14729_v62 = vadd.f32 %v7590_v22, %v14709_v35  ;;  %v14748_v45 = vrot.slane %v14336_v26, %v4477_v31  ;;  %v6130_v26 = vadd.f32 %v14599_v6, %v14709_v35 }
 0x6cb   :  { %v9025_v12 = vpop.eup %9024  ;;  %7042 = vst [vmem:[%s15081_s7 + $0x2a0] sm:$0xff] %v9023_v46  ;;  %9044 = vpow2.f32 %v7442_v29 }
 0x6cc   :  { %v9027_v21 = vpop.eup %9026  ;;  %7044 = vst [vmem:[%s15081_s7 + $0x2b0] sm:$0xff] %v9025_v12  ;;  %9046 = vpow2.f32 %v7446_v37  ;;  %v7591_v0 = vpop.f32.mrb[124].mxu1 }
 0x6cd   :  { %v9029_v3 = vpop.eup %9028  ;;  %7043 = vst [vmem:[%s15081_s7 + $0x2a8] sm:$0xff] %v9027_v21  ;;  %9048 = vpow2.f32 %v7448_v19  ;;  %v7592_v32 = vpop.f32.mrb[125].mxu1 }
 0x6ce   :  { %v9031_v7 = vpop.eup %9030  ;;  %7045 = vst [vmem:[%s15081_s7 + $0x2b8] sm:$0xff] %v9029_v3  ;;  %9050 = vpow2.f32 %v7447_v61  ;;  %v7593_v54 = vadd.f32 %v7592_v32, %v7591_v0  ;;  %v7594_v11 = vpop.f32.mrb[126].mxu1 }
 0x6cf   :  { %v9033_v34 = vpop.eup %9032  ;;  %v6713_v23 = vadd.f32 1.0, %v9031_v7  ;;  %9052 = vpow2.f32 %v7449_v53  ;;  %v7595_v18 = vpop.f32.mrb[127].mxu1 }
 0x6d0   :  { %v9035_v1 = vpop.eup %9034  ;;  %v6715_v20 = vadd.f32 1.0, %v9033_v34  ;;  %v7596_v58 = vadd.f32 %v7595_v18, %v7594_v11  ;;  %v14737_v14 = vadd.f32 %v7593_v54, %v14709_v35 }
 0x6d1   :  { %v9037_v59 = vpop.eup %9036  ;;  %9054 = vrcp.f32 %v6713_v23  ;;  %v6714_v44 = vadd.f32 1.0, %v9035_v1 }
 0x6d2   :  { %v9039_v8 = vpop.eup %9038  ;;  %9056 = vrcp.f32 %v6715_v20  ;;  %v6716_v36 = vadd.f32 1.0, %v9037_v59  ;;  %v14743_v13 = vadd.f32 %v7596_v58, %v14709_v35  ;;  %v6138_v58 = vadd.f32 %v14603_v52, %v14709_v35 }
 0x6d3   :  { %v9041_v47 = vpop.eup %9040  ;;  %9058 = vrcp.f32 %v6714_v44  ;;  %v6720_v51 = vadd.f32 1.0, %v9039_v8 }
 0x6d4   :  { %v9043_v63 = vpop.eup %9042  ;;  %9060 = vrcp.f32 %v6716_v36  ;;  %v6722_v17 = vadd.f32 1.0, %v9041_v47  ;;  %v6223_v33 = vpop.f32.mrb[128].mxu1 }
 0x6d5   :  { %v9045_v41 = vpop.eup %9044  ;;  %9062 = vrcp.f32 %v6720_v51  ;;  %v6721_v50 = vadd.f32 1.0, %v9043_v63  ;;  %v6013_v57 = vpop.f32.mrb[96].mxu0  ;;  %v6224_v2 = vadd.f32 %v6223_v33, %v6127_v48 }
 0x6d6   :  { %v9047_v5 = vpop.eup %9046  ;;  %9064 = vrcp.f32 %v6722_v17  ;;  %v6723_v15 = vadd.f32 1.0, %v9045_v41  ;;  %v6225_v19 = vpop.f32.mrb[129].mxu1  ;;  %v8176_v46 = vadd.f32 %v6013_v57, %v14740_v10 }
 0x6d7   :  { %v9049_v27 = vpop.eup %9048  ;;  %9066 = vrcp.f32 %v6721_v50  ;;  %v6727_v29 = vadd.f32 1.0, %v9047_v5  ;;  %v6015_v61 = vpop.f32.mrb[97].mxu0  ;;  %v7347_v12 = vmul.f32 -1.442695, %v6224_v2 }
 0x6d8   :  { %v9051_v60 = vpop.eup %9050  ;;  %9068 = vrcp.f32 %v6723_v15  ;;  %v6729_v37 = vadd.f32 1.0, %v9049_v27  ;;  %v6226_v49 = vpop.f32.mrb[130].mxu1  ;;  %v8177_v53 = vadd.f32 %v6015_v61, %v14748_v45  ;;  %v7345_v7 = vmul.f32 -1.442695, %v8176_v46 }
 0x6d9   :  { %v9053_v40 = vpop.eup %9052  ;;  %9070 = vrcp.f32 %v6727_v29  ;;  %v6728_v28 = vadd.f32 1.0, %v9051_v60  ;;  %v6017_v22 = vpop.f32.mrb[98].mxu0  ;;  %v6227_v23 = vadd.f32 %v6226_v49, %v6130_v26  ;;  %v6143_v49 = vadd.f32 %v14615_v56, %v14709_v35 }
 0x6da   :  { %9072 = vrcp.f32 %v6729_v37  ;;  %v6730_v38 = vadd.f32 1.0, %v9053_v40  ;;  %v6228_v21 = vpop.f32.mrb[131].mxu1  ;;  %v8178_v34 = vadd.f32 %v6017_v22, %v14740_v10  ;;  %v6019_v0 = vpop.f32.mrb[99].mxu0  ;;  %v7346_v6 = vmul.f32 -1.442695, %v8177_v53 }
 0x6db   :  { %v9055_v3 = vpop.eup %9054  ;;  %9074 = vrcp.f32 %v6728_v28  ;;  %v8179_v20 = vadd.f32 %v6019_v0, %v14748_v45  ;;  %v7354_v44 = vmul.f32 -1.442695, %v6227_v23 }
 0x6dc   :  { %v9057_v1 = vpop.eup %9056  ;;  %7049 = vst [vmem:[%s15081_s7 + $0x2d8] sm:$0xff] %v9055_v3  ;;  %9076 = vrcp.f32 %v6730_v38  ;;  %v7352_v59 = vmul.f32 -1.442695, %v8178_v34  ;;  %v6231_v36 = vpop.f32.mrb[132].mxu1 }
 0x6dd   :  { %v9059_v32 = vpop.eup %9058  ;;  %7051 = vst [vmem:[%s15081_s7 + $0x2e8] sm:$0xff] %v9057_v1  ;;  %9078 = vpow2.f32 %v7345_v7  ;;  %v7353_v11 = vmul.f32 -1.442695, %v8179_v20  ;;  %v6023_v31 = vpop.f32.mrb[100].mxu0  ;;  %v6232_v47 = vadd.f32 %v6231_v36, %v6135_v42 }
 0x6de   :  { %v9061_v54 = vpop.eup %9060  ;;  %7050 = vst [vmem:[%s15081_s7 + $0x2e0] sm:$0xff] %v9059_v32  ;;  %9080 = vpow2.f32 %v7347_v12  ;;  %v6233_v51 = vpop.f32.mrb[133].mxu1  ;;  %v8180_v63 = vadd.f32 %v6023_v31, %v14740_v10 }
 0x6df   :  { %v9063_v8 = vpop.eup %9062  ;;  %7052 = vst [vmem:[%s15081_s7 + $0x2f0] sm:$0xff] %v9061_v54  ;;  %9082 = vpow2.f32 %v7346_v6  ;;  %v6025_v17 = vpop.f32.mrb[101].mxu0  ;;  %v7361_v5 = vmul.f32 -1.442695, %v6232_v47 }
 0x6e0   :  { %v9065_v18 = vpop.eup %9064  ;;  %7056 = vst [vmem:[%s15081_s7 + $0x310] sm:$0xff] %v9063_v8  ;;  %9084 = vpow2.f32 %v7352_v59  ;;  %v6234_v41 = vpop.f32.mrb[134].mxu1  ;;  %v8181_v15 = vadd.f32 %v6025_v17, %v14748_v45  ;;  %v7359_v33 = vmul.f32 -1.442695, %v8180_v63  ;;  %v6146_v59 = vadd.f32 %v14625_v43, %v14709_v35 }
 0x6e1   :  { %v9067_v24 = vpop.eup %9066  ;;  %7058 = vst [vmem:[%s15081_s7 + $0x320] sm:$0xff] %v9065_v18  ;;  %9086 = vpow2.f32 %v7354_v44  ;;  %v6027_v52 = vpop.f32.mrb[102].mxu0  ;;  %v6235_v48 = vadd.f32 %v6234_v41, %v6138_v58  ;;  %v6151_v58 = vadd.f32 %v14651_v25, %v14709_v35 }
 0x6e2   :  { %v9069_v50 = vpop.eup %9068  ;;  %7057 = vst [vmem:[%s15081_s7 + $0x318] sm:$0xff] %v9067_v24  ;;  %9088 = vpow2.f32 %v7353_v11  ;;  %v6236_v27 = vpop.f32.mrb[135].mxu1  ;;  %v8182_v60 = vadd.f32 %v6027_v52, %v14740_v10  ;;  %v7360_v2 = vmul.f32 -1.442695, %v8181_v15 }
 0x6e3   :  { %v9071_v29 = vpop.eup %9070  ;;  %7059 = vst [vmem:[%s15081_s7 + $0x328] sm:$0xff] %v9069_v50  ;;  %v6029_v37 = vpop.f32.mrb[103].mxu0  ;;  %9090 = vpow2.f32 %v7361_v5  ;;  %v7368_v19 = vmul.f32 -1.442695, %v6235_v48 }
 0x6e4   :  { %v9073_v57 = vpop.eup %9072  ;;  %7063 = vst [vmem:[%s15081_s7 + $0x348] sm:$0xff] %v9071_v29  ;;  %v8183_v40 = vadd.f32 %v6029_v37, %v14748_v45  ;;  %9092 = vpow2.f32 %v7359_v33  ;;  %v7366_v46 = vmul.f32 -1.442695, %v8182_v60  ;;  %v6239_v12 = vpop.f32.mrb[136].mxu1 }
 0x6e5   :  { %v9075_v28 = vpop.eup %9074  ;;  %7065 = vst [vmem:[%s15081_s7 + $0x358] sm:$0xff] %v9073_v57  ;;  %9094 = vpow2.f32 %v7360_v2  ;;  %v6033_v21 = vpop.f32.mrb[104].mxu0  ;;  %v6240_v3 = vadd.f32 %v6239_v12, %v6143_v49 }
 0x6e6   :  { %v9077_v61 = vpop.eup %9076  ;;  %7064 = vst [vmem:[%s15081_s7 + $0x350] sm:$0xff] %v9075_v28  ;;  %v7367_v26 = vmul.f32 -1.442695, %v8183_v40  ;;  %9096 = vpow2.f32 %v7366_v46  ;;  %v6241_v7 = vpop.f32.mrb[137].mxu1  ;;  %v8184_v0 = vadd.f32 %v6033_v21, %v14740_v10 }
 0x6e7   :  { %v9079_v38 = vpop.eup %9078  ;;  %7066 = vst [vmem:[%s15081_s7 + $0x360] sm:$0xff] %v9077_v61  ;;  %9098 = vpow2.f32 %v7368_v19  ;;  %v6035_v1 = vpop.f32.mrb[105].mxu0  ;;  %v7375_v57 = vmul.f32 -1.442695, %v6240_v3  ;;  %v6154_v19 = vadd.f32 %v14660_v16, %v14709_v35 }
 0x6e8   :  { %v9081_v53 = vpop.eup %9080  ;;  %v6626_v22 = vadd.f32 1.0, %v9079_v38  ;;  %9100 = vpow2.f32 %v7367_v26  ;;  %v6242_v56 = vpop.f32.mrb[138].mxu1  ;;  %v7373_v18 = vmul.f32 -1.442695, %v8184_v0  ;;  %v8185_v63 = vadd.f32 %v6035_v1, %v14748_v45 }
 0x6e9   :  { %v9083_v34 = vpop.eup %9082  ;;  %v6628_v23 = vadd.f32 1.0, %v9081_v53  ;;  %v6037_v32 = vpop.f32.mrb[106].mxu0  ;;  %v6243_v31 = vadd.f32 %v6242_v56, %v6146_v59 }
 0x6ea   :  { %v9085_v6 = vpop.eup %9084  ;;  %9102 = vrcp.f32 %v6626_v22  ;;  %v6627_v20 = vadd.f32 1.0, %v9083_v34  ;;  %v6244_v44 = vpop.f32.mrb[139].mxu1  ;;  %v8186_v29 = vadd.f32 %v6037_v32, %v14740_v10  ;;  %v7374_v61 = vmul.f32 -1.442695, %v8185_v63 }
 0x6eb   :  { %v9087_v54 = vpop.eup %9086  ;;  %9104 = vrcp.f32 %v6628_v23  ;;  %v6633_v11 = vadd.f32 1.0, %v9085_v6  ;;  %v6039_v42 = vpop.f32.mrb[107].mxu0  ;;  %v7382_v7 = vmul.f32 -1.442695, %v6243_v31  ;;  %v6159_v34 = vadd.f32 %v14665_v9, %v14709_v35 }
 0x6ec   :  { %v9089_v8 = vpop.eup %9088  ;;  %9106 = vrcp.f32 %v6627_v20  ;;  %v6635_v36 = vadd.f32 1.0, %v9087_v54  ;;  %v6247_v17 = vpop.f32.mrb[140].mxu1  ;;  %v8187_v26 = vadd.f32 %v6039_v42, %v14748_v45  ;;  %v7380_v16 = vmul.f32 -1.442695, %v8186_v29 }
 0x6ed   :  { %9108 = vrcp.f32 %v6633_v11  ;;  %v6634_v47 = vadd.f32 1.0, %v9089_v8  ;;  %v9091_v51 = vpop.eup %9090  ;;  %v6043_v5 = vpop.f32.mrb[108].mxu0  ;;  %v6248_v15 = vadd.f32 %v6247_v17, %v6151_v58  ;;  %v6162_v6 = vadd.f32 %v14667_v30, %v14709_v35 }
 0x6ee   :  { %9110 = vrcp.f32 %v6635_v36  ;;  %v9093_v24 = vpop.eup %9092  ;;  %v6642_v43 = vadd.f32 1.0, %v9091_v51  ;;  %v6249_v52 = vpop.f32.mrb[141].mxu1  ;;  %v8188_v53 = vadd.f32 %v6043_v5, %v14740_v10  ;;  %v7381_v0 = vmul.f32 -1.442695, %v8187_v26 }
 0x6ef   :  { %9112 = vrcp.f32 %v6634_v47  ;;  %v9095_v41 = vpop.eup %9094  ;;  %v6640_v50 = vadd.f32 1.0, %v9093_v24  ;;  %v6045_v33 = vpop.f32.mrb[109].mxu0  ;;  %v7389_v36 = vmul.f32 -1.442695, %v6248_v15  ;;  %v6170_v26 = vadd.f32 %v14681_v4, %v14709_v35 }
 0x6f0   :  { %9114 = vpow2.f32 %v7373_v18  ;;  %v9097_v48 = vpop.eup %9096  ;;  %v6641_v27 = vadd.f32 1.0, %v9095_v41  ;;  %v6250_v60 = vpop.f32.mrb[142].mxu1  ;;  %v8189_v1 = vadd.f32 %v6045_v33, %v14748_v45  ;;  %v7387_v9 = vmul.f32 -1.442695, %v8188_v53 }
 0x6f1   :  { %9116 = vrcp.f32 %v6642_v43  ;;  %v9099_v25 = vpop.eup %9098  ;;  %v6647_v37 = vadd.f32 1.0, %v9097_v48  ;;  %v6047_v2 = vpop.f32.mrb[110].mxu0  ;;  %v6251_v22 = vadd.f32 %v6250_v60, %v6154_v19 }
 0x6f2   :  { %9118 = vrcp.f32 %v6640_v50  ;;  %v6252_v40 = vpop.f32.mrb[143].mxu1  ;;  %v9101_v28 = vpop.eup %9100  ;;  %v6649_v46 = vadd.f32 1.0, %v9099_v25  ;;  %v8190_v32 = vadd.f32 %v6047_v2, %v14740_v10  ;;  %v7388_v43 = vmul.f32 -1.442695, %v8189_v1 }
 0x6f3   :  { %9120 = vrcp.f32 %v6641_v27  ;;  %v6049_v49 = vpop.f32.mrb[111].mxu0  ;;  %v6648_v12 = vadd.f32 1.0, %v9101_v28  ;;  %v7396_v15 = vmul.f32 -1.442695, %v6251_v22  ;;  %v6167_v27 = vadd.f32 %v14671_v55, %v14709_v35 }
 0x6f4   :  { %v9103_v38 = vpop.eup %9102  ;;  %9122 = vrcp.f32 %v6647_v37  ;;  %v6255_v56 = vpop.f32.mrb[144].mxu1  ;;  %v8191_v18 = vadd.f32 %v6049_v49, %v14748_v45  ;;  %v7394_v50 = vmul.f32 -1.442695, %v8190_v32 }
 0x6f5   :  { %v9105_v21 = vpop.eup %9104  ;;  %6962 = vst [vmem:[%s15081_s7 + $0x20] sm:$0xff] %v9103_v38  ;;  %9124 = vrcp.f32 %v6649_v46  ;;  %v6053_v59 = vpop.f32.mrb[112].mxu0  ;;  %v14832_v44 = vadd.f32 %v6255_v56, %v6159_v34 }
 0x6f6   :  { %v9107_v3 = vpop.eup %9106  ;;  %6964 = vst.msk [vmem:[%s15081_s7 + $0x30] sm:$0xff] %vm555_vm0, %v9105_v21  ;;  %9126 = vrcp.f32 %v6648_v12  ;;  %v6257_v54 = vpop.f32.mrb[145].mxu1  ;;  %v8192_v63 = vadd.f32 %v6053_v59, %v14740_v10  ;;  %v7395_v48 = vmul.f32 -1.442695, %v8191_v18 }
 0x6f7   :  { %v9109_v23 = vpop.eup %9108  ;;  %6963 = vst [vmem:[%s15081_s7 + $0x28] sm:$0xff] %v9107_v3  ;;  %9128 = vpow2.f32 %v7375_v57  ;;  %v14838_v30 = vpop.f32.mrb[113].mxu0 }
 0x6f8   :  { %v9111_v20 = vpop.eup %9110  ;;  %6969 = vst [vmem:[%s15081_s7 + $0x58] sm:$0xff] %v9109_v23  ;;  %9130 = vpow2.f32 %v7374_v61  ;;  %v6258_v42 = vpop.f32.mrb[146].mxu1  ;;  %v7401_v33 = vmul.f32 -1.442695, %v8192_v63  ;;  %v8193_v1 = vadd.f32 %v14838_v30, %v14748_v45 }
 0x6f9   :  { %v9113_v11 = vpop.eup %9112  ;;  %6971 = vst.msk [vmem:[%s15081_s7 + $0x68] sm:$0xff] %vm555_vm0, %v9111_v20  ;;  %9132 = vpow2.f32 %v7380_v16  ;;  %v14844_v31 = vpop.f32.mrb[114].mxu0  ;;  %v14846_v47 = vadd.f32 %v6258_v42, %v6162_v6 }
 0x6fa   :  { %v9115_v8 = vpop.eup %9114  ;;  %6970 = vst [vmem:[%s15081_s7 + $0x60] sm:$0xff] %v9113_v11  ;;  %9134 = vpow2.f32 %v7382_v7  ;;  %v6260_v51 = vpop.f32.mrb[147].mxu1 }
 0x6fb   :  { %v9117_v58 = vpop.eup %9116  ;;  %v6654_v24 = vadd.f32 1.0, %v9115_v8  ;;  %9136 = vpow2.f32 %v7381_v0  ;;  %v14849_v17 = vpop.f32.mrb[115].mxu0  ;;  %v7403_v0 = vmul.f32 -1.442695, %v14832_v44 }
 0x6fc   :  { %v9119_v41 = vpop.eup %9118  ;;  %6978 = vst.msk [vmem:[%s15081_s7 + $0xa0] sm:$0xff] %vm555_vm0, %v9117_v58  ;;  %9138 = vpow2.f32 %v7387_v9  ;;  %v6263_v60 = vpop.f32.mrb[148].mxu1 }
 0x6fd   :  { %v9121_v5 = vpop.eup %9120  ;;  %6976 = vst [vmem:[%s15081_s7 + $0x90] sm:$0xff] %v9119_v41  ;;  %9140 = vrcp.f32 %v6654_v24  ;;  %v14870_v37 = vpop.f32.mrb[116].mxu0  ;;  %v14872_v57 = vadd.f32 %v6263_v60, %v6167_v27 }
 0x6fe   :  { %v9123_v52 = vpop.eup %9122  ;;  %6977 = vst [vmem:[%s15081_s7 + $0x98] sm:$0xff] %v9121_v5  ;;  %9142 = vpow2.f32 %v7389_v36  ;;  %v6265_v55 = vpop.f32.mrb[149].mxu1  ;;  %v8194_v36 = vadd.f32 %v14844_v31, %v14740_v10  ;;  %v8196_v27 = vadd.f32 %v14870_v37, %v14740_v10 }
 0x6ff   :  { %v9125_v29 = vpop.eup %9124  ;;  %6983 = vst [vmem:[%s15081_s7 + $0xc8] sm:$0xff] %v9123_v52  ;;  %9144 = vpow2.f32 %v7388_v43  ;;  %v14877_v19 = vpop.f32.mrb[117].mxu0  ;;  %v7402_v43 = vmul.f32 -1.442695, %v8193_v1 }
 0x700   :  { %v9127_v25 = vpop.eup %9126  ;;  %6985 = vst.msk [vmem:[%s15081_s7 + $0xd8] sm:$0xff] %vm555_vm0, %v9125_v29  ;;  %9146 = vpow2.f32 %v7394_v50  ;;  %v6266_v40 = vpop.f32.mrb[150].mxu1 }
 0x701   :  { %v9129_v2 = vpop.eup %9128  ;;  %6984 = vst [vmem:[%s15081_s7 + $0xd0] sm:$0xff] %v9127_v25  ;;  %9148 = vpow2.f32 %v7396_v15  ;;  %v14879_v61 = vpop.f32.mrb[118].mxu0  ;;  %v14885_v16 = vadd.f32 %v6266_v40, %v6170_v26  ;;  %v8195_v15 = vadd.f32 %v14849_v17, %v14748_v45  ;;  %v7408_v25 = vmul.f32 -1.442695, %v8194_v36 }
 0x702   :  { %v9131_v28 = vpop.eup %9130  ;;  %v6656_v46 = vadd.f32 1.0, %v9129_v2  ;;  %9150 = vpow2.f32 %v7395_v48  ;;  %v6268_v49 = vpop.f32.mrb[151].mxu1  ;;  %v8197_v40 = vadd.f32 %v14877_v19, %v14748_v45 }
 0x703   :  { %v9133_v38 = vpop.eup %9132  ;;  %v6655_v12 = vadd.f32 1.0, %v9131_v28  ;;  %9152 = vpow2.f32 %v7401_v33  ;;  %v14883_v53 = vpop.f32.mrb[119].mxu0  ;;  %v7409_v37 = vmul.f32 -1.442695, %v8195_v15 }
 0x704   :  { %v9135_v22 = vpop.eup %9134  ;;  %9154 = vrcp.f32 %v6656_v46  ;;  %v6661_v21 = vadd.f32 1.0, %v9133_v38  ;;  %v6271_v56 = vpop.f32.mrb[152].mxu1  ;;  %v8198_v38 = vadd.f32 %v14879_v61, %v14740_v10 }
 0x705   :  { %v9137_v3 = vpop.eup %9136  ;;  %9156 = vrcp.f32 %v6655_v12  ;;  %v6663_v7 = vadd.f32 1.0, %v9135_v22  ;;  %v6073_v20 = vpop.f32.mrb[120].mxu0  ;;  %v14894_v9 = vadd.f32 %v6271_v56, %v14720_v39 }
 0x706   :  { %v9139_v34 = vpop.eup %9138  ;;  %9158 = vrcp.f32 %v6661_v21  ;;  %v6662_v23 = vadd.f32 1.0, %v9137_v3  ;;  %v6273_v32 = vpop.f32.mrb[153].mxu1  ;;  %v14897_v54 = vadd.f32 %v6073_v20, %v14740_v10  ;;  %v7422_v20 = vmul.f32 -1.442695, %v8198_v38 }
 0x707   :  { %v9141_v4 = vpop.eup %9140  ;;  %9160 = vrcp.f32 %v6663_v7  ;;  %v6668_v35 = vadd.f32 1.0, %v9139_v34  ;;  %v6075_v11 = vpop.f32.mrb[121].mxu0 }
 0x708   :  { %v9143_v6 = vpop.eup %9142  ;;  %6990 = vst [vmem:[%s15081_s7 + $0x100] sm:$0xff] %v9141_v4  ;;  %9162 = vrcp.f32 %v6662_v23  ;;  %v6274_v30 = vpop.f32.mrb[154].mxu1  ;;  %v14902_v18 = vadd.f32 %v6075_v11, %v14748_v45 }
 0x709   :  { %v9145_v59 = vpop.eup %9144  ;;  %9164 = vrcp.f32 %v6668_v35  ;;  %v6670_v44 = vadd.f32 1.0, %v9143_v6  ;;  %v6077_v39 = vpop.f32.mrb[122].mxu0  ;;  %v14910_v31 = vadd.f32 %v6274_v30, %v14729_v62  ;;  %v7410_v62 = vmul.f32 -1.442695, %v14846_v47 }
 0x70a   :  { %v9147_v42 = vpop.eup %9146  ;;  %v6669_v8 = vadd.f32 1.0, %v9145_v59  ;;  %9166 = vpow2.f32 %v7403_v0  ;;  %v6276_v51 = vpop.f32.mrb[155].mxu1  ;;  %v14905_v63 = vadd.f32 %v6077_v39, %v14740_v10  ;;  %v7415_v47 = vmul.f32 -1.442695, %v8196_v27 }
 0x70b   :  { %v9149_v58 = vpop.eup %9148  ;;  %9168 = vrcp.f32 %v6670_v44  ;;  %v6675_v24 = vadd.f32 1.0, %v9147_v42  ;;  %v6079_v41 = vpop.f32.mrb[123].mxu0  ;;  %v8199_v0 = vadd.f32 %v14883_v53, %v14748_v45  ;;  %v7429_v44 = vmul.f32 -1.442695, %v14897_v54 }
 0x70c   :  { %v9151_v50 = vpop.eup %9150  ;;  %9170 = vrcp.f32 %v6669_v8  ;;  %v6677_v5 = vadd.f32 1.0, %v9149_v58  ;;  %v14915_v29 = vadd.f32 %v6079_v41, %v14748_v45  ;;  %v6279_v17 = vpop.f32.mrb[156].mxu1 }
 0x70d   :  { %v9153_v52 = vpop.eup %9152  ;;  %9172 = vrcp.f32 %v6675_v24  ;;  %v6676_v48 = vadd.f32 1.0, %v9151_v50  ;;  %v6083_v28 = vpop.f32.mrb[124].mxu0  ;;  %v14928_v46 = vadd.f32 %v6279_v17, %v14737_v14  ;;  %v7417_v14 = vmul.f32 -1.442695, %v14872_v57 }
 0x70e   :  { %v9155_v33 = vpop.eup %9154  ;;  %9174 = vrcp.f32 %v6677_v5  ;;  %v6682_v60 = vadd.f32 1.0, %v9153_v52  ;;  %v6281_v26 = vpop.f32.mrb[157].mxu1  ;;  %v14936_v12 = vadd.f32 %v6083_v28, %v14740_v10  ;;  %v7430_v50 = vmul.f32 -1.442695, %v14902_v18 }
 0x70f   :  { %v9157_v55 = vpop.eup %9156  ;;  %6992 = vst.msk [vmem:[%s15081_s7 + $0x110] sm:$0xff] %vm555_vm0, %v9155_v33  ;;  %9176 = vrcp.f32 %v6676_v48  ;;  %v6085_v22 = vpop.f32.mrb[125].mxu0  ;;  %v7438_v26 = vmul.f32 -1.442695, %v14910_v31  ;;  %v7445_v31 = vmul.f32 -1.442695, %v14928_v46 }
 0x710   :  { %v9159_v2 = vpop.eup %9158  ;;  %6991 = vst [vmem:[%s15081_s7 + $0x108] sm:$0xff] %v9157_v55  ;;  %9178 = vrcp.f32 %v6682_v60  ;;  %v6282_v19 = vpop.f32.mrb[158].mxu1  ;;  %v14944_v3 = vadd.f32 %v6085_v22, %v14748_v45 }
 0x711   :  { %v9161_v49 = vpop.eup %9160  ;;  %6997 = vst [vmem:[%s15081_s7 + $0x138] sm:$0xff] %v9159_v2  ;;  %9180 = vpow2.f32 %v7402_v43  ;;  %v6087_v7 = vpop.f32.mrb[126].mxu0  ;;  %v14947_v61 = vadd.f32 %v6282_v19, %v14743_v13  ;;  %v7416_v13 = vmul.f32 -1.442695, %v8197_v40 }
 0x712   :  { %v9163_v21 = vpop.eup %9162  ;;  %6999 = vst.msk [vmem:[%s15081_s7 + $0x148] sm:$0xff] %vm555_vm0, %v9161_v49  ;;  %9182 = vpow2.f32 %v7408_v25  ;;  %v6284_v34 = vpop.f32.mrb[159].mxu1  ;;  %v14955_v4 = vadd.f32 %v6087_v7, %v14740_v10  ;;  %v7424_v10 = vmul.f32 -1.442695, %v14885_v16  ;;  %v7431_v16 = vmul.f32 -1.442695, %v14894_v9 }
 0x713   :  { %v9165_v23 = vpop.eup %9164  ;;  %6998 = vst [vmem:[%s15081_s7 + $0x140] sm:$0xff] %v9163_v21  ;;  %9184 = vpow2.f32 %v7410_v62  ;;  %v6089_v57 = vpop.f32.mrb[127].mxu0 }
 0x714   :  { %v9167_v35 = vpop.eup %9166  ;;  %7004 = vst [vmem:[%s15081_s7 + $0x170] sm:$0xff] %v9165_v23  ;;  %9186 = vpow2.f32 %v7409_v37  ;;  %v14961_v1 = vadd.f32 %v6089_v57, %v14748_v45  ;;  %v7423_v45 = vmul.f32 -1.442695, %v8199_v0  ;;  %v7436_v37 = vmul.f32 -1.442695, %v14905_v63 }
 0x715   :  { %v9169_v56 = vpop.eup %9168  ;;  %v6684_v6 = vadd.f32 1.0, %v9167_v35  ;;  %9188 = vpow2.f32 %v7415_v47  ;;  %v7437_v47 = vmul.f32 -1.442695, %v14915_v29  ;;  %v7443_v63 = vmul.f32 -1.442695, %v14936_v12 }
 0x716   :  { %v9171_v32 = vpop.eup %9170  ;;  %7006 = vst.msk [vmem:[%s15081_s7 + $0x180] sm:$0xff] %vm555_vm0, %v9169_v56  ;;  %9190 = vpow2.f32 %v7417_v14  ;;  %v7444_v29 = vmul.f32 -1.442695, %v14944_v3  ;;  %v7450_v46 = vmul.f32 -1.442695, %v14955_v4 }
 0x717   :  { %v9173_v53 = vpop.eup %9172  ;;  %7005 = vst [vmem:[%s15081_s7 + $0x178] sm:$0xff] %v9171_v32  ;;  %9192 = vrcp.f32 %v6684_v6  ;;  %v7452_v3 = vmul.f32 -1.442695, %v14947_v61  ;;  %v7451_v23 = vmul.f32 -1.442695, %v14961_v1 }
 0x718   :  { %v9175_v59 = vpop.eup %9174  ;;  %7011 = vst [vmem:[%s15081_s7 + $0x1a8] sm:$0xff] %v9173_v53  ;;  %9194 = vpow2.f32 %v7416_v13 }
 0x719   :  { %v9177_v11 = vpop.eup %9176  ;;  %7013 = vst.msk [vmem:[%s15081_s7 + $0x1b8] sm:$0xff] %vm555_vm0, %v9175_v59  ;;  %9196 = vpow2.f32 %v7422_v20 }
 0x71a   :  { %v9179_v30 = vpop.eup %9178  ;;  %7012 = vst [vmem:[%s15081_s7 + $0x1b0] sm:$0xff] %v9177_v11  ;;  %9198 = vpow2.f32 %v7424_v10 }
 0x71b   :  { %v9181_v42 = vpop.eup %9180  ;;  %7018 = vst [vmem:[%s15081_s7 + $0x1e0] sm:$0xff] %v9179_v30  ;;  %9200 = vpow2.f32 %v7423_v45 }
 0x71c   :  { %v9183_v54 = vpop.eup %9182  ;;  %v6683_v8 = vadd.f32 1.0, %v9181_v42  ;;  %9202 = vpow2.f32 %v7429_v44 }
 0x71d   :  { %v9185_v36 = vpop.eup %9184  ;;  %v6689_v39 = vadd.f32 1.0, %v9183_v54  ;;  %9204 = vpow2.f32 %v7431_v16 }
 0x71e   :  { %v9187_v51 = vpop.eup %9186  ;;  %9206 = vrcp.f32 %v6683_v8  ;;  %v6691_v9 = vadd.f32 1.0, %v9185_v36 }
 0x71f   :  { %v9189_v58 = vpop.eup %9188  ;;  %9208 = vrcp.f32 %v6689_v39  ;;  %v6690_v24 = vadd.f32 1.0, %v9187_v51 }
 0x720   :  { %v9191_v43 = vpop.eup %9190  ;;  %9210 = vrcp.f32 %v6691_v9  ;;  %v6696_v41 = vadd.f32 1.0, %v9189_v58 }
 0x721   :  { %v9193_v5 = vpop.eup %9192  ;;  %9212 = vrcp.f32 %v6690_v24  ;;  %v6698_v15 = vadd.f32 1.0, %v9191_v43 }
 0x722   :  { %v9195_v52 = vpop.eup %9194  ;;  %7020 = vst.msk [vmem:[%s15081_s7 + $0x1f0] sm:$0xff] %vm555_vm0, %v9193_v5  ;;  %9214 = vrcp.f32 %v6696_v41 }
 0x723   :  { %v9197_v48 = vpop.eup %9196  ;;  %9216 = vrcp.f32 %v6698_v15  ;;  %v6697_v27 = vadd.f32 1.0, %v9195_v52 }
 0x724   :  { %v9199_v33 = vpop.eup %9198  ;;  %v6703_v60 = vadd.f32 1.0, %v9197_v48  ;;  %9218 = vpow2.f32 %v7430_v50 }
 0x725   :  { %v9201_v25 = vpop.eup %9200  ;;  %9220 = vrcp.f32 %v6697_v27  ;;  %v6705_v55 = vadd.f32 1.0, %v9199_v33 }
 0x726   :  { %v9203_v18 = vpop.eup %9202  ;;  %9222 = vrcp.f32 %v6703_v60  ;;  %v6704_v62 = vadd.f32 1.0, %v9201_v25 }
 0x727   :  { %v9205_v17 = vpop.eup %9204  ;;  %9224 = vrcp.f32 %v6705_v55  ;;  %v6710_v2 = vadd.f32 1.0, %v9203_v18 }
 0x728   :  { %v9207_v40 = vpop.eup %9206  ;;  %9226 = vrcp.f32 %v6704_v62  ;;  %v6712_v28 = vadd.f32 1.0, %v9205_v17 }
 0x729   :  { %v9209_v49 = vpop.eup %9208  ;;  %7019 = vst [vmem:[%s15081_s7 + $0x1e8] sm:$0xff] %v9207_v40  ;;  %9228 = vrcp.f32 %v6710_v2 }
 0x72a   :  { %v9211_v38 = vpop.eup %9210  ;;  %7025 = vst [vmem:[%s15081_s7 + $0x218] sm:$0xff] %v9209_v49  ;;  %9230 = vrcp.f32 %v6712_v28 }
 0x72b   :  { %v9213_v22 = vpop.eup %9212  ;;  %7027 = vst.msk [vmem:[%s15081_s7 + $0x228] sm:$0xff] %vm555_vm0, %v9211_v38  ;;  %9232 = vpow2.f32 %v7436_v37 }
 0x72c   :  { %v9215_v19 = vpop.eup %9214  ;;  %7026 = vst [vmem:[%s15081_s7 + $0x220] sm:$0xff] %v9213_v22  ;;  %9234 = vpow2.f32 %v7438_v26 }
 0x72d   :  { %v9217_v21 = vpop.eup %9216  ;;  %7032 = vst [vmem:[%s15081_s7 + $0x250] sm:$0xff] %v9215_v19  ;;  %9236 = vpow2.f32 %v7437_v47 }
 0x72e   :  { %v9219_v12 = vpop.eup %9218  ;;  %7034 = vst.msk [vmem:[%s15081_s7 + $0x260] sm:$0xff] %vm555_vm0, %v9217_v21  ;;  %9238 = vpow2.f32 %v7443_v63 }
 0x72f   :  { %v9221_v14 = vpop.eup %9220  ;;  %v6711_v7 = vadd.f32 1.0, %v9219_v12  ;;  %9240 = vpow2.f32 %v7445_v31 }
 0x730   :  { %v9223_v34 = vpop.eup %9222  ;;  %7033 = vst [vmem:[%s15081_s7 + $0x258] sm:$0xff] %v9221_v14  ;;  %9242 = vpow2.f32 %v7444_v29 }
 0x731   :  { %v9225_v0 = vpop.eup %9224  ;;  %7039 = vst [vmem:[%s15081_s7 + $0x288] sm:$0xff] %v9223_v34  ;;  %9244 = vrcp.f32 %v6711_v7 }
 0x732   :  { %v9227_v4 = vpop.eup %9226  ;;  %7041 = vst.msk [vmem:[%s15081_s7 + $0x298] sm:$0xff] %vm555_vm0, %v9225_v0  ;;  %9246 = vpow2.f32 %v7450_v46 }
 0x733   :  { %v9229_v61 = vpop.eup %9228  ;;  %7040 = vst [vmem:[%s15081_s7 + $0x290] sm:$0xff] %v9227_v4  ;;  %9248 = vpow2.f32 %v7452_v3 }
 0x734   :  { %v9231_v57 = vpop.eup %9230  ;;  %7046 = vst [vmem:[%s15081_s7 + $0x2c0] sm:$0xff] %v9229_v61  ;;  %9250 = vpow2.f32 %v7451_v23 }
 0x735   :  { %v9233_v35 = vpop.eup %9232  ;;  %7048 = vst.msk [vmem:[%s15081_s7 + $0x2d0] sm:$0xff] %vm555_vm0, %v9231_v57 }
 0x736   :  { %v9235_v13 = vpop.eup %9234  ;;  %v6717_v1 = vadd.f32 1.0, %v9233_v35 }
 0x737   :  { %v9237_v56 = vpop.eup %9236  ;;  %v6719_v6 = vadd.f32 1.0, %v9235_v13 }
 0x738   :  { %v9239_v20 = vpop.eup %9238  ;;  %9252 = vrcp.f32 %v6717_v1  ;;  %v6718_v32 = vadd.f32 1.0, %v9237_v56 }
 0x739   :  { %v9241_v10 = vpop.eup %9240  ;;  %9254 = vrcp.f32 %v6719_v6  ;;  %v6724_v53 = vadd.f32 1.0, %v9239_v20 }
 0x73a   :  { %v9243_v45 = vpop.eup %9242  ;;  %9256 = vrcp.f32 %v6718_v32  ;;  %v6726_v59 = vadd.f32 1.0, %v9241_v10 }
 0x73b   :  { %v9245_v44 = vpop.eup %9244  ;;  %9258 = vrcp.f32 %v6724_v53  ;;  %v6725_v11 = vadd.f32 1.0, %v9243_v45 }
 0x73c   :  { %v9247_v16 = vpop.eup %9246  ;;  %7047 = vst [vmem:[%s15081_s7 + $0x2c8] sm:$0xff] %v9245_v44  ;;  %9260 = vrcp.f32 %v6726_v59 }
 0x73d   :  { %v9249_v30 = vpop.eup %9248  ;;  %9262 = vrcp.f32 %v6725_v11  ;;  %v6731_v42 = vadd.f32 1.0, %v9247_v16 }
 0x73e   :  { %v9251_v54 = vpop.eup %9250  ;;  %v6733_v8 = vadd.f32 1.0, %v9249_v30 }
 0x73f   :  { %9264 = vrcp.f32 %v6731_v42  ;;  %v6732_v36 = vadd.f32 1.0, %v9251_v54 }
 0x740   :  { %9266 = vrcp.f32 %v6733_v8 }
 0x741   :  { %9268 = vrcp.f32 %v6732_v36 }
 0x742   :  { %v9253_v39 = vpop.eup %9252 }
 0x743   :  { %v9255_v51 = vpop.eup %9254  ;;  %7053 = vst [vmem:[%s15081_s7 + $0x2f8] sm:$0xff] %v9253_v39 }
 0x744   :  { %v9257_v9 = vpop.eup %9256  ;;  %7055 = vst.msk [vmem:[%s15081_s7 + $0x308] sm:$0xff] %vm555_vm0, %v9255_v51 }
 0x745   :  { %v9259_v58 = vpop.eup %9258  ;;  %7054 = vst [vmem:[%s15081_s7 + $0x300] sm:$0xff] %v9257_v9 }
 0x746   :  { %v9261_v24 = vpop.eup %9260  ;;  %7060 = vst [vmem:[%s15081_s7 + $0x330] sm:$0xff] %v9259_v58 }
 0x747   :  { %v9263_v43 = vpop.eup %9262  ;;  %7062 = vst.msk [vmem:[%s15081_s7 + $0x340] sm:$0xff] %vm555_vm0, %v9261_v24 }
 0x748   :  { %7061 = vst [vmem:[%s15081_s7 + $0x338] sm:$0xff] %v9263_v43 }
 0x749   :  { %v9265_v41 = vpop.eup %9264 }
 0x74a   :  { %v9267_v50 = vpop.eup %9266  ;;  %7067 = vst [vmem:[%s15081_s7 + $0x368] sm:$0xff] %v9265_v41 }
 0x74b   :  { %v9269_v5 = vpop.eup %9268  ;;  %7069 = vst.msk [vmem:[%s15081_s7 + $0x378] sm:$0xff] %vm555_vm0, %v9267_v50 }
 0x74c   :  { %7068 = vst [vmem:[%s15081_s7 + $0x370] sm:$0xff] %v9269_v5 }

</bundles_post_ra>
